<compile_context>
chip_gen: v7x
topology: tpu7x:2x2x1
jax: 0.10.0
libtpu: 0.0.40
codegen_flags: <defaults>
</compile_context>

<pallas_src>
from functools import partial

import jax
import jax.numpy as jnp
from jax import lax
from jax.experimental import pallas as pl
from jax.experimental.pallas import tpu as pltpu

F32 = jnp.float32
BF16 = jnp.bfloat16
APRON = 56          # zero rows appended below h1; max conv2 row shift = 4*12+4 = 52


# ----------------------------------------------------------------------------
# Fused Pallas kernel (one grid step per batch tile of TB images)
# ----------------------------------------------------------------------------

def _cnn_kernel(patches_ref, w1_ref, w2_ref, wfc1_ref, wfc2_ref, bias_ref,
                out_ref, h1_scr, *, tb):
    """Fused CNN forward for one batch tile.

    patches_ref: (4*tb*144, 32) bf16  conv1 im2col, rows (dh, dw, b, ph, pw)
    w1_ref:      (32, 128)      bf16  conv1 weight (K=25 padded, N=10 padded)
    w2_ref:      (512, 128)     bf16  conv2 weight, 32 tap blocks of (16, 128)
    wfc1_ref:    (512, 128)     bf16  fc1 weight, 16 position blocks of (32, 128)
    wfc2_ref:    (128, 128)     bf16  fc2 weight (K, N padded)
    bias_ref:    (8, 128)       f32   rows 0..3 = conv1, conv2, fc1, fc2 biases
    out_ref:     (tb, 128)      f32   logits (first 10 lanes valid)
    h1_scr:      (tb*144+56, 128) bf16 pooled conv1 activations + zero apron
    """
    R = tb * 144                                   # rows of the 12x12 pooled grid

    # ---- conv1: ONE (4R,32)x(32,128) matmul; 2x2 max-pool = max over the 4
    # ---- leading row blocks (dh, dw branches); bias + relu in f32 ------------
    y_all = jnp.dot(patches_ref[...], w1_ref[...],
                    preferred_element_type=F32)                   # (4R, 128)
    pooled = jnp.maximum(jnp.maximum(y_all[0:R], y_all[R:2 * R]),
                         jnp.maximum(y_all[2 * R:3 * R], y_all[3 * R:4 * R]))
    h1 = jnp.maximum(pooled + bias_ref[0:1, :], 0.0).astype(BF16)  # (R, 128)

    # Stash h1 (bf16) plus a zero apron so shifted conv2 reads stay in-bounds.
    h1_scr[0:R, :] = h1
    h1_scr[R:R + APRON, :] = jnp.zeros((APRON, 128), BF16)

    # ---- conv2: 25 taps packed into MXU K (2 matmuls, K=256 each) ------------
    # Tap t = kh*5+kw reads h1 shifted by s = kh*12+kw; lane group [j*16:(j+1)*16]
    # of the packed LHS holds the 16 (padded) channels of tap j of the group.
    def tap_block(t):
        kh, kw = divmod(t, 5)
        s = kh * 12 + kw
        return h1_scr[s:s + R, 0:16]                               # (R, 16) bf16

    lhs0 = jnp.concatenate([tap_block(t) for t in range(16)], axis=-1)  # (R, 256)
    lhs1 = jnp.concatenate([tap_block(t) for t in range(16, 25)]
                           + [jnp.zeros((R, 7 * 16), BF16)], axis=-1)   # (R, 256)
    y2 = (jnp.dot(lhs0, w2_ref[0:256, :], preferred_element_type=F32)
          + jnp.dot(lhs1, w2_ref[256:512, :], preferred_element_type=F32))  # (R, 128)

    # Only rows with oh<8, ow<8 in the 12x12 grid are valid; the pooling below
    # reads exactly those rows (keep row stride 12 and APRON>=52 invariant).

    # ---- 2x2 max-pool + bias + relu; pack 16 positions into lanes for fc1 ----
    # TODO(synk): Dropout2d / F.dropout are identity (eval-mode forward).
    y2g = y2.reshape(tb, 144, 128)                 # 144 % 8 == 0 -> clean split
    b2 = jnp.broadcast_to(bias_ref[1:2, :], (tb, 128))   # hoisted broadcast
    parts = []
    for ph in range(4):
        for pw in range(4):
            base = ph * 24 + pw * 2                # (2*ph)*12 + 2*pw
            a0 = y2g[:, base:base + 2, :]          # (tb, 2, 128) dh = 0
            a1 = y2g[:, base + 12:base + 14, :]    # (tb, 2, 128) dh = 1
            m = jnp.max(jnp.maximum(a0, a1), axis=1)          # (tb, 128) f32
            h2 = jnp.maximum(m + b2, 0.0)                     # relu(pool + b2)
            parts.append(h2[:, 0:32].astype(BF16))            # (tb, 32)
    h2_packed = jnp.concatenate(parts, axis=-1)               # (tb, 512) bf16

    # ---- fc1 (single K=512 dot) + relu, then fc2 -----------------------------
    z1 = jnp.dot(h2_packed, wfc1_ref[...], preferred_element_type=F32)  # (tb, 128)
    z1 = jnp.maximum(z1 + bias_ref[2:3, :], 0.0)
    out = jnp.dot(z1.astype(BF16), wfc2_ref[...],
                  preferred_element_type=F32) + bias_ref[3:4, :]
    out_ref[...] = out.astype(out_ref.dtype)


# ----------------------------------------------------------------------------
# Wrapper: input/weight re-layout (XLA glue), pallas_call, output slice
# ----------------------------------------------------------------------------

def _conv1_patches(x, tb, dtype):
    """(B,1,28,28) -> (4*B*144, 32) im2col rows ordered (tile, dh, dw, b, ph, pw)."""
    B = x.shape[0]
    nt = B // tb
    x2 = x[:, 0]                                            # (B, 28, 28)
    cols = [x2[:, kh:kh + 24, kw:kw + 24]
            for kh in range(5) for kw in range(5)]          # 25 x (B, 24, 24)
    p = jnp.stack(cols, axis=-1)                            # (B, 24, 24, 25)
    p = p.reshape(B, 12, 2, 12, 2, 25)                      # (b, ph, dh, pw, dw, k)
    p = p.transpose(2, 4, 0, 1, 3, 5)                       # (dh, dw, b, ph, pw, k)
    p = p.reshape(4, nt, tb, 144, 25)                       # (q, tile, b_loc, pos, k)
    p = p.transpose(1, 0, 2, 3, 4).reshape(4 * B * 144, 25)
    p = jnp.pad(p, ((0, 0), (0, 7)))                        # K 25 -> 32
    return p.astype(dtype)


def _prepare_params(params, dtype):
    # conv1: (10,1,5,5) -> (25,10) -> (32,128)
    w1 = params["w_conv1"].reshape(10, 25).T
    w1p = jnp.zeros((32, 128), F32).at[:25, :10].set(w1).astype(dtype)
    # conv2: (20,10,5,5) -> (kh,kw,cin,cout) -> 32 tap blocks of (16,128) -> (512,128)
    w2 = params["w_conv2"].transpose(2, 3, 1, 0).reshape(25, 10, 20)
    w2p = jnp.zeros((32, 16, 128), F32).at[:25, :10, :20].set(w2)
    w2p = w2p.reshape(512, 128).astype(dtype)
    # fc1: (50,320) -> (pos, cin, out) -> (16*32, 128)
    wf1 = params["w_fc1"].reshape(50, 20, 16).transpose(2, 1, 0)   # (16,20,50)
    wf1p = jnp.zeros((16, 32, 128), F32).at[:, :20, :50].set(wf1)
    wf1p = wf1p.reshape(512, 128).astype(dtype)
    # fc2: (10,50) -> (128,128)
    wf2p = jnp.zeros((128, 128), F32).at[:50, :10].set(params["w_fc2"].T).astype(dtype)
    # biases packed: rows 0..3 = conv1, conv2, fc1, fc2 (kept f32)
    bias = jnp.zeros((8, 128), F32)
    bias = bias.at[0, :10].set(params["b_conv1"])
    bias = bias.at[1, :20].set(params["b_conv2"])
    bias = bias.at[2, :50].set(params["b_fc1"])
    bias = bias.at[3, :10].set(params["b_fc2"])
    return w1p, w2p, wf1p, wf2p, bias


@partial(jax.jit, static_argnames=("tb",))
def forward(params, x_nchw, tb=None):
    B = x_nchw.shape[0]
    if tb is None:
        tb = B if B <= 8 else 8                     # batch tile (fits VMEM easily)
    nt = -(-B // tb)                                # cdiv
    Bp = nt * tb

    x = x_nchw.astype(F32)
    if Bp != B:
        x = jnp.pad(x, ((0, Bp - B), (0, 0), (0, 0), (0, 0)))

    w1p, w2p, wf1p, wf2p, bias = _prepare_params(params, BF16)
    patches = _conv1_patches(x, tb, BF16)

    out = pl.pallas_call(
        partial(_cnn_kernel, tb=tb),
        out_shape=jax.ShapeDtypeStruct((Bp, 128), F32),
        grid=(nt,),
        in_specs=[
            pl.BlockSpec((4 * tb * 144, 32), lambda i: (i, 0)),   # per-tile patches
            pl.BlockSpec((32, 128), lambda i: (0, 0)),            # weights resident
            pl.BlockSpec((512, 128), lambda i: (0, 0)),
            pl.BlockSpec((512, 128), lambda i: (0, 0)),
            pl.BlockSpec((128, 128), lambda i: (0, 0)),
            pl.BlockSpec((8, 128), lambda i: (0, 0)),
        ],
        out_specs=pl.BlockSpec((tb, 128), lambda i: (i, 0)),
        scratch_shapes=[
            pltpu.VMEM((tb * 144 + APRON, 128), BF16),            # h1 + zero apron
        ],
        compiler_params=pltpu.CompilerParams(
            dimension_semantics=("parallel",)),                   # megacore / pipelining
    )(patches, w1p, w2p, wf1p, wf2p, bias)

    return out[:B, :10]                                           # drop padding


# ----------------------------------------------------------------------------
# Parameter init (matches PyTorch: xavier_uniform weights, default bias init)
# ----------------------------------------------------------------------------

def init_params(key, input_size=1, n_classes=10, hidden=50):
    ks = jax.random.split(key, 8)

    def xavier_uniform(k, shape, fan_in, fan_out):
        bound = (6.0 / (fan_in + fan_out)) ** 0.5
        return jax.random.uniform(k, shape, F32, -bound, bound)

    def bias_uniform(k, shape, fan_in):
        bound = fan_in ** -0.5
        return jax.random.uniform(k, shape, F32, -bound, bound)

    p = {}
    p["w_conv1"] = xavier_uniform(ks[0], (10, input_size, 5, 5),
                                  input_size * 25, 10 * 25)
    p["b_conv1"] = bias_uniform(ks[1], (10,), input_size * 25)
    p["w_conv2"] = xavier_uniform(ks[2], (20, 10, 5, 5), 10 * 25, 20 * 25)
    p["b_conv2"] = bias_uniform(ks[3], (20,), 10 * 25)
    p["w_fc1"] = xavier_uniform(ks[4], (hidden, 320), 320, hidden)
    p["b_fc1"] = bias_uniform(ks[5], (hidden,), 320)
    p["w_fc2"] = xavier_uniform(ks[6], (n_classes, hidden), hidden, n_classes)
    p["b_fc2"] = bias_uniform(ks[7], (n_classes,), hidden)
    return p


# ----------------------------------------------------------------------------
# Pure-JAX reference (XLA ops only).  compute_dtype mirrors the kernel's
# matmul-input casts (bf16 inputs, f32 accumulation); f32 gives the exact ref.
# ----------------------------------------------------------------------------

def reference_forward(params, x, compute_dtype=jnp.float32):
    dn = ("NCHW", "OIHW", "NCHW")

    def conv(inp, w):
        return lax.conv_general_dilated(
            inp.astype(compute_dtype), w.astype(compute_dtype), (1, 1), "VALID",
            dimension_numbers=dn, preferred_element_type=F32)

    y = conv(x.astype(F32), params["w_conv1"]) + params["b_conv1"][None, :, None, None]
    y = lax.reduce_window(y, -jnp.inf, lax.max, (1, 1, 2, 2), (1, 1, 2, 2), "VALID")
    y = jnp.maximum(y, 0.0)
    y = conv(y, params["w_conv2"]) + params["b_conv2"][None, :, None, None]
    y = lax.reduce_window(y, -jnp.inf, lax.max, (1, 1, 2, 2), (1, 1, 2, 2), "VALID")
    y = jnp.maximum(y, 0.0)
    flat = y.reshape(y.shape[0], -1)                    # NCHW flatten = view(-1,320)
    z = jnp.dot(flat.astype(compute_dtype), params["w_fc1"].T.astype(compute_dtype),
                preferred_element_type=F32)
    z = jnp.maximum(z + params["b_fc1"], 0.0)
    out = jnp.dot(z.astype(compute_dtype), params["w_fc2"].T.astype(compute_dtype),
                  preferred_element_type=F32)
    return out + params["b_fc2"]


# ----------------------------------------------------------------------------
# Main
# ----------------------------------------------------------------------------

if __name__ == "__main__":
    key = jax.random.PRNGKey(0)
    k_param, k_input, k_input2 = jax.random.split(key, 3)

    params = init_params(k_param)
    # 20 * 4 * 4 = 320 flatten requires 28x28 spatial input, MNIST-style.
    x = jax.random.normal(k_input, (2, 1, 28, 28), dtype=jnp.float32)

    logits = jax.block_until_ready(forward(params, x))
    assert logits.shape == (2, 10), logits.shape
    assert logits.dtype == jnp.float32, logits.dtype

    ref_bf16 = jax.block_until_ready(reference_forward(params, x, jnp.bfloat16))
    ref_f32 = jax.block_until_ready(reference_forward(params, x, jnp.float32))
    err_bf16 = float(jnp.max(jnp.abs(logits - ref_bf16)))
    err_f32 = float(jnp.max(jnp.abs(logits - ref_f32)))
    print(f"max abs err vs bf16-input XLA reference: {err_bf16:.3e}")
    print(f"max abs err vs f32 XLA reference:        {err_f32:.3e}")
    assert err_bf16 < 1e-3, f"mismatch vs bf16-input reference: {err_bf16}"
    assert err_f32 < 5e-2, f"mismatch vs f32 reference: {err_f32}"

    # Exercise the batch-tiled grid path (grid=(2,), TB=8).
    x2 = jax.random.normal(k_input2, (16, 1, 28, 28), dtype=jnp.float32)
    logits2 = jax.block_until_ready(forward(params, x2))
    ref2 = jax.block_until_ready(reference_forward(params, x2, jnp.bfloat16))
    err2 = float(jnp.max(jnp.abs(logits2 - ref2)))
    print(f"batch=16 tiled grid: max abs err vs bf16 reference: {err2:.3e}")
    assert logits2.shape == (16, 10), logits2.shape
    assert err2 < 1e-3, f"tiled-grid mismatch vs bf16-input reference: {err2}"

    print("KERNEL_OK")
</pallas_src>

<mosaic_0001>
module attributes {stable_mosaic.version = 11 : i64} {
  func.func @_cnn_kernel(%arg0: i32, %arg1: memref<1152x32xbf16, #tpu.memory_space<vmem>>, %arg2: memref<32x128xbf16, #tpu.memory_space<vmem>>, %arg3: memref<512x128xbf16, #tpu.memory_space<vmem>>, %arg4: memref<512x128xbf16, #tpu.memory_space<vmem>>, %arg5: memref<128x128xbf16, #tpu.memory_space<vmem>>, %arg6: memref<8x128xf32, #tpu.memory_space<vmem>>, %arg7: memref<2x128xf32, #tpu.memory_space<vmem>>, %arg8: memref<344x128xbf16, #tpu.memory_space<vmem>>) attributes {dimension_semantics = [#tpu.dimension_semantics<parallel>], iteration_bounds = array<i64: 1>, scalar_prefetch = 0 : i64, scratch_operands = 1 : i64, tpu.core_type = #tpu.core_type<tc>, window_params = [{transform_indices = @transform_0, window_bounds = array<i64: 1152, 32>}, {pipeline_mode = #tpu.pipeline_mode<synchronous>, transform_indices = @transform_1, window_bounds = array<i64: 32, 128>}, {pipeline_mode = #tpu.pipeline_mode<synchronous>, transform_indices = @transform_2, window_bounds = array<i64: 512, 128>}, {pipeline_mode = #tpu.pipeline_mode<synchronous>, transform_indices = @transform_3, window_bounds = array<i64: 512, 128>}, {pipeline_mode = #tpu.pipeline_mode<synchronous>, transform_indices = @transform_4, window_bounds = array<i64: 128, 128>}, {pipeline_mode = #tpu.pipeline_mode<synchronous>, transform_indices = @transform_5, window_bounds = array<i64: 8, 128>}, {transform_indices = @transform_6, window_bounds = array<i64: 2, 128>}]} {
    %c0 = arith.constant 0 : index
    %c0_0 = arith.constant 0 : index
    %0 = vector.load %arg1[%c0, %c0_0] : memref<1152x32xbf16, #tpu.memory_space<vmem>>, vector<1152x32xbf16>
    %c0_1 = arith.constant 0 : index
    %c0_2 = arith.constant 0 : index
    %1 = vector.load %arg2[%c0_1, %c0_2] : memref<32x128xbf16, #tpu.memory_space<vmem>>, vector<32x128xbf16>
    %cst = arith.constant dense<0.000000e+00> : vector<1152x128xf32>
    %2 = tpu.matmul %0, %1, %cst {dimension_numbers = #tpu.dot_dimension_numbers<[1], [0], [0], [1], [0, 0, 1, 1], [], []>} : vector<1152x32xbf16>, vector<32x128xbf16>, vector<1152x128xf32> -> vector<1152x128xf32>
    %3 = vector.extract_strided_slice %2 {offsets = [0, 0], sizes = [288, 128], strides = [1, 1]} : vector<1152x128xf32> to vector<288x128xf32>
    %4 = vector.extract_strided_slice %2 {offsets = [288, 0], sizes = [288, 128], strides = [1, 1]} : vector<1152x128xf32> to vector<288x128xf32>
    %5 = arith.maximumf %3, %4 : vector<288x128xf32>
    %6 = vector.extract_strided_slice %2 {offsets = [576, 0], sizes = [288, 128], strides = [1, 1]} : vector<1152x128xf32> to vector<288x128xf32>
    %7 = vector.extract_strided_slice %2 {offsets = [864, 0], sizes = [288, 128], strides = [1, 1]} : vector<1152x128xf32> to vector<288x128xf32>
    %8 = arith.maximumf %6, %7 : vector<288x128xf32>
    %9 = arith.maximumf %5, %8 : vector<288x128xf32>
    %c0_3 = arith.constant 0 : index
    %c0_4 = arith.constant 0 : index
    %10 = vector.load %arg6[%c0_3, %c0_4] : memref<8x128xf32, #tpu.memory_space<vmem>>, vector<1x128xf32>
    %11 = vector.broadcast %10 : vector<1x128xf32> to vector<288x128xf32>
    %12 = arith.addf %9, %11 : vector<288x128xf32>
    %cst_5 = arith.constant 0.000000e+00 : f32
    %13 = vector.broadcast %cst_5 : f32 to vector<288x128xf32>
    %14 = arith.maximumf %12, %13 : vector<288x128xf32>
    %15 = arith.truncf %14 : vector<288x128xf32> to vector<288x128xbf16>
    %c0_6 = arith.constant 0 : index
    %c0_7 = arith.constant 0 : index
    %16 = vector.load %arg8[%c0_6, %c0_7] : memref<344x128xbf16, #tpu.memory_space<vmem>>, vector<288x128xbf16>
    tpu.vector_store %arg8[%c0_6, %c0_7], %15 {strides = array<i32>} : memref<344x128xbf16, #tpu.memory_space<vmem>>, vector<288x128xbf16>,
    %cst_8 = arith.constant 0.000000e+00 : bf16
    %17 = vector.broadcast %cst_8 : bf16 to vector<56x128xbf16>
    %c288 = arith.constant 288 : index
    %c0_9 = arith.constant 0 : index
    %18 = vector.load %arg8[%c288, %c0_9] : memref<344x128xbf16, #tpu.memory_space<vmem>>, vector<56x128xbf16>
    tpu.vector_store %arg8[%c288, %c0_9], %17 {strides = array<i32>} : memref<344x128xbf16, #tpu.memory_space<vmem>>, vector<56x128xbf16>,
    %c0_10 = arith.constant 0 : index
    %c0_11 = arith.constant 0 : index
    %19 = vector.load %arg8[%c0_10, %c0_11] : memref<344x128xbf16, #tpu.memory_space<vmem>>, vector<288x16xbf16>
    %c1 = arith.constant 1 : index
    %c0_12 = arith.constant 0 : index
    %20 = vector.load %arg8[%c1, %c0_12] : memref<344x128xbf16, #tpu.memory_space<vmem>>, vector<288x16xbf16>
    %c2 = arith.constant 2 : index
    %c0_13 = arith.constant 0 : index
    %21 = vector.load %arg8[%c2, %c0_13] : memref<344x128xbf16, #tpu.memory_space<vmem>>, vector<288x16xbf16>
    %c3 = arith.constant 3 : index
    %c0_14 = arith.constant 0 : index
    %22 = vector.load %arg8[%c3, %c0_14] : memref<344x128xbf16, #tpu.memory_space<vmem>>, vector<288x16xbf16>
    %c4 = arith.constant 4 : index
    %c0_15 = arith.constant 0 : index
    %23 = vector.load %arg8[%c4, %c0_15] : memref<344x128xbf16, #tpu.memory_space<vmem>>, vector<288x16xbf16>
    %c12 = arith.constant 12 : index
    %c0_16 = arith.constant 0 : index
    %24 = vector.load %arg8[%c12, %c0_16] : memref<344x128xbf16, #tpu.memory_space<vmem>>, vector<288x16xbf16>
    %c13 = arith.constant 13 : index
    %c0_17 = arith.constant 0 : index
    %25 = vector.load %arg8[%c13, %c0_17] : memref<344x128xbf16, #tpu.memory_space<vmem>>, vector<288x16xbf16>
    %c14 = arith.constant 14 : index
    %c0_18 = arith.constant 0 : index
    %26 = vector.load %arg8[%c14, %c0_18] : memref<344x128xbf16, #tpu.memory_space<vmem>>, vector<288x16xbf16>
    %c15 = arith.constant 15 : index
    %c0_19 = arith.constant 0 : index
    %27 = vector.load %arg8[%c15, %c0_19] : memref<344x128xbf16, #tpu.memory_space<vmem>>, vector<288x16xbf16>
    %c16 = arith.constant 16 : index
    %c0_20 = arith.constant 0 : index
    %28 = vector.load %arg8[%c16, %c0_20] : memref<344x128xbf16, #tpu.memory_space<vmem>>, vector<288x16xbf16>
    %c24 = arith.constant 24 : index
    %c0_21 = arith.constant 0 : index
    %29 = vector.load %arg8[%c24, %c0_21] : memref<344x128xbf16, #tpu.memory_space<vmem>>, vector<288x16xbf16>
    %c25 = arith.constant 25 : index
    %c0_22 = arith.constant 0 : index
    %30 = vector.load %arg8[%c25, %c0_22] : memref<344x128xbf16, #tpu.memory_space<vmem>>, vector<288x16xbf16>
    %c26 = arith.constant 26 : index
    %c0_23 = arith.constant 0 : index
    %31 = vector.load %arg8[%c26, %c0_23] : memref<344x128xbf16, #tpu.memory_space<vmem>>, vector<288x16xbf16>
    %c27 = arith.constant 27 : index
    %c0_24 = arith.constant 0 : index
    %32 = vector.load %arg8[%c27, %c0_24] : memref<344x128xbf16, #tpu.memory_space<vmem>>, vector<288x16xbf16>
    %c28 = arith.constant 28 : index
    %c0_25 = arith.constant 0 : index
    %33 = vector.load %arg8[%c28, %c0_25] : memref<344x128xbf16, #tpu.memory_space<vmem>>, vector<288x16xbf16>
    %c36 = arith.constant 36 : index
    %c0_26 = arith.constant 0 : index
    %34 = vector.load %arg8[%c36, %c0_26] : memref<344x128xbf16, #tpu.memory_space<vmem>>, vector<288x16xbf16>
    %35 = tpu.concatenate %19, %20, %21, %22, %23, %24, %25, %26, %27, %28, %29, %30, %31, %32, %33, %34 in 1 : vector<288x16xbf16>, vector<288x16xbf16>, vector<288x16xbf16>, vector<288x16xbf16>, vector<288x16xbf16>, vector<288x16xbf16>, vector<288x16xbf16>, vector<288x16xbf16>, vector<288x16xbf16>, vector<288x16xbf16>, vector<288x16xbf16>, vector<288x16xbf16>, vector<288x16xbf16>, vector<288x16xbf16>, vector<288x16xbf16>, vector<288x16xbf16> -> vector<288x256xbf16>
    %c37 = arith.constant 37 : index
    %c0_27 = arith.constant 0 : index
    %36 = vector.load %arg8[%c37, %c0_27] : memref<344x128xbf16, #tpu.memory_space<vmem>>, vector<288x16xbf16>
    %c38 = arith.constant 38 : index
    %c0_28 = arith.constant 0 : index
    %37 = vector.load %arg8[%c38, %c0_28] : memref<344x128xbf16, #tpu.memory_space<vmem>>, vector<288x16xbf16>
    %c39 = arith.constant 39 : index
    %c0_29 = arith.constant 0 : index
    %38 = vector.load %arg8[%c39, %c0_29] : memref<344x128xbf16, #tpu.memory_space<vmem>>, vector<288x16xbf16>
    %c40 = arith.constant 40 : index
    %c0_30 = arith.constant 0 : index
    %39 = vector.load %arg8[%c40, %c0_30] : memref<344x128xbf16, #tpu.memory_space<vmem>>, vector<288x16xbf16>
    %c48 = arith.constant 48 : index
    %c0_31 = arith.constant 0 : index
    %40 = vector.load %arg8[%c48, %c0_31] : memref<344x128xbf16, #tpu.memory_space<vmem>>, vector<288x16xbf16>
    %c49 = arith.constant 49 : index
    %c0_32 = arith.constant 0 : index
    %41 = vector.load %arg8[%c49, %c0_32] : memref<344x128xbf16, #tpu.memory_space<vmem>>, vector<288x16xbf16>
    %c50 = arith.constant 50 : index
    %c0_33 = arith.constant 0 : index
    %42 = vector.load %arg8[%c50, %c0_33] : memref<344x128xbf16, #tpu.memory_space<vmem>>, vector<288x16xbf16>
    %c51 = arith.constant 51 : index
    %c0_34 = arith.constant 0 : index
    %43 = vector.load %arg8[%c51, %c0_34] : memref<344x128xbf16, #tpu.memory_space<vmem>>, vector<288x16xbf16>
    %c52 = arith.constant 52 : index
    %c0_35 = arith.constant 0 : index
    %44 = vector.load %arg8[%c52, %c0_35] : memref<344x128xbf16, #tpu.memory_space<vmem>>, vector<288x16xbf16>
    %cst_36 = arith.constant 0.000000e+00 : bf16
    %45 = vector.broadcast %cst_36 : bf16 to vector<288x112xbf16>
    %46 = tpu.concatenate %36, %37, %38, %39, %40, %41, %42, %43, %44, %45 in 1 : vector<288x16xbf16>, vector<288x16xbf16>, vector<288x16xbf16>, vector<288x16xbf16>, vector<288x16xbf16>, vector<288x16xbf16>, vector<288x16xbf16>, vector<288x16xbf16>, vector<288x16xbf16>, vector<288x112xbf16> -> vector<288x256xbf16>
    %c0_37 = arith.constant 0 : index
    %c0_38 = arith.constant 0 : index
    %47 = vector.load %arg3[%c0_37, %c0_38] : memref<512x128xbf16, #tpu.memory_space<vmem>>, vector<256x128xbf16>
    %cst_39 = arith.constant dense<0.000000e+00> : vector<288x128xf32>
    %48 = tpu.matmul %35, %47, %cst_39 {dimension_numbers = #tpu.dot_dimension_numbers<[1], [0], [0], [1], [0, 0, 1, 1], [], []>} : vector<288x256xbf16>, vector<256x128xbf16>, vector<288x128xf32> -> vector<288x128xf32>
    %c256 = arith.constant 256 : index
    %c0_40 = arith.constant 0 : index
    %49 = vector.load %arg3[%c256, %c0_40] : memref<512x128xbf16, #tpu.memory_space<vmem>>, vector<256x128xbf16>
    %cst_41 = arith.constant dense<0.000000e+00> : vector<288x128xf32>
    %50 = tpu.matmul %46, %49, %cst_41 {dimension_numbers = #tpu.dot_dimension_numbers<[1], [0], [0], [1], [0, 0, 1, 1], [], []>} : vector<288x256xbf16>, vector<256x128xbf16>, vector<288x128xf32> -> vector<288x128xf32>
    %51 = arith.addf %48, %50 : vector<288x128xf32>
    %52 = vector.shape_cast %51 : vector<288x128xf32> to vector<2x144x128xf32>
    %c1_42 = arith.constant 1 : index
    %c0_43 = arith.constant 0 : index
    %53 = vector.load %arg6[%c1_42, %c0_43] : memref<8x128xf32, #tpu.memory_space<vmem>>, vector<1x128xf32>
    %54 = vector.shape_cast %53 : vector<1x128xf32> to vector<1x128xf32>
    %55 = vector.broadcast %54 : vector<1x128xf32> to vector<2x128xf32>
    %56 = vector.extract_strided_slice %52 {offsets = [0, 0, 0], sizes = [2, 2, 128], strides = [1, 1, 1]} : vector<2x144x128xf32> to vector<2x2x128xf32>
    %57 = vector.extract_strided_slice %52 {offsets = [0, 12, 0], sizes = [2, 2, 128], strides = [1, 1, 1]} : vector<2x144x128xf32> to vector<2x2x128xf32>
    %58 = arith.maximumf %56, %57 : vector<2x2x128xf32>
    %cst_44 = arith.constant dense<0xFF800000> : vector<2x128xf32>
    %59 = vector.multi_reduction <maximumf>, %58, %cst_44 [1] : vector<2x2x128xf32> to vector<2x128xf32>
    %60 = arith.addf %59, %55 : vector<2x128xf32>
    %cst_45 = arith.constant 0.000000e+00 : f32
    %61 = vector.broadcast %cst_45 : f32 to vector<2x128xf32>
    %62 = arith.maximumf %60, %61 : vector<2x128xf32>
    %63 = vector.extract_strided_slice %62 {offsets = [0, 0], sizes = [2, 32], strides = [1, 1]} : vector<2x128xf32> to vector<2x32xf32>
    %64 = arith.truncf %63 : vector<2x32xf32> to vector<2x32xbf16>
    %65 = vector.extract_strided_slice %52 {offsets = [0, 2, 0], sizes = [2, 2, 128], strides = [1, 1, 1]} : vector<2x144x128xf32> to vector<2x2x128xf32>
    %66 = vector.extract_strided_slice %52 {offsets = [0, 14, 0], sizes = [2, 2, 128], strides = [1, 1, 1]} : vector<2x144x128xf32> to vector<2x2x128xf32>
    %67 = arith.maximumf %65, %66 : vector<2x2x128xf32>
    %cst_46 = arith.constant dense<0xFF800000> : vector<2x128xf32>
    %68 = vector.multi_reduction <maximumf>, %67, %cst_46 [1] : vector<2x2x128xf32> to vector<2x128xf32>
    %69 = arith.addf %68, %55 : vector<2x128xf32>
    %cst_47 = arith.constant 0.000000e+00 : f32
    %70 = vector.broadcast %cst_47 : f32 to vector<2x128xf32>
    %71 = arith.maximumf %69, %70 : vector<2x128xf32>
    %72 = vector.extract_strided_slice %71 {offsets = [0, 0], sizes = [2, 32], strides = [1, 1]} : vector<2x128xf32> to vector<2x32xf32>
    %73 = arith.truncf %72 : vector<2x32xf32> to vector<2x32xbf16>
    %74 = vector.extract_strided_slice %52 {offsets = [0, 4, 0], sizes = [2, 2, 128], strides = [1, 1, 1]} : vector<2x144x128xf32> to vector<2x2x128xf32>
    %75 = vector.extract_strided_slice %52 {offsets = [0, 16, 0], sizes = [2, 2, 128], strides = [1, 1, 1]} : vector<2x144x128xf32> to vector<2x2x128xf32>
    %76 = arith.maximumf %74, %75 : vector<2x2x128xf32>
    %cst_48 = arith.constant dense<0xFF800000> : vector<2x128xf32>
    %77 = vector.multi_reduction <maximumf>, %76, %cst_48 [1] : vector<2x2x128xf32> to vector<2x128xf32>
    %78 = arith.addf %77, %55 : vector<2x128xf32>
    %cst_49 = arith.constant 0.000000e+00 : f32
    %79 = vector.broadcast %cst_49 : f32 to vector<2x128xf32>
    %80 = arith.maximumf %78, %79 : vector<2x128xf32>
    %81 = vector.extract_strided_slice %80 {offsets = [0, 0], sizes = [2, 32], strides = [1, 1]} : vector<2x128xf32> to vector<2x32xf32>
    %82 = arith.truncf %81 : vector<2x32xf32> to vector<2x32xbf16>
    %83 = vector.extract_strided_slice %52 {offsets = [0, 6, 0], sizes = [2, 2, 128], strides = [1, 1, 1]} : vector<2x144x128xf32> to vector<2x2x128xf32>
    %84 = vector.extract_strided_slice %52 {offsets = [0, 18, 0], sizes = [2, 2, 128], strides = [1, 1, 1]} : vector<2x144x128xf32> to vector<2x2x128xf32>
    %85 = arith.maximumf %83, %84 : vector<2x2x128xf32>
    %cst_50 = arith.constant dense<0xFF800000> : vector<2x128xf32>
    %86 = vector.multi_reduction <maximumf>, %85, %cst_50 [1] : vector<2x2x128xf32> to vector<2x128xf32>
    %87 = arith.addf %86, %55 : vector<2x128xf32>
    %cst_51 = arith.constant 0.000000e+00 : f32
    %88 = vector.broadcast %cst_51 : f32 to vector<2x128xf32>
    %89 = arith.maximumf %87, %88 : vector<2x128xf32>
    %90 = vector.extract_strided_slice %89 {offsets = [0, 0], sizes = [2, 32], strides = [1, 1]} : vector<2x128xf32> to vector<2x32xf32>
    %91 = arith.truncf %90 : vector<2x32xf32> to vector<2x32xbf16>
    %92 = vector.extract_strided_slice %52 {offsets = [0, 24, 0], sizes = [2, 2, 128], strides = [1, 1, 1]} : vector<2x144x128xf32> to vector<2x2x128xf32>
    %93 = vector.extract_strided_slice %52 {offsets = [0, 36, 0], sizes = [2, 2, 128], strides = [1, 1, 1]} : vector<2x144x128xf32> to vector<2x2x128xf32>
    %94 = arith.maximumf %92, %93 : vector<2x2x128xf32>
    %cst_52 = arith.constant dense<0xFF800000> : vector<2x128xf32>
    %95 = vector.multi_reduction <maximumf>, %94, %cst_52 [1] : vector<2x2x128xf32> to vector<2x128xf32>
    %96 = arith.addf %95, %55 : vector<2x128xf32>
    %cst_53 = arith.constant 0.000000e+00 : f32
    %97 = vector.broadcast %cst_53 : f32 to vector<2x128xf32>
    %98 = arith.maximumf %96, %97 : vector<2x128xf32>
    %99 = vector.extract_strided_slice %98 {offsets = [0, 0], sizes = [2, 32], strides = [1, 1]} : vector<2x128xf32> to vector<2x32xf32>
    %100 = arith.truncf %99 : vector<2x32xf32> to vector<2x32xbf16>
    %101 = vector.extract_strided_slice %52 {offsets = [0, 26, 0], sizes = [2, 2, 128], strides = [1, 1, 1]} : vector<2x144x128xf32> to vector<2x2x128xf32>
    %102 = vector.extract_strided_slice %52 {offsets = [0, 38, 0], sizes = [2, 2, 128], strides = [1, 1, 1]} : vector<2x144x128xf32> to vector<2x2x128xf32>
    %103 = arith.maximumf %101, %102 : vector<2x2x128xf32>
    %cst_54 = arith.constant dense<0xFF800000> : vector<2x128xf32>
    %104 = vector.multi_reduction <maximumf>, %103, %cst_54 [1] : vector<2x2x128xf32> to vector<2x128xf32>
    %105 = arith.addf %104, %55 : vector<2x128xf32>
    %cst_55 = arith.constant 0.000000e+00 : f32
    %106 = vector.broadcast %cst_55 : f32 to vector<2x128xf32>
    %107 = arith.maximumf %105, %106 : vector<2x128xf32>
    %108 = vector.extract_strided_slice %107 {offsets = [0, 0], sizes = [2, 32], strides = [1, 1]} : vector<2x128xf32> to vector<2x32xf32>
    %109 = arith.truncf %108 : vector<2x32xf32> to vector<2x32xbf16>
    %110 = vector.extract_strided_slice %52 {offsets = [0, 28, 0], sizes = [2, 2, 128], strides = [1, 1, 1]} : vector<2x144x128xf32> to vector<2x2x128xf32>
    %111 = vector.extract_strided_slice %52 {offsets = [0, 40, 0], sizes = [2, 2, 128], strides = [1, 1, 1]} : vector<2x144x128xf32> to vector<2x2x128xf32>
    %112 = arith.maximumf %110, %111 : vector<2x2x128xf32>
    %cst_56 = arith.constant dense<0xFF800000> : vector<2x128xf32>
    %113 = vector.multi_reduction <maximumf>, %112, %cst_56 [1] : vector<2x2x128xf32> to vector<2x128xf32>
    %114 = arith.addf %113, %55 : vector<2x128xf32>
    %cst_57 = arith.constant 0.000000e+00 : f32
    %115 = vector.broadcast %cst_57 : f32 to vector<2x128xf32>
    %116 = arith.maximumf %114, %115 : vector<2x128xf32>
    %117 = vector.extract_strided_slice %116 {offsets = [0, 0], sizes = [2, 32], strides = [1, 1]} : vector<2x128xf32> to vector<2x32xf32>
    %118 = arith.truncf %117 : vector<2x32xf32> to vector<2x32xbf16>
    %119 = vector.extract_strided_slice %52 {offsets = [0, 30, 0], sizes = [2, 2, 128], strides = [1, 1, 1]} : vector<2x144x128xf32> to vector<2x2x128xf32>
    %120 = vector.extract_strided_slice %52 {offsets = [0, 42, 0], sizes = [2, 2, 128], strides = [1, 1, 1]} : vector<2x144x128xf32> to vector<2x2x128xf32>
    %121 = arith.maximumf %119, %120 : vector<2x2x128xf32>
    %cst_58 = arith.constant dense<0xFF800000> : vector<2x128xf32>
    %122 = vector.multi_reduction <maximumf>, %121, %cst_58 [1] : vector<2x2x128xf32> to vector<2x128xf32>
    %123 = arith.addf %122, %55 : vector<2x128xf32>
    %cst_59 = arith.constant 0.000000e+00 : f32
    %124 = vector.broadcast %cst_59 : f32 to vector<2x128xf32>
    %125 = arith.maximumf %123, %124 : vector<2x128xf32>
    %126 = vector.extract_strided_slice %125 {offsets = [0, 0], sizes = [2, 32], strides = [1, 1]} : vector<2x128xf32> to vector<2x32xf32>
    %127 = arith.truncf %126 : vector<2x32xf32> to vector<2x32xbf16>
    %128 = vector.extract_strided_slice %52 {offsets = [0, 48, 0], sizes = [2, 2, 128], strides = [1, 1, 1]} : vector<2x144x128xf32> to vector<2x2x128xf32>
    %129 = vector.extract_strided_slice %52 {offsets = [0, 60, 0], sizes = [2, 2, 128], strides = [1, 1, 1]} : vector<2x144x128xf32> to vector<2x2x128xf32>
    %130 = arith.maximumf %128, %129 : vector<2x2x128xf32>
    %cst_60 = arith.constant dense<0xFF800000> : vector<2x128xf32>
    %131 = vector.multi_reduction <maximumf>, %130, %cst_60 [1] : vector<2x2x128xf32> to vector<2x128xf32>
    %132 = arith.addf %131, %55 : vector<2x128xf32>
    %cst_61 = arith.constant 0.000000e+00 : f32
    %133 = vector.broadcast %cst_61 : f32 to vector<2x128xf32>
    %134 = arith.maximumf %132, %133 : vector<2x128xf32>
    %135 = vector.extract_strided_slice %134 {offsets = [0, 0], sizes = [2, 32], strides = [1, 1]} : vector<2x128xf32> to vector<2x32xf32>
    %136 = arith.truncf %135 : vector<2x32xf32> to vector<2x32xbf16>
    %137 = vector.extract_strided_slice %52 {offsets = [0, 50, 0], sizes = [2, 2, 128], strides = [1, 1, 1]} : vector<2x144x128xf32> to vector<2x2x128xf32>
    %138 = vector.extract_strided_slice %52 {offsets = [0, 62, 0], sizes = [2, 2, 128], strides = [1, 1, 1]} : vector<2x144x128xf32> to vector<2x2x128xf32>
    %139 = arith.maximumf %137, %138 : vector<2x2x128xf32>
    %cst_62 = arith.constant dense<0xFF800000> : vector<2x128xf32>
    %140 = vector.multi_reduction <maximumf>, %139, %cst_62 [1] : vector<2x2x128xf32> to vector<2x128xf32>
    %141 = arith.addf %140, %55 : vector<2x128xf32>
    %cst_63 = arith.constant 0.000000e+00 : f32
    %142 = vector.broadcast %cst_63 : f32 to vector<2x128xf32>
    %143 = arith.maximumf %141, %142 : vector<2x128xf32>
    %144 = vector.extract_strided_slice %143 {offsets = [0, 0], sizes = [2, 32], strides = [1, 1]} : vector<2x128xf32> to vector<2x32xf32>
    %145 = arith.truncf %144 : vector<2x32xf32> to vector<2x32xbf16>
    %146 = vector.extract_strided_slice %52 {offsets = [0, 52, 0], sizes = [2, 2, 128], strides = [1, 1, 1]} : vector<2x144x128xf32> to vector<2x2x128xf32>
    %147 = vector.extract_strided_slice %52 {offsets = [0, 64, 0], sizes = [2, 2, 128], strides = [1, 1, 1]} : vector<2x144x128xf32> to vector<2x2x128xf32>
    %148 = arith.maximumf %146, %147 : vector<2x2x128xf32>
    %cst_64 = arith.constant dense<0xFF800000> : vector<2x128xf32>
    %149 = vector.multi_reduction <maximumf>, %148, %cst_64 [1] : vector<2x2x128xf32> to vector<2x128xf32>
    %150 = arith.addf %149, %55 : vector<2x128xf32>
    %cst_65 = arith.constant 0.000000e+00 : f32
    %151 = vector.broadcast %cst_65 : f32 to vector<2x128xf32>
    %152 = arith.maximumf %150, %151 : vector<2x128xf32>
    %153 = vector.extract_strided_slice %152 {offsets = [0, 0], sizes = [2, 32], strides = [1, 1]} : vector<2x128xf32> to vector<2x32xf32>
    %154 = arith.truncf %153 : vector<2x32xf32> to vector<2x32xbf16>
    %155 = vector.extract_strided_slice %52 {offsets = [0, 54, 0], sizes = [2, 2, 128], strides = [1, 1, 1]} : vector<2x144x128xf32> to vector<2x2x128xf32>
    %156 = vector.extract_strided_slice %52 {offsets = [0, 66, 0], sizes = [2, 2, 128], strides = [1, 1, 1]} : vector<2x144x128xf32> to vector<2x2x128xf32>
    %157 = arith.maximumf %155, %156 : vector<2x2x128xf32>
    %cst_66 = arith.constant dense<0xFF800000> : vector<2x128xf32>
    %158 = vector.multi_reduction <maximumf>, %157, %cst_66 [1] : vector<2x2x128xf32> to vector<2x128xf32>
    %159 = arith.addf %158, %55 : vector<2x128xf32>
    %cst_67 = arith.constant 0.000000e+00 : f32
    %160 = vector.broadcast %cst_67 : f32 to vector<2x128xf32>
    %161 = arith.maximumf %159, %160 : vector<2x128xf32>
    %162 = vector.extract_strided_slice %161 {offsets = [0, 0], sizes = [2, 32], strides = [1, 1]} : vector<2x128xf32> to vector<2x32xf32>
    %163 = arith.truncf %162 : vector<2x32xf32> to vector<2x32xbf16>
    %164 = vector.extract_strided_slice %52 {offsets = [0, 72, 0], sizes = [2, 2, 128], strides = [1, 1, 1]} : vector<2x144x128xf32> to vector<2x2x128xf32>
    %165 = vector.extract_strided_slice %52 {offsets = [0, 84, 0], sizes = [2, 2, 128], strides = [1, 1, 1]} : vector<2x144x128xf32> to vector<2x2x128xf32>
    %166 = arith.maximumf %164, %165 : vector<2x2x128xf32>
    %cst_68 = arith.constant dense<0xFF800000> : vector<2x128xf32>
    %167 = vector.multi_reduction <maximumf>, %166, %cst_68 [1] : vector<2x2x128xf32> to vector<2x128xf32>
    %168 = arith.addf %167, %55 : vector<2x128xf32>
    %cst_69 = arith.constant 0.000000e+00 : f32
    %169 = vector.broadcast %cst_69 : f32 to vector<2x128xf32>
    %170 = arith.maximumf %168, %169 : vector<2x128xf32>
    %171 = vector.extract_strided_slice %170 {offsets = [0, 0], sizes = [2, 32], strides = [1, 1]} : vector<2x128xf32> to vector<2x32xf32>
    %172 = arith.truncf %171 : vector<2x32xf32> to vector<2x32xbf16>
    %173 = vector.extract_strided_slice %52 {offsets = [0, 74, 0], sizes = [2, 2, 128], strides = [1, 1, 1]} : vector<2x144x128xf32> to vector<2x2x128xf32>
    %174 = vector.extract_strided_slice %52 {offsets = [0, 86, 0], sizes = [2, 2, 128], strides = [1, 1, 1]} : vector<2x144x128xf32> to vector<2x2x128xf32>
    %175 = arith.maximumf %173, %174 : vector<2x2x128xf32>
    %cst_70 = arith.constant dense<0xFF800000> : vector<2x128xf32>
    %176 = vector.multi_reduction <maximumf>, %175, %cst_70 [1] : vector<2x2x128xf32> to vector<2x128xf32>
    %177 = arith.addf %176, %55 : vector<2x128xf32>
    %cst_71 = arith.constant 0.000000e+00 : f32
    %178 = vector.broadcast %cst_71 : f32 to vector<2x128xf32>
    %179 = arith.maximumf %177, %178 : vector<2x128xf32>
    %180 = vector.extract_strided_slice %179 {offsets = [0, 0], sizes = [2, 32], strides = [1, 1]} : vector<2x128xf32> to vector<2x32xf32>
    %181 = arith.truncf %180 : vector<2x32xf32> to vector<2x32xbf16>
    %182 = vector.extract_strided_slice %52 {offsets = [0, 76, 0], sizes = [2, 2, 128], strides = [1, 1, 1]} : vector<2x144x128xf32> to vector<2x2x128xf32>
    %183 = vector.extract_strided_slice %52 {offsets = [0, 88, 0], sizes = [2, 2, 128], strides = [1, 1, 1]} : vector<2x144x128xf32> to vector<2x2x128xf32>
    %184 = arith.maximumf %182, %183 : vector<2x2x128xf32>
    %cst_72 = arith.constant dense<0xFF800000> : vector<2x128xf32>
    %185 = vector.multi_reduction <maximumf>, %184, %cst_72 [1] : vector<2x2x128xf32> to vector<2x128xf32>
    %186 = arith.addf %185, %55 : vector<2x128xf32>
    %cst_73 = arith.constant 0.000000e+00 : f32
    %187 = vector.broadcast %cst_73 : f32 to vector<2x128xf32>
    %188 = arith.maximumf %186, %187 : vector<2x128xf32>
    %189 = vector.extract_strided_slice %188 {offsets = [0, 0], sizes = [2, 32], strides = [1, 1]} : vector<2x128xf32> to vector<2x32xf32>
    %190 = arith.truncf %189 : vector<2x32xf32> to vector<2x32xbf16>
    %191 = vector.extract_strided_slice %52 {offsets = [0, 78, 0], sizes = [2, 2, 128], strides = [1, 1, 1]} : vector<2x144x128xf32> to vector<2x2x128xf32>
    %192 = vector.extract_strided_slice %52 {offsets = [0, 90, 0], sizes = [2, 2, 128], strides = [1, 1, 1]} : vector<2x144x128xf32> to vector<2x2x128xf32>
    %193 = arith.maximumf %191, %192 : vector<2x2x128xf32>
    %cst_74 = arith.constant dense<0xFF800000> : vector<2x128xf32>
    %194 = vector.multi_reduction <maximumf>, %193, %cst_74 [1] : vector<2x2x128xf32> to vector<2x128xf32>
    %195 = arith.addf %194, %55 : vector<2x128xf32>
    %cst_75 = arith.constant 0.000000e+00 : f32
    %196 = vector.broadcast %cst_75 : f32 to vector<2x128xf32>
    %197 = arith.maximumf %195, %196 : vector<2x128xf32>
    %198 = vector.extract_strided_slice %197 {offsets = [0, 0], sizes = [2, 32], strides = [1, 1]} : vector<2x128xf32> to vector<2x32xf32>
    %199 = arith.truncf %198 : vector<2x32xf32> to vector<2x32xbf16>
    %200 = tpu.concatenate %64, %73, %82, %91, %100, %109, %118, %127, %136, %145, %154, %163, %172, %181, %190, %199 in 1 : vector<2x32xbf16>, vector<2x32xbf16>, vector<2x32xbf16>, vector<2x32xbf16>, vector<2x32xbf16>, vector<2x32xbf16>, vector<2x32xbf16>, vector<2x32xbf16>, vector<2x32xbf16>, vector<2x32xbf16>, vector<2x32xbf16>, vector<2x32xbf16>, vector<2x32xbf16>, vector<2x32xbf16>, vector<2x32xbf16>, vector<2x32xbf16> -> vector<2x512xbf16>
    %c0_76 = arith.constant 0 : index
    %c0_77 = arith.constant 0 : index
    %201 = vector.load %arg4[%c0_76, %c0_77] : memref<512x128xbf16, #tpu.memory_space<vmem>>, vector<512x128xbf16>
    %cst_78 = arith.constant dense<0.000000e+00> : vector<2x128xf32>
    %202 = tpu.matmul %200, %201, %cst_78 {dimension_numbers = #tpu.dot_dimension_numbers<[1], [0], [0], [1], [0, 0, 1, 1], [], []>} : vector<2x512xbf16>, vector<512x128xbf16>, vector<2x128xf32> -> vector<2x128xf32>
    %c2_79 = arith.constant 2 : index
    %c0_80 = arith.constant 0 : index
    %203 = vector.load %arg6[%c2_79, %c0_80] : memref<8x128xf32, #tpu.memory_space<vmem>>, vector<1x128xf32>
    %204 = vector.broadcast %203 : vector<1x128xf32> to vector<2x128xf32>
    %205 = arith.addf %202, %204 : vector<2x128xf32>
    %cst_81 = arith.constant 0.000000e+00 : f32
    %206 = vector.broadcast %cst_81 : f32 to vector<2x128xf32>
    %207 = arith.maximumf %205, %206 : vector<2x128xf32>
    %208 = arith.truncf %207 : vector<2x128xf32> to vector<2x128xbf16>
    %c0_82 = arith.constant 0 : index
    %c0_83 = arith.constant 0 : index
    %209 = vector.load %arg5[%c0_82, %c0_83] : memref<128x128xbf16, #tpu.memory_space<vmem>>, vector<128x128xbf16>
    %cst_84 = arith.constant dense<0.000000e+00> : vector<2x128xf32>
    %210 = tpu.matmul %208, %209, %cst_84 {dimension_numbers = #tpu.dot_dimension_numbers<[1], [0], [0], [1], [0, 0, 1, 1], [], []>} : vector<2x128xbf16>, vector<128x128xbf16>, vector<2x128xf32> -> vector<2x128xf32>
    %c3_85 = arith.constant 3 : index
    %c0_86 = arith.constant 0 : index
    %211 = vector.load %arg6[%c3_85, %c0_86] : memref<8x128xf32, #tpu.memory_space<vmem>>, vector<1x128xf32>
    %212 = vector.broadcast %211 : vector<1x128xf32> to vector<2x128xf32>
    %213 = arith.addf %210, %212 : vector<2x128xf32>
    %c0_87 = arith.constant 0 : index
    %c0_88 = arith.constant 0 : index
    %214 = vector.load %arg7[%c0_87, %c0_88] : memref<2x128xf32, #tpu.memory_space<vmem>>, vector<2x128xf32>
    tpu.vector_store %arg7[%c0_87, %c0_88], %213 {strides = array<i32>} : memref<2x128xf32, #tpu.memory_space<vmem>>, vector<2x128xf32>,
    return
  }
  func.func @transform_0(%arg0: i32) -> (i32, i32) {
    %c0_i32 = arith.constant 0 : i32
    %c0_i32_0 = arith.constant 0 : i32
    return %arg0, %c0_i32 : i32, i32
  }
  func.func @transform_1(%arg0: i32) -> (i32, i32) {
    %c0_i32 = arith.constant 0 : i32
    %c0_i32_0 = arith.constant 0 : i32
    %c0_i32_1 = arith.constant 0 : i32
    return %c0_i32, %c0_i32_0 : i32, i32
  }
  func.func @transform_2(%arg0: i32) -> (i32, i32) {
    %c0_i32 = arith.constant 0 : i32
    %c0_i32_0 = arith.constant 0 : i32
    %c0_i32_1 = arith.constant 0 : i32
    return %c0_i32, %c0_i32_0 : i32, i32
  }
  func.func @transform_3(%arg0: i32) -> (i32, i32) {
    %c0_i32 = arith.constant 0 : i32
    %c0_i32_0 = arith.constant 0 : i32
    %c0_i32_1 = arith.constant 0 : i32
    return %c0_i32, %c0_i32_0 : i32, i32
  }
  func.func @transform_4(%arg0: i32) -> (i32, i32) {
    %c0_i32 = arith.constant 0 : i32
    %c0_i32_0 = arith.constant 0 : i32
    %c0_i32_1 = arith.constant 0 : i32
    return %c0_i32, %c0_i32_0 : i32, i32
  }
  func.func @transform_5(%arg0: i32) -> (i32, i32) {
    %c0_i32 = arith.constant 0 : i32
    %c0_i32_0 = arith.constant 0 : i32
    %c0_i32_1 = arith.constant 0 : i32
    return %c0_i32, %c0_i32_0 : i32, i32
  }
  func.func @transform_6(%arg0: i32) -> (i32, i32) {
    %c0_i32 = arith.constant 0 : i32
    %c0_i32_0 = arith.constant 0 : i32
    return %arg0, %c0_i32 : i32, i32
  }
}

</mosaic_0001>

<bundles_post_ra>
// kernel: forward.1
= control target key start
LH: loop header
LB: loop body
LE: loop exit
PB: predicated region body
PF: predicated region fallthrough
CT: control target
= control target key end

     0   :  { %vm545_vm0 = vcmask 261120   ;;  %s13455_s0 = inlined_call_operand.vmem [shape: bf16[1152,32], index: 0, kind: input, shape index: {}]   ;;  %s13456_s1 = inlined_call_operand.vmem [shape: bf16[32,128], index: 1, kind: input, shape index: {}]   ;;  %s13457_s2 = inlined_call_operand.vmem [shape: bf16[512,128], index: 2, kind: input, shape index: {}]   ;;  %s13458_s3 = inlined_call_operand.vmem [shape: bf16[512,128], index: 3, kind: input, shape index: {}]   ;;  %s13459_s4 = inlined_call_operand.vmem [shape: bf16[128,128], index: 4, kind: input, shape index: {}]   ;;  %s13460_s5 = inlined_call_operand.vmem [shape: f32[8,128], index: 5, kind: input, shape index: {}]   ;;  %s13461_s6 = inlined_call_operand.hbm [shape: f32[2,128], index: 6, kind: output, shape index: {}]  }
   0x1   :  { %v7782_v0 = vld [vmem:[%s13456_s1] sm:$0xff]   ;;  %v7783_v1 = vld [vmem:[%s13456_s1 + $0x8] sm:$0xff]   ;;  %v7786_v4 = vld [vmem:[%s13455_s0 + $0x10] sm:$0xff]  }
   0x2   :  { %7555 = vmatprep.subr.bf16.mxu0 %v7782_v0  ;;  %v7784_v2 = vld [vmem:[%s13455_s0] sm:$0xff]   ;;  %v7785_v3 = vld [vmem:[%s13455_s0 + $0x8] sm:$0xff]   ;;  %v7787_v5 = vld [vmem:[%s13455_s0 + $0x18] sm:$0xff]  }
   0x3   :  { %7556 = vmatpush3.bf16.msra.mxu0 %v7782_v0  ;;  %7559 = vmatprep.mubr.msk.bf16.mxu0 %vm545_vm0, %v7784_v2  ;;  %v7788_v6 = vld [vmem:[%s13455_s0 + $0x20] sm:$0xff]   ;;  %v7789_v7 = vld [vmem:[%s13455_s0 + $0x28] sm:$0xff]   ;;  %v7790_v8 = vld [vmem:[%s13455_s0 + $0x30] sm:$0xff]  }
   0x4   :  { %7557 = vmatprep.subr.bf16.mxu0 %v7783_v1  ;;  %v7791_v9 = vld [vmem:[%s13455_s0 + $0x38] sm:$0xff]   ;;  %v7792_v10 = vld [vmem:[%s13455_s0 + $0x40] sm:$0xff]   ;;  %v7793_v11 = vld [vmem:[%s13455_s0 + $0x48] sm:$0xff]  }
   0x5   :  { %v7794_v12 = vld [vmem:[%s13455_s0 + $0x50] sm:$0xff]   ;;  %v7795_v13 = vld [vmem:[%s13455_s0 + $0x58] sm:$0xff]   ;;  %v7796_v14 = vld [vmem:[%s13455_s0 + $0x60] sm:$0xff]  }
   0x6   :  { %v7797_v15 = vld [vmem:[%s13455_s0 + $0x68] sm:$0xff]   ;;  %v7798_v16 = vld [vmem:[%s13455_s0 + $0x70] sm:$0xff]   ;;  %v7799_v17 = vld [vmem:[%s13455_s0 + $0x78] sm:$0xff]  }
   0x7   :  { %7558 = vmatpush3.bf16.msra.mxu0 %v7783_v1  ;;  %v7800_v18 = vld [vmem:[%s13455_s0 + $0x80] sm:$0xff]   ;;  %v7801_v19 = vld [vmem:[%s13455_s0 + $0x88] sm:$0xff]   ;;  %v7802_v20 = vld [vmem:[%s13455_s0 + $0x90] sm:$0xff]  }
   0x8   :  { %v7803_v21 = vld [vmem:[%s13455_s0 + $0x98] sm:$0xff]   ;;  %v7804_v22 = vld [vmem:[%s13455_s0 + $0xa0] sm:$0xff]   ;;  %v7805_v23 = vld [vmem:[%s13455_s0 + $0xa8] sm:$0xff]  }
   0x9   :  { %v7806_v24 = vld [vmem:[%s13455_s0 + $0xb0] sm:$0xff]   ;;  %v7807_v25 = vld [vmem:[%s13455_s0 + $0xb8] sm:$0xff]   ;;  %v7808_v26 = vld [vmem:[%s13455_s0 + $0xc0] sm:$0xff]  }
   0xa   :  { %7560 = vmatmul.mubr.msk.bf16.vlgmr.msra.gmra.mrb[0].mxu0 %vm545_vm0, %v7785_v3  ;;  %v7809_v27 = vld [vmem:[%s13455_s0 + $0xc8] sm:$0xff]   ;;  %v7810_v28 = vld [vmem:[%s13455_s0 + $0xd0] sm:$0xff]   ;;  %v7811_v29 = vld [vmem:[%s13455_s0 + $0xd8] sm:$0xff]  }
   0xb   :  { %7563 = vmatprep.mubr.msk.bf16.mxu0 %vm545_vm0, %v7786_v4  ;;  %v7812_v30 = vld [vmem:[%s13455_s0 + $0xe0] sm:$0xff]   ;;  %v7813_v31 = vld [vmem:[%s13455_s0 + $0xe8] sm:$0xff]  }
  0x12   :  { %7564 = vmatmul.mubr.msk.bf16.gmra.mrb[4].mxu0 %vm545_vm0, %v7787_v5 }
  0x13   :  { %7567 = vmatprep.mubr.msk.bf16.mxu0 %vm545_vm0, %v7788_v6 }
  0x1a   :  { %7568 = vmatmul.mubr.msk.bf16.gmra.mrb[8].mxu0 %vm545_vm0, %v7789_v7 }
  0x1b   :  { %7571 = vmatprep.mubr.msk.bf16.mxu0 %vm545_vm0, %v7790_v8 }
  0x22   :  { %7572 = vmatmul.mubr.msk.bf16.gmra.mrb[12].mxu0 %vm545_vm0, %v7791_v9 }
  0x23   :  { %7575 = vmatprep.mubr.msk.bf16.mxu0 %vm545_vm0, %v7792_v10 }
  0x2a   :  { %7576 = vmatmul.mubr.msk.bf16.gmra.mrb[16].mxu0 %vm545_vm0, %v7793_v11 }
  0x2b   :  { %7579 = vmatprep.mubr.msk.bf16.mxu0 %vm545_vm0, %v7794_v12 }
  0x32   :  { %7580 = vmatmul.mubr.msk.bf16.gmra.mrb[20].mxu0 %vm545_vm0, %v7795_v13 }
  0x33   :  { %7583 = vmatprep.mubr.msk.bf16.mxu0 %vm545_vm0, %v7796_v14 }
  0x3a   :  { %7584 = vmatmul.mubr.msk.bf16.gmra.mrb[24].mxu0 %vm545_vm0, %v7797_v15 }
  0x3b   :  { %7587 = vmatprep.mubr.msk.bf16.mxu0 %vm545_vm0, %v7798_v16 }
  0x42   :  { %7588 = vmatmul.mubr.msk.bf16.gmra.mrb[28].mxu0 %vm545_vm0, %v7799_v17 }
  0x43   :  { %7591 = vmatprep.mubr.msk.bf16.mxu0 %vm545_vm0, %v7800_v18 }
  0x4a   :  { %7592 = vmatmul.mubr.msk.bf16.gmra.mrb[32].mxu0 %vm545_vm0, %v7801_v19 }
  0x4b   :  { %7595 = vmatprep.mubr.msk.bf16.mxu0 %vm545_vm0, %v7802_v20 }
  0x52   :  { %7596 = vmatmul.mubr.msk.bf16.gmra.mrb[36].mxu0 %vm545_vm0, %v7803_v21 }
  0x53   :  { %7599 = vmatprep.mubr.msk.bf16.mxu0 %vm545_vm0, %v7804_v22 }
  0x5a   :  { %7600 = vmatmul.mubr.msk.bf16.gmra.mrb[40].mxu0 %vm545_vm0, %v7805_v23 }
  0x5b   :  { %7603 = vmatprep.mubr.msk.bf16.mxu0 %vm545_vm0, %v7806_v24 }
  0x62   :  { %7604 = vmatmul.mubr.msk.bf16.gmra.mrb[44].mxu0 %vm545_vm0, %v7807_v25 }
  0x63   :  { %7607 = vmatprep.mubr.msk.bf16.mxu0 %vm545_vm0, %v7808_v26 }
  0x6a   :  { %7608 = vmatmul.mubr.msk.bf16.gmra.mrb[48].mxu0 %vm545_vm0, %v7809_v27 }
  0x6b   :  { %7611 = vmatprep.mubr.msk.bf16.mxu0 %vm545_vm0, %v7810_v28 }
  0x72   :  { %7612 = vmatmul.mubr.msk.bf16.gmra.mrb[52].mxu0 %vm545_vm0, %v7811_v29 }
  0x73   :  { %7615 = vmatprep.mubr.msk.bf16.mxu0 %vm545_vm0, %v7812_v30 }
  0x74   :  { %11 = vsyncpa [#allocation4], 0  ;;  %v7814_v32 = vld [vmem:[%s13455_s0 + $0xf0] sm:$0xff]   ;;  %v7815_v33 = vld [vmem:[%s13455_s0 + $0xf8] sm:$0xff]   ;;  %v13465_v23 = vmov 0   ;;  %vm2078_vm1 = vcmask 1046528  }
  0x75   :  { %v7816_v34 = vld [vmem:[%s13455_s0 + $0x100] sm:$0xff]   ;;  %v7817_v35 = vld [vmem:[%s13455_s0 + $0x108] sm:$0xff]   ;;  %v7818_v36 = vld [vmem:[%s13455_s0 + $0x110] sm:$0xff]   ;;  %1736 = vst [vmem:[#allocation2 + $0x90] sm:$0xf] %v13465_v23  ;;  %5492 = vmatprep.subr.bf16.mxu1 %v13465_v23  ;;  %vm4307_vm2 = vcmask 1041408  }
  0x76   :  { %v7819_v37 = vld [vmem:[%s13455_s0 + $0x118] sm:$0xff]   ;;  %v7820_v38 = vld [vmem:[%s13455_s0 + $0x120] sm:$0xff]   ;;  %v7821_v39 = vld [vmem:[%s13455_s0 + $0x128] sm:$0xff]   ;;  %1737 = vst [vmem:[#allocation2 + $0x94] sm:$0xf] %v13465_v23  ;;  %s8042_s13 = smov 32  }
  0x77   :  { %v7822_v40 = vld [vmem:[%s13455_s0 + $0x130] sm:$0xff]   ;;  %v7823_v41 = vld [vmem:[%s13455_s0 + $0x138] sm:$0xff]   ;;  %v7824_v42 = vld [vmem:[%s13455_s0 + $0x140] sm:$0xff]   ;;  %1738 = vst [vmem:[#allocation2 + $0x98] sm:$0xf] %v13465_v23  ;;  %s8043_s14 = smov 80  }
  0x78   :  { %v7825_v43 = vld [vmem:[%s13455_s0 + $0x148] sm:$0xff]   ;;  %v7826_v44 = vld [vmem:[%s13455_s0 + $0x150] sm:$0xff]   ;;  %v7827_v45 = vld [vmem:[%s13455_s0 + $0x158] sm:$0xff]   ;;  %1739 = vst [vmem:[#allocation2 + $0x9c] sm:$0xf] %v13465_v23  ;;  %vm4598_vm4 = vcmask 1040384  }
  0x79   :  { %v7828_v46 = vld [vmem:[%s13455_s0 + $0x160] sm:$0xff]   ;;  %v7829_v47 = vld [vmem:[%s13455_s0 + $0x168] sm:$0xff]   ;;  %v7830_v48 = vld [vmem:[%s13455_s0 + $0x170] sm:$0xff]   ;;  %1740 = vst [vmem:[#allocation2 + $0xa0] sm:$0xf] %v13465_v23  ;;  %s8044_s17 = smov 64  }
  0x7a   :  { %7616 = vmatmul.mubr.msk.bf16.gmra.mrb[56].mxu0 %vm545_vm0, %v7813_v31  ;;  %v7831_v49 = vld [vmem:[%s13455_s0 + $0x178] sm:$0xff]   ;;  %v7832_v50 = vld [vmem:[%s13455_s0 + $0x180] sm:$0xff]   ;;  %v7833_v51 = vld [vmem:[%s13455_s0 + $0x188] sm:$0xff]   ;;  %1741 = vst [vmem:[#allocation2 + $0xa4] sm:$0xf] %v13465_v23  ;;  %s8045_s18 = smov 112  }
  0x7b   :  { %7619 = vmatprep.mubr.msk.bf16.mxu0 %vm545_vm0, %v7814_v32  ;;  %v7834_v52 = vld [vmem:[%s13455_s0 + $0x190] sm:$0xff]   ;;  %v7835_v53 = vld [vmem:[%s13455_s0 + $0x198] sm:$0xff]   ;;  %v7836_v54 = vld [vmem:[%s13455_s0 + $0x1a0] sm:$0xff]   ;;  %1742 = vst [vmem:[#allocation2 + $0xa8] sm:$0xf] %v13465_v23  ;;  %s8046_s21 = smov 96  }
  0x7c   :  { %v7837_v55 = vld [vmem:[%s13455_s0 + $0x1a8] sm:$0xff]   ;;  %v7838_v56 = vld [vmem:[%s13455_s0 + $0x1b0] sm:$0xff]   ;;  %v7839_v59 = vld [vmem:[%s13455_s0 + $0x1b8] sm:$0xff]   ;;  %vm3982_vm3 = vsmask.f32 2304  ;;  %s8047_s24 = smov 16  }
  0x7d   :  { %v7840_v61 = vld [vmem:[%s13455_s0 + $0x1c0] sm:$0xff]   ;;  %v7841_v1 = vld [vmem:[%s13455_s0 + $0x1c8] sm:$0xff]   ;;  %v7842_v3 = vld [vmem:[%s13455_s0 + $0x1d0] sm:$0xff]   ;;  %vm13606_vm5 = vsmask.f32 1280  ;;  %vm2280_vm7 = vcmask 1045504  }
  0x7e   :  { %v7843_v7 = vld [vmem:[%s13455_s0 + $0x1d8] sm:$0xff]   ;;  %v7844_v9 = vld [vmem:[%s13455_s0 + $0x1e0] sm:$0xff]   ;;  %v7845_v13 = vld [vmem:[%s13455_s0 + $0x1e8] sm:$0xff]   ;;  %vm1890_vm6 = vsmask.f32 7424  ;;  %vm13612_vm9 = vcmask 1044480  }
  0x7f   :  { %v7846_v15 = vld [vmem:[%s13455_s0 + $0x1f0] sm:$0xff]   ;;  %v7847_v19 = vld [vmem:[%s13455_s0 + $0x1f8] sm:$0xff]   ;;  %v7848_v21 = vld [vmem:[%s13455_s0 + $0x200] sm:$0xff]   ;;  %vm13603_vm8 = vsmask.f32 6400  ;;  %vm3304_vm10 = vcmask 130048  }
  0x80   :  { %v7849_v26 = vld [vmem:[%s13455_s0 + $0x208] sm:$0xff]   ;;  %v7850_v28 = vld [vmem:[%s13455_s0 + $0x210] sm:$0xff]   ;;  %v1789_v32 = vld [vmem:[#allocation2 + $0x98] sm:$0xf]  ;;  %vm4677_vm11 = vsmask.f32 256 }
  0x81   :  { %v1784_v30 = vld [vmem:[#allocation2 + $0x90] sm:$0xf]  ;;  %v1788_v31 = vld [vmem:[#allocation2 + $0x94] sm:$0xf]  ;;  %vm2455_vm12 = vsmask.f32 5376 }
  0x82   :  { %7620 = vmatmul.mubr.msk.bf16.gmra.mrb[60].mxu0 %vm545_vm0, %v7815_v33  ;;  %v8417_v33 = vld [vmem:[#allocation2 + $0x9c] sm:$0xf]  ;;  %v7854_v23 = vld [vmem:[%s13455_s0 + $0x230] sm:$0xff]   ;;  %vm13602_vm13 = vsmask.f32 4352  ;;  %vm3377_vm14 = vcmask 392192  }
  0x83   :  { %7623 = vmatprep.mubr.msk.bf16.mxu0 %vm545_vm0, %v7816_v34  ;;  %v8419_v34 = vcombine.low %v1784_v30, %v1788_v31  ;;  %vm3414_vm15 = vcmask 523264   ;;  %s8051_s23 = smov [#allocation3]  }
  0x84   :  { %s6939_s25 = sshll.u32 %s8051_s23, 4  ;;  %s6940_s25 = int_to_ptr.vmem [resolvable:$true] %s6939_s25 }
  0x85   :  { %13754 = vst [vmem:[#allocation14_spill] sm:$0xff] %v8419_v34  ;;  %s8017_s26 = scalar_lea.vmem %s6940_s25, 32  ;;  %p8022_p1 = scmp.lt.s32.totalorder %s6940_s25, %s6940_s25 }
  0x86   :  { %p8018_p0 = scmp.ne.s32.totalorder %s6940_s25, %s8017_s26  ;;  %p8023_p2 = scmp.lt.s32.totalorder %s8017_s26, %s8017_s26 }
  0x88   :  { %p8024_p3 = por %p8023_p2, %p8022_p1 }
  0x8a   :  { %7624 = vmatmul.mubr.msk.bf16.gmra.mrb[64].mxu0 %vm545_vm0, %v7817_v35  ;;  %v8422_v35 = vcombine.low %v1789_v32, %v8417_v33  ;;  %p8025_p4 = pnand %p8024_p3, %p8018_p0 }
  0x8b   :  { %7627 = vmatprep.mubr.msk.bf16.mxu0 %vm545_vm0, %v7818_v36  ;;  %v8424_v36 = vld [vmem:[#allocation2 + $0x90] sm:$0xff]  }
  0x8c   :  { %13755 = vst [vmem:[#allocation15_spill] sm:$0xff] %v8422_v35  ;;  %13756 = vst [vmem:[#allocation16_spill] sm:$0xff] %v8424_v36 }
  0x92   :  { %7628 = vmatmul.mubr.msk.bf16.gmra.mrb[68].mxu0 %vm545_vm0, %v7819_v37 }
  0x93   :  { %7631 = vmatprep.mubr.msk.bf16.mxu0 %vm545_vm0, %v7820_v38  ;;  %v13464_v38 = vrot.slane %v8419_v34, 1 }
  0x9a   :  { %7632 = vmatmul.mubr.msk.bf16.gmra.mrb[72].mxu0 %vm545_vm0, %v7821_v39  ;;  %v8429_v39 = vld [vmem:[#allocation2 + $0x98] sm:$0xff]  }
  0x9b   :  { %7635 = vmatprep.mubr.msk.bf16.mxu0 %vm545_vm0, %v7822_v40  ;;  %v13470_v40 = vshll.u32 %v8419_v34, 16 }
  0xa2   :  { %7636 = vmatmul.mubr.msk.bf16.gmra.mrb[76].mxu0 %vm545_vm0, %v7823_v41  ;;  %v13469_v41 = vshrl.u32 %v8419_v34, 16 }
  0xa3   :  { %7639 = vmatprep.mubr.msk.bf16.mxu0 %vm545_vm0, %v7824_v42 }
  0xaa   :  { %7640 = vmatmul.mubr.msk.bf16.gmra.mrb[80].mxu0 %vm545_vm0, %v7825_v43  ;;  %v7851_v43 = vld [vmem:[%s13455_s0 + $0x218] sm:$0xff]  }
  0xab   :  { %7643 = vmatprep.mubr.msk.bf16.mxu0 %vm545_vm0, %v7826_v44  ;;  %v3967_v44 = vrot.slane %v8422_v35, 1 }
  0xb2   :  { %7644 = vmatmul.mubr.msk.bf16.gmra.mrb[84].mxu0 %vm545_vm0, %v7827_v45  ;;  %v13463_v45 = vrot.slane %v8424_v36, 6 }
  0xb3   :  { %7647 = vmatprep.mubr.msk.bf16.mxu0 %vm545_vm0, %v7828_v46  ;;  %v3935_v46 = vshll.u32 %v8422_v35, 16 }
  0xba   :  { %7648 = vmatmul.mubr.msk.bf16.gmra.mrb[88].mxu0 %vm545_vm0, %v7829_v47 }
  0xbb   :  { %7651 = vmatprep.mubr.msk.bf16.mxu0 %vm545_vm0, %v7830_v48  ;;  %v7852_v48 = vld [vmem:[%s13455_s0 + $0x220] sm:$0xff]  }
  0xc2   :  { %7652 = vmatmul.mubr.msk.bf16.gmra.mrb[92].mxu0 %vm545_vm0, %v7831_v49  ;;  %v13468_v49 = vrot.slane %v8429_v39, 6 }
  0xc3   :  { %7655 = vmatprep.mubr.msk.bf16.mxu0 %vm545_vm0, %v7832_v50  ;;  %v3939_v50 = vshrl.u32 %v8422_v35, 16  ;;  %v8550_v35 = vld [vmem:[#allocation2 + $0xa0] sm:$0xff]  }
  0xca   :  { %7656 = vmatmul.mubr.msk.bf16.gmra.mrb[96].mxu0 %vm545_vm0, %v7833_v51 }
  0xcb   :  { %7659 = vmatprep.mubr.msk.bf16.mxu0 %vm545_vm0, %v7834_v52  ;;  %v3968_v52 = vsel %vm2078_vm1, %v13464_v38, %v3967_v44 }
  0xcc   :  { %3975 = vrot.lane.b32.xlu1 %v3968_v52, %s8042_s13 }
  0xd2   :  { %7660 = vmatmul.mubr.msk.bf16.gmra.mrb[100].mxu0 %vm545_vm0, %v7835_v53  ;;  %v4159_v53 = vrot.slane %v13469_v41, 5 }
  0xd3   :  { %7663 = vmatprep.mubr.msk.bf16.mxu0 %vm545_vm0, %v7836_v54  ;;  %v4340_v54 = vsel %vm4307_vm2, %v13463_v45, %v13468_v49 }
  0xd4   :  { %4377 = vrot.lane.b32.xlu0 %v4340_v54, %s8043_s14  ;;  %v8486_v54 = vld [vmem:[#allocation2 + $0xa0] ss:$0 sps:$4 sm:$0x77]  }
  0xd5   :  { %v3943_v41 = vshll.u32 %v8486_v54, 16 }
  0xda   :  { %7664 = vmatmul.mubr.msk.bf16.gmra.mrb[104].mxu0 %vm545_vm0, %v7837_v55  ;;  %v4160_v55 = vrot.slane %v13470_v40, 6 }
  0xdb   :  { %7667 = vmatprep.mubr.msk.bf16.mxu0 %vm545_vm0, %v7838_v56  ;;  %v4163_v56 = vrot.slane %v3939_v50, 5 }
  0xdd   :  { %v8313_v57 = vpop.f32.mrb[0].mxu0 }
  0xde   :  { %v8315_v58 = vpop.f32.mrb[1].mxu0 }
  0xdf   :  { %v8320_v60 = vpop.f32.mrb[2].mxu0 }
  0xe0   :  { %v8325_v62 = vpop.f32.mrb[3].mxu0 }
  0xe2   :  { %7668 = vmatmul.mubr.msk.bf16.gmra.mrb[108].mxu0 %vm545_vm0, %v7839_v59  ;;  %v4164_v59 = vrot.slane %v3935_v46, 6 }
  0xe3   :  { %7671 = vmatprep.mubr.msk.bf16.mxu0 %vm545_vm0, %v7840_v61  ;;  %v13462_v61 = vrot.slane %v8424_v36, 7 }
  0xe5   :  { %v8329_v63 = vpop.f32.mrb[4].mxu0 }
  0xe6   :  { %v8331_v0 = vpop.f32.mrb[5].mxu0 }
  0xe7   :  { %v8336_v2 = vpop.f32.mrb[6].mxu0 }
  0xe8   :  { %v8341_v4 = vpop.f32.mrb[7].mxu0 }
  0xea   :  { %7672 = vmatmul.mubr.msk.bf16.gmra.mrb[112].mxu0 %vm545_vm0, %v7841_v1  ;;  %v13467_v1 = vrot.slane %v8429_v39, 7 }
  0xeb   :  { %7675 = vmatprep.mubr.msk.bf16.mxu0 %vm545_vm0, %v7842_v3  ;;  %v4522_v3 = vshrl.u32 %v8424_v36, 16 }
  0xed   :  { %v8345_v5 = vpop.f32.mrb[8].mxu0 }
  0xee   :  { %v8347_v6 = vpop.f32.mrb[9].mxu0 }
  0xef   :  { %v8352_v8 = vpop.f32.mrb[10].mxu0 }
  0xf0   :  { %v8357_v10 = vpop.f32.mrb[11].mxu0 }
  0xf2   :  { %7676 = vmatmul.mubr.msk.bf16.gmra.mrb[116].mxu0 %vm545_vm0, %v7843_v7  ;;  %v8469_v7 = vor.u32 %v4160_v55, %v4159_v53 }
  0xf3   :  { %7679 = vmatprep.mubr.msk.bf16.mxu0 %vm545_vm0, %v7844_v9  ;;  %v8471_v9 = vor.u32 %v4164_v59, %v4163_v56  ;;  %v7853_v56 = vld [vmem:[%s13455_s0 + $0x228] sm:$0xff]   ;;  %v8493_v59 = vcombine.low %v1788_v31, %v1789_v32  ;;  %v8506_v31 = vrot.slane %v4522_v3, 7 }
  0xf4   :  { %13761 = vst [vmem:[#allocation21_spill] sm:$0xff] %v8469_v7 }
  0xf5   :  { %v8361_v11 = vpop.f32.mrb[12].mxu0  ;;  %13764 = vst [vmem:[#allocation24_spill] sm:$0xff] %v8493_v59  ;;  %13767 = vst [vmem:[#allocation27_spill] sm:$0xff] %v8506_v31 }
  0xf6   :  { %v8363_v12 = vpop.f32.mrb[13].mxu0 }
  0xf7   :  { %v8368_v14 = vpop.f32.mrb[14].mxu0 }
  0xf8   :  { %v8373_v16 = vpop.f32.mrb[15].mxu0 }
  0xfa   :  { %7680 = vmatmul.mubr.msk.bf16.gmra.mrb[120].mxu0 %vm545_vm0, %v7845_v13  ;;  %v4525_v13 = vshll.u32 %v8424_v36, 16 }
  0xfb   :  { %7683 = vmatprep.mubr.msk.bf16.mxu0 %vm545_vm0, %v7846_v15  ;;  %v4531_v15 = vshrl.u32 %v8429_v39, 16 }
  0xfc   :  { %v4527_v52 = vrot.slane %v4525_v13, 7  ;;  %v8518_v40 = vor.u32 %v8506_v31, %v4525_v13  ;;  %v8535_v13 = vshll.u32 %v8493_v59, 16 }
  0xfd   :  { %v8377_v17 = vpop.f32.mrb[16].mxu0  ;;  %v4533_v53 = vrot.slane %v4531_v15, 6  ;;  %v8508_v32 = vrot.slane %v4531_v15, 7  ;;  %v13772_v15 = vshll.u32 %v8419_v34, 16 }
  0xfe   :  { %13746 = vst [vmem:[#allocation6_spill] sm:$0xff] %v8377_v17  ;;  %v8379_v18 = vpop.f32.mrb[17].mxu0  ;;  %13770 = vst [vmem:[#allocation30_spill] sm:$0xff] %v8518_v40 }
  0xff   :  { %13747 = vst [vmem:[#allocation7_spill] sm:$0xff] %v8379_v18  ;;  %v8384_v20 = vpop.f32.mrb[18].mxu0  ;;  %13768 = vst [vmem:[#allocation28_spill] sm:$0xff] %v8508_v32 }
 0x100   :  { %13748 = vst [vmem:[#allocation8_spill] sm:$0xff] %v8384_v20  ;;  %v8389_v22 = vpop.f32.mrb[19].mxu0  ;;  %13774 = vst [vmem:[#allocation33_spill] sm:$0xff] %v8535_v13 }
 0x101   :  { %13749 = vst [vmem:[#allocation9_spill] sm:$0xff] %v8389_v22 }
 0x102   :  { %7684 = vmatmul.mubr.msk.bf16.gmra.mrb[124].mxu0 %vm545_vm0, %v7847_v19  ;;  %v3870_v19 = vld [vmem:[#allocation2 + $0xa0] sm:$0xf] }
 0x103   :  { %7687 = vmatprep.mubr.msk.bf16.mxu0 %vm545_vm0, %v7848_v21  ;;  %v4631_v21 = vsel %vm4598_vm4, %v13462_v61, %v13467_v1  ;;  %v7185_v30 = vcombine.low %v3870_v19, %v3870_v19 }
 0x104   :  { %4668 = vrot.lane.b32.xlu0 %v4631_v21, %s8045_s18 }
 0x105   :  { %v8401_v24 = vpop.f32.mrb[20].mxu0  ;;  %v8497_v45 = vrot.slane %v7185_v30, 1 }
 0x106   :  { %13750 = vst [vmem:[#allocation10_spill] sm:$0xff] %v8401_v24  ;;  %v8403_v25 = vpop.f32.mrb[21].mxu0 }
 0x107   :  { %13751 = vst [vmem:[#allocation11_spill] sm:$0xff] %v8403_v25  ;;  %v8408_v27 = vpop.f32.mrb[22].mxu0  ;;  %v3970_v30 = vsel %vm2078_vm1, %v3967_v44, %v8497_v45 }
 0x108   :  { %13752 = vst [vmem:[#allocation12_spill] sm:$0xff] %v8408_v27  ;;  %v8413_v29 = vpop.f32.mrb[23].mxu0  ;;  %3977 = vrot.lane.b32.xlu0 %v3970_v30, %s8042_s13 }
 0x109   :  { %13753 = vst [vmem:[#allocation13_spill] sm:$0xff] %v8413_v29 }
 0x10a   :  { %7688 = vmatmul.mubr.msk.bf16.gmra.mrb[128].mxu0 %vm545_vm0, %v7849_v26  ;;  %v4524_v26 = vrot.slane %v4522_v3, 6 }
 0x10b   :  { %7691 = vmatprep.mubr.msk.bf16.mxu0 %vm545_vm0, %v7850_v28  ;;  %v4534_v28 = vshll.u32 %v8429_v39, 16 }
 0x10c   :  { %v8504_v1 = vor.u32 %v4527_v52, %v4524_v26  ;;  %v3871_v52 = vld [vmem:[#allocation2 + $0xa4] sm:$0xf] }
 0x10d   :  { %v8426_v37 = vpop.f32.mrb[24].mxu0  ;;  %v4536_v61 = vrot.slane %v4534_v28, 7  ;;  %v8521_v26 = vor.u32 %v8508_v32, %v4534_v28  ;;  %v13776_v28 = vshrl.u32 %v8419_v34, 16  ;;  %v7187_v30 = vcombine.low %v3870_v19, %v3871_v52 }
 0x10e   :  { %13757 = vst [vmem:[#allocation17_spill] sm:$0xff] %v8426_v37  ;;  %v8433_v42 = vpop.f32.mrb[25].mxu0  ;;  %13766 = vst [vmem:[#allocation26_spill] sm:$0xff] %v8504_v1  ;;  %v4543_v52 = vshll.u32 %v8550_v35, 16 }
 0x10f   :  { %13758 = vst [vmem:[#allocation18_spill] sm:$0xff] %v8433_v42  ;;  %v8441_v47 = vpop.f32.mrb[26].mxu0  ;;  %v8512_v21 = vor.u32 %v4536_v61, %v4533_v53  ;;  %13771 = vst [vmem:[#allocation31_spill] sm:$0xff] %v8521_v26  ;;  %v8532_v61 = vrot.slane %v3943_v41, 1 }
 0x110   :  { %13759 = vst [vmem:[#allocation19_spill] sm:$0xff] %v8441_v47  ;;  %v8448_v51 = vpop.f32.mrb[27].mxu0  ;;  %v4545_v31 = vrot.slane %v4543_v52, 7 }
 0x111   :  { %13760 = vst [vmem:[#allocation20_spill] sm:$0xff] %v8448_v51  ;;  %v4538_v44 = vsel %vm13606_vm5, %v8504_v1, %v8512_v21 }
 0x112   :  { %7692 = vmatmul.mubr.msk.bf16.gmra.mrb[132].mxu0 %vm545_vm0, %v7851_v43 }
 0x113   :  { %7695 = vmatprep.mubr.msk.bf16.mxu0 %vm545_vm0, %v7852_v48  ;;  %v4166_v48 = vsel %vm3982_vm3, %v8469_v7, %v8471_v9  ;;  %v4168_v7 = vshrl.u32 %v7187_v30, 16 }
 0x114   :  { %4208 = vrot.lane.b32.xlu1 %v4166_v48, %s8044_s17  ;;  %v3937_v48 = vrot.slane %v3935_v46, 1  ;;  %v8525_v46 = vrot.slane %v13772_v15, 1 }
 0x115   :  { %v8481_v43 = vpop.f32.mrb[28].mxu0 }
 0x116   :  { %13762 = vst [vmem:[#allocation22_spill] sm:$0xff] %v8481_v43  ;;  %v8488_v55 = vpop.f32.mrb[29].mxu0  ;;  %v3941_v3 = vor.u32 %v3939_v50, %v3937_v48  ;;  %13773 = vst [vmem:[#allocation32_spill] sm:$0xff] %v8525_v46  ;;  %v8538_v50 = vshrl.u32 %v8493_v59, 16  ;;  %v3933_v53 = vor.u32 %v13776_v28, %v8525_v46  ;;  %v4047_v59 = vrot.slane %v8535_v13, 6 }
 0x117   :  { %13763 = vst [vmem:[#allocation23_spill] sm:$0xff] %v8488_v55  ;;  %v8499_v38 = vpop.f32.mrb[30].mxu0  ;;  %v4170_v13 = vrot.slane %v4168_v7, 5 }
 0x118   :  { %13765 = vst [vmem:[#allocation25_spill] sm:$0xff] %v8499_v38  ;;  %v8510_v49 = vpop.f32.mrb[31].mxu0  ;;  %13775 = vst [vmem:[#allocation34_spill] sm:$0xff] %v8538_v50  ;;  %4589 = vrot.lane.b32.xlu1 %v4538_v44, %s8046_s21  ;;  %v3946_v41 = vsel %vm1890_vm6, %v3941_v3, %v8532_v61  ;;  %v4046_v15 = vrot.slane %v8538_v50, 5  ;;  %v3938_v44 = vsel %vm1890_vm6, %v3933_v53, %v3937_v48  ;;  %v4540_v3 = vshrl.u32 %v8550_v35, 16 }
 0x119   :  { %13769 = vst [vmem:[#allocation29_spill] sm:$0xff] %v8510_v49  ;;  %3954 = vrot.lane.b32.xlu0 %v3938_v44, %s8047_s24 }
 0x11a   :  { %7696 = vmatmul.mubr.msk.bf16.gmra.mrb[136].mxu0 %vm545_vm0, %v7853_v56  ;;  %v7186_v56 = vcombine.low %v8417_v33, %v3870_v19  ;;  %v7855_v33 = vld [vmem:[%s13455_s0 + $0x238] sm:$0xff]   ;;  %v4171_v19 = vshll.u32 %v7187_v30, 16  ;;  %v8566_v48 = vor.u32 %v4047_v59, %v4046_v15  ;;  %v4542_v34 = vrot.slane %v4540_v3, 6  ;;  %s8048_s0 = smov 48  }
 0x11b   :  { %7699 = vmatprep.mubr.msk.bf16.mxu0 %vm545_vm0, %v7854_v23  ;;  %v4341_v30 = vrot.slane %v8550_v35, 6  ;;  %v8571_v26 = vrot.slane %v4540_v3, 7 }
 0x11c   :  { %v4051_v32 = vshrl.u32 %v7186_v56, 16  ;;  %v4054_v1 = vshll.u32 %v7186_v56, 16  ;;  %3956 = vrot.lane.b32.xlu1 %v3946_v41, %s8047_s24  ;;  %13780 = vst [vmem:[#allocation38_spill] sm:$0xff] %v8566_v48  ;;  %v4173_v36 = vrot.slane %v4171_v19, 6  ;;  %v13784_v41 = vrot.slane %v8429_v39, 6 }
 0x11d   :  { %v8552_v23 = vpop.f32.mrb[32].mxu0  ;;  %13782 = vst [vmem:[#allocation40_spill] sm:$0xff] %v8571_v26 }
 0x11e   :  { %13777 = vst [vmem:[#allocation35_spill] sm:$0xff] %v8552_v23  ;;  %v8555_v28 = vpop.f32.mrb[33].mxu0  ;;  %v4053_v53 = vrot.slane %v4051_v32, 5  ;;  %v4056_v56 = vrot.slane %v4054_v1, 6  ;;  %v4174_v40 = vor.u32 %v4173_v36, %v4170_v13  ;;  %v8577_v1 = vor.u32 %v8571_v26, %v4543_v52 }
 0x11f   :  { %13778 = vst [vmem:[#allocation36_spill] sm:$0xff] %v8555_v28  ;;  %v8563_v50 = vpop.f32.mrb[34].mxu0  ;;  %v4632_v36 = vrot.slane %v8550_v35, 7 }
 0x120   :  { %13779 = vst [vmem:[#allocation37_spill] sm:$0xff] %v8563_v50  ;;  %v8568_v46 = vpop.f32.mrb[35].mxu0  ;;  %v4057_v44 = vor.u32 %v4056_v56, %v4053_v53  ;;  %v4546_v50 = vor.u32 %v4545_v31, %v4542_v34  ;;  %13783 = vst [vmem:[#allocation41_spill] sm:$0xff] %v8577_v1  ;;  %v4175_v7 = vsel %vm3982_vm3, %v8471_v9, %v4174_v40  ;;  %v3947_v31 = vshrl.u32 %v8486_v54, 16 }
 0x121   :  { %13781 = vst [vmem:[#allocation39_spill] sm:$0xff] %v8568_v46  ;;  %4210 = vrot.lane.b32.xlu0 %v4175_v7, %s8044_s17  ;;  %v4342_v34 = vsel %vm4307_vm2, %v13784_v41, %v4341_v30  ;;  %v13785_v54 = vrot.slane %v8429_v39, 7  ;;  %v7865_v56 = vld [vmem:[#allocation2 + $0xa8] ss:$0 sps:$4 sm:$0x11]  }
 0x122   :  { %7700 = vmatmul.mubr.msk.bf16.gmra.mrb[140].mxu0 %vm545_vm0, %v7855_v33  ;;  %v4058_v59 = vsel %vm3982_vm3, %v8566_v48, %v4057_v44  ;;  %v4547_v9 = vsel %vm13606_vm5, %v8512_v21, %v4546_v50  ;;  %v3949_v53 = vor.u32 %v3947_v31, %v8532_v61  ;;  %v4549_v7 = vshrl.u32 %v7865_v56, 16 }
 0x123   :  { %4093 = vrot.lane.b32.xlu1 %v4058_v59, %s8048_s0  ;;  %v4633_v21 = vsel %vm4598_vm4, %v13785_v54, %v4632_v36  ;;  %v4552_v41 = vshll.u32 %v7865_v56, 16 }
 0x124   :  { %v4551_v61 = vrot.slane %v4549_v7, 6 }
 0x125   :  { %v8582_v32 = vpop.f32.mrb[36].mxu0  ;;  %4591 = vrot.lane.b32.xlu0 %v4547_v9, %s8046_s21  ;;  %v4343_v9 = vrot.slane %v7865_v56, 6  ;;  %v4554_v31 = vrot.slane %v4552_v41, 7 }
 0x126   :  { %v8592_v15 = vpop.f32.mrb[37].mxu0 }
 0x127   :  { %v8598_v19 = vpop.f32.mrb[38].mxu0  ;;  %4379 = vrot.lane.b32.xlu1 %v4342_v34, %s8043_s14  ;;  %v4555_v56 = vor.u32 %v4554_v31, %v4551_v61  ;;  %v4344_v39 = vsel %vm4307_vm2, %v4341_v30, %v4343_v9 }
 0x128   :  { %v8602_v52 = vpop.f32.mrb[39].mxu0 }
 0x129   :  { %3958 = vrot.lane.b32.xlu0 %v3949_v53, %s8047_s24  ;;  %v7866_v53 = vld [vmem:[#allocation2 + $0xa8] ss:$0 sps:$4 sm:$0x33]   ;;  %v4556_v41 = vsel %vm13606_vm5, %v4546_v50, %v4555_v56 }
 0x12a   :  { %v4634_v33 = vrot.slane %v7866_v53, 7 }
 0x12b   :  { %4670 = vrot.lane.b32.xlu1 %v4633_v21, %s8045_s18 }
 0x12c   :  { %v4635_v34 = vsel %vm4598_vm4, %v4632_v36, %v4634_v33 }
 0x12d   :  { %v8613_v59 = vpop.f32.mrb[40].mxu0  ;;  %4095 = vrot.lane.b32.xlu0 %v4057_v44, %s8048_s0 }
 0x12e   :  { %v8618_v35 = vpop.f32.mrb[41].mxu0 }
 0x12f   :  { %v8622_v54 = vpop.f32.mrb[42].mxu0  ;;  %3979 = vrot.lane.b32.xlu1 %v8497_v45, %s8042_s13 }
 0x130   :  { %v8626_v3 = vpop.f32.mrb[43].mxu0 }
 0x131   :  { %4381 = vrot.lane.b32.xlu0 %v4344_v39, %s8043_s14 }
 0x133   :  { %4212 = vrot.lane.b32.xlu1 %v4174_v40, %s8044_s17 }
 0x135   :  { %v8635_v7 = vpop.f32.mrb[44].mxu0  ;;  %4672 = vrot.lane.b32.xlu0 %v4635_v34, %s8045_s18 }
 0x136   :  { %v8641_v21 = vpop.f32.mrb[45].mxu0 }
 0x137   :  { %v8646_v30 = vpop.f32.mrb[46].mxu0  ;;  %4593 = vrot.lane.b32.xlu1 %v4556_v41, %s8046_s21 }
 0x138   :  { %v8650_v9 = vpop.f32.mrb[47].mxu0 }
 0x13d   :  { %v8656_v39 = vpop.f32.mrb[48].mxu0 }
 0x13e   :  { %v8660_v33 = vpop.f32.mrb[49].mxu0 }
 0x13f   :  { %v8664_v31 = vpop.f32.mrb[50].mxu0 }
 0x140   :  { %v8668_v56 = vpop.f32.mrb[51].mxu0 }
 0x145   :  { %v8672_v41 = vpop.f32.mrb[52].mxu0 }
 0x146   :  { %13786 = vst [vmem:[#allocation42_spill] sm:$0xff] %v8672_v41  ;;  %v8676_v50 = vpop.f32.mrb[53].mxu0 }
 0x147   :  { %13787 = vst [vmem:[#allocation43_spill] sm:$0xff] %v8676_v50  ;;  %v8680_v40 = vpop.f32.mrb[54].mxu0 }
 0x148   :  { %13788 = vst [vmem:[#allocation44_spill] sm:$0xff] %v8680_v40  ;;  %v8684_v44 = vpop.f32.mrb[55].mxu0 }
 0x149   :  { %13789 = vst [vmem:[#allocation45_spill] sm:$0xff] %v8684_v44 }
 0x14d   :  { %v8688_v45 = vpop.f32.mrb[56].mxu0 }
 0x14e   :  { %13790 = vst [vmem:[#allocation46_spill] sm:$0xff] %v8688_v45  ;;  %v8692_v13 = vpop.f32.mrb[57].mxu0 }
 0x14f   :  { %13791 = vst [vmem:[#allocation47_spill] sm:$0xff] %v8692_v13  ;;  %v8696_v26 = vpop.f32.mrb[58].mxu0 }
 0x150   :  { %13792 = vst [vmem:[#allocation48_spill] sm:$0xff] %v8696_v26  ;;  %v8700_v1 = vpop.f32.mrb[59].mxu0 }
 0x151   :  { %13793 = vst [vmem:[#allocation49_spill] sm:$0xff] %v8700_v1 }
 0x155   :  { %v8704_v48 = vpop.f32.mrb[60].mxu0 }
 0x156   :  { %13794 = vst [vmem:[#allocation50_spill] sm:$0xff] %v8704_v48  ;;  %v8708_v45 = vpop.f32.mrb[61].mxu0 }
 0x157   :  { %13795 = vst [vmem:[#allocation51_spill] sm:$0xff] %v8708_v45  ;;  %v8712_v13 = vpop.f32.mrb[62].mxu0 }
 0x158   :  { %13796 = vst [vmem:[#allocation52_spill] sm:$0xff] %v8712_v13  ;;  %v8716_v26 = vpop.f32.mrb[63].mxu0 }
 0x159   :  { %13797 = vst [vmem:[#allocation53_spill] sm:$0xff] %v8716_v26 }
 0x15d   :  { %v8720_v1 = vpop.f32.mrb[64].mxu0 }
 0x15e   :  { %13798 = vst [vmem:[#allocation54_spill] sm:$0xff] %v8720_v1  ;;  %v8724_v48 = vpop.f32.mrb[65].mxu0 }
 0x15f   :  { %13799 = vst [vmem:[#allocation55_spill] sm:$0xff] %v8724_v48  ;;  %v8728_v45 = vpop.f32.mrb[66].mxu0 }
 0x160   :  { %13800 = vst [vmem:[#allocation56_spill] sm:$0xff] %v8728_v45  ;;  %v8732_v13 = vpop.f32.mrb[67].mxu0 }
 0x161   :  { %13801 = vst [vmem:[#allocation57_spill] sm:$0xff] %v8732_v13 }
 0x165   :  { %v8736_v26 = vpop.f32.mrb[68].mxu0 }
 0x166   :  { %13802 = vst [vmem:[#allocation58_spill] sm:$0xff] %v8736_v26  ;;  %v8740_v1 = vpop.f32.mrb[69].mxu0 }
 0x167   :  { %13803 = vst [vmem:[#allocation59_spill] sm:$0xff] %v8740_v1  ;;  %v8744_v48 = vpop.f32.mrb[70].mxu0 }
 0x168   :  { %13804 = vst [vmem:[#allocation60_spill] sm:$0xff] %v8744_v48  ;;  %v8748_v45 = vpop.f32.mrb[71].mxu0 }
 0x169   :  { %13806 = vst [vmem:[#allocation61_spill] sm:$0xff] %v8748_v45 }
 0x16d   :  { %v7633_v13 = vpop.f32.mrb[72].mxu0 }
 0x16e   :  { %v1084_v49 = vpop.f32.mrb[73].mxu0 }
 0x16f   :  { %v7634_v38 = vpop.f32.mrb[74].mxu0 }
 0x170   :  { %v1087_v43 = vpop.f32.mrb[75].mxu0 }
 0x175   :  { %v7637_v36 = vpop.f32.mrb[76].mxu0 }
 0x176   :  { %v8752_v26 = vpop.f32.mrb[77].mxu0 }
 0x177   :  { %v8754_v23 = vpop.f32.mrb[78].mxu0 }
 0x178   :  { %v8756_v61 = vpop.f32.mrb[79].mxu0 }
 0x17d   :  { %v8758_v1 = vpop.f32.mrb[80].mxu0 }
 0x17e   :  { %v8760_v28 = vpop.f32.mrb[81].mxu0 }
 0x17f   :  { %v8762_v53 = vpop.f32.mrb[82].mxu0 }
 0x180   :  { %v8764_v48 = vpop.f32.mrb[83].mxu0 }
 0x185   :  { %v8766_v34 = vpop.f32.mrb[84].mxu0 }
 0x186   :  { %v8768_v45 = vpop.f32.mrb[85].mxu0 }
 0x187   :  { %v8770_v46 = vpop.f32.mrb[86].mxu0 }
 0x188   :  { %v8772_v55 = vpop.f32.mrb[87].mxu0 }
 0x18d   :  { %v8774_v51 = vpop.f32.mrb[88].mxu0 }
 0x18e   :  { %v8776_v47 = vpop.f32.mrb[89].mxu0 }
 0x18f   :  { %v8778_v42 = vpop.f32.mrb[90].mxu0 }
 0x190   :  { %13807 = vst [vmem:[#allocation62_spill] sm:$0xff] %v8778_v42  ;;  %v8780_v37 = vpop.f32.mrb[91].mxu0 }
 0x191   :  { %13808 = vst [vmem:[#allocation63_spill] sm:$0xff] %v8780_v37 }
 0x195   :  { %v8782_v29 = vpop.f32.mrb[92].mxu0 }
 0x196   :  { %13809 = vst [vmem:[#allocation64_spill] sm:$0xff] %v8782_v29  ;;  %v8784_v27 = vpop.f32.mrb[93].mxu0 }
 0x197   :  { %13810 = vst [vmem:[#allocation65_spill] sm:$0xff] %v8784_v27  ;;  %v8786_v25 = vpop.f32.mrb[94].mxu0 }
 0x198   :  { %13811 = vst [vmem:[#allocation66_spill] sm:$0xff] %v8786_v25  ;;  %v8788_v24 = vpop.f32.mrb[95].mxu0 }
 0x199   :  { %13812 = vst [vmem:[#allocation67_spill] sm:$0xff] %v8788_v24 }
 0x19d   :  { %v8790_v44 = vpop.f32.mrb[96].mxu0 }
 0x19e   :  { %13813 = vst [vmem:[#allocation68_spill] sm:$0xff] %v8790_v44  ;;  %v8792_v22 = vpop.f32.mrb[97].mxu0 }
 0x19f   :  { %13814 = vst [vmem:[#allocation69_spill] sm:$0xff] %v8792_v22  ;;  %v8794_v40 = vpop.f32.mrb[98].mxu0 }
 0x1a0   :  { %13815 = vst [vmem:[#allocation70_spill] sm:$0xff] %v8794_v40  ;;  %v8796_v20 = vpop.f32.mrb[99].mxu0 }
 0x1a1   :  { %13816 = vst [vmem:[#allocation71_spill] sm:$0xff] %v8796_v20 }
 0x1a5   :  { %v8798_v50 = vpop.f32.mrb[100].mxu0 }
 0x1a6   :  { %13817 = vst [vmem:[#allocation72_spill] sm:$0xff] %v8798_v50  ;;  %v8800_v18 = vpop.f32.mrb[101].mxu0  ;;  %v8817_v50 = vld [vmem:[%s13460_s5] ss:$0 sm:$0xff] }
 0x1a7   :  { %13818 = vst [vmem:[#allocation73_spill] sm:$0xff] %v8800_v18  ;;  %v8802_v37 = vpop.f32.mrb[102].mxu0 }
 0x1a8   :  { %13819 = vst [vmem:[#allocation74_spill] sm:$0xff] %v8802_v37  ;;  %v8804_v29 = vpop.f32.mrb[103].mxu0 }
 0x1a9   :  { %13820 = vst [vmem:[#allocation75_spill] sm:$0xff] %v8804_v29  ;;  %v13825_v29 = vmax.f32 %v8313_v57, %v8582_v32 }
 0x1ad   :  { %v8806_v27 = vpop.f32.mrb[104].mxu0 }
 0x1ae   :  { %13821 = vst [vmem:[#allocation76_spill] sm:$0xff] %v8806_v27  ;;  %v8808_v25 = vpop.f32.mrb[105].mxu0 }
 0x1af   :  { %13822 = vst [vmem:[#allocation77_spill] sm:$0xff] %v8808_v25  ;;  %v8810_v24 = vpop.f32.mrb[106].mxu0 }
 0x1b0   :  { %13823 = vst [vmem:[#allocation78_spill] sm:$0xff] %v8810_v24  ;;  %v8812_v44 = vpop.f32.mrb[107].mxu0  ;;  %v13826_v24 = vmax.f32 %v8315_v58, %v8592_v15  ;;  %v13829_v15 = vmax.f32 %v8329_v63, %v8613_v59 }
 0x1b1   :  { %13824 = vst [vmem:[#allocation79_spill] sm:$0xff] %v8812_v44 }
 0x1b5   :  { %v7669_v22 = vpop.f32.mrb[108].mxu0 }
 0x1b6   :  { %v1409_v40 = vmax.f32 %v7633_v13, %v7669_v22  ;;  %v1228_v42 = vpop.f32.mrb[109].mxu0  ;;  %v13827_v13 = vmax.f32 %v8320_v60, %v8598_v19 }
 0x1b7   :  { %v1407_v18 = vmax.f32 %v1084_v49, %v1228_v42  ;;  %v7670_v37 = vpop.f32.mrb[110].mxu0  ;;  %v13828_v49 = vmax.f32 %v8325_v62, %v8602_v52 }
 0x1b8   :  { %v1445_v27 = vmax.f32 %v13825_v29, %v1409_v40  ;;  %v1410_v20 = vmax.f32 %v7634_v38, %v7670_v37  ;;  %v1231_v25 = vpop.f32.mrb[111].mxu0 }
 0x1b9   :  { %v1443_v44 = vmax.f32 %v13826_v24, %v1407_v18  ;;  %v1408_v41 = vmax.f32 %v1087_v43, %v1231_v25 }
 0x1ba   :  { %v1486_v22 = vadd.f32 %v8817_v50, %v1445_v27  ;;  %v1446_v17 = vmax.f32 %v13827_v13, %v1410_v20 }
 0x1bb   :  { %v1484_v42 = vadd.f32 %v8817_v50, %v1443_v44  ;;  %v1444_v57 = vmax.f32 %v13828_v49, %v1408_v41  ;;  %v13830_v44 = vmax.f32 %v8331_v0, %v8618_v35 }
 0x1bc   :  { %v1487_v29 = vadd.f32 %v8817_v50, %v1446_v17  ;;  %v1522_v58 = vmax.f32 %v1486_v22, 0.0 }
 0x1bd   :  { %v1485_v37 = vadd.f32 %v8817_v50, %v1444_v57  ;;  %v7673_v38 = vpop.f32.mrb[112].mxu0  ;;  %v1520_v27 = vmax.f32 %v1484_v42, 0.0 }
 0x1be   :  { %v1523_v18 = vmax.f32 %v1487_v29, 0.0  ;;  %v1413_v24 = vmax.f32 %v7637_v36, %v7673_v38  ;;  %v1244_v25 = vpop.f32.mrb[113].mxu0 }
 0x1bf   :  { %v1521_v43 = vmax.f32 %v1485_v37, 0.0  ;;  %v1411_v60 = vmax.f32 %v8752_v26, %v1244_v25  ;;  %v7674_v20 = vpop.f32.mrb[114].mxu0  ;;  %v13831_v26 = vmax.f32 %v8336_v2, %v8622_v54  ;;  %v13834_v25 = vmax.f32 %v8347_v6, %v8641_v21 }
 0x1c0   :  { %v7329_v32 = vpack.c.bf16 %v1523_v18, %v1522_v58  ;;  %v1449_v62 = vmax.f32 %v13829_v15, %v1413_v24  ;;  %v1414_v19 = vmax.f32 %v8754_v23, %v7674_v20  ;;  %v1247_v17 = vpop.f32.mrb[115].mxu0  ;;  %v13832_v23 = vmax.f32 %v8341_v4, %v8626_v3 }
 0x1c1   :  { %v7324_v52 = vpack.c.bf16 %v1521_v43, %v1520_v27  ;;  %v1447_v40 = vmax.f32 %v13830_v44, %v1411_v60  ;;  %v1412_v36 = vmax.f32 %v8756_v61, %v1247_v17  ;;  %v13833_v4 = vmax.f32 %v8345_v5, %v8635_v7 }
 0x1c2   :  { %7411 = vst [vmem:[#allocation2 + $0x8] sm:$0xff] %v7329_v32   ;;  %v1490_v41 = vadd.f32 %v8817_v50, %v1449_v62  ;;  %v1450_v22 = vmax.f32 %v13831_v26, %v1414_v19  ;;  %v13835_v5 = vmax.f32 %v8352_v8, %v8646_v30  ;;  %v13837_v21 = vmax.f32 %v8357_v10, %v8650_v9 }
 0x1c3   :  { %7325 = vst [vmem:[#allocation2] sm:$0xff] %v7324_v52   ;;  %v1488_v63 = vadd.f32 %v8817_v50, %v1447_v40  ;;  %v1448_v59 = vmax.f32 %v13832_v23, %v1412_v36 }
 0x1c4   :  { %v1491_v13 = vadd.f32 %v8817_v50, %v1450_v22  ;;  %v1526_v61 = vmax.f32 %v1490_v41, 0.0 }
 0x1c5   :  { %v1489_v0 = vadd.f32 %v8817_v50, %v1448_v59  ;;  %v7677_v35 = vpop.f32.mrb[116].mxu0  ;;  %v1524_v29 = vmax.f32 %v1488_v63, 0.0 }
 0x1c6   :  { %v1527_v42 = vmax.f32 %v1491_v13, 0.0  ;;  %v1417_v49 = vmax.f32 %v8758_v1, %v7677_v35  ;;  %v1260_v57 = vpop.f32.mrb[117].mxu0 }
 0x1c7   :  { %v1525_v2 = vmax.f32 %v1489_v0, 0.0  ;;  %v1415_v54 = vmax.f32 %v8760_v28, %v1260_v57  ;;  %v7678_v37 = vpop.f32.mrb[118].mxu0 }
 0x1c8   :  { %v7339_v38 = vpack.c.bf16 %v1527_v42, %v1526_v61  ;;  %v1453_v3 = vmax.f32 %v13833_v4, %v1417_v49  ;;  %v1418_v58 = vmax.f32 %v8762_v53, %v7678_v37  ;;  %v1263_v18 = vpop.f32.mrb[119].mxu0  ;;  %v13840_v37 = vmax.f32 %v8363_v12, %v8660_v33 }
 0x1c9   :  { %v7334_v24 = vpack.c.bf16 %v1525_v2, %v1524_v29  ;;  %v1451_v27 = vmax.f32 %v13834_v25, %v1415_v54  ;;  %v1416_v1 = vmax.f32 %v8764_v48, %v1263_v18  ;;  %v8864_v43 = vld [vmem:[#allocation2 + $0x8] sm:$0xf]  ;;  %v1746_v60 = vld [vmem:[#allocation2 + $0xc] sm:$0xf]  ;;  %v13843_v25 = vmax.f32 %v8373_v16, %v8668_v56 }
 0x1ca   :  { %7413 = vst [vmem:[#allocation2 + $0x18] sm:$0xff] %v7339_v38   ;;  %v1494_v28 = vadd.f32 %v8817_v50, %v1453_v3  ;;  %v1454_v7 = vmax.f32 %v13835_v5, %v1418_v58  ;;  %v8871_v53 = vcombine.low %v8864_v43, %v1746_v60  ;;  %v1744_v20 = vld [vmem:[#allocation2 + $0x4] sm:$0xf]  ;;  %v1780_v32 = vld [vmem:[#allocation2] sm:$0xe] }
 0x1cb   :  { %v1782_v6 = vld [vmem:[#allocation2] sm:$0xc]  ;;  %7412 = vst [vmem:[#allocation2 + $0x10] sm:$0xff] %v7334_v24   ;;  %v1492_v48 = vadd.f32 %v8817_v50, %v1451_v27  ;;  %v1452_v15 = vmax.f32 %v13837_v21, %v1416_v1  ;;  %v8877_v62 = vcombine.low %v1780_v32, %v1744_v20 }
 0x1cc   :  { %13836 = vst [vmem:[#allocation80_spill] sm:$0xff] %v8871_v53  ;;  %v7151_v19 = vcombine.low %v1782_v6, %v1744_v20  ;;  %v1743_v17 = vld [vmem:[#allocation2] sm:$0xf]  ;;  %v1530_v52 = vmax.f32 %v1494_v28, 0.0  ;;  %v1495_v8 = vadd.f32 %v8817_v50, %v1454_v7  ;;  %2829 = vrot.lane.b32.xlu1 %v8871_v53, %s8047_s24  ;;  %v2080_v30 = vrot.slane %v8871_v53, 1 }
 0x1cd   :  { %v2282_v44 = vrot.slane %v8871_v53, 2  ;;  %v1528_v40 = vmax.f32 %v1492_v48, 0.0  ;;  %v1493_v36 = vadd.f32 %v8817_v50, %v1452_v15  ;;  %v7681_v41 = vpop.f32.mrb[120].mxu0  ;;  %v2079_v10 = vrot.slane %v8877_v62, 1 }
 0x1ce   :  { %v2281_v9 = vrot.slane %v7151_v19, 2  ;;  %v1531_v26 = vmax.f32 %v1495_v8, 0.0  ;;  %v1421_v22 = vmax.f32 %v8766_v34, %v7681_v41  ;;  %v1276_v63 = vpop.f32.mrb[121].mxu0  ;;  %v8887_v23 = vcombine.low %v1743_v17, %v1744_v20 }
 0x1cf   :  { %v1899_v59 = vshll.u32 %v8871_v53, 16  ;;  %v1529_v13 = vmax.f32 %v1493_v36, 0.0  ;;  %v1419_v0 = vmax.f32 %v8768_v45, %v1276_v63  ;;  %v7682_v35 = vpop.f32.mrb[122].mxu0  ;;  %v2081_v61 = vsel %vm2078_vm1, %v2079_v10, %v2080_v30  ;;  %v13847_v63 = vld [vmem:[#allocation62_spill] sm:$0xff] }
 0x1d0   :  { %13838 = vst [vmem:[#allocation81_spill] sm:$0xff] %v8887_v23  ;;  %v2283_v42 = vsel %vm2280_vm7, %v2281_v9, %v2282_v44  ;;  %v7349_v49 = vpack.c.bf16 %v1531_v26, %v1530_v52  ;;  %v13839_v34 = vmax.f32 %v8361_v11, %v8656_v39  ;;  %v1422_v29 = vmax.f32 %v8770_v46, %v7682_v35  ;;  %v1279_v2 = vpop.f32.mrb[123].mxu0  ;;  %v13844_v9 = vld [vmem:[#allocation6_spill] sm:$0xff] }
 0x1d1   :  { %2116 = vrot.lane.b32.xlu0 %v2081_v61, %s8042_s13  ;;  %v1892_v45 = vshrl.u32 %v8887_v23, 16  ;;  %v7344_v54 = vpack.c.bf16 %v1529_v13, %v1528_v40  ;;  %v1455_v38 = vmax.f32 %v13840_v37, %v1419_v0  ;;  %v1420_v4 = vmax.f32 %v8772_v55, %v1279_v2  ;;  %v8907_v3 = vld [vmem:[#allocation2 + $0x18] sm:$0xf]  ;;  %v8909_v58 = vld [vmem:[#allocation2 + $0x1c] sm:$0xf]  ;;  %v13845_v26 = vld [vmem:[#allocation42_spill] sm:$0xff] }
 0x1d2   :  { %v1457_v57 = vmax.f32 %v13839_v34, %v1421_v22  ;;  %v1894_v11 = vshll.u32 %v8887_v23, 16  ;;  %7415 = vst [vmem:[#allocation2 + $0x28] sm:$0xff] %v7349_v49   ;;  %v13841_v39 = vmax.f32 %v8368_v14, %v8664_v31  ;;  %v8918_v12 = vcombine.low %v8907_v3, %v8909_v58  ;;  %v8922_v55 = vld [vmem:[#allocation2 + $0x10] sm:$0xf]  ;;  %v8942_v17 = vld [vmem:[#allocation2 + $0x14] sm:$0xf] }
 0x1d3   :  { %v8920_v33 = vrot.slane %v1899_v59, 1  ;;  %7414 = vst [vmem:[#allocation2 + $0x20] sm:$0xff] %v7344_v54   ;;  %v1496_v24 = vadd.f32 %v8817_v50, %v1455_v38  ;;  %v1456_v27 = vmax.f32 %v13843_v25, %v1420_v4  ;;  %v8929_v28 = vcombine.low %v1746_v60, %v8922_v55  ;;  %v3872_v10 = vld [vmem:[#allocation2 + $0x18] sm:$0xf]  ;;  %v3873_v35 = vld [vmem:[#allocation2 + $0x1c] sm:$0xf] }
 0x1d4   :  { %v1498_v46 = vadd.f32 %v8817_v50, %v1457_v57  ;;  %v1458_v18 = vmax.f32 %v13841_v39, %v1422_v29  ;;  %13842 = vst [vmem:[#allocation82_spill] sm:$0xff] %v8918_v12  ;;  %v1896_v1 = vrot.slane %v1894_v11, 1  ;;  %2833 = vrot.lane.b32.xlu1 %v8918_v12, %s8047_s24  ;;  %v1903_v5 = vshrl.u32 %v8871_v53, 16  ;;  %v3911_v61 = vld [vmem:[#allocation2 + $0x18] sm:$0xc]  ;;  %v13852_v38 = vld [vmem:[#allocation8_spill] sm:$0xff] }
 0x1d5   :  { %2318 = vrot.lane.b32.xlu0 %v2283_v42, %s8044_s17  ;;  %v2157_v7 = vshrl.u32 %v8877_v62, 16  ;;  %v1532_v20 = vmax.f32 %v1496_v24, 0.0  ;;  %v1497_v16 = vadd.f32 %v8817_v50, %v1456_v27  ;;  %v7685_v56 = vpop.f32.mrb[124].mxu0  ;;  %v2160_v60 = vshll.u32 %v8877_v62, 16  ;;  %v13848_v49 = vld [vmem:[#allocation7_spill] sm:$0xff]  ;;  %v13853_v4 = vld [vmem:[#allocation44_spill] sm:$0xff] }
 0x1d6   :  { %v1534_v14 = vmax.f32 %v1498_v46, 0.0  ;;  %v1499_v31 = vadd.f32 %v8817_v50, %v1458_v18  ;;  %v1897_v32 = vor.u32 %v1896_v1, %v1892_v45  ;;  %v1425_v48 = vmax.f32 %v8774_v51, %v7685_v56  ;;  %v1292_v21 = vpop.f32.mrb[125].mxu0  ;;  %v13849_v34 = vld [vmem:[#allocation43_spill] sm:$0xff]  ;;  %v13856_v24 = vld [vmem:[#allocation9_spill] sm:$0xff] }
 0x1d7   :  { %v2159_v15 = vrot.slane %v2157_v7, 1  ;;  %v2164_v19 = vrot.slane %v1903_v5, 1  ;;  %v1533_v52 = vmax.f32 %v1497_v16, 0.0  ;;  %v1423_v8 = vmax.f32 %v8776_v47, %v1292_v21  ;;  %v7686_v40 = vpop.f32.mrb[126].mxu0  ;;  %v13851_v2 = vld [vmem:[#allocation63_spill] sm:$0xff]  ;;  %v13857_v25 = vld [vmem:[#allocation45_spill] sm:$0xff] }
 0x1d8   :  { %v1535_v6 = vmax.f32 %v1499_v31, 0.0  ;;  %v1902_v36 = vsel %vm1890_vm6, %v1897_v32, %v8920_v33  ;;  %v2162_v41 = vrot.slane %v2160_v60, 2  ;;  %v13846_v51 = vmax.f32 %v13844_v9, %v13845_v26  ;;  %2868 = vrot.lane.b32.xlu1 %v8929_v28, %s8042_s13  ;;  %v1295_v0 = vpop.f32.mrb[127].mxu0  ;;  %v3909_v7 = vld [vmem:[#allocation2 + $0x18] sm:$0xe] }
 0x1d9   :  { %v1426_v13 = vmax.f32 %v13847_v63, %v7686_v40  ;;  %2039 = vrot.lane.b32.xlu0 %v1902_v36, %s8047_s24  ;;  %v2165_v47 = vrot.slane %v1899_v59, 2  ;;  %v7354_v42 = vpack.c.bf16 %v1533_v52, %v1532_v20  ;;  %v13850_v57 = vmax.f32 %v13848_v49, %v13849_v34  ;;  %v13859_v52 = vld [vmem:[#allocation64_spill] sm:$0xff]  ;;  %v1783_v63 = vld [vmem:[#allocation2 + $0x4] sm:$0xc]  ;;  %v13864_v49 = vld [vmem:[#allocation66_spill] sm:$0xff] }
 0x1da   :  { %v7359_v62 = vpack.c.bf16 %v1535_v6, %v1534_v14  ;;  %v1461_v22 = vmax.f32 %v13846_v51, %v1425_v48  ;;  %v1424_v45 = vmax.f32 %v13851_v2, %v1295_v0  ;;  %v2163_v54 = vor.u32 %v2162_v41, %v2159_v15  ;;  %v13861_v0 = vld [vmem:[#allocation10_spill] sm:$0xff]  ;;  %v13865_v2 = vld [vmem:[#allocation11_spill] sm:$0xff] }
 0x1db   :  { %v1459_v29 = vmax.f32 %v13850_v57, %v1423_v8  ;;  %v13854_v11 = vmax.f32 %v13852_v38, %v13853_v4  ;;  %v8962_v39 = vor.u32 %v2165_v47, %v2164_v19  ;;  %v8966_v59 = vcombine.low %v8922_v55, %v8942_v17  ;;  %7416 = vst [vmem:[#allocation2 + $0x30] sm:$0xff] %v7354_v42   ;;  %v13862_v47 = vld [vmem:[#allocation46_spill] sm:$0xff]  ;;  %v13868_v38 = vld [vmem:[#allocation67_spill] sm:$0xff] }
 0x1dc   :  { %7417 = vst [vmem:[#allocation2 + $0x38] sm:$0xff] %v7359_v62   ;;  %v1502_v37 = vadd.f32 %v8817_v50, %v1461_v22  ;;  %v13858_v27 = vmax.f32 %v13856_v24, %v13857_v25  ;;  %v7188_v14 = vcombine.low %v3872_v10, %v3873_v35  ;;  %v8972_v31 = vcombine.low %v3911_v61, %v3873_v35  ;;  %v13860_v62 = vld [vmem:[#allocation65_spill] sm:$0xff]  ;;  %v13870_v24 = vld [vmem:[#allocation48_spill] sm:$0xff] }
 0x1dd   :  { %v1462_v46 = vmax.f32 %v13854_v11, %v1426_v13  ;;  %13855 = vst [vmem:[#allocation6_spill] sm:$0xff] %v8966_v59  ;;  %v1500_v18 = vadd.f32 %v8817_v50, %v1459_v29  ;;  %v2167_v56 = vsel %vm13603_vm8, %v2163_v54, %v8962_v39  ;;  %2831 = vrot.lane.b32.xlu1 %v8966_v59, %s8047_s24  ;;  %v7689_v48 = vpop.f32.mrb[128].mxu0  ;;  %v8996_v22 = vrot.slane %v8918_v12, 1 }
 0x1de   :  { %v1460_v1 = vmax.f32 %v13858_v27, %v1424_v45  ;;  %v1538_v20 = vmax.f32 %v1502_v37, 0.0  ;;  %v8981_v32 = vcombine.low %v8942_v17, %v8907_v3  ;;  %2241 = vrot.lane.b32.xlu0 %v2167_v56, %s8048_s0  ;;  %v8985_v21 = vrot.slane %v7188_v14, 6  ;;  %v1308_v40 = vpop.f32.mrb[129].mxu0  ;;  %v3869_v3 = vld [vmem:[#allocation2 + $0x10] sm:$0x8]  ;;  %v13866_v45 = vld [vmem:[#allocation47_spill] sm:$0xff] }
 0x1df   :  { %v1503_v16 = vadd.f32 %v8817_v50, %v1462_v46  ;;  %v1536_v60 = vmax.f32 %v1500_v18, 0.0  ;;  %v4679_v15 = vshrl.u32 %v8972_v31, 16  ;;  %v1429_v8 = vmax.f32 %v13859_v52, %v7689_v48  ;;  %v7690_v26 = vpop.f32.mrb[130].mxu0  ;;  %v13869_v18 = vld [vmem:[#allocation12_spill] sm:$0xff]  ;;  %v13872_v56 = vld [vmem:[#allocation13_spill] sm:$0xff] }
 0x1e0   :  { %v1501_v6 = vadd.f32 %v8817_v50, %v1460_v1  ;;  %v4682_v36 = vshll.u32 %v8972_v31, 16  ;;  %v8990_v41 = vcombine.low %v3909_v7, %v3873_v35  ;;  %v1427_v9 = vmax.f32 %v13860_v62, %v1308_v40  ;;  %v1311_v34 = vpop.f32.mrb[131].mxu0  ;;  %v1791_v7 = vld [vmem:[#allocation2 + $0xc] sm:$0xe] }
 0x1e1   :  { %v1539_v19 = vmax.f32 %v1503_v16, 0.0  ;;  %v8993_v51 = vrot.slane %v4679_v15, 7  ;;  %v13863_v61 = vmax.f32 %v13861_v0, %v13862_v47  ;;  %v1430_v35 = vmax.f32 %v13864_v49, %v7690_v26  ;;  %2870 = vrot.lane.b32.xlu1 %v8981_v32, %s8042_s13  ;;  %v13875_v0 = vld [vmem:[#allocation68_spill] sm:$0xff] }
 0x1e2   :  { %v1537_v10 = vmax.f32 %v1501_v6, 0.0  ;;  %v4599_v57 = vrot.slane %v8990_v41, 7  ;;  %v13867_v54 = vmax.f32 %v13865_v2, %v13866_v45  ;;  %4345 = vrot.lane.b32.xlu0 %v8985_v21, %s8043_s14  ;;  %v1428_v4 = vmax.f32 %v13868_v38, %v1311_v34  ;;  %v13876_v34 = vld [vmem:[#allocation69_spill] sm:$0xff] }
 0x1e3   :  { %v7369_v13 = vpack.c.bf16 %v1539_v19, %v1538_v20  ;;  %v1465_v42 = vmax.f32 %v13863_v61, %v1429_v8  ;;  %v9012_v11 = vcombine.low %v3869_v3, %v8942_v17  ;;  %v13871_v25 = vmax.f32 %v13869_v18, %v13870_v24  ;;  %v1787_v20 = vld [vmem:[#allocation2 + $0x4] sm:$0x8] }
 0x1e4   :  { %v7364_v29 = vpack.c.bf16 %v1537_v10, %v1536_v60  ;;  %v1463_v37 = vmax.f32 %v13867_v54, %v1427_v9  ;;  %v9019_v1 = vcombine.low %v1783_v63, %v8864_v43  ;;  %v2380_v14 = vrot.slane %v8929_v28, 2  ;;  %v13873_v60 = vld [vmem:[#allocation49_spill] sm:$0xff] }
 0x1e5   :  { %7419 = vst [vmem:[#allocation2 + $0x48] sm:$0xff] %v7369_v13   ;;  %v1506_v46 = vadd.f32 %v8817_v50, %v1465_v42  ;;  %v1466_v27 = vmax.f32 %v13871_v25, %v1430_v35  ;;  %v13874_v6 = vmax.f32 %v13872_v56, %v13873_v60  ;;  %v3963_v15 = vrot.slane %v9012_v11, 1  ;;  %v7693_v26 = vpop.f32.mrb[132].mxu0  ;;  %v13882_v56 = vld [vmem:[#allocation51_spill] sm:$0xff] }
 0x1e6   :  { %7418 = vst [vmem:[#allocation2 + $0x40] sm:$0xff] %v7364_v29   ;;  %v1504_v16 = vadd.f32 %v8817_v50, %v1463_v37  ;;  %v9028_v19 = vcombine.low %v1791_v7, %v8922_v55  ;;  %v2379_v40 = vrot.slane %v9019_v1, 2  ;;  %v13534_v3 = vrot.slane %v8981_v32, 1  ;;  %4636 = vrot.lane.b32.xlu0 %v4599_v57, %s8045_s18  ;;  %v1324_v61 = vpop.f32.mrb[133].mxu0  ;;  %v9053_v37 = vld [vmem:[#allocation2 + $0x20] sm:$0xff]  }
 0x1e7   :  { %v1464_v48 = vmax.f32 %v13874_v6, %v1428_v4  ;;  %v1542_v52 = vmax.f32 %v1506_v46, 0.0  ;;  %v1507_v8 = vadd.f32 %v8817_v50, %v1466_v27  ;;  %v3964_v9 = vsel %vm2078_vm1, %v3963_v15, %v8996_v22  ;;  %v7694_v2 = vpop.f32.mrb[134].mxu0  ;;  %v13877_v4 = vld [vmem:[#allocation17_spill] sm:$0xff]  ;;  %v13878_v46 = vld [vmem:[#allocation50_spill] sm:$0xff] }
 0x1e8   :  { %v1540_v10 = vmax.f32 %v1504_v16, 0.0  ;;  %v3009_v63 = vrot.slane %v9028_v19, 1  ;;  %3971 = vrot.lane.b32.xlu1 %v3964_v9, %s8042_s13  ;;  %v1433_v47 = vmax.f32 %v13875_v0, %v7693_v26  ;;  %v2381_v42 = vsel %vm2280_vm7, %v2379_v40, %v2380_v14  ;;  %v1327_v27 = vpop.f32.mrb[135].mxu0  ;;  %v13881_v16 = vld [vmem:[#allocation18_spill] sm:$0xff]  ;;  %v13886_v9 = vld [vmem:[#allocation52_spill] sm:$0xff] }
 0x1e9   :  { %v1505_v62 = vadd.f32 %v8817_v50, %v1464_v48  ;;  %v1543_v13 = vmax.f32 %v1507_v8, 0.0  ;;  %v9046_v49 = vcombine.low %v1787_v20, %v8864_v43  ;;  %v1431_v29 = vmax.f32 %v13876_v34, %v1324_v61  ;;  %v13880_v43 = vld [vmem:[#allocation70_spill] sm:$0xff]  ;;  %v13884_v48 = vld [vmem:[#allocation71_spill] sm:$0xff]  ;;  %v13889_v61 = vld [vmem:[#allocation53_spill] sm:$0xff] }
 0x1ea   :  { %v3011_v45 = vsel %vm2078_vm1, %v3009_v63, %v13534_v3  ;;  %v2667_v54 = vrot.slane %v8929_v28, 3  ;;  %v13879_v18 = vmax.f32 %v13877_v4, %v13878_v46  ;;  %v1434_v25 = vmax.f32 %v13880_v43, %v7694_v2  ;;  %2416 = vrot.lane.b32.xlu0 %v2381_v42, %s8043_s14  ;;  %v1793_v8 = vld [vmem:[#allocation2 + $0xc] sm:$0xc] }
 0x1eb   :  { %v1541_v35 = vmax.f32 %v1505_v62, 0.0  ;;  %v7379_v38 = vpack.c.bf16 %v1543_v13, %v1542_v52  ;;  %v2666_v7 = vrot.slane %v9046_v49, 3  ;;  %v13883_v60 = vmax.f32 %v13881_v16, %v13882_v56  ;;  %v13885_v62 = vld [vmem:[#allocation19_spill] sm:$0xff] }
 0x1ec   :  { %v1469_v24 = vmax.f32 %v13879_v18, %v1433_v47  ;;  %v1432_v15 = vmax.f32 %v13884_v48, %v1327_v27  ;;  %v9066_v52 = vrot.slane %v8981_v32, 2  ;;  %v13887_v26 = vmax.f32 %v13885_v62, %v13886_v9  ;;  %3046 = vrot.lane.b32.xlu1 %v3011_v45, %s8044_s17  ;;  %v13888_v47 = vld [vmem:[#allocation20_spill] sm:$0xff] }
 0x1ed   :  { %v7374_v20 = vpack.c.bf16 %v1541_v35, %v1540_v10  ;;  %v1467_v6 = vmax.f32 %v13883_v60, %v1431_v29  ;;  %7421 = vst [vmem:[#allocation2 + $0x58] sm:$0xff] %v7379_v38   ;;  %v2668_v10 = vsel %vm13612_vm9, %v2666_v7, %v2667_v54  ;;  %v7179_v13 = vcombine.low %v1793_v8, %v8922_v55  ;;  %v13892_v8 = vld [vmem:[#allocation22_spill] sm:$0xff] }
 0x1ee   :  { %v1510_v40 = vadd.f32 %v8817_v50, %v1469_v24  ;;  %v1470_v63 = vmax.f32 %v13887_v26, %v1434_v25  ;;  %v13890_v42 = vmax.f32 %v13888_v47, %v13889_v61  ;;  %v4396_v34 = vshrl.u32 %v9053_v37, 16  ;;  %2703 = vrot.lane.b32.xlu0 %v2668_v10, %s8045_s18  ;;  %v7697_v24 = vpop.f32.mrb[136].mxu0  ;;  %v13895_v26 = vld [vmem:[#allocation73_spill] sm:$0xff]  ;;  %v13896_v10 = vld [vmem:[#allocation74_spill] sm:$0xff] }
 0x1ef   :  { %7420 = vst [vmem:[#allocation2 + $0x50] sm:$0xff] %v7374_v20   ;;  %v1508_v0 = vadd.f32 %v8817_v50, %v1467_v6  ;;  %v4399_v29 = vshll.u32 %v9053_v37, 16  ;;  %v3209_v38 = vrot.slane %v7179_v13, 2  ;;  %v4684_v4 = vor.u32 %v4682_v36, %v8993_v51  ;;  %v13891_v36 = vld [vmem:[#allocation72_spill] sm:$0xff]  ;;  %v1340_v20 = vpop.f32.mrb[137].mxu0 }
 0x1f0   :  { %v1468_v35 = vmax.f32 %v13890_v42, %v1432_v15  ;;  %v1546_v2 = vmax.f32 %v1510_v40, 0.0  ;;  %v1511_v45 = vadd.f32 %v8817_v50, %v1470_v63  ;;  %v9091_v18 = vrot.slane %v4396_v34, 7  ;;  %v7698_v48 = vpop.f32.mrb[138].mxu0  ;;  %v13893_v40 = vld [vmem:[#allocation54_spill] sm:$0xff] }
 0x1f1   :  { %v1544_v55 = vmax.f32 %v1508_v0, 0.0  ;;  %v9094_v43 = vrot.slane %v8918_v12, 2  ;;  %v3210_v27 = vsel %vm2280_vm7, %v3209_v38, %v9066_v52  ;;  %v4957_v31 = vsel %vm3304_vm10, %v4684_v4, 0  ;;  %v1794_v0 = vld [vmem:[#allocation2 + $0x10] sm:$0xc]  ;;  %v1343_v47 = vpop.f32.mrb[139].mxu0 }
 0x1f2   :  { %v1509_v46 = vadd.f32 %v8817_v50, %v1468_v35  ;;  %v1547_v25 = vmax.f32 %v1511_v45, 0.0  ;;  %v1437_v7 = vmax.f32 %v13891_v36, %v7697_v24  ;;  %3215 = vrot.lane.b32.xlu1 %v3210_v27, %s8046_s21  ;;  %v4686_v56 = vor.u32 %v9091_v18, %v4399_v29  ;;  %v13897_v4 = vld [vmem:[#allocation23_spill] sm:$0xff]  ;;  %v13900_v27 = vld [vmem:[#allocation25_spill] sm:$0xff] }
 0x1f3   :  { %v5073_v60 = vshrl.u32 %v4957_v31, 16  ;;  %v5076_v6 = vshll.u32 %v4957_v31, 16  ;;  %v13894_v62 = vmax.f32 %v13892_v8, %v13893_v40  ;;  %v1435_v63 = vmax.f32 %v13895_v26, %v1340_v20  ;;  %v13901_v31 = vld [vmem:[#allocation56_spill] sm:$0xff] }
 0x1f4   :  { %v1545_v16 = vmax.f32 %v1509_v46, 0.0  ;;  %v7389_v15 = vpack.c.bf16 %v1547_v25, %v1546_v2  ;;  %v1438_v13 = vmax.f32 %v13896_v10, %v7698_v48  ;;  %v4687_v42 = vsel %vm4677_vm11, %v8993_v51, %v4686_v56  ;;  %v13898_v46 = vld [vmem:[#allocation55_spill] sm:$0xff] }
 0x1f5   :  { %v1473_v9 = vmax.f32 %v13894_v62, %v1437_v7  ;;  %v5075_v35 = vrot.slane %v5073_v60, 2  ;;  %v5078_v45 = vrot.slane %v5076_v6, 3  ;;  %v4959_v2 = vsel %vm3304_vm10, %v4687_v42, 0  ;;  %v13904_v62 = vld [vmem:[#allocation75_spill] sm:$0xff]  ;;  %v7701_v26 = vpop.f32.mrb[140].mxu0 }
 0x1f6   :  { %v7384_v61 = vpack.c.bf16 %v1545_v16, %v1544_v55  ;;  %7423 = vst [vmem:[#allocation2 + $0x68] sm:$0xff] %v7389_v15   ;;  %v13899_v24 = vmax.f32 %v13897_v4, %v13898_v46  ;;  %v13902_v36 = vmax.f32 %v13900_v27, %v13901_v31  ;;  %v5080_v20 = vshrl.u32 %v4959_v2, 16 }
 0x1f7   :  { %v1514_v38 = vadd.f32 %v8817_v50, %v1473_v9  ;;  %v5079_v55 = vor.u32 %v5078_v45, %v5075_v35  ;;  %v5083_v16 = vshll.u32 %v4959_v2, 16  ;;  %v9120_v51 = vcombine.low %v1794_v0, %v8942_v17  ;;  %v1356_v0 = vpop.f32.mrb[141].mxu0  ;;  %v13907_v35 = vld [vmem:[#allocation57_spill] sm:$0xff] }
 0x1f8   :  { %v1471_v25 = vmax.f32 %v13899_v24, %v1435_v63  ;;  %v1474_v7 = vmax.f32 %v13902_v36, %v1438_v13  ;;  %7422 = vst [vmem:[#allocation2 + $0x60] sm:$0xff] %v7384_v61   ;;  %v2082_v48 = vrot.slane %v8966_v59, 1  ;;  %v5082_v15 = vrot.slane %v5080_v20, 2  ;;  %v7702_v4 = vpop.f32.mrb[142].mxu0 }
 0x1f9   :  { %13903 = vst [vmem:[#allocation42_spill] sm:$0xff] %v9120_v51  ;;  %v1550_v56 = vmax.f32 %v1514_v38, 0.0  ;;  %v5085_v8 = vrot.slane %v5083_v16, 3  ;;  %v3260_v40 = vrot.slane %v9120_v51, 2  ;;  %v1436_v9 = vmax.f32 %v13904_v62, %v1343_v47  ;;  %v13906_v47 = vld [vmem:[#allocation29_spill] sm:$0xff]  ;;  %v1359_v31 = vpop.f32.mrb[143].mxu0 }
 0x1fa   :  { %v1512_v60 = vadd.f32 %v8817_v50, %v1471_v25  ;;  %v1515_v6 = vadd.f32 %v8817_v50, %v1474_v7  ;;  %v2083_v17 = vsel %vm2078_vm1, %v2080_v30, %v2082_v48  ;;  %v9133_v13 = vshrl.u32 %v8929_v28, 16  ;;  %v13909_v25 = vld [vmem:[#allocation76_spill] sm:$0xff]  ;;  %v13910_v16 = vld [vmem:[#allocation77_spill] sm:$0xff]  ;;  %v13914_v62 = vld [vmem:[#allocation78_spill] sm:$0xff] }
 0x1fb   :  { %v9135_v61 = vor.u32 %v5085_v8, %v5082_v15  ;;  %v3261_v42 = vsel %vm2280_vm7, %v3260_v40, %v9094_v43  ;;  %2118 = vrot.lane.b32.xlu0 %v2083_v17, %s8042_s13  ;;  %v13908_v45 = vmax.f32 %v13906_v47, %v13907_v35  ;;  %v9144_v38 = vshll.u32 %v8929_v28, 16  ;;  %v13911_v15 = vld [vmem:[#allocation35_spill] sm:$0xff]  ;;  %v13912_v8 = vld [vmem:[#allocation58_spill] sm:$0xff]  ;;  %v13915_v17 = vld [vmem:[#allocation36_spill] sm:$0xff] }
 0x1fc   :  { %v1548_v63 = vmax.f32 %v1512_v60, 0.0  ;;  %v1551_v10 = vmax.f32 %v1515_v6, 0.0  ;;  %3268 = vrot.lane.b32.xlu1 %v3261_v42, %s8045_s18  ;;  %v9148_v46 = vshll.u32 %v8981_v32, 16  ;;  %v2284_v24 = vrot.slane %v8966_v59, 2 }
 0x1fd   :  { %13905 = vst [vmem:[#allocation62_spill] sm:$0xff] %v9135_v61  ;;  %v1472_v2 = vmax.f32 %v13908_v45, %v1436_v9  ;;  %v1441_v27 = vmax.f32 %v13909_v25, %v7701_v26  ;;  %v5087_v36 = vsel %vm2455_vm12, %v5079_v55, %v9135_v61  ;;  %v2907_v20 = vrot.slane %v9144_v38, 1  ;;  %v13918_v45 = vld [vmem:[#allocation37_spill] sm:$0xff] }
 0x1fe   :  { %v7399_v30 = vpack.c.bf16 %v1551_v10, %v1550_v56  ;;  %v1439_v60 = vmax.f32 %v13910_v16, %v1356_v0  ;;  %5524 = vmatprep.mubr.bf16.mxu1 %v5087_v36  ;;  %v13533_v56 = vrot.slane %v9148_v46, 1  ;;  %v2285_v6 = vsel %vm2280_vm7, %v2282_v44, %v2284_v24  ;;  %v13916_v0 = vld [vmem:[#allocation59_spill] sm:$0xff] }
 0x1ff   :  { %v1513_v7 = vadd.f32 %v8817_v50, %v1472_v2  ;;  %v13913_v40 = vmax.f32 %v13911_v15, %v13912_v8  ;;  %v1442_v9 = vmax.f32 %v13914_v62, %v7702_v4  ;;  %v2908_v10 = vor.u32 %v2907_v20, %v9133_v13  ;;  %2320 = vrot.lane.b32.xlu0 %v2285_v6, %s8044_s17  ;;  %v13919_v2 = vld [vmem:[#allocation60_spill] sm:$0xff] }
 0x200   :  { %7425 = vst [vmem:[#allocation2 + $0x78] sm:$0xff] %v7399_v30   ;;  %v13917_v42 = vmax.f32 %v13915_v17, %v13916_v0  ;;  %v9173_v35 = vshrl.u32 %v8981_v32, 16  ;;  %v13920_v30 = vmax.f32 %v13918_v45, %v13919_v2  ;;  %v3086_v4 = vshrl.u32 %v9028_v19, 16  ;;  %v13922_v17 = vld [vmem:[#allocation39_spill] sm:$0xff]  ;;  %v13923_v0 = vld [vmem:[#allocation61_spill] sm:$0xff] }
 0x201   :  { %v1477_v55 = vmax.f32 %v13913_v40, %v1441_v27  ;;  %v1549_v26 = vmax.f32 %v1513_v7, 0.0  ;;  %v3089_v27 = vshll.u32 %v9028_v19, 16  ;;  %v2910_v7 = vsel %vm1890_vm6, %v2908_v10, %v13533_v56 }
 0x202   :  { %v1475_v47 = vmax.f32 %v13917_v42, %v1439_v60  ;;  %v1478_v25 = vmax.f32 %v13920_v30, %v1442_v9  ;;  %v3093_v20 = vrot.slane %v9173_v35, 1  ;;  %2970 = vrot.lane.b32.xlu1 %v2910_v7, %s8048_s0  ;;  %v3088_v60 = vrot.slane %v3086_v4, 1  ;;  %v9209_v30 = vld [vmem:[#allocation2 + $0x28] sm:$0xf] }
 0x203   :  { %v1518_v44 = vadd.f32 %v8817_v50, %v1477_v55  ;;  %v7394_v36 = vpack.c.bf16 %v1549_v26, %v1548_v63  ;;  %v3091_v6 = vrot.slane %v3089_v27, 2  ;;  %v3094_v15 = vrot.slane %v9148_v46, 2  ;;  %v13921_v63 = vld [vmem:[#allocation79_spill] sm:$0xff]  ;;  %v1751_v27 = vld [vmem:[#allocation2 + $0x20] sm:$0xf] }
 0x204   :  { %v1519_v16 = vadd.f32 %v8817_v50, %v1478_v25  ;;  %v2383_v19 = vsel %vm2280_vm7, %v2380_v14, %v9066_v52  ;;  %v1440_v8 = vmax.f32 %v13921_v63, %v1359_v31  ;;  %v13530_v9 = vrot.slane %v8981_v32, 3 }
 0x205   :  { %7424 = vst [vmem:[#allocation2 + $0x70] sm:$0xff] %v7394_v36   ;;  %v1554_v40 = vmax.f32 %v1518_v44, 0.0  ;;  %v3092_v62 = vor.u32 %v3091_v6, %v3088_v60  ;;  %2418 = vrot.lane.b32.xlu0 %v2383_v19, %s8043_s14  ;;  %v1516_v26 = vadd.f32 %v8817_v50, %v1475_v47  ;;  %v9196_v10 = vor.u32 %v3094_v15, %v3093_v20  ;;  %v9211_v47 = vld [vmem:[#allocation2 + $0x2c] sm:$0xf]  ;;  %v9232_v20 = vpop.permute.xlu1 %3975  ;;  %v9236_v60 = vld [vmem:[#allocation2 + $0x24] sm:$0xf] }
 0x206   :  { %v1555_v55 = vmax.f32 %v1519_v16, 0.0  ;;  %v13924_v42 = vmax.f32 %v13922_v17, %v13923_v0  ;;  %v2670_v44 = vsel %vm13612_vm9, %v2667_v54, %v13530_v9  ;;  %v9220_v28 = vshll.u32 %v8918_v12, 16  ;;  %13926 = vst [vmem:[#allocation43_spill] sm:$0xff] %v9232_v20  ;;  %v9234_v16 = vpop.permute.xlu0 %4377 }
 0x207   :  { %v3096_v14 = vsel %vm13603_vm8, %v3092_v62, %v9196_v10  ;;  %v1552_v25 = vmax.f32 %v1516_v26, 0.0  ;;  %v9223_v54 = vshrl.u32 %v8918_v12, 16  ;;  %v2085_v7 = vsel %vm2078_vm1, %v2082_v48, %v8996_v22  ;;  %13927 = vst [vmem:[#allocation63_spill] sm:$0xff] %v9234_v16 }
 0x208   :  { %v1476_v45 = vmax.f32 %v13924_v42, %v1440_v8  ;;  %v7409_v2 = vpack.c.bf16 %v1555_v55, %v1554_v40  ;;  %3170 = vrot.lane.b32.xlu1 %v3096_v14, %s8043_s14  ;;  %v9239_v6 = vcombine.low %v8909_v58, %v1751_v27  ;;  %v4101_v19 = vrot.slane %v9220_v28, 6 }
 0x209   :  { %2705 = vrot.lane.b32.xlu0 %v2670_v44, %s8045_s18  ;;  %v4100_v15 = vrot.slane %v9223_v54, 5  ;;  %v4388_v48 = vshrl.u32 %v8990_v41, 16  ;;  %v4391_v63 = vshll.u32 %v8990_v41, 16  ;;  %v2287_v8 = vsel %vm2280_vm7, %v2284_v24, %v9094_v43  ;;  %v9255_v58 = vpop.permute.xlu1 %4208 }
 0x20a   :  { %v1517_v31 = vadd.f32 %v8817_v50, %v1476_v45  ;;  %7427 = vst [vmem:[#allocation2 + $0x88] sm:$0xff] %v7409_v2   ;;  %v9217_v50 = vcombine.low %v9209_v30, %v9211_v47  ;;  %v9250_v40 = vcombine.low %v1751_v27, %v9236_v60  ;;  %13929 = vst [vmem:[#allocation44_spill] sm:$0xff] %v9255_v58  ;;  %v9257_v55 = vpop.permute.xlu0 %4668  ;;  %v1907_v24 = vshll.u32 %v8966_v59, 16 }
 0x20b   :  { %13930 = vst [vmem:[#allocation9_spill] sm:$0xff] %v9257_v55  ;;  %v9259_v62 = vor.u32 %v4101_v19, %v4100_v15  ;;  %v4390_v26 = vrot.slane %v4388_v48, 6  ;;  %v4393_v17 = vrot.slane %v4391_v63, 7  ;;  %v13532_v42 = vrot.slane %v9053_v37, 6 }
 0x20c   :  { %v1553_v4 = vmax.f32 %v1517_v31, 0.0  ;;  %13925 = vst [vmem:[#allocation7_spill] sm:$0xff] %v9217_v50  ;;  %2837 = vrot.lane.b32.xlu1 %v9217_v50, %s8047_s24  ;;  %13928 = vst [vmem:[#allocation8_spill] sm:$0xff] %v9250_v40  ;;  %v2086_v0 = vrot.slane %v9250_v40, 1  ;;  %v13531_v2 = vrot.slane %v9053_v37, 7  ;;  %v3983_v14 = vrot.slane %v9173_v35, 5 }
 0x20d   :  { %2120 = vrot.lane.b32.xlu0 %v2085_v7, %s8042_s13  ;;  %v9268_v45 = vor.u32 %v4393_v17, %v4390_v26  ;;  %v3984_v31 = vrot.slane %v9148_v46, 6  ;;  %v9279_v27 = vpop.permute.xlu1 %4589  ;;  %v4310_v7 = vsel %vm4307_vm2, %v8985_v21, %v13532_v42  ;;  %v13535_v48 = vrot.slane %v9217_v50, 1 }
 0x20e   :  { %v7404_v36 = vpack.c.bf16 %v1553_v4, %v1552_v25  ;;  %v2087_v44 = vsel %vm2078_vm1, %v8996_v22, %v2086_v0  ;;  %v9275_v25 = vrot.slane %v1907_v24, 1  ;;  %v3921_v4 = vshll.u32 %v9012_v11, 16  ;;  %13931 = vst [vmem:[#allocation45_spill] sm:$0xff] %v9279_v27 }
 0x20f   :  { %v1905_v22 = vor.u32 %v1903_v5, %v8920_v33  ;;  %v4601_v15 = vsel %vm4598_vm4, %v4599_v57, %v13531_v2  ;;  %v9297_v19 = vor.u32 %v3984_v31, %v3983_v14  ;;  %v9301_v63 = vrot.slane %v9220_v28, 1  ;;  %v9317_v31 = vld [vmem:[#allocation2 + $0x28] sm:$0xff]  }
 0x210   :  { %7426 = vst [vmem:[#allocation2 + $0x80] sm:$0xff] %v7404_v36   ;;  %2872 = vrot.lane.b32.xlu1 %v9239_v6, %s8042_s13  ;;  %v9281_v36 = vpop.permute.xlu0 %3977  ;;  %v3923_v33 = vrot.slane %v3921_v4, 1  ;;  %v2457_v41 = vshrl.u32 %v9019_v1, 16  ;;  %v2460_v57 = vshll.u32 %v9019_v1, 16  ;;  %v4398_v26 = vrot.slane %v4396_v34, 6 }
 0x211   :  { %2322 = vrot.lane.b32.xlu0 %v2287_v8, %s8044_s17  ;;  %13932 = vst [vmem:[#allocation64_spill] sm:$0xff] %v9281_v36  ;;  %v1910_v21 = vsel %vm1890_vm6, %v1905_v22, %v9275_v25  ;;  %v3919_v8 = vshrl.u32 %v9012_v11, 16  ;;  %v4401_v17 = vrot.slane %v4399_v29, 7  ;;  %v2467_v14 = vrot.slane %v9133_v13, 2 }
 0x212   :  { %v2470_v11 = vrot.slane %v9144_v38, 3  ;;  %v2747_v4 = vshll.u32 %v9046_v49, 16  ;;  %v13537_v1 = vshrl.u32 %v8966_v59, 16  ;;  %v2751_v29 = vrot.slane %v9133_v13, 3 }
 0x213   :  { %v9326_v34 = vor.u32 %v4401_v17, %v4398_v26  ;;  %v2089_v9 = vsel %vm2078_vm1, %v2086_v0, %v13535_v48  ;;  %v3924_v2 = vor.u32 %v3923_v33, %v3919_v8  ;;  %v9337_v26 = vshll.u32 %v9239_v6, 16 }
 0x214   :  { %2835 = vrot.lane.b32.xlu1 %v9250_v40, %s8047_s24  ;;  %v9323_v22 = vpop.permute.xlu0 %3954  ;;  %v2749_v56 = vrot.slane %v2747_v4, 4  ;;  %v9340_v13 = vshrl.u32 %v9239_v6, 16  ;;  %v2462_v17 = vrot.slane %v2460_v57, 3  ;;  %v2471_v3 = vor.u32 %v2470_v11, %v2467_v14  ;;  %v7896_v11 = vld [vmem:[%s13457_s2 + $0x80] sm:$0xff]  }
 0x215   :  { %4176 = vrot.lane.b32.xlu0 %v9259_v62, %s8044_s17  ;;  %13934 = vst [vmem:[#allocation10_spill] sm:$0xff] %v9323_v22  ;;  %v13536_v0 = vshrl.u32 %v9317_v31, 16  ;;  %v2168_v8 = vrot.slane %v13537_v1, 1  ;;  %v2755_v33 = vrot.slane %v9173_v35, 3  ;;  %v13538_v57 = vshll.u32 %v9317_v31, 16  ;;  %5493 = vmatpush1.bf16.msra.mxu1 %v7896_v11 }
 0x216   :  { %v13938_v48 = vrot.slane %v9239_v6, 1  ;;  %v2479_v1 = vrot.slane %v9148_v46, 3  ;;  %v13941_v53 = vmov 0   ;;  %v9406_v11 = vld [vmem:[#allocation2 + $0x30] sm:$0xf]  ;;  %v13959_v27 = vrot.slane %v9317_v31, 6 }
 0x217   :  { %5494 = vmatprep.subr.bf16.mxu1 %v13941_v53  ;;  %v3098_v20 = vrot.slane %v9337_v26, 2  ;;  %v9690_v22 = vld [vmem:[#allocation2 + $0x40] sm:$0xf] }
 0x218   :  { %2122 = vrot.lane.b32.xlu1 %v2087_v44, %s8042_s13  ;;  %v2744_v44 = vshrl.u32 %v9046_v49, 16  ;;  %v2459_v49 = vrot.slane %v2457_v41, 2  ;;  %v2756_v41 = vrot.slane %v9148_v46, 4  ;;  %v9359_v14 = vpop.permute.xlu0 %4210 }
 0x219   :  { %4557 = vrot.lane.b32.xlu0 %v9268_v45, %s8046_s21  ;;  %13937 = vst [vmem:[#allocation11_spill] sm:$0xff] %v9359_v14 }
 0x21a   :  { %v2746_v42 = vrot.slane %v2744_v44, 3  ;;  %v3925_v44 = vsel %vm1890_vm6, %v3924_v2, %v9301_v63  ;;  %v2759_v2 = vrot.slane %v9340_v13, 3 }
 0x21c   :  { %4347 = vrot.lane.b32.xlu1 %v4310_v7, %s8043_s14  ;;  %v9321_v7 = vpop.permute.xlu1 %3956  ;;  %v2750_v5 = vor.u32 %v2749_v56, %v2746_v42  ;;  %v9355_v56 = vrot.slane %v13536_v0, 7 }
 0x21d   :  { %2041 = vrot.lane.b32.xlu0 %v1910_v21, %s8047_s24  ;;  %13933 = vst [vmem:[#allocation65_spill] sm:$0xff] %v9321_v7  ;;  %v2752_v21 = vrot.slane %v9144_v38, 4 }
 0x21f   :  { %v2753_v38 = vor.u32 %v2752_v21, %v2751_v29  ;;  %v2463_v29 = vor.u32 %v2462_v17, %v2459_v49  ;;  %v9371_v21 = vor.u32 %v9355_v56, %v13538_v57 }
 0x220   :  { %4638 = vrot.lane.b32.xlu1 %v4601_v15, %s8045_s18  ;;  %v2169_v15 = vrot.slane %v1907_v24, 2  ;;  %v9357_v42 = vpop.permute.xlu1 %4093  ;;  %v2757_v24 = vor.u32 %v2756_v41, %v2755_v33  ;;  %v13541_v41 = vrot.slane %v9239_v6, 2 }
 0x221   :  { %4059 = vrot.lane.b32.xlu0 %v9297_v19, %s8048_s0  ;;  %v9350_v4 = vsel %vm13602_vm13, %v2750_v5, %v2753_v38  ;;  %13936 = vst [vmem:[#allocation66_spill] sm:$0xff] %v9357_v42  ;;  %v2760_v5 = vrot.slane %v9337_v26, 4  ;;  %v2472_v49 = vsel %vm2455_vm12, %v2463_v29, %v2471_v3 }
 0x222   :  { %13935 = vst [vmem:[#allocation46_spill] sm:$0xff] %v9350_v4  ;;  %v2170_v17 = vor.u32 %v2169_v15, %v2168_v8  ;;  %v9385_v57 = vsel %vm13602_vm13, %v2753_v38, %v2757_v24  ;;  %v9399_v8 = vcombine.low %v9236_v60, %v9209_v30  ;;  %v9403_v15 = vpop.permute.xlu0 %4591  ;;  %v7898_v60 = vld [vmem:[%s13457_s2 + $0x90] sm:$0xff]  }
 0x223   :  { %v9380_v0 = vor.u32 %v2760_v5, %v2759_v2  ;;  %13940 = vst [vmem:[#allocation47_spill] sm:$0xff] %v9385_v57  ;;  %v7897_v2 = vld [vmem:[%s13457_s2 + $0x88] sm:$0xff]   ;;  %13944 = vst [vmem:[#allocation48_spill] sm:$0xff] %v9403_v15  ;;  %v13540_v5 = vrot.slane %v9250_v40, 2 }
 0x224   :  { %2124 = vrot.lane.b32.xlu1 %v2089_v9, %s8042_s13  ;;  %v13939_v9 = vrot.slane %v8981_v32, 1  ;;  %v9401_v38 = vpop.permute.xlu1 %4379  ;;  %5495 = vmatpush1.bf16.msra.mxu1 %v7897_v2  ;;  %v2171_v29 = vsel %vm13603_vm8, %v8962_v39, %v2170_v17 }
 0x225   :  { %3950 = vrot.lane.b32.xlu0 %v3925_v44, %s8047_s24  ;;  %v2476_v44 = vrot.slane %v9173_v35, 2  ;;  %13943 = vst [vmem:[#allocation12_spill] sm:$0xff] %v9401_v38  ;;  %5496 = vmatprep.subr.bf16.mxu1 %v13941_v53  ;;  %v9433_v39 = vsel %vm2280_vm7, %v9094_v43, %v13540_v5  ;;  %v2386_v5 = vrot.slane %v9399_v8, 2 }
 0x226   :  { %v3013_v33 = vsel %vm2078_vm1, %v13939_v9, %v13938_v48  ;;  %v9392_v48 = vsel %vm13602_vm13, %v2757_v24, %v9380_v0  ;;  %v9412_v24 = vsel %vm2280_vm7, %v9066_v52, %v13541_v41  ;;  %v9427_v52 = vcombine.low %v9211_v47, %v9406_v11  ;;  %v9446_v43 = vpop.permute.xlu0 %3958 }
 0x227   :  { %13942 = vst [vmem:[#allocation67_spill] sm:$0xff] %v9392_v48  ;;  %v9416_v30 = vor.u32 %v2479_v1, %v2476_v44  ;;  %v3014_v1 = vrot.slane %v9399_v8, 1  ;;  %v2173_v47 = vrot.slane %v9220_v28, 2  ;;  %13947 = vst [vmem:[#allocation49_spill] sm:$0xff] %v9446_v43  ;;  %v9458_v28 = vshll.u32 %v9399_v8, 16 }
 0x228   :  { %3048 = vrot.lane.b32.xlu1 %v3013_v33, %s8044_s17  ;;  %5497 = vmatpush1.bf16.msra.mxu1 %v7898_v60  ;;  %v13945_v33 = vshrl.u32 %v8966_v59, 16  ;;  %v9444_v2 = vpop.permute.xlu1 %4670  ;;  %v13948_v60 = vrot.slane %v9239_v6, 1  ;;  %v9476_v57 = vshrl.u32 %v9427_v52, 16 }
 0x229   :  { %2626 = vrot.lane.b32.xlu0 %v2472_v49, %s8046_s21  ;;  %v2481_v9 = vsel %vm2455_vm12, %v2471_v3, %v9416_v30  ;;  %v2172_v49 = vrot.slane %v9223_v54, 1  ;;  %5498 = vmatprep.subr.bf16.mxu1 %v13941_v53  ;;  %13946 = vst [vmem:[#allocation13_spill] sm:$0xff] %v9444_v2  ;;  %v9452_v3 = vshrl.u32 %v9399_v8, 16  ;;  %v13546_v2 = vrot.slane %v9217_v50, 2 }
 0x22a   :  { %v1913_v44 = vor.u32 %v13945_v33, %v9275_v25  ;;  %v7905_v25 = vld [vmem:[%s13457_s2 + $0x98] sm:$0xff]   ;;  %v3015_v33 = vsel %vm2078_vm1, %v13948_v60, %v3014_v1  ;;  %v2767_v60 = vrot.slane %v9476_v57, 3 }
 0x22b   :  { %v9468_v59 = vor.u32 %v2173_v47, %v2172_v49  ;;  %v9487_v49 = vshll.u32 %v9427_v52, 16  ;;  %v7907_v47 = vld [vmem:[%s13457_s2 + $0xa0] sm:$0xff]  }
 0x22c   :  { %3217 = vrot.lane.b32.xlu1 %v9412_v24, %s8046_s21  ;;  %5499 = vmatpush1.bf16.msra.mxu1 %v7905_v25  ;;  %v1918_v41 = vsel %vm1890_vm6, %v1913_v44, %v9301_v63  ;;  %v2764_v25 = vrot.slane %v9458_v28, 4 }
 0x22d   :  { %2243 = vrot.lane.b32.xlu0 %v2171_v29, %s8048_s0  ;;  %v13544_v29 = vrot.slane %v9427_v52, 1  ;;  %5500 = vmatprep.subr.bf16.mxu1 %v13941_v53  ;;  %v2175_v4 = vsel %vm13603_vm8, %v2170_v17, %v9468_v59 }
 0x22f   :  { %v9473_v48 = vsel %vm2078_vm1, %v3014_v1, %v13544_v29  ;;  %v2763_v1 = vrot.slane %v9452_v3, 3  ;;  %v13951_v29 = vrot.slane %v9239_v6, 2 }
 0x230   :  { %3270 = vrot.lane.b32.xlu1 %v9433_v39, %s8045_s18  ;;  %5501 = vmatpush1.bf16.msra.mxu1 %v7907_v47  ;;  %v9524_v47 = vshll.u32 %v9250_v40, 16 }
 0x231   :  { %2628 = vrot.lane.b32.xlu0 %v2481_v9, %s8046_s21  ;;  %v13543_v9 = vrot.slane %v9427_v52, 2  ;;  %v9503_v23 = vsel %vm2280_vm7, %v13951_v29, %v2386_v5  ;;  %v2765_v15 = vor.u32 %v2764_v25, %v2763_v1  ;;  %5502 = vmatprep.subr.bf16.mxu1 %v13941_v53  ;;  %v3987_v29 = vrot.slane %v9337_v26, 6 }
 0x232   :  { %v3986_v1 = vrot.slane %v9340_v13, 5  ;;  %v9527_v25 = vshrl.u32 %v9250_v40, 16 }
 0x233   :  { %v9484_v44 = vsel %vm2280_vm7, %v2386_v5, %v13543_v9  ;;  %v2768_v9 = vrot.slane %v9487_v49, 4  ;;  %v7908_v5 = vld [vmem:[%s13457_s2 + $0xa8] sm:$0xff]   ;;  %v9520_v17 = vsel %vm13602_vm13, %v9380_v0, %v2765_v15 }
 0x234   :  { %3050 = vrot.lane.b32.xlu1 %v3015_v33, %s8044_s17  ;;  %v9495_v33 = vpop.permute.xlu1 %3979  ;;  %13952 = vst [vmem:[#allocation17_spill] sm:$0xff] %v9520_v17  ;;  %5503 = vmatpush1.bf16.msra.mxu1 %v7908_v5  ;;  %v7909_v5 = vld [vmem:[%s13457_s2 + $0xb0] sm:$0xff]   ;;  %v13547_v17 = vrot.slane %v9317_v31, 7 }
 0x235   :  { %2043 = vrot.lane.b32.xlu0 %v1918_v41, %s8047_s24  ;;  %13949 = vst [vmem:[#allocation68_spill] sm:$0xff] %v9495_v33  ;;  %v9497_v41 = vpop.permute.xlu0 %4095  ;;  %v9512_v38 = vor.u32 %v2768_v9, %v2767_v60  ;;  %v13954_v9 = vrot.slane %v9250_v40, 2  ;;  %5504 = vmatprep.subr.bf16.mxu1 %v13941_v53  ;;  %v9560_v60 = vor.u32 %v3987_v29, %v3986_v1  ;;  %v13960_v33 = vrot.slane %v9053_v37, 6  ;;  %v7910_v29 = vld [vmem:[%s13457_s2 + $0xb8] sm:$0xff]  }
 0x236   :  { %13950 = vst [vmem:[#allocation69_spill] sm:$0xff] %v9497_v41 }
 0x237   :  { %v9538_v0 = vsel %vm2280_vm7, %v13954_v9, %v13546_v2  ;;  %v13957_v9 = vrot.slane %v9148_v46, 1  ;;  %v4312_v46 = vsel %vm4307_vm2, %v13960_v33, %v13959_v27 }
 0x238   :  { %3219 = vrot.lane.b32.xlu1 %v9503_v23, %s8046_s21  ;;  %v9543_v55 = vpop.permute.xlu1 %4212  ;;  %5505 = vmatpush1.bf16.msra.mxu1 %v7909_v5 }
 0x239   :  { %2245 = vrot.lane.b32.xlu0 %v2175_v4, %s8048_s0  ;;  %v9531_v4 = vsel %vm13602_vm13, %v2765_v15, %v9512_v38  ;;  %13955 = vst [vmem:[#allocation70_spill] sm:$0xff] %v9543_v55  ;;  %v9545_v41 = vpop.permute.xlu0 %4381  ;;  %v9551_v15 = vld [vmem:[#allocation2 + $0x38] sm:$0xff]   ;;  %v2911_v2 = vor.u32 %v13957_v9, %v9173_v35  ;;  %v13958_v55 = vrot.slane %v9337_v26, 1  ;;  %5506 = vmatprep.subr.bf16.mxu1 %v13941_v53 }
 0x23a   :  { %13953 = vst [vmem:[#allocation50_spill] sm:$0xff] %v9531_v4  ;;  %13956 = vst [vmem:[#allocation18_spill] sm:$0xff] %v9545_v41  ;;  %v4103_v4 = vrot.slane %v9527_v25, 5  ;;  %v4104_v41 = vrot.slane %v9524_v47, 6  ;;  %v13548_v35 = vshrl.u32 %v9551_v15, 16  ;;  %v13549_v5 = vshll.u32 %v9551_v15, 16 }
 0x23b   :  { %v2913_v14 = vsel %vm1890_vm6, %v2911_v2, %v13958_v55  ;;  %v13961_v55 = vrot.slane %v9053_v37, 7  ;;  %v9597_v37 = vshll.u32 %v9217_v50, 16 }
 0x23c   :  { %3272 = vrot.lane.b32.xlu1 %v9538_v0, %s8045_s18  ;;  %v9584_v1 = vpop.permute.xlu1 %4593  ;;  %v4105_v33 = vor.u32 %v4104_v41, %v4103_v4  ;;  %v9594_v9 = vrot.slane %v13548_v35, 7  ;;  %5507 = vmatpush1.bf16.msra.mxu1 %v7910_v29  ;;  %v3105_v41 = vrot.slane %v9476_v57, 1  ;;  %v7911_v4 = vld [vmem:[%s13457_s2 + $0xc0] sm:$0xff]   ;;  %v3106_v29 = vrot.slane %v9487_v49, 2 }
 0x23d   :  { %2874 = vrot.lane.b32.xlu0 %v9399_v8, %s8042_s13  ;;  %v4603_v2 = vsel %vm4598_vm4, %v13961_v55, %v13547_v17  ;;  %13962 = vst [vmem:[#allocation51_spill] sm:$0xff] %v9584_v1  ;;  %v9586_v27 = vpop.permute.xlu0 %4672  ;;  %v3101_v55 = vrot.slane %v9452_v3, 1  ;;  %v3102_v17 = vrot.slane %v9458_v28, 2  ;;  %5508 = vmatprep.subr.bf16.mxu1 %v13941_v53  ;;  %v4108_v1 = vrot.slane %v9597_v37, 6 }
 0x23e   :  { %13963 = vst [vmem:[#allocation71_spill] sm:$0xff] %v9586_v27  ;;  %v4106_v35 = vsel %vm3982_vm3, %v9259_v62, %v4105_v33  ;;  %v9628_v16 = vor.u32 %v3106_v29, %v3105_v41  ;;  %v2497_v29 = vrot.slane %v9458_v28, 3 }
 0x23f   :  { %v9626_v42 = vor.u32 %v3102_v17, %v3101_v55  ;;  %v4403_v17 = vsel %vm13606_vm5, %v9268_v45, %v9326_v34  ;;  %v13966_v55 = vrot.slane %v8981_v32, 3  ;;  %v13970_v45 = vshll.u32 %v9317_v31, 16 }
 0x240   :  { %2972 = vrot.lane.b32.xlu1 %v2913_v14, %s8048_s0  ;;  %v3989_v14 = vsel %vm3982_vm3, %v9297_v19, %v9560_v60  ;;  %v9610_v19 = vor.u32 %v9594_v9, %v13549_v5  ;;  %v9619_v27 = vpop.permute.xlu1 %2829  ;;  %5509 = vmatpush1.bf16.msra.mxu1 %v7911_v4  ;;  %v2494_v4 = vrot.slane %v9452_v3, 2  ;;  %v2503_v32 = vrot.slane %v9476_v57, 2 }
 0x241   :  { %4349 = vrot.lane.b32.xlu0 %v4312_v46, %s8043_s14  ;;  %v9600_v46 = vshrl.u32 %v9217_v50, 16  ;;  %13964 = vst [vmem:[#allocation19_spill] sm:$0xff] %v9619_v27  ;;  %5510 = vmatprep.subr.bf16.mxu1 %v13941_v53  ;;  %v9640_v62 = vsel %vm13603_vm8, %v9626_v42, %v9628_v16  ;;  %v13969_v27 = vshrl.u32 %v9317_v31, 16  ;;  %v4410_v36 = vrot.slane %v13970_v45, 7 }
 0x243   :  { %v4107_v5 = vrot.slane %v9600_v46, 5  ;;  %v4407_v43 = vrot.slane %v13969_v27, 6  ;;  %v7913_v27 = vld [vmem:[%s13457_s2 + $0xd0] sm:$0xff]  }
 0x244   :  { %4061 = vrot.lane.b32.xlu1 %v3989_v14, %s8048_s0  ;;  %v9622_v14 = vpop.permute.xlu0 %2116 }
 0x245   :  { %4640 = vrot.lane.b32.xlu0 %v4603_v2, %s8045_s18  ;;  %v2671_v2 = vrot.slane %v9239_v6, 3  ;;  %13965 = vst [vmem:[#allocation52_spill] sm:$0xff] %v9622_v14  ;;  %v7912_v6 = vld [vmem:[%s13457_s2 + $0xc8] sm:$0xff]   ;;  %v9654_v14 = vor.u32 %v4108_v1, %v4107_v5  ;;  %v2506_v1 = vrot.slane %v9487_v49, 3  ;;  %v3097_v5 = vrot.slane %v9340_v13, 1 }
 0x246   :  { %5511 = vmatpush1.bf16.msra.mxu1 %v7912_v6  ;;  %v9683_v58 = vor.u32 %v4410_v36, %v4407_v43  ;;  %v7914_v43 = vld [vmem:[%s13457_s2 + $0xd8] sm:$0xff]  }
 0x247   :  { %5512 = vmatprep.subr.bf16.mxu1 %v13941_v53 }
 0x248   :  { %4178 = vrot.lane.b32.xlu1 %v4106_v35, %s8044_s17  ;;  %v2672_v35 = vsel %vm13612_vm9, %v13966_v55, %v2671_v2  ;;  %v9648_v41 = vpop.permute.xlu0 %2318  ;;  %v9664_v55 = vld [vmem:[#allocation2 + $0x38] sm:$0xf] }
 0x249   :  { %2420 = vrot.lane.b32.xlu0 %v9412_v24, %s8043_s14  ;;  %13967 = vst [vmem:[#allocation20_spill] sm:$0xff] %v9648_v41  ;;  %v9650_v24 = vpop.permute.xlu1 %2833  ;;  %v9677_v41 = vor.u32 %v2497_v29, %v2494_v4  ;;  %v13551_v4 = vrot.slane %v9399_v8, 3 }
 0x24a   :  { %13968 = vst [vmem:[#allocation53_spill] sm:$0xff] %v9650_v24  ;;  %v9666_v24 = vld [vmem:[#allocation2 + $0x34] sm:$0xf]  ;;  %5513 = vmatpush1.bf16.msra.mxu1 %v7913_v27 }
 0x24b   :  { %v9688_v7 = vcombine.low %v9666_v24, %v9664_v55  ;;  %5514 = vmatprep.subr.bf16.mxu1 %v13941_v53 }
 0x24c   :  { %4559 = vrot.lane.b32.xlu1 %v4403_v17, %s8046_s21  ;;  %v9673_v6 = vpop.permute.xlu0 %2039  ;;  %v9679_v17 = vor.u32 %v2506_v1, %v2503_v32  ;;  %v3099_v1 = vor.u32 %v3098_v20, %v3097_v5  ;;  %v9728_v20 = vld [vmem:[#allocation2 + $0x30] sm:$0xff]   ;;  %v2674_v5 = vsel %vm13612_vm9, %v2671_v2, %v13551_v4 }
 0x24d   :  { %2707 = vrot.lane.b32.xlu0 %v2672_v35, %s8045_s18  ;;  %13971 = vst [vmem:[#allocation72_spill] sm:$0xff] %v9673_v6  ;;  %v9675_v45 = vpop.permute.xlu1 %2868  ;;  %v4110_v35 = vsel %vm3982_vm3, %v4105_v33, %v9654_v14  ;;  %v1758_v33 = vld [vmem:[#allocation2 + $0x3c] sm:$0xf]  ;;  %v9719_v6 = vshrl.u32 %v9688_v7, 16 }
 0x24e   :  { %13972 = vst [vmem:[#allocation22_spill] sm:$0xff] %v9675_v45  ;;  %13973 = vst [vmem:[#allocation54_spill] sm:$0xff] %v9679_v17  ;;  %v9699_v36 = vsel %vm2455_vm12, %v9677_v41, %v9679_v17  ;;  %v9708_v32 = vcombine.low %v1758_v33, %v9690_v22  ;;  %5515 = vmatpush1.bf16.msra.mxu1 %v7914_v43  ;;  %v13977_v43 = vrot.slane %v9337_v26, 1 }
 0x24f   :  { %5516 = vmatprep.subr.bf16.mxu1 %v13941_v53  ;;  %v2771_v2 = vrot.slane %v9719_v6, 3 }
 0x250   :  { %4180 = vrot.lane.b32.xlu1 %v4110_v35, %s8044_s17  ;;  %13975 = vst [vmem:[#allocation74_spill] sm:$0xff] %v9708_v32  ;;  %v9713_v27 = vpop.permute.xlu0 %2241  ;;  %v9716_v35 = vshll.u32 %v9688_v7, 16  ;;  %v9746_v61 = vshll.u32 %v9708_v32, 16 }
 0x251   :  { %2324 = vrot.lane.b32.xlu0 %v9433_v39, %s8044_s17  ;;  %v9705_v29 = vpop.permute.xlu1 %2831  ;;  %v4412_v39 = vsel %vm13606_vm5, %v9326_v34, %v9683_v58  ;;  %13976 = vst [vmem:[#allocation23_spill] sm:$0xff] %v9713_v27  ;;  %v7915_v34 = vld [vmem:[%s13457_s2 + $0xe0] sm:$0xff]   ;;  %v2914_v27 = vor.u32 %v13977_v43, %v9340_v13  ;;  %v13556_v43 = vrot.slane %v9458_v28, 1 }
 0x252   :  { %13974 = vst [vmem:[#allocation73_spill] sm:$0xff] %v9705_v29  ;;  %5517 = vmatpush1.bf16.msra.mxu1 %v7915_v34  ;;  %v2772_v4 = vrot.slane %v9716_v35, 4  ;;  %v2776_v12 = vrot.slane %v9746_v61, 4 }
 0x253   :  { %5518 = vmatprep.subr.bf16.mxu1 %v13941_v53 }
 0x254   :  { %4561 = vrot.lane.b32.xlu1 %v4412_v39, %s8046_s21  ;;  %v9739_v39 = vshrl.u32 %v9708_v32, 16  ;;  %v9743_v45 = vpop.permute.xlu0 %4345  ;;  %v2773_v40 = vor.u32 %v2772_v4, %v2771_v2  ;;  %v9787_v2 = vld [vmem:[#allocation2 + $0x40] sm:$0xff]  }
 0x255   :  { %2422 = vrot.lane.b32.xlu0 %v9503_v23, %s8043_s14  ;;  %v9736_v29 = vpop.permute.xlu1 %2870  ;;  %v3100_v23 = vsel %vm13603_vm8, %v9196_v10, %v3099_v1  ;;  %13979 = vst [vmem:[#allocation25_spill] sm:$0xff] %v9743_v45  ;;  %v7917_v10 = vld [vmem:[%s13457_s2 + $0xe8] sm:$0xff]   ;;  %v1925_v45 = vrot.slane %v9524_v47, 1 }
 0x256   :  { %13978 = vst [vmem:[#allocation55_spill] sm:$0xff] %v9736_v29  ;;  %v2775_v34 = vrot.slane %v9739_v39, 3  ;;  %v13557_v29 = vshrl.u32 %v9728_v20, 16  ;;  %5519 = vmatpush1.bf16.msra.mxu1 %v7917_v10  ;;  %v9770_v17 = vsel %vm13602_vm13, %v9512_v38, %v2773_v40 }
 0x257   :  { %13981 = vst [vmem:[#allocation75_spill] sm:$0xff] %v9770_v17  ;;  %5520 = vmatprep.subr.bf16.mxu1 %v13941_v53  ;;  %v1929_v10 = vor.u32 %v9527_v25, %v1925_v45 }
 0x258   :  { %3172 = vrot.lane.b32.xlu1 %v3100_v23, %s8043_s14  ;;  %v9764_v23 = vpop.permute.xlu0 %4636  ;;  %v9766_v51 = vor.u32 %v2776_v12, %v2775_v34  ;;  %v1921_v12 = vor.u32 %v9223_v54, %v9301_v63  ;;  %v9785_v38 = vrot.slane %v13557_v29, 7  ;;  %v4690_v54 = vsel %vm4677_vm11, %v9091_v18, %v9371_v21 }
 0x259   :  { %2709 = vrot.lane.b32.xlu0 %v2674_v5, %s8045_s18  ;;  %v2916_v5 = vsel %vm1890_vm6, %v2914_v27, %v13556_v43  ;;  %13980 = vst [vmem:[#allocation56_spill] sm:$0xff] %v9764_v23  ;;  %v7918_v27 = vld [vmem:[%s13457_s2 + $0xf0] sm:$0xff]   ;;  %v3991_v43 = vrot.slane %v9458_v28, 6  ;;  %v3104_v63 = vsel %vm13603_vm8, %v3099_v1, %v9626_v42  ;;  %v9814_v18 = vcombine.low %v9406_v11, %v9666_v24  ;;  %v7919_v42 = vld [vmem:[%s13457_s2 + $0xf8] sm:$0xff]  }
 0x25a   :  { %v9776_v4 = vpop.permute.xlu1 %3971  ;;  %v9791_v34 = vsel %vm13602_vm13, %v2773_v40, %v9766_v51  ;;  %5521 = vmatpush1.bf16.msra.mxu1 %v7918_v27  ;;  %v1926_v29 = vsel %vm1890_vm6, %v1921_v12, %v1925_v45  ;;  %v13558_v40 = vshll.u32 %v9728_v20, 16  ;;  %v13559_v27 = vrot.slane %v9597_v37, 1 }
 0x25b   :  { %13982 = vst [vmem:[#allocation29_spill] sm:$0xff] %v9791_v34  ;;  %5522 = vmatprep.subr.bf16.mxu1 %v13941_v53  ;;  %v9809_v34 = vcombine.low %v9664_v55, %v1758_v33  ;;  %13983 = vst [vmem:[#allocation57_spill] sm:$0xff] %v9814_v18  ;;  %v4961_v21 = vsel %vm3304_vm10, %v4690_v54, 0  ;;  %v2485_v1 = vrot.slane %v9340_v13, 2  ;;  %v2488_v54 = vrot.slane %v9337_v26, 3 }
 0x25c   :  { %2974 = vrot.lane.b32.xlu1 %v2916_v5, %s8048_s0  ;;  %v3990_v5 = vrot.slane %v9452_v3, 5  ;;  %v9820_v45 = vpop.permute.xlu0 %2416  ;;  %v4692_v55 = vor.u32 %v9785_v38, %v13558_v40  ;;  %v1934_v11 = vsel %vm1890_vm6, %v1929_v10, %v13559_v27  ;;  %v3110_v13 = vrot.slane %v9716_v35, 2 }
 0x25d   :  { %2326 = vrot.lane.b32.xlu0 %v9538_v0, %s8044_s17  ;;  %v9793_v0 = vld [vmem:[#allocation2 + $0x48] sm:$0xff]   ;;  %13984 = vst [vmem:[#allocation76_spill] sm:$0xff] %v9820_v45  ;;  %v5096_v40 = vshrl.u32 %v4961_v21, 16  ;;  %v5099_v17 = vshll.u32 %v4961_v21, 16  ;;  %v3113_v33 = vrot.slane %v9739_v39, 1  ;;  %v13986_v10 = vshrl.u32 %v9787_v2, 16 }
 0x25e   :  { %v9831_v24 = vpop.permute.xlu1 %3046  ;;  %v9833_v12 = vor.u32 %v3991_v43, %v3990_v5  ;;  %5523 = vmatpush1.bf16.msra.mxu1 %v7919_v42  ;;  %v2176_v27 = vrot.slane %v9527_v25, 1  ;;  %v3114_v45 = vrot.slane %v9746_v61, 2  ;;  %v2489_v43 = vor.u32 %v2488_v54, %v2485_v1 }
 0x25f   :  { %13985 = vst [vmem:[#allocation77_spill] sm:$0xff] %v9831_v24  ;;  %5753 = vmatprep.subr.bf16.mxu1 %v13941_v53  ;;  %v9847_v5 = vrot.slane %v13986_v10, 7  ;;  %v2177_v26 = vrot.slane %v9524_v47, 2  ;;  %v13987_v24 = vshll.u32 %v9787_v2, 16 }
 0x260   :  { %3174 = vrot.lane.b32.xlu1 %v3104_v63, %s8043_s14  ;;  %v3109_v63 = vrot.slane %v9719_v6, 1  ;;  %v3993_v25 = vsel %vm3982_vm3, %v9560_v60, %v9833_v12  ;;  %v9872_v21 = vpop.permute.xlu0 %2703  ;;  %v9876_v1 = vor.u32 %v3114_v45, %v3113_v33  ;;  %v13562_v45 = vrot.slane %v9728_v20, 7 }
 0x261   :  { %2045 = vrot.lane.b32.xlu0 %v1926_v29, %s8047_s24  ;;  %v13560_v29 = vshrl.u32 %v9793_v0, 16  ;;  %v9862_v10 = vor.u32 %v9847_v5, %v13987_v24  ;;  %13989 = vst [vmem:[#allocation35_spill] sm:$0xff] %v9872_v21  ;;  %v5101_v24 = vrot.slane %v5099_v17, 3  ;;  %v2490_v17 = vsel %vm2455_vm12, %v9416_v30, %v2489_v43 }
 0x262   :  { %13990 = vst [vmem:[#allocation58_spill] sm:$0xff] %v9876_v1  ;;  %v2090_v30 = vrot.slane %v9814_v18, 1 }
 0x263   :  { %v9851_v42 = vrot.slane %v13560_v29, 7  ;;  %v13988_v29 = vshll.u32 %v9793_v0, 16 }
 0x264   :  { %2841 = vrot.lane.b32.xlu1 %v9809_v34, %s8047_s24 }
 0x265   :  { %2047 = vrot.lane.b32.xlu0 %v1934_v11, %s8047_s24  ;;  %v4693_v11 = vsel %vm4677_vm11, %v9355_v56, %v4692_v55  ;;  %v9867_v53 = vor.u32 %v9851_v42, %v13988_v29  ;;  %v9874_v56 = vor.u32 %v3110_v13, %v3109_v63  ;;  %v9882_v55 = vpop.permute.xlu1 %3215  ;;  %v5098_v29 = vrot.slane %v5096_v40, 2 }
 0x266   :  { %v4963_v47 = vsel %vm3304_vm10, %v4693_v11, 0  ;;  %13991 = vst [vmem:[#allocation78_spill] sm:$0xff] %v9882_v55  ;;  %v13993_v63 = vrot.slane %v9728_v20, 6  ;;  %v13994_v11 = vrot.slane %v9317_v31, 6  ;;  %v2178_v40 = vor.u32 %v2177_v26, %v2176_v27 }
 0x267   :  { %v5112_v54 = vshrl.u32 %v4963_v47, 16  ;;  %v5115_v23 = vshll.u32 %v4963_v47, 16  ;;  %v9887_v60 = vsel %vm13603_vm8, %v9874_v56, %v9876_v1  ;;  %v9899_v47 = vor.u32 %v5101_v24, %v5098_v29 }
 0x268   :  { %2839 = vrot.lane.b32.xlu1 %v9814_v18, %s8047_s24  ;;  %13992 = vst [vmem:[#allocation36_spill] sm:$0xff] %v9887_v60  ;;  %v2179_v26 = vsel %vm13603_vm8, %v9468_v59, %v2178_v40  ;;  %v13563_v29 = vrot.slane %v9809_v34, 1  ;;  %v2180_v24 = vrot.slane %v9600_v46, 1  ;;  %v14011_v55 = vrot.slane %v9217_v50, 2 }
 0x269   :  { %4063 = vrot.lane.b32.xlu0 %v3993_v25, %s8048_s0  ;;  %v5114_v33 = vrot.slane %v5112_v54, 2  ;;  %v5117_v13 = vrot.slane %v5115_v23, 3  ;;  %v4314_v25 = vsel %vm4307_vm2, %v13994_v11, %v13993_v63  ;;  %13995 = vst [vmem:[#allocation59_spill] sm:$0xff] %v9899_v47  ;;  %v13997_v23 = vrot.slane %v9317_v31, 7 }
 0x26a   :  { %v2181_v31 = vrot.slane %v9597_v37, 2  ;;  %v14015_v60 = vrot.slane %v9688_v7, 1 }
 0x26b   :  { %v9901_v21 = vor.u32 %v5117_v13, %v5114_v33  ;;  %v4605_v63 = vsel %vm4598_vm4, %v13997_v23, %v13562_v45  ;;  %v2093_v13 = vsel %vm2078_vm1, %v2090_v30, %v13563_v29  ;;  %v9938_v23 = vld [vmem:[#allocation2 + $0x44] sm:$0xf] }
 0x26c   :  { %4351 = vrot.lane.b32.xlu1 %v4314_v25, %s8043_s14  ;;  %v2499_v25 = vsel %vm2455_vm12, %v2489_v43, %v9677_v41  ;;  %v9932_v59 = vor.u32 %v2181_v31, %v2180_v24  ;;  %v9955_v43 = vld [vmem:[#allocation2 + $0x58] sm:$0xff]  }
 0x26d   :  { %2630 = vrot.lane.b32.xlu0 %v2490_v17, %s8046_s21  ;;  %v9903_v54 = vpop.permute.xlu0 %2118  ;;  %v9916_v27 = vsel %vm2455_vm12, %v9899_v47, %v9901_v21  ;;  %14004 = vst [vmem:[#allocation85_spill] sm:$0xff] %v9955_v43 }
 0x26e   :  { %13996 = vst [vmem:[#allocation37_spill] sm:$0xff] %v9903_v54  ;;  %v9910_v11 = vpop.permute.xlu1 %3268  ;;  %13999 = vst [vmem:[#allocation79_spill] sm:$0xff] %v9916_v27  ;;  %v2183_v29 = vsel %vm13603_vm8, %v2178_v40, %v9932_v59  ;;  %v14016_v27 = vrot.slane %v9427_v52, 1 }
 0x26f   :  { %13998 = vst [vmem:[#allocation60_spill] sm:$0xff] %v9910_v11 }
 0x270   :  { %4642 = vrot.lane.b32.xlu1 %v4605_v63, %s8045_s18  ;;  %v9940_v63 = vld [vmem:[#allocation2 + $0x48] sm:$0xf] }
 0x271   :  { %2247 = vrot.lane.b32.xlu0 %v2179_v26, %s8048_s0  ;;  %v9925_v33 = vpop.permute.xlu0 %2320  ;;  %v9942_v26 = vld [vmem:[#allocation2 + $0x50] sm:$0xff]   ;;  %v9953_v41 = vcombine.low %v9938_v23, %v9940_v63 }
 0x272   :  { %14000 = vst [vmem:[#allocation39_spill] sm:$0xff] %v9925_v33  ;;  %14002 = vst [vmem:[#allocation83_spill] sm:$0xff] %v9942_v26  ;;  %v13564_v24 = vshrl.u32 %v9942_v26, 16  ;;  %v13566_v40 = vshll.u32 %v9942_v26, 16 }
 0x274   :  { %2128 = vrot.lane.b32.xlu1 %v2093_v13, %s8042_s13  ;;  %v9935_v17 = vpop.permute.xlu1 %2970 }
 0x275   :  { %14001 = vst [vmem:[#allocation61_spill] sm:$0xff] %v9935_v17  ;;  %2632 = vrot.lane.b32.xlu0 %v2499_v25, %s8046_s21  ;;  %v2292_v25 = vrot.slane %v9814_v18, 2  ;;  %v13574_v17 = vshll.u32 %v9955_v43, 16 }
 0x277   :  { %v9944_v45 = vpop.permute.xlu0 %2418 }
 0x278   :  { %14003 = vst [vmem:[#allocation84_spill] sm:$0xff] %v9944_v45  ;;  %3052 = vrot.lane.b32.xlu1 %v9473_v48, %s8044_s17  ;;  %v9968_v48 = vshrl.u32 %v9953_v41, 16  ;;  %v9976_v45 = vshll.u32 %v9953_v41, 16 }
 0x279   :  { %2249 = vrot.lane.b32.xlu0 %v2183_v29, %s8048_s0  ;;  %v9973_v29 = vrot.slane %v13564_v24, 7 }
 0x27a   :  { %v9958_v31 = vpop.permute.xlu1 %3170  ;;  %14007 = vst [vmem:[#allocation88_spill] sm:$0xff] %v9968_v48  ;;  %14008 = vst [vmem:[#allocation89_spill] sm:$0xff] %v9976_v45  ;;  %v2780_v24 = vrot.slane %v9976_v45, 4 }
 0x27b   :  { %14005 = vst [vmem:[#allocation86_spill] sm:$0xff] %v9958_v31  ;;  %v9960_v13 = vpop.permute.xlu0 %2705  ;;  %v9986_v11 = vor.u32 %v9973_v29, %v13566_v40  ;;  %v9991_v31 = vsel %vm2280_vm7, %v14011_v55, %v2292_v25  ;;  %v2779_v40 = vrot.slane %v9968_v48, 3  ;;  %v3019_v48 = vsel %vm2078_vm1, %v14016_v27, %v14015_v60 }
 0x27c   :  { %14006 = vst [vmem:[#allocation87_spill] sm:$0xff] %v9960_v13  ;;  %3221 = vrot.lane.b32.xlu1 %v9484_v44, %s8046_s21  ;;  %v13567_v13 = vshrl.u32 %v9955_v43, 16  ;;  %v13576_v43 = vrot.slane %v9688_v7, 2  ;;  %v10055_v60 = vshll.u32 %v9814_v18, 16 }
 0x27d   :  { %2876 = vrot.lane.b32.xlu0 %v9427_v52, %s8042_s13  ;;  %v10024_v47 = vor.u32 %v2780_v24, %v2779_v40  ;;  %v4696_v24 = vsel %vm4677_vm11, %v9785_v38, %v9610_v19 }
 0x27e   :  { %v9979_v33 = vpop.permute.xlu1 %2837  ;;  %v9997_v1 = vrot.slane %v13567_v13, 7  ;;  %v14014_v13 = vrot.slane %v9217_v50, 1  ;;  %v4965_v27 = vsel %vm3304_vm10, %v4696_v24, 0  ;;  %v13583_v45 = vrot.slane %v10055_v60, 1 }
 0x27f   :  { %14009 = vst [vmem:[#allocation90_spill] sm:$0xff] %v9979_v33  ;;  %v9981_v54 = vpop.permute.xlu0 %2120  ;;  %14017 = vst [vmem:[#allocation94_spill] sm:$0xff] %v10024_v47  ;;  %v5128_v19 = vshrl.u32 %v4965_v27, 16  ;;  %v5131_v38 = vshll.u32 %v4965_v27, 16  ;;  %v14027_v27 = vrot.slane %v9597_v37, 1  ;;  %v4699_v37 = vsel %vm4677_vm11, %v9594_v9, %v9862_v10 }
 0x280   :  { %14010 = vst [vmem:[#allocation91_spill] sm:$0xff] %v9981_v54  ;;  %3274 = vrot.lane.b32.xlu1 %v9991_v31, %s8045_s18  ;;  %v10007_v55 = vor.u32 %v9997_v1, %v13574_v17  ;;  %v2091_v26 = vsel %vm2078_vm1, %v14014_v13, %v2090_v30  ;;  %v13578_v17 = vrot.slane %v9551_v15, 6  ;;  %v10031_v30 = vsel %vm13602_vm13, %v9766_v51, %v10024_v47 }
 0x281   :  { %2878 = vrot.lane.b32.xlu0 %v9688_v7, %s8042_s13  ;;  %14018 = vst [vmem:[#allocation95_spill] sm:$0xff] %v10031_v30  ;;  %v14021_v51 = vrot.slane %v9728_v20, 6  ;;  %v14024_v47 = vrot.slane %v9809_v34, 2  ;;  %v5130_v30 = vrot.slane %v5128_v19, 2  ;;  %v5133_v24 = vrot.slane %v5131_v38, 3 }
 0x282   :  { %v10010_v33 = vpop.permute.xlu1 %2872  ;;  %v1937_v50 = vor.u32 %v9600_v46, %v14027_v27  ;;  %v10091_v46 = vshrl.u32 %v9814_v18, 16  ;;  %vm3451_vm13 = vcmask 654336  }
 0x283   :  { %14012 = vst [vmem:[#allocation92_spill] sm:$0xff] %v10010_v33  ;;  %v10012_v54 = vpop.permute.xlu0 %2322  ;;  %v4316_v40 = vsel %vm4307_vm2, %v14021_v51, %v13578_v17  ;;  %v10068_v51 = vsel %vm2280_vm7, %v2292_v25, %v14024_v47  ;;  %v14026_v33 = vrot.slane %v9728_v20, 7  ;;  %v3994_v47 = vrot.slane %v9476_v57, 5 }
 0x284   :  { %14013 = vst [vmem:[#allocation93_spill] sm:$0xff] %v10012_v54  ;;  %3054 = vrot.lane.b32.xlu1 %v3019_v48, %s8044_s17  ;;  %v3995_v25 = vrot.slane %v9487_v49, 6  ;;  %v5134_v19 = vor.u32 %v5133_v24, %v5130_v30  ;;  %v10103_v30 = vshrl.u32 %v9809_v34, 16 }
 0x285   :  { %2126 = vrot.lane.b32.xlu0 %v2091_v26, %s8042_s13  ;;  %v14020_v26 = vrot.slane %v9427_v52, 2 }
 0x286   :  { %v10033_v13 = vpop.permute.xlu1 %2835  ;;  %v10107_v9 = vsel %vm2455_vm12, %v9901_v21, %v5134_v19 }
 0x287   :  { %14019 = vst [vmem:[#allocation96_spill] sm:$0xff] %v10033_v13  ;;  %v10035_v54 = vpop.permute.xlu0 %4176  ;;  %v10047_v48 = vsel %vm2280_vm7, %v14020_v26, %v13576_v43  ;;  %v10061_v26 = vld [vmem:[#allocation2 + $0x60] sm:$0xff]   ;;  %v14025_v13 = vrot.slane %v9551_v15, 7  ;;  %14030 = vst [vmem:[#allocation101_spill] sm:$0xff] %v10107_v9 }
 0x288   :  { %3223 = vrot.lane.b32.xlu1 %v10047_v48, %s8046_s21  ;;  %14022 = vst [vmem:[#allocation97_spill] sm:$0xff] %v10061_v26  ;;  %v13584_v38 = vshll.u32 %v10061_v26, 16  ;;  %v14031_v18 = vshrl.u32 %v10061_v26, 16 }
 0x289   :  { %4353 = vrot.lane.b32.xlu0 %v4316_v40, %s8043_s14  ;;  %v4607_v40 = vsel %vm4598_vm4, %v14026_v33, %v14025_v13  ;;  %v10094_v33 = vshll.u32 %v9809_v34, 16  ;;  %v4967_v13 = vsel %vm3304_vm10, %v4699_v37, 0  ;;  %v2675_v37 = vrot.slane %v9427_v52, 3 }
 0x28a   :  { %v10063_v43 = vpop.permute.xlu1 %2122  ;;  %v5144_v10 = vshrl.u32 %v4967_v13, 16  ;;  %v5147_v24 = vshll.u32 %v4967_v13, 16  ;;  %v14033_v13 = vrot.slane %v9458_v28, 1  ;;  %v4111_v52 = vrot.slane %v10091_v46, 5 }
 0x28b   :  { %14023 = vst [vmem:[#allocation98_spill] sm:$0xff] %v10063_v43  ;;  %v10070_v17 = vpop.permute.xlu0 %4557  ;;  %v1942_v43 = vsel %vm1890_vm6, %v1937_v50, %v13583_v45  ;;  %v10124_v50 = vor.u32 %v3995_v25, %v3994_v47  ;;  %v10127_v45 = vld [vmem:[#allocation2 + $0x68] sm:$0xff]   ;;  %v4115_v28 = vrot.slane %v10103_v30, 5  ;;  %v14035_v25 = vrot.slane %v9487_v49, 1 }
 0x28c   :  { %3276 = vrot.lane.b32.xlu1 %v10068_v51, %s8045_s18  ;;  %v5146_v21 = vrot.slane %v5144_v10, 2  ;;  %v5149_v9 = vrot.slane %v5147_v24, 3  ;;  %v4112_v10 = vrot.slane %v10055_v60, 6 }
 0x28d   :  { %4644 = vrot.lane.b32.xlu0 %v4607_v40, %s8045_s18 }
 0x28e   :  { %v10098_v40 = vpop.permute.xlu1 %4347  ;;  %v10141_v47 = vor.u32 %v5149_v9, %v5146_v21 }
 0x28f   :  { %14028 = vst [vmem:[#allocation99_spill] sm:$0xff] %v10098_v40  ;;  %v10100_v27 = vpop.permute.xlu0 %2041  ;;  %v2917_v40 = vor.u32 %v14033_v13, %v9452_v3  ;;  %v4116_v3 = vrot.slane %v10094_v33, 6  ;;  %v14036_v13 = vrot.slane %v9399_v8, 3  ;;  %v4113_v8 = vor.u32 %v4112_v10, %v4111_v52 }
 0x290   :  { %14029 = vst [vmem:[#allocation100_spill] sm:$0xff] %v10100_v27  ;;  %v10116_v27 = vrot.slane %v14031_v18, 7  ;;  %2049 = vrot.lane.b32.xlu1 %v1942_v43, %s8047_s24  ;;  %v10153_v26 = vsel %vm2455_vm12, %v5134_v19, %v10141_v47  ;;  %v14043_v52 = vshrl.u32 %v10127_v45, 16 }
 0x291   :  { %2424 = vrot.lane.b32.xlu0 %v9484_v44, %s8043_s14  ;;  %v2919_v24 = vsel %vm1890_vm6, %v2917_v40, %v14035_v25  ;;  %14037 = vst [vmem:[#allocation104_spill] sm:$0xff] %v10153_v26  ;;  %v3997_v40 = vsel %vm3982_vm3, %v9833_v12, %v10124_v50  ;;  %v10163_v25 = vor.u32 %v4116_v3, %v4115_v28  ;;  %v14041_v26 = vshrl.u32 %v9551_v15, 16 }
 0x292   :  { %14032 = vst [vmem:[#allocation102_spill] sm:$0xff] %v10116_v27  ;;  %v10132_v18 = vor.u32 %v10116_v27, %v13584_v38  ;;  %v10134_v43 = vpop.permute.xlu1 %4638  ;;  %v2676_v38 = vsel %vm13612_vm9, %v14036_v13, %v2675_v37  ;;  %v14040_v13 = vshll.u32 %v9728_v20, 16  ;;  %v13588_v12 = vshll.u32 %v10127_v45, 16 }
 0x293   :  { %14034 = vst [vmem:[#allocation103_spill] sm:$0xff] %v10134_v43  ;;  %v10136_v44 = vpop.permute.xlu0 %4059  ;;  %v4425_v43 = vrot.slane %v14041_v26, 6  ;;  %v10179_v10 = vrot.slane %v14043_v52, 7  ;;  %v4118_v3 = vsel %vm3982_vm3, %v4113_v8, %v10163_v25 }
 0x294   :  { %2976 = vrot.lane.b32.xlu1 %v2919_v24, %s8048_s0  ;;  %v14039_v24 = vshrl.u32 %v9728_v20, 16  ;;  %v4419_v19 = vrot.slane %v14040_v13, 7 }
 0x295   :  { %2711 = vrot.lane.b32.xlu0 %v2676_v38, %s8045_s18  ;;  %v10188_v26 = vor.u32 %v10179_v10, %v13588_v12 }
 0x296   :  { %v10156_v9 = vpop.permute.xlu1 %2124  ;;  %v4416_v38 = vrot.slane %v14039_v24, 6 }
 0x297   :  { %14038 = vst [vmem:[#allocation105_spill] sm:$0xff] %v10156_v9  ;;  %v10161_v21 = vpop.permute.xlu0 %3950  ;;  %v14042_v9 = vshll.u32 %v9551_v15, 16 }
 0x298   :  { %4065 = vrot.lane.b32.xlu1 %v3997_v40, %s8048_s0  ;;  %v13589_v40 = vrot.slane %v9688_v7, 3 }
 0x299   :  { %v4428_v27 = vrot.slane %v14042_v9, 7  ;;  %2328 = vrot.lane.b32.xlu0 %v9991_v31, %s8044_s17  ;;  %v4420_v9 = vor.u32 %v4419_v19, %v4416_v38  ;;  %v14050_v19 = vrot.slane %v9487_v49, 1 }
 0x29a   :  { %v10181_v28 = vpop.permute.xlu1 %3048  ;;  %v2678_v38 = vsel %vm13612_vm9, %v2675_v37, %v13589_v40  ;;  %v13592_v37 = vrot.slane %v9716_v35, 1 }
 0x29b   :  { %14044 = vst [vmem:[#allocation106_spill] sm:$0xff] %v10181_v28  ;;  %v10183_v20 = vpop.permute.xlu0 %2626  ;;  %v10192_v31 = vor.u32 %v4428_v27, %v4425_v43  ;;  %v10207_v27 = vld [vmem:[#allocation2 + $0x70] sm:$0xff]  }
 0x29c   :  { %14045 = vst [vmem:[#allocation107_spill] sm:$0xff] %v10183_v20  ;;  %4184 = vrot.lane.b32.xlu1 %v4118_v3, %s8044_s17  ;;  %v2920_v3 = vor.u32 %v14050_v19, %v9476_v57  ;;  %v13590_v12 = vshrl.u32 %v10207_v27, 16  ;;  %v10233_v57 = vld [vmem:[#allocation2 + $0x78] sm:$0xff]  }
 0x29d   :  { %2426 = vrot.lane.b32.xlu0 %v10047_v48, %s8043_s14  ;;  %v4430_v52 = vsel %vm13606_vm5, %v4420_v9, %v10192_v31 }
 0x29e   :  { %v10198_v24 = vpop.permute.xlu1 %3217 }
 0x29f   :  { %14046 = vst [vmem:[#allocation108_spill] sm:$0xff] %v10198_v24  ;;  %v10200_v13 = vpop.permute.xlu0 %2243 }
 0x2a0   :  { %14047 = vst [vmem:[#allocation109_spill] sm:$0xff] %v10200_v13  ;;  %4565 = vrot.lane.b32.xlu1 %v4430_v52, %s8046_s21  ;;  %v13591_v52 = vshll.u32 %v10207_v27, 16 }
 0x2a1   :  { %2713 = vrot.lane.b32.xlu0 %v2678_v38, %s8045_s18  ;;  %v10227_v38 = vrot.slane %v13590_v12, 7 }
 0x2a2   :  { %v10211_v43 = vpop.permute.xlu1 %3270 }
 0x2a3   :  { %14048 = vst [vmem:[#allocation110_spill] sm:$0xff] %v10211_v43  ;;  %v10213_v48 = vpop.permute.xlu0 %2628  ;;  %v10243_v19 = vor.u32 %v10227_v38, %v13591_v52 }
 0x2a4   :  { %14049 = vst [vmem:[#allocation111_spill] sm:$0xff] %v10213_v48  ;;  %3176 = vrot.lane.b32.xlu1 %v9640_v62, %s8043_s14  ;;  %v2922_v62 = vsel %vm1890_vm6, %v2920_v3, %v13592_v37  ;;  %v13593_v3 = vshrl.u32 %v10233_v57, 16 }
 0x2a5   :  { %2330 = vrot.lane.b32.xlu0 %v10068_v51, %s8044_s17  ;;  %v4114_v51 = vsel %vm3982_vm3, %v9654_v14, %v4113_v8  ;;  %v3112_v14 = vsel %vm13603_vm8, %v9628_v16, %v9874_v56  ;;  %v14055_v8 = vrot.slane %v10055_v60, 1  ;;  %v13595_v16 = vrot.slane %v10094_v33, 1 }
 0x2a6   :  { %v10229_v40 = vpop.permute.xlu1 %3050 }
 0x2a7   :  { %14051 = vst [vmem:[#allocation112_spill] sm:$0xff] %v10229_v40  ;;  %v10231_v49 = vpop.permute.xlu0 %2043  ;;  %v1945_v52 = vor.u32 %v10091_v46, %v14055_v8  ;;  %v10274_v8 = vcombine.low %v9690_v22, %v9938_v23  ;;  %v10295_v23 = vld [vmem:[#allocation2 + $0x88] sm:$0xff]  }
 0x2a8   :  { %14052 = vst [vmem:[#allocation113_spill] sm:$0xff] %v10231_v49  ;;  %2978 = vrot.lane.b32.xlu1 %v2922_v62, %s8048_s0  ;;  %v4421_v49 = vsel %vm13606_vm5, %v9683_v58, %v4420_v9  ;;  %v3998_v62 = vrot.slane %v9719_v6, 5  ;;  %v13594_v58 = vshll.u32 %v10233_v57, 16  ;;  %v10267_v9 = vrot.slane %v13593_v3, 7  ;;  %14058 = vst [vmem:[#allocation118_spill] sm:$0xff] %v10295_v23 }
 0x2a9   :  { %4182 = vrot.lane.b32.xlu0 %v4114_v51, %s8044_s17  ;;  %v3999_v51 = vrot.slane %v9716_v35, 6  ;;  %v1950_v3 = vsel %vm1890_vm6, %v1945_v52, %v13595_v16  ;;  %vm3525_vm5 = vcmask 916480  }
 0x2aa   :  { %v10247_v12 = vpop.permute.xlu1 %3219 }
 0x2ab   :  { %14053 = vst [vmem:[#allocation114_spill] sm:$0xff] %v10247_v12  ;;  %v10249_v48 = vpop.permute.xlu0 %2245 }
 0x2ac   :  { %14054 = vst [vmem:[#allocation115_spill] sm:$0xff] %v10249_v48  ;;  %3178 = vrot.lane.b32.xlu1 %v3112_v14, %s8043_s14  ;;  %v10283_v14 = vld [vmem:[#allocation2 + $0x4c] sm:$0xf]  ;;  %v13596_v48 = vrot.slane %v9787_v2, 6 }
 0x2ad   :  { %4563 = vrot.lane.b32.xlu0 %v4421_v49, %s8046_s21  ;;  %v10281_v49 = vor.u32 %v10267_v9, %v13594_v58  ;;  %v10299_v58 = vcombine.low %v9940_v63, %v10283_v14  ;;  %v14061_v63 = vrot.slane %v9787_v2, 7 }
 0x2ae   :  { %v10270_v56 = vpop.permute.xlu1 %3272 }
 0x2af   :  { %14056 = vst [vmem:[#allocation116_spill] sm:$0xff] %v10270_v56  ;;  %v10276_v37 = vpop.permute.xlu0 %2874  ;;  %v10289_v56 = vor.u32 %v3999_v51, %v3998_v62  ;;  %v2184_v62 = vrot.slane %v10091_v46, 1  ;;  %v2185_v51 = vrot.slane %v10055_v60, 2  ;;  %v14062_v46 = vrot.slane %v9551_v15, 7 }
 0x2b0   :  { %14057 = vst [vmem:[#allocation117_spill] sm:$0xff] %v10276_v37  ;;  %2843 = vrot.lane.b32.xlu1 %v10274_v8, %s8047_s24  ;;  %v4702_v37 = vsel %vm4677_vm11, %v9847_v5, %v9867_v53  ;;  %v13599_v53 = vshll.u32 %v10295_v23, 16 }
 0x2b1   :  { %2051 = vrot.lane.b32.xlu0 %v1950_v3, %s8047_s24  ;;  %v14060_v3 = vrot.slane %v9551_v15, 6  ;;  %v4001_v22 = vsel %vm3982_vm3, %v10124_v50, %v10289_v56  ;;  %v4609_v60 = vsel %vm4598_vm4, %v14062_v46, %v14061_v63  ;;  %v4969_v43 = vsel %vm3304_vm10, %v4702_v37, 0 }
 0x2b2   :  { %v10301_v12 = vpop.permute.xlu1 %2972  ;;  %v2512_v15 = vrot.slane %v9719_v6, 2  ;;  %v2515_v63 = vrot.slane %v9716_v35, 3  ;;  %v5160_v46 = vshrl.u32 %v4969_v43, 16  ;;  %v5163_v24 = vshll.u32 %v4969_v43, 16 }
 0x2b3   :  { %14059 = vst [vmem:[#allocation119_spill] sm:$0xff] %v10301_v12  ;;  %v10303_v52 = vpop.permute.xlu0 %4349  ;;  %v4318_v16 = vsel %vm4307_vm2, %v14060_v3, %v13596_v48  ;;  %v13597_v3 = vshrl.u32 %v10295_v23, 16  ;;  %v14063_v43 = vrot.slane %v10274_v8, 1  ;;  %v14071_v12 = vld [vmem:[#allocation42_spill] sm:$0xff] }
 0x2b4   :  { %4355 = vrot.lane.b32.xlu1 %v4318_v16, %s8043_s14  ;;  %v13598_v16 = vrot.slane %v10299_v58, 1  ;;  %v5162_v37 = vrot.slane %v5160_v46, 2 }
 0x2b5   :  { %4067 = vrot.lane.b32.xlu0 %v4001_v22, %s8048_s0  ;;  %v2186_v22 = vor.u32 %v2185_v51, %v2184_v62  ;;  %v10341_v5 = vrot.slane %v13597_v3, 7  ;;  %v5165_v51 = vrot.slane %v5163_v24, 3  ;;  %v2188_v3 = vrot.slane %v10103_v30, 1 }
 0x2b6   :  { %v10326_v48 = vpop.permute.xlu1 %4061  ;;  %v10361_v24 = vor.u32 %v2515_v63, %v2512_v15  ;;  %v2189_v62 = vrot.slane %v10094_v33, 2 }
 0x2b7   :  { %v10328_v40 = vpop.permute.xlu0 %4640  ;;  %v10359_v46 = vor.u32 %v10341_v5, %v13599_v53  ;;  %v5166_v13 = vor.u32 %v5165_v51, %v5162_v37  ;;  %v14067_v37 = vrot.slane %v9708_v32, 1 }
 0x2b8   :  { %4646 = vrot.lane.b32.xlu1 %v4609_v60, %s8045_s18  ;;  %v2097_v60 = vsel %vm2078_vm1, %v14063_v43, %v13598_v16  ;;  %v4705_v43 = vsel %vm4677_vm11, %v9851_v42, %v9986_v11  ;;  %v14068_v42 = vrot.slane %v9688_v7, 1 }
 0x2b9   :  { %2634 = vrot.lane.b32.xlu0 %v9699_v36, %s8046_s21  ;;  %v2187_v36 = vsel %vm13603_vm8, %v9932_v59, %v2186_v22  ;;  %v10369_v59 = vld [vmem:[#allocation2 + $0x80] sm:$0xff]   ;;  %v4971_v16 = vsel %vm3304_vm10, %v4705_v43, 0  ;;  %v10374_v53 = vsel %vm2455_vm12, %v10141_v47, %v5166_v13  ;;  %v10389_v47 = vor.u32 %v2189_v62, %v2188_v3 }
 0x2ba   :  { %v10344_v50 = vpop.permute.xlu1 %4178  ;;  %14065 = vst [vmem:[#allocation121_spill] sm:$0xff] %v10369_v59  ;;  %14066 = vst [vmem:[#allocation122_spill] sm:$0xff] %v10374_v53  ;;  %v5176_v15 = vshrl.u32 %v4971_v16, 16  ;;  %v5179_v63 = vshll.u32 %v4971_v16, 16  ;;  %v3021_v11 = vsel %vm2078_vm1, %v14068_v42, %v14067_v37  ;;  %v4746_v53 = vsel %vm3304_vm10, %v14071_v12, %v10161_v21 }
 0x2bb   :  { %v10351_v20 = vpop.permute.xlu0 %2420  ;;  %v13605_v37 = vshrl.u32 %v10369_v59, 16  ;;  %v2296_v3 = vrot.slane %v10274_v8, 2  ;;  %v13604_v62 = vshll.u32 %v10369_v59, 16  ;;  %v4756_v21 = vsel %vm545_vm0, %v4746_v53, %v9776_v4 }
 0x2bc   :  { %14064 = vst [vmem:[#allocation120_spill] sm:$0xff] %v10351_v20  ;;  %2132 = vrot.lane.b32.xlu1 %v2097_v60, %s8042_s13  ;;  %v2392_v60 = vrot.slane %v9708_v32, 2  ;;  %v5178_v28 = vrot.slane %v5176_v15, 2  ;;  %v5181_v16 = vrot.slane %v5179_v63, 3  ;;  %v14073_v12 = vrot.slane %v9688_v7, 2 }
 0x2bd   :  { %2251 = vrot.lane.b32.xlu0 %v2187_v36, %s8048_s0  ;;  %v14070_v36 = vld [vmem:[#allocation54_spill] sm:$0xff]  ;;  %v10407_v15 = vrot.slane %v13605_v37, 7  ;;  %v2191_v63 = vsel %vm13603_vm8, %v2186_v22, %v10389_v47  ;;  %v4766_v53 = vsel %vm3377_vm14, %v4756_v21, %v10136_v44  ;;  %v4708_v21 = vsel %vm4677_vm11, %v9973_v29, %v10007_v55 }
 0x2be   :  { %v10376_v20 = vpop.permute.xlu1 %4559  ;;  %v2517_v43 = vsel %vm2455_vm12, %v14070_v36, %v10361_v24  ;;  %v10397_v42 = vor.u32 %v5181_v16, %v5178_v28  ;;  %v10414_v28 = vsel %vm2280_vm7, %v14073_v12, %v2392_v60  ;;  %vm3488_vm8 = vcmask 785408  }
 0x2bf   :  { %v10383_v51 = vpop.permute.xlu0 %2707  ;;  %v10428_v4 = vor.u32 %v10407_v15, %v13604_v62  ;;  %v10459_v12 = vshll.u32 %v10274_v8, 16  ;;  %v14079_v44 = vrot.slane %v9953_v41, 1  ;;  %v14080_v29 = vrot.slane %v9708_v32, 1 }
 0x2c0   :  { %14069 = vst [vmem:[#allocation123_spill] sm:$0xff] %v10383_v51  ;;  %3056 = vrot.lane.b32.xlu1 %v3021_v11, %s8044_s17  ;;  %v10420_v11 = vsel %vm2455_vm12, %v5166_v13, %v10397_v42  ;;  %v14076_v13 = vrot.slane %v9809_v34, 2  ;;  %v4002_v59 = vrot.slane %v9739_v39, 5 }
 0x2c1   :  { %2636 = vrot.lane.b32.xlu0 %v2517_v43, %s8046_s21  ;;  %14074 = vst [vmem:[#allocation42_spill] sm:$0xff] %v10420_v11  ;;  %v3023_v55 = vsel %vm2078_vm1, %v14080_v29, %v14079_v44  ;;  %v4711_v11 = vsel %vm4677_vm11, %v9997_v1, %v10132_v18  ;;  %v14090_v1 = vrot.slane %v9793_v0, 6  ;;  %v14091_v18 = vrot.slane %v9787_v2, 6 }
 0x2c2   :  { %v10399_v51 = vpop.permute.xlu1 %4180  ;;  %v10439_v43 = vsel %vm2280_vm7, %v14076_v13, %v2296_v3  ;;  %v4973_v13 = vsel %vm3304_vm10, %v4708_v21, 0 }
 0x2c3   :  { %v10401_v23 = vpop.permute.xlu0 %2324  ;;  %v5192_v16 = vshrl.u32 %v4973_v13, 16  ;;  %v5195_v21 = vshll.u32 %v4973_v13, 16  ;;  %v14086_v13 = vrot.slane %v9809_v34, 1 }
 0x2c4   :  { %14072 = vst [vmem:[#allocation54_spill] sm:$0xff] %v10401_v23  ;;  %3225 = vrot.lane.b32.xlu1 %v10414_v28, %s8046_s21  ;;  %v14083_v23 = vrot.slane %v10299_v58, 2 }
 0x2c5   :  { %2253 = vrot.lane.b32.xlu0 %v2191_v63, %s8048_s0  ;;  %v4804_v63 = vsel %vm3414_vm15, %v4766_v53, %v10035_v54  ;;  %v14081_v54 = vrot.slane %v9953_v41, 2  ;;  %v5194_v29 = vrot.slane %v5192_v16, 2  ;;  %v10516_v16 = vshrl.u32 %v10274_v8, 16 }
 0x2c6   :  { %v10432_v36 = vpop.permute.xlu1 %4561 }
 0x2c7   :  { %v10434_v22 = vpop.permute.xlu0 %2422  ;;  %v10469_v53 = vsel %vm2280_vm7, %v2392_v60, %v14081_v54  ;;  %v14085_v60 = vrot.slane %v10274_v8, 1 }
 0x2c8   :  { %14075 = vst [vmem:[#allocation124_spill] sm:$0xff] %v10434_v22  ;;  %3278 = vrot.lane.b32.xlu1 %v10439_v43, %s8045_s18  ;;  %v14082_v22 = vld [vmem:[#allocation25_spill] sm:$0xff] }
 0x2c9   :  { %2880 = vrot.lane.b32.xlu0 %v9708_v32, %s8042_s13  ;;  %v2095_v54 = vsel %vm2078_vm1, %v14086_v13, %v14085_v60  ;;  %v4975_v60 = vsel %vm3304_vm10, %v4711_v11, 0  ;;  %v14092_v11 = vrot.slane %v9716_v35, 1  ;;  %v14096_v35 = vrot.slane %v9793_v0, 7 }
 0x2ca   :  { %v10454_v62 = vpop.permute.xlu1 %3172  ;;  %v5208_v13 = vshrl.u32 %v4975_v60, 16 }
 0x2cb   :  { %14077 = vst [vmem:[#allocation125_spill] sm:$0xff] %v10454_v62  ;;  %v10456_v37 = vpop.permute.xlu0 %2709  ;;  %v10479_v62 = vsel %vm2280_vm7, %v2296_v3, %v14083_v23  ;;  %v2923_v44 = vor.u32 %v14092_v11, %v9719_v6 }
 0x2cc   :  { %14078 = vst [vmem:[#allocation126_spill] sm:$0xff] %v10456_v37  ;;  %v4842_v37 = vsel %vm3451_vm13, %v4804_v63, %v14082_v22  ;;  %3058 = vrot.lane.b32.xlu1 %v3023_v55, %s8044_s17  ;;  %14084 = vst [vmem:[#allocation25_spill] sm:$0xff] %v10479_v62  ;;  %v14087_v22 = vrot.slane %v10094_v33, 1  ;;  %v5197_v55 = vrot.slane %v5195_v21, 3  ;;  %v4003_v33 = vrot.slane %v9746_v61, 6 }
 0x2cd   :  { %2882 = vrot.lane.b32.xlu0 %v9953_v41, %s8042_s13 }
 0x2ce   :  { %v1953_v63 = vor.u32 %v10103_v30, %v14087_v22  ;;  %v10493_v23 = vpop.permute.xlu1 %2974  ;;  %v4880_v30 = vsel %vm3488_vm8, %v4842_v37, %v10070_v17  ;;  %v5198_v21 = vor.u32 %v5197_v55, %v5194_v29  ;;  %v4320_v22 = vsel %vm4307_vm2, %v14091_v18, %v14090_v1  ;;  %v14098_v37 = vld [vmem:[#allocation56_spill] sm:$0xff] }
 0x2cf   :  { %14088 = vst [vmem:[#allocation127_spill] sm:$0xff] %v10493_v23  ;;  %v10495_v3 = vpop.permute.xlu0 %2326  ;;  %v5211_v17 = vshll.u32 %v4975_v60, 16  ;;  %v5210_v55 = vrot.slane %v5208_v13, 2  ;;  %v14095_v18 = vrot.slane %v10459_v12, 1  ;;  %v14097_v60 = vrot.slane %v9787_v2, 7 }
 0x2d0   :  { %14089 = vst [vmem:[#allocation128_spill] sm:$0xff] %v10495_v3  ;;  %3227 = vrot.lane.b32.xlu1 %v10469_v53, %s8046_s21  ;;  %v4918_v29 = vsel %vm3525_vm5, %v4880_v30, %v14098_v37  ;;  %v4119_v30 = vrot.slane %v10516_v16, 5  ;;  %v14102_v37 = vrot.slane %v9746_v61, 1 }
 0x2d1   :  { %2130 = vrot.lane.b32.xlu0 %v2095_v54, %s8042_s13  ;;  %v10522_v54 = vsel %vm2455_vm12, %v10397_v42, %v5198_v21  ;;  %v1958_v6 = vsel %vm1890_vm6, %v1953_v63, %v14095_v18  ;;  %v4611_v11 = vsel %vm4598_vm4, %v14097_v60, %v14096_v35  ;;  %v5213_v23 = vrot.slane %v5211_v17, 3  ;;  %v14099_v42 = vld [vmem:[#allocation82_spill] sm:$0xff] }
 0x2d2   :  { %14093 = vst [vmem:[#allocation129_spill] sm:$0xff] %v10522_v54  ;;  %v10524_v3 = vpop.permute.xlu1 %3174  ;;  %v10538_v54 = vor.u32 %v4003_v33, %v4002_v59  ;;  %v10544_v63 = vshrl.u32 %v10299_v58, 16  ;;  %v14100_v18 = vld [vmem:[#allocation98_spill] sm:$0xff]  ;;  %v4120_v59 = vrot.slane %v10459_v12, 6  ;;  %v14103_v60 = vrot.slane %v9708_v32, 3  ;;  %v14109_v32 = vld [vmem:[#allocation8_spill] sm:$0xff] }
 0x2d3   :  { %14094 = vst [vmem:[#allocation130_spill] sm:$0xff] %v10524_v3  ;;  %v2046_v1 = vpop.permute.xlu0 %2045  ;;  %v10541_v3 = vshll.u32 %v10299_v58, 16  ;;  %v5214_v33 = vor.u32 %v5213_v23, %v5210_v55  ;;  %v5061_v55 = vshll.u32 %v4918_v29, 16 }
 0x2d4   :  { %v3312_v13 = vsel %vm3304_vm10, %v14099_v42, %v2046_v1  ;;  %3280 = vrot.lane.b32.xlu1 %v10479_v62, %s8045_s18  ;;  %v2925_v1 = vsel %vm1890_vm6, %v2923_v44, %v14102_v37  ;;  %v14104_v42 = vrot.slane %v9688_v7, 3  ;;  %v14108_v37 = vld [vmem:[#allocation99_spill] sm:$0xff] }
 0x2d5   :  { %v10550_v35 = vsel %vm545_vm0, %v3312_v13, %v14100_v18  ;;  %4357 = vrot.lane.b32.xlu0 %v4320_v22, %s8043_s14  ;;  %v5058_v22 = vshrl.u32 %v4918_v29, 16  ;;  %v10587_v29 = vor.u32 %v4120_v59, %v4119_v30  ;;  %v5063_v30 = vrot.slane %v5061_v55, 3 }
 0x2d6   :  { %14101 = vst [vmem:[#allocation56_spill] sm:$0xff] %v10550_v35  ;;  %v4768_v17 = vsel %vm3377_vm14, %v10550_v35, %v10326_v48  ;;  %v2680_v13 = vsel %vm13612_vm9, %v14104_v42, %v14103_v60  ;;  %v10568_v62 = vpop.permute.xlu1 %2841  ;;  %v10571_v48 = vsel %vm2455_vm12, %v5198_v21, %v5214_v33  ;;  %v14107_v35 = vld [vmem:[#allocation102_spill] sm:$0xff]  ;;  %v4123_v42 = vrot.slane %v10544_v63, 5 }
 0x2d7   :  { %v4806_v18 = vsel %vm3414_vm15, %v4768_v17, %v10344_v50  ;;  %14105 = vst [vmem:[#allocation82_spill] sm:$0xff] %v10568_v62  ;;  %v2048_v23 = vpop.permute.xlu0 %2047  ;;  %14106 = vst [vmem:[#allocation98_spill] sm:$0xff] %v10571_v48  ;;  %v4714_v44 = vsel %vm4677_vm11, %v14107_v35, %v10188_v26  ;;  %v4124_v50 = vrot.slane %v10541_v3, 6  ;;  %v4005_v21 = vsel %vm3982_vm3, %v10289_v56, %v10538_v54 }
 0x2d8   :  { %v4844_v7 = vsel %vm3451_vm13, %v4806_v18, %v14108_v37  ;;  %v3314_v60 = vsel %vm3304_vm10, %v14109_v32, %v2048_v23  ;;  %2053 = vrot.lane.b32.xlu1 %v1958_v6, %s8047_s24  ;;  %v4977_v35 = vsel %vm3304_vm10, %v4714_v44, 0  ;;  %v14110_v32 = vld [vmem:[#allocation103_spill] sm:$0xff]  ;;  %v5060_v18 = vrot.slane %v5058_v22, 2 }
 0x2d9   :  { %4648 = vrot.lane.b32.xlu0 %v4611_v11, %s8045_s18  ;;  %v4882_v26 = vsel %vm3488_vm8, %v4844_v7, %v10376_v20  ;;  %v5224_v23 = vshrl.u32 %v4977_v35, 16  ;;  %v5227_v37 = vshll.u32 %v4977_v35, 16  ;;  %v14112_v11 = vld [vmem:[#allocation105_spill] sm:$0xff]  ;;  %v10602_v44 = vor.u32 %v4124_v50, %v4123_v42 }
 0x2da   :  { %v4920_v17 = vsel %vm3525_vm5, %v4882_v26, %v14110_v32  ;;  %v10594_v6 = vpop.permute.xlu1 %2839  ;;  %v10598_v62 = vsel %vm545_vm0, %v3314_v60, %v14112_v11  ;;  %v14114_v55 = vshrl.u32 %v9787_v2, 16  ;;  %v14115_v42 = vshll.u32 %v9787_v2, 16 }
 0x2db   :  { %14111 = vst [vmem:[#allocation102_spill] sm:$0xff] %v10594_v6  ;;  %14113 = vst [vmem:[#allocation99_spill] sm:$0xff] %v10598_v62  ;;  %v4064_v56 = vpop.permute.xlu0 %4063  ;;  %v5065_v59 = vshrl.u32 %v4920_v17, 16  ;;  %v5068_v48 = vshll.u32 %v4920_v17, 16  ;;  %v5226_v7 = vrot.slane %v5224_v23, 2  ;;  %v5229_v26 = vrot.slane %v5227_v37, 3 }
 0x2dc   :  { %v4770_v20 = vsel %vm3377_vm14, %v10598_v62, %v4064_v56  ;;  %2980 = vrot.lane.b32.xlu1 %v2925_v1, %s8048_s0  ;;  %v4434_v32 = vrot.slane %v14114_v55, 6  ;;  %v4437_v50 = vrot.slane %v14115_v42, 7  ;;  %v14116_v23 = vshrl.u32 %v9793_v0, 16 }
 0x2dd   :  { %v4808_v22 = vsel %vm3414_vm15, %v4770_v20, %v10399_v51  ;;  %2428 = vrot.lane.b32.xlu0 %v10414_v28, %s8043_s14  ;;  %v5067_v60 = vrot.slane %v5065_v59, 2  ;;  %v5070_v35 = vrot.slane %v5068_v48, 3  ;;  %v5230_v37 = vor.u32 %v5229_v26, %v5226_v7 }
 0x2de   :  { %v4846_v17 = vsel %vm3451_vm13, %v4808_v22, %v10303_v52  ;;  %v4443_v1 = vrot.slane %v14116_v23, 6  ;;  %v10619_v11 = vpop.permute.xlu1 %4351  ;;  %v5064_v48 = vor.u32 %v5063_v30, %v5060_v18  ;;  %v4717_v52 = vsel %vm4677_vm11, %v10179_v10, %v10243_v19  ;;  %v14120_v19 = vld [vmem:[#allocation59_spill] sm:$0xff]  ;;  %v14121_v22 = vld [vmem:[#allocation62_spill] sm:$0xff] }
 0x2df   :  { %v4884_v51 = vsel %vm3488_vm8, %v4846_v17, %v10432_v36  ;;  %v10621_v28 = vpop.permute.xlu0 %2630  ;;  %v5071_v56 = vor.u32 %v5070_v35, %v5067_v60  ;;  %v14118_v2 = vshll.u32 %v9793_v0, 16  ;;  %v10631_v7 = vsel %vm2455_vm12, %v5214_v33, %v5230_v37 }
 0x2e0   :  { %14117 = vst [vmem:[#allocation8_spill] sm:$0xff] %v10621_v28  ;;  %v4922_v20 = vsel %vm3525_vm5, %v4884_v51, %v10328_v40  ;;  %14119 = vst [vmem:[#allocation103_spill] sm:$0xff] %v10631_v7  ;;  %v4979_v36 = vsel %vm3304_vm10, %v4717_v52, 0  ;;  %4069 = vrot.lane.b32.xlu1 %v4005_v21, %s8048_s0  ;;  %v5103_v60 = vsel %vm2455_vm12, %v14121_v22, %v14120_v19  ;;  %vm14124_vm9 = vsmask.f32 1280  ;;  %v14131_v19 = vld [vmem:[#allocation89_spill] sm:$0xff] }
 0x2e1   :  { %v4446_v59 = vrot.slane %v14118_v2, 7  ;;  %2715 = vrot.lane.b32.xlu0 %v2680_v13, %s8045_s18  ;;  %v5072_v18 = vsel %vm2455_vm12, %v5064_v48, %v5071_v56  ;;  %v5088_v30 = vshrl.u32 %v4922_v20, 16  ;;  %v5091_v26 = vshll.u32 %v4922_v20, 16 }
 0x2e2   :  { %v5240_v10 = vshrl.u32 %v4979_v36, 16  ;;  %5525 = vmatmul.mubr.bf16.vlgmr.msra.gmra.mrb[0].mxu1 %v5072_v18  ;;  %v5243_v40 = vshll.u32 %v4979_v36, 16  ;;  %v10640_v35 = vpop.permute.xlu1 %4642  ;;  %v4126_v13 = vsel %vm3982_vm3, %v10587_v29, %v10602_v44  ;;  %v4438_v42 = vor.u32 %v4437_v50, %v4434_v32 }
 0x2e3   :  { %5532 = vmatprep.mubr.bf16.mxu1 %v5103_v60  ;;  %v10642_v33 = vpop.permute.xlu0 %2247  ;;  %v5090_v55 = vrot.slane %v5088_v30, 2  ;;  %v5093_v21 = vrot.slane %v5091_v26, 3  ;;  %v10647_v23 = vor.u32 %v4446_v59, %v4443_v1  ;;  %v4720_v50 = vsel %vm4677_vm11, %v10227_v38, %v10281_v49  ;;  %v14130_v38 = vld [vmem:[#allocation88_spill] sm:$0xff] }
 0x2e4   :  { %14122 = vst [vmem:[#allocation105_spill] sm:$0xff] %v10642_v33  ;;  %v5242_v17 = vrot.slane %v5240_v10, 2  ;;  %v5245_v51 = vrot.slane %v5243_v40, 3  ;;  %4188 = vrot.lane.b32.xlu1 %v4126_v13, %s8044_s17  ;;  %v4981_v1 = vsel %vm3304_vm10, %v4720_v50, 0  ;;  %v14129_v30 = vrot.slane %v9746_v61, 1  ;;  %v14132_v40 = vld [vmem:[#allocation36_spill] sm:$0xff] }
 0x2e5   :  { %2332 = vrot.lane.b32.xlu0 %v10439_v43, %s8044_s17  ;;  %v10652_v48 = vor.u32 %v5093_v21, %v5090_v55  ;;  %v4448_v36 = vsel %vm14124_vm9, %v4438_v42, %v10647_v23  ;;  %v5256_v26 = vshrl.u32 %v4981_v1, 16  ;;  %v5259_v10 = vshll.u32 %v4981_v1, 16 }
 0x2e6   :  { %v5246_v52 = vor.u32 %v5245_v51, %v5242_v17  ;;  %v10654_v2 = vpop.permute.xlu1 %2128  ;;  %v3117_v49 = vrot.slane %v14130_v38, 1  ;;  %v3118_v22 = vrot.slane %v14131_v19, 2  ;;  %v4723_v60 = vsel %vm4677_vm11, %v10267_v9, %v10428_v4 }
 0x2e7   :  { %v10656_v20 = vpop.permute.xlu0 %2632  ;;  %v5095_v43 = vsel %vm2455_vm12, %v5071_v56, %v10652_v48  ;;  %v4122_v56 = vsel %vm3982_vm3, %v10163_v25, %v10587_v29  ;;  %v13613_v55 = vrot.slane %v14131_v19, 1  ;;  %v5258_v21 = vrot.slane %v5256_v26, 2 }
 0x2e8   :  { %14123 = vst [vmem:[#allocation59_spill] sm:$0xff] %v10656_v20  ;;  %v10661_v32 = vsel %vm2455_vm12, %v5230_v37, %v5246_v52  ;;  %4569 = vrot.lane.b32.xlu1 %v4448_v36, %s8046_s21  ;;  %v14128_v37 = vld [vmem:[#allocation79_spill] sm:$0xff]  ;;  %v5261_v17 = vrot.slane %v5259_v10, 3  ;;  %v4983_v13 = vsel %vm3304_vm10, %v4723_v60, 0  ;;  %v4439_v25 = vsel %vm14124_vm9, %v10192_v31, %v4438_v42 }
 0x2e9   :  { %14125 = vst [vmem:[#allocation62_spill] sm:$0xff] %v10661_v32  ;;  %2430 = vrot.lane.b32.xlu0 %v10469_v53, %s8043_s14  ;;  %v2926_v53 = vor.u32 %v14129_v30, %v9739_v39  ;;  %v5272_v29 = vshrl.u32 %v4983_v13, 16  ;;  %v5275_v51 = vshll.u32 %v4983_v13, 16  ;;  %v4006_v1 = vrot.slane %v14130_v38, 5  ;;  %v10722_v13 = vld [vmem:[#allocation2 + $0x58] sm:$0xf] }
 0x2ea   :  { %5533 = vmatmul.mubr.bf16.gmra.mrb[4].mxu1 %v5095_v43  ;;  %v10672_v59 = vpop.permute.xlu1 %3052  ;;  %v14135_v43 = vrot.slane %v10459_v12, 1  ;;  %v10706_v30 = vor.u32 %v3118_v22, %v3117_v49  ;;  %v4007_v31 = vrot.slane %v14131_v19, 6  ;;  %v13614_v10 = vrot.slane %v10541_v3, 1  ;;  %v14139_v49 = vld [vmem:[#allocation83_spill] sm:$0xff] }
 0x2eb   :  { %14126 = vst [vmem:[#allocation131_spill] sm:$0xff] %v10672_v59  ;;  %v10674_v18 = vpop.permute.xlu0 %2249  ;;  %5540 = vmatprep.mubr.bf16.mxu1 %v14128_v37  ;;  %v2928_v9 = vsel %vm1890_vm6, %v2926_v53, %v13613_v55  ;;  %v5262_v37 = vor.u32 %v5261_v17, %v5258_v21  ;;  %v5274_v42 = vrot.slane %v5272_v29, 2  ;;  %v5277_v26 = vrot.slane %v5275_v51, 3  ;;  %v1763_v29 = vld [vmem:[#allocation2 + $0x50] sm:$0xf] }
 0x2ec   :  { %14127 = vst [vmem:[#allocation132_spill] sm:$0xff] %v10674_v18  ;;  %3180 = vrot.lane.b32.xlu1 %v14132_v40, %s8043_s14  ;;  %v1961_v50 = vor.u32 %v10516_v16, %v14135_v43  ;;  %v13615_v22 = vrot.slane %v14139_v49, 6  ;;  %v2521_v21 = vrot.slane %v9739_v39, 2  ;;  %v2524_v17 = vrot.slane %v9746_v61, 3 }
 0x2ed   :  { %4186 = vrot.lane.b32.xlu0 %v4122_v56, %s8044_s17  ;;  %v10712_v53 = vsel %vm2455_vm12, %v5246_v52, %v5262_v37  ;;  %v5278_v56 = vor.u32 %v5277_v26, %v5274_v42  ;;  %v14140_v52 = vld [vmem:[#allocation58_spill] sm:$0xff]  ;;  %vm14141_vm9 = vsmask.f32 6400  ;;  %v10732_v43 = vor.u32 %v4007_v31, %v4006_v1  ;;  %v10734_v42 = vld [vmem:[#allocation2 + $0x5c] sm:$0xf] }
 0x2ee   :  { %v10695_v36 = vpop.permute.xlu1 %3221  ;;  %14136 = vst [vmem:[#allocation89_spill] sm:$0xff] %v10712_v53  ;;  %v3120_v51 = vsel %vm14141_vm9, %v14140_v52, %v10706_v30  ;;  %v2192_v55 = vrot.slane %v10516_v16, 1  ;;  %v4726_v61 = vsel %vm4677_vm11, %v10407_v15, %v10359_v46  ;;  %v14168_v20 = vrot.slane %v14139_v49, 6 }
 0x2ef   :  { %14133 = vst [vmem:[#allocation79_spill] sm:$0xff] %v10695_v36  ;;  %v10700_v4 = vpop.permute.xlu0 %2876  ;;  %v10737_v39 = vsel %vm2455_vm12, %v5262_v37, %v5278_v56  ;;  %v2525_v37 = vor.u32 %v2524_v17, %v2521_v21  ;;  %v4985_v21 = vsel %vm3304_vm10, %v4726_v61, 0  ;;  %v10770_v17 = vcombine.low %v10283_v14, %v1763_v29 }
 0x2f0   :  { %14134 = vst [vmem:[#allocation88_spill] sm:$0xff] %v10700_v4  ;;  %2982 = vrot.lane.b32.xlu1 %v2928_v9, %s8048_s0  ;;  %v1966_v9 = vsel %vm1890_vm6, %v1961_v50, %v13614_v10  ;;  %14142 = vst [vmem:[#allocation83_spill] sm:$0xff] %v10737_v39  ;;  %v14144_v50 = vrot.slane %v9793_v0, 6  ;;  %v2193_v10 = vrot.slane %v10459_v12, 2  ;;  %v5288_v12 = vshrl.u32 %v4985_v21, 16 }
 0x2f1   :  { %4567 = vrot.lane.b32.xlu0 %v4439_v25, %s8046_s21  ;;  %v10724_v25 = vld [vmem:[#allocation2 + $0x54] sm:$0xf]  ;;  %v2526_v46 = vsel %vm2455_vm12, %v10361_v24, %v2525_v37  ;;  %v5291_v14 = vshll.u32 %v4985_v21, 16 }
 0x2f2   :  { %v10715_v60 = vpop.permute.xlu1 %3274  ;;  %v10743_v26 = vcombine.low %v1763_v29, %v10724_v25  ;;  %v4322_v1 = vsel %vm4307_vm2, %v14144_v50, %v13615_v22  ;;  %v14145_v50 = vrot.slane %v14139_v49, 7  ;;  %v10785_v29 = vor.u32 %v2193_v10, %v2192_v55  ;;  %v14152_v21 = vld [vmem:[#allocation27_spill] sm:$0xff] }
 0x2f3   :  { %14137 = vst [vmem:[#allocation36_spill] sm:$0xff] %v10715_v60  ;;  %v10717_v40 = vpop.permute.xlu0 %2878 }
 0x2f4   :  { %14138 = vst [vmem:[#allocation133_spill] sm:$0xff] %v10717_v40  ;;  %3182 = vrot.lane.b32.xlu1 %v3120_v51, %s8043_s14  ;;  %v10756_v51 = vcombine.low %v10722_v13, %v10734_v42  ;;  %v2098_v15 = vrot.slane %v10743_v26, 1 }
 0x2f5   :  { %2055 = vrot.lane.b32.xlu0 %v1966_v9, %s8047_s24  ;;  %v4009_v9 = vsel %vm3982_vm3, %v10538_v54, %v10732_v43  ;;  %v14146_v54 = vrot.slane %v9793_v0, 7  ;;  %v2533_v0 = vrot.slane %v14131_v19, 3 }
 0x2f6   :  { %v10745_v52 = vpop.permute.xlu1 %3054  ;;  %v13617_v61 = vrot.slane %v10756_v51, 1  ;;  %v10910_v28 = vshll.u32 %v10756_v51, 16 }
 0x2f7   :  { %14143 = vst [vmem:[#allocation58_spill] sm:$0xff] %v10745_v52  ;;  %v10752_v31 = vpop.permute.xlu0 %2126  ;;  %v4613_v16 = vsel %vm4598_vm4, %v14146_v54, %v14145_v50  ;;  %v5293_v50 = vrot.slane %v5291_v14, 3  ;;  %v14148_v54 = vld [vmem:[#allocation30_spill] sm:$0xff] }
 0x2f8   :  { %4359 = vrot.lane.b32.xlu1 %v4322_v1, %s8043_s14  ;;  %v2530_v1 = vrot.slane %v14130_v38, 2  ;;  %v4729_v24 = vsel %vm4677_vm11, %v10341_v5, %v14148_v54  ;;  %v2101_v55 = vsel %vm2078_vm1, %v2098_v15, %v13617_v61  ;;  %14171 = vst [vmem:[#allocation142_spill] sm:$0xff] %v10910_v28 }
 0x2f9   :  { %4071 = vrot.lane.b32.xlu0 %v4009_v9, %s8048_s0  ;;  %v5290_v9 = vrot.slane %v5288_v12, 2 }
 0x2fa   :  { %v10777_v22 = vpop.permute.xlu1 %3223  ;;  %v10806_v14 = vor.u32 %v2533_v0, %v2530_v1 }
 0x2fb   :  { %14147 = vst [vmem:[#allocation134_spill] sm:$0xff] %v10777_v22  ;;  %v10779_v62 = vpop.permute.xlu0 %4353  ;;  %v5294_v12 = vor.u32 %v5293_v50, %v5290_v9 }
 0x2fc   :  { %4650 = vrot.lane.b32.xlu1 %v4613_v16, %s8045_s18  ;;  %v4987_v16 = vsel %vm3304_vm10, %v4729_v24, 0 }
 0x2fd   :  { %2638 = vrot.lane.b32.xlu0 %v2526_v46, %s8046_s21  ;;  %v2195_v46 = vsel %vm14141_vm9, %v10389_v47, %v10785_v29  ;;  %v5304_v5 = vshrl.u32 %v4987_v16, 16  ;;  %v5307_v54 = vshll.u32 %v4987_v16, 16  ;;  %v10811_v61 = vsel %vm2455_vm12, %v5278_v56, %v5294_v12 }
 0x2fe   :  { %v10794_v18 = vpop.permute.xlu1 %3276  ;;  %14150 = vst [vmem:[#allocation135_spill] sm:$0xff] %v10811_v61  ;;  %v14155_v16 = vrot.slane %v9953_v41, 1  ;;  %vm14185_vm9 = vsmask.f32 1280 }
 0x2ff   :  { %14149 = vst [vmem:[#allocation30_spill] sm:$0xff] %v10794_v18  ;;  %v10799_v10 = vpop.permute.xlu0 %4644  ;;  %v14151_v18 = vld [vmem:[#allocation31_spill] sm:$0xff]  ;;  %v5306_v50 = vrot.slane %v5304_v5, 2  ;;  %v5309_v24 = vrot.slane %v5307_v54, 3 }
 0x300   :  { %2136 = vrot.lane.b32.xlu1 %v2101_v55, %s8042_s13  ;;  %v4732_v9 = vsel %vm4677_vm11, %v14152_v21, %v14151_v18  ;;  %v14154_v55 = vrot.slane %v10770_v17, 1 }
 0x301   :  { %2255 = vrot.lane.b32.xlu0 %v2195_v46, %s8048_s0  ;;  %v4989_v0 = vsel %vm3304_vm10, %v4732_v9, 0  ;;  %v2535_v46 = vsel %vm2455_vm12, %v2525_v37, %v10806_v14  ;;  %v5310_v18 = vor.u32 %v5309_v24, %v5306_v50  ;;  %v14159_v50 = vrot.slane %v10770_v17, 2 }
 0x302   :  { %v10816_v22 = vpop.permute.xlu1 %2049  ;;  %v3025_v56 = vsel %vm2078_vm1, %v14155_v16, %v14154_v55  ;;  %v5320_v21 = vshrl.u32 %v4989_v0, 16  ;;  %v5323_v5 = vshll.u32 %v4989_v0, 16  ;;  %v10840_v16 = vshll.u32 %v10743_v26, 16 }
 0x303   :  { %v10818_v47 = vpop.permute.xlu0 %2424  ;;  %v10832_v54 = vsel %vm2455_vm12, %v5294_v12, %v5310_v18  ;;  %v14160_v24 = vrot.slane %v9953_v41, 2  ;;  %v14161_v12 = vrot.slane %v10299_v58, 1  ;;  %v10856_v55 = vshrl.u32 %v10743_v26, 16 }
 0x304   :  { %14153 = vst [vmem:[#allocation31_spill] sm:$0xff] %v10818_v47  ;;  %3060 = vrot.lane.b32.xlu1 %v3025_v56, %s8044_s17  ;;  %14156 = vst [vmem:[#allocation27_spill] sm:$0xff] %v10832_v54  ;;  %v5322_v9 = vrot.slane %v5320_v21, 2  ;;  %v5325_v37 = vrot.slane %v5323_v5, 3  ;;  %v14163_v21 = vrot.slane %v10299_v58, 2 }
 0x305   :  { %2640 = vrot.lane.b32.xlu0 %v2535_v46, %s8046_s21  ;;  %v10847_v0 = vsel %vm2280_vm7, %v14160_v24, %v14159_v50  ;;  %v2099_v56 = vsel %vm2078_vm1, %v14161_v12, %v2098_v15  ;;  %v10852_v46 = vld [vmem:[#allocation2 + $0x58] sm:$0xff]   ;;  %v10864_v50 = vshll.u32 %v10770_v17, 16  ;;  %v10867_v24 = vshrl.u32 %v10770_v17, 16 }
 0x306   :  { %v10834_v1 = vpop.permute.xlu1 %2976  ;;  %v10861_v5 = vor.u32 %v5325_v37, %v5322_v9  ;;  %v14162_v12 = vrot.slane %v10743_v26, 2  ;;  %v14167_v37 = vrot.slane %v10852_v46, 6  ;;  %v4127_v60 = vrot.slane %v10856_v55, 5 }
 0x307   :  { %14157 = vst [vmem:[#allocation136_spill] sm:$0xff] %v10834_v1  ;;  %v10836_v47 = vpop.permute.xlu0 %2711  ;;  %v14175_v1 = vshrl.u32 %v14139_v49, 16 }
 0x308   :  { %14158 = vst [vmem:[#allocation137_spill] sm:$0xff] %v10836_v47  ;;  %3229 = vrot.lane.b32.xlu1 %v10847_v0, %s8046_s21  ;;  %v10874_v47 = vsel %vm2280_vm7, %v14163_v21, %v14162_v12  ;;  %v10881_v9 = vsel %vm2455_vm12, %v5310_v18, %v10861_v5  ;;  %v4324_v6 = vsel %vm4307_vm2, %v14168_v20, %v14167_v37  ;;  %v4128_v21 = vrot.slane %v10840_v16, 6 }
 0x309   :  { %2134 = vrot.lane.b32.xlu0 %v2099_v56, %s8042_s13  ;;  %14164 = vst [vmem:[#allocation138_spill] sm:$0xff] %v10874_v47  ;;  %v1973_v56 = vrot.slane %v10840_v16, 1  ;;  %14166 = vst [vmem:[#allocation140_spill] sm:$0xff] %v10881_v9  ;;  %v14169_v18 = vrot.slane %v10541_v3, 1  ;;  %v4010_v20 = vrot.slane %v10867_v24, 5  ;;  %v4011_v37 = vrot.slane %v10864_v50, 6 }
 0x30a   :  { %v4066_v15 = vpop.permute.xlu1 %4065  ;;  %v4129_v59 = vor.u32 %v4128_v21, %v4127_v60 }
 0x30b   :  { %v10876_v40 = vpop.permute.xlu0 %2328  ;;  %v1969_v12 = vor.u32 %v10544_v63, %v14169_v18  ;;  %v10913_v18 = vshrl.u32 %v10756_v51, 16  ;;  %v4012_v61 = vor.u32 %v4011_v37, %v4010_v20  ;;  %v14180_v20 = vld [vmem:[#allocation7_spill] sm:$0xff] }
 0x30c   :  { %14165 = vst [vmem:[#allocation139_spill] sm:$0xff] %v10876_v40  ;;  %3282 = vrot.lane.b32.xlu1 %v10874_v47, %s8045_s18  ;;  %v10899_v40 = vcombine.low %v10724_v25, %v10722_v13  ;;  %v14173_v13 = vrot.slane %v10852_v46, 7  ;;  %v14174_v25 = vrot.slane %v14139_v49, 7 }
 0x30d   :  { %4361 = vrot.lane.b32.xlu0 %v4324_v6, %s8043_s14  ;;  %v1974_v36 = vsel %vm1890_vm6, %v1969_v12, %v1973_v56  ;;  %14172 = vst [vmem:[#allocation143_spill] sm:$0xff] %v10913_v18  ;;  %v4452_v12 = vrot.slane %v14175_v1, 6  ;;  %v14177_v6 = vrot.slane %v14131_v19, 1  ;;  %v4013_v1 = vsel %vm3982_vm3, %v10732_v43, %v4012_v61 }
 0x30e   :  { %v10903_v52 = vpop.permute.xlu1 %4184  ;;  %v4615_v33 = vsel %vm4598_vm4, %v14174_v25, %v14173_v13  ;;  %v14178_v13 = vrot.slane %v10864_v50, 1  ;;  %v10941_v19 = vshrl.u32 %v10899_v40, 16  ;;  %v13618_v25 = vrot.slane %v10910_v28, 1 }
 0x30f   :  { %v10906_v4 = vpop.permute.xlu0 %2426  ;;  %v2929_v54 = vor.u32 %v14177_v6, %v14130_v38  ;;  %v10944_v38 = vshll.u32 %v10899_v40, 16 }
 0x310   :  { %14170 = vst [vmem:[#allocation141_spill] sm:$0xff] %v10906_v4  ;;  %v14176_v4 = vshll.u32 %v14139_v49, 16  ;;  %2057 = vrot.lane.b32.xlu1 %v1974_v36, %s8047_s24  ;;  %v4131_v49 = vrot.slane %v10913_v18, 5 }
 0x311   :  { %4652 = vrot.lane.b32.xlu0 %v4615_v33, %s8045_s18  ;;  %v2931_v60 = vsel %vm1890_vm6, %v2929_v54, %v14178_v13  ;;  %v4130_v33 = vsel %vm3982_vm3, %v10602_v44, %v4129_v59  ;;  %v1977_v54 = vor.u32 %v10856_v55, %v1973_v56  ;;  %v3316_v44 = vsel %vm3304_vm10, %v14180_v20, %v10816_v22 }
 0x312   :  { %v4455_v9 = vrot.slane %v14176_v4, 7  ;;  %v10929_v39 = vpop.permute.xlu1 %4565  ;;  %v4132_v4 = vrot.slane %v10910_v28, 6  ;;  %v4015_v22 = vrot.slane %v10944_v38, 6  ;;  %v10975_v20 = vsel %vm545_vm0, %v3316_v44, %v10752_v31 }
 0x313   :  { %v10934_v21 = vpop.permute.xlu0 %2713 }
 0x314   :  { %14179 = vst [vmem:[#allocation144_spill] sm:$0xff] %v10934_v21  ;;  %v4456_v36 = vor.u32 %v4455_v9, %v4452_v12  ;;  %2984 = vrot.lane.b32.xlu1 %v2931_v60, %s8048_s0  ;;  %v10958_v6 = vor.u32 %v4132_v4, %v4131_v49  ;;  %v14183_v12 = vld [vmem:[#allocation85_spill] sm:$0xff]  ;;  %v4014_v21 = vrot.slane %v10941_v19, 5  ;;  %v1767_v49 = vld [vmem:[#allocation2 + $0x60] sm:$0xf] }
 0x315   :  { %4190 = vrot.lane.b32.xlu0 %v4130_v33, %s8044_s17  ;;  %v14184_v13 = vshrl.u32 %v14183_v12, 16  ;;  %v14186_v56 = vshll.u32 %v14183_v12, 16  ;;  %v10971_v4 = vld [vmem:[#allocation2 + $0x64] sm:$0xf]  ;;  %14187 = vst [vmem:[#allocation85_spill] sm:$0xff] %v10975_v20  ;;  %v4772_v12 = vsel %vm3377_vm14, %v10975_v20, %v4066_v15  ;;  %v11058_v32 = vcombine.low %v10734_v42, %v1767_v49  ;;  %v7943_v42 = vld [vmem:[%s13457_s2 + $0x8] sm:$0xff]  }
 0x316   :  { %v10954_v9 = vpop.permute.xlu1 %3176  ;;  %v4457_v43 = vsel %vm14185_vm9, %v10647_v23, %v4456_v36  ;;  %v1982_v23 = vsel %vm1890_vm6, %v1977_v54, %v13618_v25  ;;  %v10994_v54 = vcombine.low %v1767_v49, %v10971_v4 }
 0x317   :  { %14181 = vst [vmem:[#allocation7_spill] sm:$0xff] %v10954_v9  ;;  %v10956_v37 = vpop.permute.xlu0 %2330  ;;  %v4461_v60 = vrot.slane %v14184_v13, 6  ;;  %v4464_v33 = vrot.slane %v14186_v56, 7  ;;  %v3121_v56 = vrot.slane %v10867_v24, 1  ;;  %v10991_v9 = vor.u32 %v4015_v22, %v4014_v21 }
 0x318   :  { %14182 = vst [vmem:[#allocation145_spill] sm:$0xff] %v10956_v37  ;;  %4073 = vrot.lane.b32.xlu1 %v4013_v1, %s8048_s0  ;;  %v4134_v1 = vsel %vm3982_vm3, %v4129_v59, %v10958_v6  ;;  %v3122_v37 = vrot.slane %v10864_v50, 2  ;;  %14189 = vst [vmem:[#allocation147_spill] sm:$0xff] %v10994_v54  ;;  %v13620_v22 = vrot.slane %v10994_v54, 1 }
 0x319   :  { %4571 = vrot.lane.b32.xlu0 %v4457_v43, %s8046_s21  ;;  %v10989_v44 = vor.u32 %v4464_v33, %v4461_v60  ;;  %v4017_v33 = vsel %vm3982_vm3, %v4012_v61, %v10991_v9 }
 0x31a   :  { %v10982_v13 = vpop.permute.xlu1 %2978  ;;  %v11002_v20 = vor.u32 %v3122_v37, %v3121_v56  ;;  %v11023_v56 = vshll.u32 %v10994_v54, 16 }
 0x31b   :  { %14188 = vst [vmem:[#allocation146_spill] sm:$0xff] %v10982_v13  ;;  %v4183_v43 = vpop.permute.xlu0 %4182  ;;  %v4466_v60 = vsel %vm14185_vm9, %v4456_v36, %v10989_v44  ;;  %vm14192_vm9 = vsmask.f32 6400 }
 0x31c   :  { %v4810_v31 = vsel %vm3414_vm15, %v4772_v12, %v4183_v43  ;;  %4192 = vrot.lane.b32.xlu1 %v4134_v1, %s8044_s17  ;;  %v8007_v12 = vld [vmem:[#allocation2 + $0x60] sm:$0xff]   ;;  %v3124_v61 = vsel %vm14192_vm9, %v10706_v30, %v11002_v20  ;;  %14193 = vst [vmem:[#allocation150_spill] sm:$0xff] %v11023_v56  ;;  %v1769_v30 = vld [vmem:[#allocation2 + $0x68] sm:$0xf]  ;;  %vm14221_vm9 = vsmask.f32 1280 }
 0x31d   :  { %2059 = vrot.lane.b32.xlu0 %v1982_v23, %s8047_s24  ;;  %v4848_v25 = vsel %vm3451_vm13, %v4810_v31, %v10619_v11  ;;  %v7942_v11 = vld [vmem:[%s13457_s2] sm:$0xff]   ;;  %v4616_v13 = vrot.slane %v8007_v12, 7 }
 0x31e   :  { %v10998_v15 = vpop.permute.xlu1 %3178  ;;  %5754 = vmatpush1.bf16.msra.mxu1 %v7942_v11  ;;  %v11040_v11 = vld [vmem:[#allocation2 + $0x68] sm:$0xff]  }
 0x31f   :  { %14190 = vst [vmem:[#allocation148_spill] sm:$0xff] %v10998_v15  ;;  %v4564_v59 = vpop.permute.xlu0 %4563  ;;  %v14197_v15 = vmov 0  }
 0x320   :  { %v4886_v21 = vsel %vm3488_vm8, %v4848_v25, %v4564_v59  ;;  %4573 = vrot.lane.b32.xlu1 %v4466_v60, %s8046_s21  ;;  %v4325_v25 = vrot.slane %v8007_v12, 6  ;;  %v14195_v60 = vld [vmem:[#allocation57_spill] sm:$0xff]  ;;  %5755 = vmatprep.subr.bf16.mxu1 %v14197_v15 }
 0x321   :  { %v4924_v23 = vsel %vm3525_vm5, %v4886_v21, %v10640_v35  ;;  %4075 = vrot.lane.b32.xlu0 %v4017_v33, %s8048_s0  ;;  %v11026_v35 = vshrl.u32 %v10994_v54, 16  ;;  %v14196_v33 = vrot.slane %v10756_v51, 1 }
 0x322   :  { %v5104_v37 = vshrl.u32 %v4924_v23, 16  ;;  %v5107_v36 = vshll.u32 %v4924_v23, 16  ;;  %v11017_v1 = vpop.permute.xlu1 %2843  ;;  %5756 = vmatpush1.bf16.msra.mxu1 %v7943_v42 }
 0x323   :  { %14191 = vst [vmem:[#allocation149_spill] sm:$0xff] %v11017_v1  ;;  %v2052_v43 = vpop.permute.xlu0 %2051  ;;  %14194 = vst [vmem:[#allocation151_spill] sm:$0xff] %v11026_v35  ;;  %v2103_v23 = vsel %vm2078_vm1, %v14196_v33, %v13620_v22  ;;  %v11035_v1 = vld [vmem:[#allocation2 + $0x6c] sm:$0xf]  ;;  %5757 = vmatprep.subr.bf16.mxu1 %v14197_v15 }
 0x324   :  { %v5106_v31 = vrot.slane %v5104_v37, 2  ;;  %v5109_v59 = vrot.slane %v5107_v36, 3  ;;  %v3318_v21 = vsel %vm3304_vm10, %v14195_v60, %v2052_v43  ;;  %3184 = vrot.lane.b32.xlu1 %v3124_v61, %s8043_s14  ;;  %v14198_v36 = vrot.slane %v10852_v46, 6 }
 0x325   :  { %2138 = vrot.lane.b32.xlu0 %v2103_v23, %s8042_s13  ;;  %v11050_v22 = vsel %vm545_vm0, %v3318_v21, %v10654_v2  ;;  %v11053_v61 = vcombine.low %v1769_v30, %v11035_v1  ;;  %v4135_v23 = vrot.slane %v11026_v35, 5  ;;  %v4136_v37 = vrot.slane %v11023_v56, 6 }
 0x326   :  { %v4326_v43 = vsel %vm4307_vm2, %v14198_v36, %v4325_v25  ;;  %v5110_v60 = vor.u32 %v5109_v59, %v5106_v31  ;;  %v11046_v33 = vpop.permute.xlu1 %4355  ;;  %14199 = vst [vmem:[#allocation57_spill] sm:$0xff] %v11050_v22  ;;  %v13621_v2 = vrot.slane %v11040_v11, 7  ;;  %v14201_v21 = vrot.slane %v11040_v11, 6 }
 0x327   :  { %v4068_v53 = vpop.permute.xlu0 %4067  ;;  %14200 = vst [vmem:[#allocation152_spill] sm:$0xff] %v11053_v61 }
 0x328   :  { %v4774_v12 = vsel %vm3377_vm14, %v11050_v22, %v4068_v53  ;;  %v5111_v31 = vsel %vm2455_vm12, %v10652_v48, %v5110_v60  ;;  %4363 = vrot.lane.b32.xlu1 %v4326_v43, %s8043_s14  ;;  %v4328_v36 = vsel %vm4307_vm2, %v4325_v25, %v14201_v21  ;;  %v14202_v48 = vrot.slane %v10852_v46, 7  ;;  %v14203_v43 = vld [vmem:[#allocation101_spill] sm:$0xff] }
 0x329   :  { %v4812_v59 = vsel %vm3414_vm15, %v4774_v12, %v10903_v52  ;;  %5541 = vmatmul.mubr.bf16.gmra.mrb[8].mxu1 %v5111_v31  ;;  %4365 = vrot.lane.b32.xlu0 %v4328_v36, %s8043_s14  ;;  %v13623_v31 = vrot.slane %v11053_v61, 1  ;;  %v11089_v21 = vcombine.low %v10971_v4, %v1769_v30  ;;  %v4619_v46 = vsel %vm4598_vm4, %v4616_v13, %v13621_v2 }
 0x32a   :  { %v4850_v53 = vsel %vm3451_vm13, %v4812_v59, %v10779_v62  ;;  %v4617_v49 = vsel %vm4598_vm4, %v14202_v48, %v4616_v13  ;;  %5548 = vmatprep.mubr.bf16.mxu1 %v14203_v43  ;;  %v11083_v12 = vpop.permute.xlu1 %4646  ;;  %v11091_v62 = vor.u32 %v4136_v37, %v4135_v23  ;;  %v11102_v36 = vshll.u32 %v11058_v32, 16  ;;  %v14208_v37 = vld [vmem:[#allocation97_spill] sm:$0xff] }
 0x32b   :  { %v4888_v52 = vsel %vm3488_vm8, %v4850_v53, %v10929_v39  ;;  %v11085_v25 = vpop.permute.xlu0 %2634  ;;  %14205 = vst [vmem:[#allocation153_spill] sm:$0xff] %v11089_v21  ;;  %v11099_v39 = vshrl.u32 %v11058_v32, 16  ;;  %v14209_v23 = vshrl.u32 %v14208_v37, 16  ;;  %v14210_v13 = vshll.u32 %v14208_v37, 16 }
 0x32c   :  { %14204 = vst [vmem:[#allocation101_spill] sm:$0xff] %v11085_v25  ;;  %v4926_v59 = vsel %vm3525_vm5, %v4888_v52, %v10799_v10  ;;  %14207 = vst [vmem:[#allocation155_spill] sm:$0xff] %v11102_v36  ;;  %4654 = vrot.lane.b32.xlu1 %v4617_v49, %s8045_s18  ;;  %v1989_v10 = vrot.slane %v11023_v56, 1  ;;  %v14211_v43 = vrot.slane %v10994_v54, 1  ;;  %v11127_v2 = vshll.u32 %v11053_v61, 16 }
 0x32d   :  { %14206 = vst [vmem:[#allocation154_spill] sm:$0xff] %v11099_v39  ;;  %v5120_v4 = vshrl.u32 %v4926_v59, 16  ;;  %v5123_v30 = vshll.u32 %v4926_v59, 16  ;;  %v4470_v42 = vrot.slane %v14209_v23, 6  ;;  %v4473_v53 = vrot.slane %v14210_v13, 7  ;;  %4656 = vrot.lane.b32.xlu0 %v4619_v46, %s8045_s18 }
 0x32e   :  { %v11112_v48 = vpop.permute.xlu1 %2132  ;;  %v2105_v49 = vsel %vm2078_vm1, %v14211_v43, %v13623_v31  ;;  %v4138_v59 = vsel %vm3982_vm3, %v10958_v6, %v11091_v62  ;;  %v4018_v46 = vrot.slane %v11099_v39, 5  ;;  %v4019_v13 = vrot.slane %v11102_v36, 6  ;;  %14213 = vst [vmem:[#allocation156_spill] sm:$0xff] %v11127_v2 }
 0x32f   :  { %v11119_v52 = vpop.permute.xlu0 %2251  ;;  %v5122_v37 = vrot.slane %v5120_v4, 2  ;;  %v5125_v23 = vrot.slane %v5123_v30, 3  ;;  %v11130_v22 = vshrl.u32 %v11053_v61, 16  ;;  %v4474_v31 = vor.u32 %v4473_v53, %v4470_v42 }
 0x330   :  { %14212 = vst [vmem:[#allocation97_spill] sm:$0xff] %v11119_v52  ;;  %2140 = vrot.lane.b32.xlu1 %v2105_v49, %s8042_s13  ;;  %v11136_v25 = vshrl.u32 %v11089_v21, 16  ;;  %v11139_v6 = vshll.u32 %v11089_v21, 16  ;;  %v14217_v4 = vrot.slane %v10910_v28, 1  ;;  %v4020_v53 = vor.u32 %v4019_v13, %v4018_v46  ;;  %v1771_v46 = vld [vmem:[#allocation2 + $0x70] sm:$0xf] }
 0x331   :  { %14214 = vst [vmem:[#allocation157_spill] sm:$0xff] %v11130_v22  ;;  %v11133_v43 = vor.u32 %v5125_v23, %v5122_v37  ;;  %4194 = vrot.lane.b32.xlu0 %v4138_v59, %s8044_s17  ;;  %v4139_v37 = vrot.slane %v11130_v22, 5  ;;  %v4140_v23 = vrot.slane %v11127_v2, 6  ;;  %v14220_v59 = vld [vmem:[#allocation104_spill] sm:$0xff]  ;;  %v1772_v13 = vld [vmem:[#allocation2 + $0x74] sm:$0xf] }
 0x332   :  { %14215 = vst [vmem:[#allocation158_spill] sm:$0xff] %v11136_v25  ;;  %14216 = vst [vmem:[#allocation159_spill] sm:$0xff] %v11139_v6  ;;  %v1985_v30 = vor.u32 %v10913_v18, %v14217_v4  ;;  %v11145_v52 = vpop.permute.xlu1 %3056  ;;  %v4475_v4 = vsel %vm14221_vm9, %v10989_v44, %v4474_v31 }
 0x333   :  { %14218 = vst [vmem:[#allocation160_spill] sm:$0xff] %v11145_v52  ;;  %v11147_v56 = vpop.permute.xlu0 %2636  ;;  %v5127_v49 = vsel %vm2455_vm12, %v5110_v60, %v11133_v43  ;;  %v4022_v52 = vrot.slane %v11136_v25, 5  ;;  %v4023_v60 = vrot.slane %v11139_v6, 6  ;;  %v11169_v44 = vor.u32 %v4140_v23, %v4139_v37 }
 0x334   :  { %14219 = vst [vmem:[#allocation161_spill] sm:$0xff] %v11147_v56  ;;  %v1990_v42 = vsel %vm1890_vm6, %v1985_v30, %v1989_v10  ;;  %5549 = vmatmul.mubr.bf16.gmra.mrb[12].mxu1 %v5127_v49  ;;  %v1993_v56 = vor.u32 %v11026_v35, %v1989_v10  ;;  %v14224_v10 = vshrl.u32 %v10127_v45, 16  ;;  %v14225_v25 = vshll.u32 %v10127_v45, 16 }
 0x335   :  { %2061 = vrot.lane.b32.xlu1 %v1990_v42, %s8047_s24  ;;  %5556 = vmatprep.mubr.bf16.mxu1 %v14220_v59  ;;  %v13630_v42 = vrot.slane %v11127_v2, 1  ;;  %v4021_v59 = vsel %vm3982_vm3, %v10991_v9, %v4020_v53  ;;  %v11184_v9 = vcombine.low %v1771_v46, %v1772_v13 }
 0x336   :  { %4575 = vrot.lane.b32.xlu0 %v4475_v4, %s8046_s21  ;;  %v11162_v30 = vpop.permute.xlu1 %3225  ;;  %v4479_v35 = vrot.slane %v14224_v10, 6  ;;  %v4482_v21 = vrot.slane %v14225_v25, 7  ;;  %v7944_v4 = vld [vmem:[%s13457_s2 + $0x10] sm:$0xff]   ;;  %v7945_v25 = vld [vmem:[%s13457_s2 + $0x18] sm:$0xff]  }
 0x337   :  { %14222 = vst [vmem:[#allocation104_spill] sm:$0xff] %v11162_v30  ;;  %v11164_v49 = vpop.permute.xlu0 %2253  ;;  %v11182_v30 = vor.u32 %v4023_v60, %v4022_v52  ;;  %14226 = vst [vmem:[#allocation163_spill] sm:$0xff] %v11184_v9  ;;  %5758 = vmatpush1.bf16.msra.mxu1 %v7944_v4  ;;  %v2106_v60 = vrot.slane %v11184_v9, 1  ;;  %v1773_v10 = vld [vmem:[#allocation2 + $0x78] sm:$0xf] }
 0x338   :  { %14223 = vst [vmem:[#allocation162_spill] sm:$0xff] %v11164_v49  ;;  %v1998_v49 = vsel %vm1890_vm6, %v1993_v56, %v13630_v42  ;;  %5759 = vmatprep.subr.bf16.mxu1 %v14197_v15  ;;  %v4142_v56 = vsel %vm3982_vm3, %v11091_v62, %v11169_v44  ;;  %v11198_v52 = vor.u32 %v4482_v21, %v4479_v35  ;;  %v8009_v21 = vld [vmem:[#allocation2 + $0x70] sm:$0xff]   ;;  %v11212_v4 = vld [vmem:[#allocation2 + $0x7c] sm:$0xf]  ;;  %v11222_v42 = vshll.u32 %v11184_v9, 16 }
 0x339   :  { %4077 = vrot.lane.b32.xlu1 %v4021_v59, %s8048_s0  ;;  %v4025_v23 = vsel %vm3982_vm3, %v4020_v53, %v11182_v30  ;;  %v4329_v62 = vrot.slane %v8009_v21, 6  ;;  %v14231_v53 = vrot.slane %v11053_v61, 1 }
 0x33a   :  { %2063 = vrot.lane.b32.xlu0 %v1998_v49, %s8047_s24  ;;  %v11187_v37 = vpop.permute.xlu1 %3278  ;;  %v4484_v35 = vsel %vm14221_vm9, %v4474_v31, %v11198_v52  ;;  %14232 = vst [vmem:[#allocation168_spill] sm:$0xff] %v11222_v42  ;;  %v11225_v31 = vshrl.u32 %v11184_v9, 16  ;;  %v4144_v6 = vrot.slane %v11222_v42, 6 }
 0x33b   :  { %14227 = vst [vmem:[#allocation164_spill] sm:$0xff] %v11187_v37  ;;  %v11189_v45 = vpop.permute.xlu0 %2880  ;;  %5760 = vmatpush1.bf16.msra.mxu1 %v7945_v25  ;;  %v2107_v25 = vsel %vm2078_vm1, %v14231_v53, %v2106_v60  ;;  %v14236_v53 = vrot.slane %v11040_v11, 6 }
 0x33c   :  { %14228 = vst [vmem:[#allocation165_spill] sm:$0xff] %v11189_v45  ;;  %5761 = vmatprep.subr.bf16.mxu1 %v14197_v15  ;;  %14233 = vst [vmem:[#allocation169_spill] sm:$0xff] %v11225_v31  ;;  %v4620_v45 = vrot.slane %v8009_v21, 7  ;;  %v4143_v61 = vrot.slane %v11225_v31, 5 }
 0x33d   :  { %4196 = vrot.lane.b32.xlu1 %v4142_v56, %s8044_s17  ;;  %v11218_v56 = vld [vmem:[#allocation2 + $0x78] sm:$0xff]   ;;  %v4330_v37 = vsel %vm4307_vm2, %v14236_v53, %v4329_v62  ;;  %v7946_v53 = vld [vmem:[%s13457_s2 + $0x20] sm:$0xff]  }
 0x33e   :  { %4079 = vrot.lane.b32.xlu0 %v4025_v23, %s8048_s0  ;;  %v11205_v49 = vpop.permute.xlu1 %3058  ;;  %v11239_v23 = vcombine.low %v11035_v1, %v1771_v46  ;;  %v14238_v9 = vrot.slane %v11218_v56, 6 }
 0x33f   :  { %14229 = vst [vmem:[#allocation166_spill] sm:$0xff] %v11205_v49  ;;  %v11207_v59 = vpop.permute.xlu0 %2882  ;;  %5762 = vmatpush1.bf16.msra.mxu1 %v7946_v53 }
 0x340   :  { %14230 = vst [vmem:[#allocation167_spill] sm:$0xff] %v11207_v59  ;;  %14237 = vst [vmem:[#allocation172_spill] sm:$0xff] %v11239_v23  ;;  %v11266_v28 = vshll.u32 %v11239_v23, 16  ;;  %5763 = vmatprep.subr.bf16.mxu1 %v14197_v15 }
 0x341   :  { %4577 = vrot.lane.b32.xlu1 %v4484_v35, %s8046_s21  ;;  %v11233_v35 = vcombine.low %v1773_v10, %v11212_v4 }
 0x342   :  { %2142 = vrot.lane.b32.xlu0 %v2107_v25, %s8042_s13  ;;  %v11228_v59 = vpop.permute.xlu1 %3227  ;;  %v4332_v25 = vsel %vm4307_vm2, %v4329_v62, %v14238_v9  ;;  %v14240_v9 = vrot.slane %v11040_v11, 7  ;;  %v11260_v62 = vcombine.low %v1772_v13, %v1773_v10  ;;  %14243 = vst [vmem:[#allocation176_spill] sm:$0xff] %v11266_v28  ;;  %v14245_v11 = vshrl.u32 %v10207_v27, 16 }
 0x343   :  { %14234 = vst [vmem:[#allocation170_spill] sm:$0xff] %v11228_v59  ;;  %v11230_v49 = vpop.permute.xlu0 %2130  ;;  %14235 = vst [vmem:[#allocation171_spill] sm:$0xff] %v11233_v35  ;;  %v11263_v59 = vshrl.u32 %v11239_v23, 16  ;;  %v14246_v13 = vshll.u32 %v10207_v27, 16  ;;  %v14247_v23 = vrot.slane %v11233_v35, 1  ;;  %v11290_v27 = vshrl.u32 %v11233_v35, 16 }
 0x344   :  { %v4621_v21 = vsel %vm4598_vm4, %v14240_v9, %v4620_v45  ;;  %14241 = vst [vmem:[#allocation174_spill] sm:$0xff] %v11260_v62  ;;  %v4488_v9 = vrot.slane %v14245_v11, 6  ;;  %v7947_v11 = vld [vmem:[%s13457_s2 + $0x28] sm:$0xff]  }
 0x345   :  { %4367 = vrot.lane.b32.xlu1 %v4330_v37, %s8043_s14  ;;  %14242 = vst [vmem:[#allocation175_spill] sm:$0xff] %v11263_v59  ;;  %v4145_v37 = vor.u32 %v4144_v6, %v4143_v61  ;;  %v4491_v10 = vrot.slane %v14246_v13, 7  ;;  %v2109_v18 = vsel %vm2078_vm1, %v2106_v60, %v14247_v23  ;;  %v4027_v61 = vrot.slane %v11266_v28, 6  ;;  %5764 = vmatpush1.bf16.msra.mxu1 %v7947_v11 }
 0x346   :  { %4369 = vrot.lane.b32.xlu0 %v4332_v25, %s8043_s14  ;;  %v11252_v1 = vpop.permute.xlu1 %3280  ;;  %v14244_v25 = vrot.slane %v11218_v56, 7  ;;  %v11287_v6 = vshll.u32 %v11233_v35, 16  ;;  %v11296_v23 = vshrl.u32 %v11260_v62, 16  ;;  %v14250_v13 = vrot.slane %v11127_v2, 1  ;;  %5765 = vmatprep.subr.bf16.mxu1 %v14197_v15 }
 0x347   :  { %14239 = vst [vmem:[#allocation173_spill] sm:$0xff] %v11252_v1  ;;  %v11254_v46 = vpop.permute.xlu0 %4357  ;;  %v4492_v60 = vor.u32 %v4491_v10, %v4488_v9 }
 0x348   :  { %v4623_v53 = vsel %vm4598_vm4, %v4620_v45, %v14244_v25  ;;  %v4026_v45 = vrot.slane %v11263_v59, 5  ;;  %v4146_v25 = vsel %vm3982_vm3, %v11169_v44, %v4145_v37  ;;  %14248 = vst [vmem:[#allocation177_spill] sm:$0xff] %v11296_v23  ;;  %v4148_v59 = vrot.slane %v11287_v6, 6 }
 0x349   :  { %4658 = vrot.lane.b32.xlu1 %v4621_v21, %s8045_s18  ;;  %v2005_v21 = vrot.slane %v11222_v42, 1  ;;  %v13653_v2 = vrot.slane %v11287_v6, 1 }
 0x34a   :  { %4660 = vrot.lane.b32.xlu0 %v4623_v53, %s8045_s18  ;;  %v2054_v1 = vpop.permute.xlu1 %2053  ;;  %v11299_v53 = vshll.u32 %v11260_v62, 16  ;;  %v4028_v10 = vor.u32 %v4027_v61, %v4026_v45  ;;  %v4147_v62 = vrot.slane %v11290_v27, 5  ;;  %v11323_v45 = vld [vmem:[#allocation2 + $0x88] sm:$0xf]  ;;  %v1778_v61 = vld [vmem:[#allocation2 + $0x8c] sm:$0xf] }
 0x34b   :  { %v11281_v7 = vpop.permute.xlu0 %4648 }
 0x34c   :  { %14249 = vst [vmem:[#allocation178_spill] sm:$0xff] %v11299_v53  ;;  %v4031_v11 = vrot.slane %v11299_v53, 6 }
 0x34d   :  { %2144 = vrot.lane.b32.xlu1 %v2109_v18, %s8042_s13  ;;  %v2001_v18 = vor.u32 %v11130_v22, %v14250_v13  ;;  %v2009_v13 = vor.u32 %v11225_v31, %v2005_v21  ;;  %v11343_v22 = vcombine.low %v11323_v45, %v1778_v61 }
 0x34e   :  { %4198 = vrot.lane.b32.xlu0 %v4146_v25, %s8044_s17  ;;  %v11308_v42 = vpop.permute.xlu1 %2980  ;;  %v4493_v25 = vsel %vm14221_vm9, %v11198_v52, %v4492_v60  ;;  %v11330_v52 = vor.u32 %v4148_v59, %v4147_v62  ;;  %v11348_v59 = vld [vmem:[#allocation2 + $0x84] sm:$0xf] }
 0x34f   :  { %14251 = vst [vmem:[#allocation179_spill] sm:$0xff] %v11308_v42  ;;  %v11310_v44 = vpop.permute.xlu0 %2428  ;;  %v2006_v9 = vsel %vm1890_vm6, %v2001_v18, %v2005_v21  ;;  %v4030_v42 = vrot.slane %v11296_v23, 5  ;;  %v14254_v21 = vshrl.u32 %v10233_v57, 16  ;;  %v14255_v23 = vshll.u32 %v10233_v57, 16  ;;  %14256 = vst [vmem:[#allocation182_spill] sm:$0xff] %v11343_v22 }
 0x350   :  { %14252 = vst [vmem:[#allocation180_spill] sm:$0xff] %v11310_v44  ;;  %v11410_v47 = vshll.u32 %v11343_v22, 16  ;;  %v11413_v54 = vshrl.u32 %v11343_v22, 16 }
 0x351   :  { %2065 = vrot.lane.b32.xlu1 %v2006_v9, %s8047_s24  ;;  %v4029_v9 = vsel %vm3982_vm3, %v11182_v30, %v4028_v10  ;;  %v4497_v31 = vrot.slane %v14254_v21, 6  ;;  %v4500_v53 = vrot.slane %v14255_v23, 7  ;;  %v11346_v30 = vld [vmem:[#allocation2 + $0x80] sm:$0xf]  ;;  %v7948_v23 = vld [vmem:[%s13457_s2 + $0x30] sm:$0xff]  }
 0x352   :  { %4579 = vrot.lane.b32.xlu0 %v4493_v25, %s8046_s21  ;;  %v4070_v18 = vpop.permute.xlu1 %4069  ;;  %v2014_v25 = vsel %vm1890_vm6, %v2009_v13, %v13653_v2  ;;  %v11369_v21 = vcombine.low %v11346_v30, %v11348_v59  ;;  %5766 = vmatpush1.bf16.msra.mxu1 %v7948_v23  ;;  %v14261_v2 = vld [vmem:[#allocation14_spill] sm:$0xff]  ;;  %14270 = vst [vmem:[#allocation189_spill] sm:$0xff] %v11413_v54 }
 0x353   :  { %v11325_v44 = vpop.permute.xlu0 %2715  ;;  %v11359_v13 = vor.u32 %v4500_v53, %v4497_v31  ;;  %5767 = vmatprep.subr.bf16.mxu1 %v14197_v15  ;;  %v3320_v31 = vsel %vm3304_vm10, %v9809_v34, %v2054_v1  ;;  %v14262_v23 = vrot.slane %v14261_v2, 1  ;;  %v14265_v2 = vld [vmem:[#allocation16_spill] sm:$0xff] }
 0x354   :  { %14253 = vst [vmem:[#allocation181_spill] sm:$0xff] %v11325_v44  ;;  %v11340_v44 = vor.u32 %v4031_v11, %v4030_v42  ;;  %v4150_v42 = vsel %vm3982_vm3, %v4145_v37, %v11330_v52  ;;  %14259 = vst [vmem:[#allocation185_spill] sm:$0xff] %v11369_v21  ;;  %v11389_v34 = vsel %vm545_vm0, %v3320_v31, %v11230_v49  ;;  %v14267_v31 = vrot.slane %v11369_v21, 1 }
 0x355   :  { %4081 = vrot.lane.b32.xlu1 %v4029_v9, %s8048_s0  ;;  %v11365_v9 = vrot.slane %v11343_v22, 1  ;;  %14263 = vst [vmem:[#allocation187_spill] sm:$0xff] %v11389_v34  ;;  %v4776_v1 = vsel %vm3377_vm14, %v11389_v34, %v4070_v18  ;;  %v14268_v18 = vrot.slane %v11233_v35, 1  ;;  %v8012_v34 = vld [vmem:[#allocation2 + $0x80] sm:$0xff]   ;;  %14269 = vst [vmem:[#allocation16_spill] sm:$0xff] %v11410_v47 }
 0x356   :  { %2067 = vrot.lane.b32.xlu0 %v2014_v25, %s8047_s24  ;;  %v11350_v62 = vpop.permute.xlu1 %4188  ;;  %v4033_v11 = vsel %vm3982_vm3, %v4028_v10, %v11340_v44  ;;  %v4502_v10 = vsel %vm14221_vm9, %v4492_v60, %v11359_v13  ;;  %v8011_v25 = vld [vmem:[#allocation2 + $0x88] sm:$0xff]  }
 0x357   :  { %v11352_v57 = vpop.permute.xlu0 %2332  ;;  %14258 = vst [vmem:[#allocation184_spill] sm:$0xff] %v11365_v9  ;;  %v4626_v49 = vrot.slane %v8011_v25, 7 }
 0x358   :  { %14257 = vst [vmem:[#allocation183_spill] sm:$0xff] %v11352_v57 }
 0x359   :  { %4200 = vrot.lane.b32.xlu1 %v4150_v42, %s8044_s17  ;;  %v4335_v42 = vrot.slane %v8011_v25, 6 }
 0x35a   :  { %4083 = vrot.lane.b32.xlu0 %v4033_v11, %s8048_s0  ;;  %v11375_v37 = vpop.permute.xlu1 %4569  ;;  %v3966_v11 = vsel %vm2078_vm1, %v11365_v9, %v14262_v23  ;;  %v14266_v23 = vrot.slane %v14265_v2, 6 }
 0x35b   :  { %v11377_v53 = vpop.permute.xlu0 %2430 }
 0x35c   :  { %14260 = vst [vmem:[#allocation186_spill] sm:$0xff] %v11377_v53  ;;  %v4338_v57 = vsel %vm4307_vm2, %v4335_v42, %v14266_v23 }
 0x35d   :  { %4581 = vrot.lane.b32.xlu1 %v4502_v10, %s8046_s21  ;;  %v7949_v10 = vld [vmem:[%s13457_s2 + $0x38] sm:$0xff]  }
 0x35e   :  { %3973 = vrot.lane.b32.xlu0 %v3966_v11, %s8042_s13  ;;  %v11394_v60 = vpop.permute.xlu1 %3180  ;;  %v2111_v11 = vsel %vm2078_vm1, %v14268_v18, %v14267_v31  ;;  %5768 = vmatpush1.bf16.msra.mxu1 %v7949_v10  ;;  %v14273_v31 = vrot.slane %v14265_v2, 7  ;;  %v4624_v10 = vrot.slane %v8012_v34, 7  ;;  %v14275_v2 = vrot.slane %v11218_v56, 6 }
 0x35f   :  { %14264 = vst [vmem:[#allocation188_spill] sm:$0xff] %v11394_v60  ;;  %v4187_v53 = vpop.permute.xlu0 %4186  ;;  %v4333_v60 = vrot.slane %v8012_v34, 6  ;;  %5769 = vmatprep.subr.bf16.mxu1 %v14197_v15 }
 0x360   :  { %v4814_v28 = vsel %vm3414_vm15, %v4776_v1, %v4187_v53  ;;  %v4629_v18 = vsel %vm4598_vm4, %v4626_v49, %v14273_v31 }
 0x361   :  { %4375 = vrot.lane.b32.xlu1 %v4338_v57, %s8043_s14  ;;  %v8013_v57 = vld [vmem:[#allocation2 + $0x90] sm:$0xf]  ;;  %v4852_v23 = vsel %vm3451_vm13, %v4814_v28, %v11046_v33  ;;  %v4334_v34 = vsel %vm4307_vm2, %v14275_v2, %v4333_v60 }
 0x362   :  { %2146 = vrot.lane.b32.xlu0 %v2111_v11, %s8042_s13  ;;  %v11417_v53 = vcombine.low %v1778_v61, %v8013_v57  ;;  %v11419_v25 = vpop.permute.xlu1 %2982  ;;  %v4336_v61 = vsel %vm4307_vm2, %v4333_v60, %v4335_v42  ;;  %v4155_v57 = vrot.slane %v11413_v54, 5  ;;  %v4627_v60 = vsel %vm4598_vm4, %v4624_v10, %v4626_v49 }
 0x363   :  { %14272 = vst [vmem:[#allocation191_spill] sm:$0xff] %v11419_v25  ;;  %v4568_v1 = vpop.permute.xlu0 %4567  ;;  %v4156_v25 = vrot.slane %v11410_v47, 6 }
 0x364   :  { %14271 = vst [vmem:[#allocation190_spill] sm:$0xff] %v11417_v53  ;;  %v4890_v22 = vsel %vm3488_vm8, %v4852_v23, %v4568_v1  ;;  %v14276_v23 = vld [vmem:[#allocation118_spill] sm:$0xff] }
 0x365   :  { %4666 = vrot.lane.b32.xlu1 %v4629_v18, %s8045_s18  ;;  %v4928_v11 = vsel %vm3525_vm5, %v4890_v22, %v11083_v12  ;;  %v14277_v31 = vshrl.u32 %v14276_v23, 16  ;;  %v14278_v12 = vshll.u32 %v14276_v23, 16  ;;  %v11444_v18 = vshrl.u32 %v11417_v53, 16  ;;  %v7950_v23 = vld [vmem:[%s13457_s2 + $0x40] sm:$0xff]  }
 0x366   :  { %v5136_v35 = vshrl.u32 %v4928_v11, 16  ;;  %v5139_v28 = vshll.u32 %v4928_v11, 16  ;;  %4373 = vrot.lane.b32.xlu0 %v4336_v61, %s8043_s14  ;;  %v11434_v33 = vpop.permute.xlu1 %3182  ;;  %v11453_v2 = vor.u32 %v4156_v25, %v4155_v57  ;;  %5770 = vmatpush1.bf16.msra.mxu1 %v7950_v23 }
 0x367   :  { %14274 = vst [vmem:[#allocation192_spill] sm:$0xff] %v11434_v33  ;;  %v2056_v1 = vpop.permute.xlu0 %2055  ;;  %v4515_v22 = vrot.slane %v14277_v31, 6  ;;  %v4518_v42 = vrot.slane %v14278_v12, 7  ;;  %14279 = vst [vmem:[#allocation118_spill] sm:$0xff] %v11444_v18  ;;  %v11449_v33 = vshll.u32 %v11417_v53, 16  ;;  %v11475_v31 = vshll.u32 %v11369_v21, 16  ;;  %5771 = vmatprep.subr.bf16.mxu1 %v14197_v15 }
 0x368   :  { %v5138_v39 = vrot.slane %v5136_v35, 2  ;;  %v5141_v11 = vrot.slane %v5139_v28, 3  ;;  %v3322_v61 = vsel %vm3304_vm10, %v10274_v8, %v2056_v1  ;;  %v11460_v35 = vcombine.low %v11212_v4, %v11346_v30 }
 0x369   :  { %14280 = vst [vmem:[#allocation193_spill] sm:$0xff] %v11449_v33  ;;  %4371 = vrot.lane.b32.xlu1 %v4334_v34, %s8043_s14  ;;  %v14282_v1 = vrot.slane %v11218_v56, 7  ;;  %v11470_v49 = vsel %vm545_vm0, %v3322_v61, %v11112_v48  ;;  %v11472_v57 = vor.u32 %v4518_v42, %v4515_v22  ;;  %14284 = vst [vmem:[#allocation196_spill] sm:$0xff] %v11475_v31  ;;  %v4042_v56 = vrot.slane %v11444_v18, 5  ;;  %v14288_v61 = vld [vmem:[#allocation122_spill] sm:$0xff] }
 0x36a   :  { %14281 = vst [vmem:[#allocation194_spill] sm:$0xff] %v11460_v35  ;;  %4664 = vrot.lane.b32.xlu0 %v4627_v60, %s8045_s18  ;;  %v5142_v8 = vor.u32 %v5141_v11, %v5138_v39  ;;  %v11463_v28 = vpop.permute.xlu1 %4359  ;;  %14283 = vst [vmem:[#allocation195_spill] sm:$0xff] %v11470_v49  ;;  %v4043_v30 = vrot.slane %v11449_v33, 6  ;;  %v11491_v12 = vshrl.u32 %v11369_v21, 16  ;;  %v14287_v42 = vrot.slane %v11369_v21, 1 }
 0x36b   :  { %v4625_v34 = vsel %vm4598_vm4, %v14282_v1, %v4624_v10  ;;  %v4072_v25 = vpop.permute.xlu0 %4071  ;;  %v14285_v10 = vld [vmem:[#allocation21_spill] sm:$0xff]  ;;  %vm14291_vm4 = vmmov %vm14221_vm9 }
 0x36c   :  { %v4778_v39 = vsel %vm3377_vm14, %v11470_v49, %v4072_v25  ;;  %v5143_v4 = vsel %vm2455_vm12, %v11133_v43, %v5142_v8  ;;  %v4162_v22 = vsel %vm3982_vm3, %v11453_v2, %v14285_v10  ;;  %14286 = vst [vmem:[#allocation21_spill] sm:$0xff] %v11491_v12  ;;  %v2113_v11 = vsel %vm2078_vm1, %v14287_v42, %v11365_v9  ;;  %v14295_v9 = vld [vmem:[#allocation38_spill] sm:$0xff]  ;;  %v14301_v49 = vld [vmem:[#allocation32_spill] sm:$0xff]  ;;  %vm14305_vm9 = vmmov %vm14291_vm4 }
 0x36d   :  { %4662 = vrot.lane.b32.xlu1 %v4625_v34, %s8045_s18  ;;  %v4816_v48 = vsel %vm3414_vm15, %v4778_v39, %v11350_v62  ;;  %5557 = vmatmul.mubr.bf16.gmra.mrb[16].mxu1 %v5143_v4  ;;  %v14289_v62 = vrot.slane %v11287_v6, 1  ;;  %v2021_v39 = vrot.slane %v11475_v31, 1  ;;  %v2029_v4 = vrot.slane %v11410_v47, 1 }
 0x36e   :  { %v4854_v43 = vsel %vm3451_vm13, %v4816_v48, %v11254_v46  ;;  %4206 = vrot.lane.b32.xlu0 %v4162_v22, %s8044_s17  ;;  %5564 = vmatprep.mubr.bf16.mxu1 %v14288_v61  ;;  %v11506_v1 = vpop.permute.xlu1 %4650  ;;  %v14290_v46 = vld [vmem:[#allocation26_spill] sm:$0xff]  ;;  %v11515_v48 = vor.u32 %v4043_v30, %v4042_v56  ;;  %v11520_v22 = vshrl.u32 %v11460_v35, 16  ;;  %v4151_v61 = vrot.slane %v11491_v12, 5 }
 0x36f   :  { %v2017_v60 = vor.u32 %v11290_v27, %v14289_v62  ;;  %v4892_v23 = vsel %vm3488_vm8, %v4854_v43, %v11375_v37  ;;  %v11508_v34 = vpop.permute.xlu0 %2638  ;;  %v4529_v25 = vsel %vm14291_vm4, %v11472_v57, %v14290_v46  ;;  %v11523_v37 = vshll.u32 %v11460_v35, 16  ;;  %v7951_v56 = vld [vmem:[%s13457_s2 + $0x48] sm:$0xff]  }
 0x370   :  { %v4930_v10 = vsel %vm3525_vm5, %v4892_v23, %v11281_v7  ;;  %14292 = vst [vmem:[#allocation122_spill] sm:$0xff] %v11520_v22  ;;  %v4152_v62 = vrot.slane %v11475_v31, 6  ;;  %v11534_v7 = vcombine.low %v11348_v59, %v11323_v45  ;;  %5772 = vmatpush1.bf16.msra.mxu1 %v7951_v56  ;;  %v4049_v18 = vsel %vm3982_vm3, %v11515_v48, %v14295_v9 }
 0x371   :  { %14293 = vst [vmem:[#allocation26_spill] sm:$0xff] %v11523_v37  ;;  %2148 = vrot.lane.b32.xlu1 %v2113_v11, %s8042_s13  ;;  %v5152_v43 = vshrl.u32 %v4930_v10, 16  ;;  %v5155_v42 = vshll.u32 %v4930_v10, 16  ;;  %v2022_v11 = vsel %vm1890_vm6, %v2017_v60, %v2021_v39  ;;  %v11545_v53 = vor.u32 %v11413_v54, %v2029_v4  ;;  %5773 = vmatprep.subr.bf16.mxu1 %v14197_v15 }
 0x372   :  { %4587 = vrot.lane.b32.xlu0 %v4529_v25, %s8046_s21  ;;  %14294 = vst [vmem:[#allocation197_spill] sm:$0xff] %v11534_v7  ;;  %v11536_v30 = vpop.permute.xlu1 %2136  ;;  %v4034_v25 = vrot.slane %v11520_v22, 5  ;;  %v4035_v45 = vrot.slane %v11523_v37, 6  ;;  %v4153_v60 = vor.u32 %v4152_v62, %v4151_v61  ;;  %v14302_v62 = vld [vmem:[#allocation42_spill] sm:$0xff] }
 0x373   :  { %v11539_v23 = vpop.permute.xlu0 %2255  ;;  %v5154_v46 = vrot.slane %v5152_v43, 2  ;;  %v5157_v10 = vrot.slane %v5155_v42, 3  ;;  %14296 = vst [vmem:[#allocation38_spill] sm:$0xff] %v11545_v53  ;;  %v14297_v43 = vld [vmem:[#allocation121_spill] sm:$0xff] }
 0x374   :  { %v14298_v42 = vshrl.u32 %v14297_v43, 16  ;;  %v14299_v47 = vshll.u32 %v14297_v43, 16  ;;  %v4036_v61 = vor.u32 %v4035_v45, %v4034_v25  ;;  %v2025_v25 = vor.u32 %v11491_v12, %v2021_v39 }
 0x375   :  { %2069 = vrot.lane.b32.xlu1 %v2022_v11, %s8047_s24  ;;  %v11551_v59 = vor.u32 %v5157_v10, %v5154_v46  ;;  %v3930_v11 = vsel %vm1890_vm6, %v11545_v53, %v14301_v49  ;;  %v11572_v46 = vshrl.u32 %v11534_v7, 16  ;;  %v11575_v10 = vshll.u32 %v11534_v7, 16 }
 0x376   :  { %v4506_v56 = vrot.slane %v14298_v42, 6  ;;  %v4509_v9 = vrot.slane %v14299_v47, 7  ;;  %4091 = vrot.lane.b32.xlu0 %v4049_v18, %s8048_s0  ;;  %v11558_v54 = vpop.permute.xlu1 %3060  ;;  %v4154_v47 = vsel %vm3982_vm3, %v11330_v52, %v4153_v60 }
 0x377   :  { %v11560_v33 = vpop.permute.xlu0 %2640  ;;  %v5159_v31 = vsel %vm2455_vm12, %v5142_v8, %v11551_v59  ;;  %14303 = vst [vmem:[#allocation32_spill] sm:$0xff] %v11572_v46  ;;  %14304 = vst [vmem:[#allocation42_spill] sm:$0xff] %v11575_v10  ;;  %v4038_v45 = vrot.slane %v11572_v46, 5  ;;  %v4039_v43 = vrot.slane %v11575_v10, 6 }
 0x378   :  { %14300 = vst [vmem:[#allocation121_spill] sm:$0xff] %v11560_v33  ;;  %5565 = vmatmul.mubr.bf16.gmra.mrb[20].mxu1 %v5159_v31  ;;  %v4510_v18 = vor.u32 %v4509_v9, %v4506_v56  ;;  %v4037_v31 = vsel %vm3982_vm3, %v11340_v44, %v4036_v61  ;;  %v7952_v44 = vld [vmem:[%s13457_s2 + $0x50] sm:$0xff]  }
 0x379   :  { %3952 = vrot.lane.b32.xlu1 %v3930_v11, %s8047_s24  ;;  %5572 = vmatprep.mubr.bf16.mxu1 %v14302_v62  ;;  %v4040_v39 = vor.u32 %v4039_v43, %v4038_v45  ;;  %v4158_v62 = vsel %vm3982_vm3, %v4153_v60, %v11453_v2 }
 0x37a   :  { %4202 = vrot.lane.b32.xlu0 %v4154_v47, %s8044_s17  ;;  %v11578_v8 = vpop.permute.xlu1 %3229  ;;  %v4511_v52 = vsel %vm14305_vm9, %v11359_v13, %v4510_v18  ;;  %v2030_v13 = vsel %vm1890_vm6, %v2025_v25, %v2029_v4  ;;  %5774 = vmatpush1.bf16.msra.mxu1 %v7952_v44  ;;  %v7953_v47 = vld [vmem:[%s13457_s2 + $0x58] sm:$0xff]   ;;  %v4520_v60 = vsel %vm14291_vm4, %v4510_v18, %v11472_v57  ;;  %vm14309_vm9 = vcmask 1044480  }
 0x37b   :  { %v2135_v49 = vpop.permute.xlu0 %2134  ;;  %5775 = vmatprep.subr.bf16.mxu1 %v14197_v15  ;;  %v4041_v4 = vsel %vm3982_vm3, %v4036_v61, %v4040_v39  ;;  %v14307_v61 = vld [vmem:[#allocation74_spill] sm:$0xff]  ;;  %v2196_v44 = vrot.slane %v10544_v63, 1  ;;  %v14311_v57 = vrot.slane %v10864_v50, 1 }
 0x37c   :  { %v14308_v45 = vrot.slane %v14307_v61, 3 }
 0x37d   :  { %4085 = vrot.lane.b32.xlu1 %v4037_v31, %s8048_s0  ;;  %v2681_v31 = vrot.slane %v9953_v41, 3  ;;  %v2932_v18 = vor.u32 %v14311_v57, %v10867_v24 }
 0x37e   :  { %4583 = vrot.lane.b32.xlu0 %v4511_v52, %s8046_s21  ;;  %v11589_v42 = vpop.permute.xlu1 %3282  ;;  %5776 = vmatpush1.bf16.msra.mxu1 %v7953_v47 }
 0x37f   :  { %14306 = vst [vmem:[#allocation198_spill] sm:$0xff] %v11589_v42  ;;  %v11591_v56 = vpop.permute.xlu0 %4361  ;;  %5777 = vmatprep.subr.bf16.mxu1 %v14197_v15  ;;  %v2682_v43 = vsel %vm14309_vm9, %v14308_v45, %v2681_v31  ;;  %v13678_v45 = vrot.slane %v10899_v40, 1 }
 0x381   :  { %2845 = vrot.lane.b32.xlu1 %v10299_v58, %s8047_s24 }
 0x382   :  { %2071 = vrot.lane.b32.xlu0 %v2030_v13, %s8047_s24  ;;  %v2058_v9 = vpop.permute.xlu1 %2057  ;;  %v2197_v13 = vrot.slane %v10541_v3, 2  ;;  %v13679_v3 = vrot.slane %v10944_v38, 1 }
 0x383   :  { %v11600_v11 = vpop.permute.xlu0 %4652  ;;  %v3324_v2 = vsel %vm3304_vm10, %v10299_v58, %v2058_v9 }
 0x385   :  { %4204 = vrot.lane.b32.xlu1 %v4158_v62, %s8044_s17  ;;  %v11629_v62 = vsel %vm545_vm0, %v3324_v2, %v2135_v49  ;;  %v11641_v49 = vor.u32 %v2197_v13, %v2196_v44  ;;  %v7954_v2 = vld [vmem:[%s13457_s2 + $0x60] sm:$0xff]   ;;  %v3125_v44 = vrot.slane %v10941_v19, 1  ;;  %v3126_v13 = vrot.slane %v10944_v38, 2 }
 0x386   :  { %4087 = vrot.lane.b32.xlu0 %v4041_v4, %s8048_s0  ;;  %v11612_v52 = vpop.permute.xlu1 %2984  ;;  %14310 = vst [vmem:[#allocation74_spill] sm:$0xff] %v11629_v62  ;;  %v4045_v4 = vsel %vm3982_vm3, %v4040_v39, %v11515_v48  ;;  %5778 = vmatpush1.bf16.msra.mxu1 %v7954_v2  ;;  %vm14312_vm3 = vsmask.f32 6400  ;;  %v14314_v2 = vrot.slane %v10770_v17, 1 }
 0x387   :  { %v4191_v25 = vpop.permute.xlu0 %4190  ;;  %5779 = vmatprep.subr.bf16.mxu1 %v14197_v15  ;;  %v2199_v57 = vsel %vm14312_vm3, %v10785_v29, %v11641_v49  ;;  %v11678_v29 = vor.u32 %v3126_v13, %v3125_v44  ;;  %vm14316_vm4 = vmmov %vm14312_vm3 }
 0x389   :  { %4585 = vrot.lane.b32.xlu1 %v4520_v60, %s8046_s21 }
 0x38a   :  { %2717 = vrot.lane.b32.xlu0 %v2682_v43, %s8045_s18  ;;  %v4074_v58 = vpop.permute.xlu1 %4073 }
 0x38b   :  { %v4572_v9 = vpop.permute.xlu0 %4571  ;;  %v4780_v47 = vsel %vm3377_vm14, %v11629_v62, %v4074_v58 }
 0x38c   :  { %v4818_v63 = vsel %vm3414_vm15, %v4780_v47, %v4191_v25  ;;  %v2934_v25 = vsel %vm1890_vm6, %v2932_v18, %v13679_v3 }
 0x38d   :  { %4089 = vrot.lane.b32.xlu1 %v4045_v4, %s8048_s0  ;;  %v4856_v60 = vsel %vm3451_vm13, %v4818_v63, %v11463_v28 }
 0x38e   :  { %2884 = vrot.lane.b32.xlu0 %v10770_v17, %s8042_s13  ;;  %v4894_v48 = vsel %vm3488_vm8, %v4856_v60, %v4572_v9  ;;  %v4193_v39 = vpop.permute.xlu1 %4192  ;;  %v3027_v60 = vsel %vm2078_vm1, %v14314_v2, %v13678_v45 }
 0x38f   :  { %v2060_v61 = vpop.permute.xlu0 %2059  ;;  %v4932_v43 = vsel %vm3525_vm5, %v4894_v48, %v11506_v1 }
 0x390   :  { %v3326_v28 = vsel %vm3304_vm10, %v10743_v26, %v2060_v61  ;;  %v5168_v58 = vshrl.u32 %v4932_v43, 16  ;;  %v5171_v9 = vshll.u32 %v4932_v43, 16  ;;  %v2542_v43 = vrot.slane %v10864_v50, 3 }
 0x391   :  { %2986 = vrot.lane.b32.xlu1 %v2934_v25, %s8048_s0  ;;  %v11669_v4 = vsel %vm545_vm0, %v3326_v28, %v11536_v30  ;;  %v2539_v30 = vrot.slane %v10867_v24, 2  ;;  %v7955_v28 = vld [vmem:[%s13457_s2 + $0x68] sm:$0xff]  }
 0x392   :  { %2257 = vrot.lane.b32.xlu0 %v2199_v57, %s8048_s0  ;;  %v5170_v1 = vrot.slane %v5168_v58, 2  ;;  %v5173_v18 = vrot.slane %v5171_v9, 3  ;;  %v4574_v47 = vpop.permute.xlu1 %4573  ;;  %14313 = vst [vmem:[#allocation199_spill] sm:$0xff] %v11669_v4  ;;  %v14315_v9 = vld [vmem:[#allocation25_spill] sm:$0xff]  ;;  %5780 = vmatpush1.bf16.msra.mxu1 %v7955_v28 }
 0x393   :  { %v4076_v63 = vpop.permute.xlu0 %4075  ;;  %5781 = vmatprep.subr.bf16.mxu1 %v14197_v15 }
 0x394   :  { %v4782_v48 = vsel %vm3377_vm14, %v11669_v4, %v4076_v63  ;;  %v5174_v61 = vor.u32 %v5173_v18, %v5170_v1  ;;  %v3128_v1 = vsel %vm14316_vm4, %v11002_v20, %v11678_v29  ;;  %vm14336_vm4 = vmmov %vm14309_vm9  ;;  %v14370_v4 = vld [vmem:[#allocation156_spill] sm:$0xff] }
 0x395   :  { %3062 = vrot.lane.b32.xlu1 %v3027_v60, %s8044_s17  ;;  %v4820_v25 = vsel %vm3414_vm15, %v4782_v48, %v4193_v39  ;;  %v2213_v62 = vrot.slane %v14370_v4, 2 }
 0x396   :  { %v4858_v58 = vsel %vm3451_vm13, %v4820_v25, %v11591_v56  ;;  %2334 = vrot.lane.b32.xlu0 %v14315_v9, %s8044_s17  ;;  %v11692_v13 = vpop.permute.xlu1 %3184  ;;  %v5175_v39 = vsel %vm2455_vm12, %v11551_v59, %v5174_v61  ;;  %v13677_v56 = vrot.slane %v10899_v40, 2  ;;  %v11707_v59 = vor.u32 %v2542_v43, %v2539_v30  ;;  %v8014_v25 = vld [vmem:[#allocation2 + $0xa8] ss:$0 sps:$4 sm:$0x33]  }
 0x397   :  { %v4896_v44 = vsel %vm3488_vm8, %v4858_v58, %v4574_v47  ;;  %v11696_v57 = vpop.permute.xlu0 %2138  ;;  %5573 = vmatmul.mubr.bf16.gmra.mrb[24].mxu1 %v5175_v39  ;;  %v14317_v47 = vld [vmem:[#allocation129_spill] sm:$0xff]  ;;  %v4737_v28 = vshrl.u32 %v8014_v25, 16  ;;  %v13682_v43 = vrot.slane %v10756_v51, 2  ;;  %v13681_v9 = vrot.slane %v10770_v17, 3 }
 0x398   :  { %v4934_v18 = vsel %vm3525_vm5, %v4896_v44, %v11600_v11  ;;  %5578 = vmatprep.mubr.bf16.mxu1 %v14317_v47  ;;  %v14318_v11 = vrot.slane %v10770_v17, 2  ;;  %v14319_v39 = vld [vmem:[#allocation41_spill] sm:$0xff]  ;;  %v4740_v3 = vshll.u32 %v8014_v25, 16  ;;  %v7956_v25 = vld [vmem:[%s13457_s2 + $0x70] sm:$0xff]  }
 0x399   :  { %3186 = vrot.lane.b32.xlu1 %v3128_v1, %s8043_s14  ;;  %v5184_v63 = vshrl.u32 %v4934_v18, 16  ;;  %v5187_v2 = vshll.u32 %v4934_v18, 16  ;;  %v14320_v1 = vld [vmem:[#allocation28_spill] sm:$0xff]  ;;  %v4739_v45 = vrot.slane %v4737_v28, 7  ;;  %v14322_v28 = vld [vmem:[#allocation98_spill] sm:$0xff]  ;;  %5782 = vmatpush1.bf16.msra.mxu1 %v7956_v25 }
 0x39a   :  { %2432 = vrot.lane.b32.xlu0 %v10847_v0, %s8043_s14  ;;  %v11711_v60 = vpop.permute.xlu1 %4363  ;;  %v11718_v58 = vsel %vm2280_vm7, %v14318_v11, %v13677_v56  ;;  %v2544_v0 = vsel %vm2455_vm12, %v10806_v14, %v11707_v59  ;;  %v4735_v18 = vsel %vm4677_vm11, %v14320_v1, %v14319_v39  ;;  %v14321_v14 = vrot.slane %v10743_v26, 2  ;;  %5783 = vmatprep.subr.bf16.mxu1 %v14197_v15  ;;  %v14324_v25 = vld [vmem:[#allocation40_spill] sm:$0xff] }
 0x39b   :  { %v5186_v20 = vrot.slane %v5184_v63, 2  ;;  %v5189_v48 = vrot.slane %v5187_v2, 3  ;;  %v11720_v30 = vpop.permute.xlu0 %4365  ;;  %v4991_v47 = vsel %vm3304_vm10, %v4735_v18, 0  ;;  %v2201_v39 = vrot.slane %v10840_v16, 2 }
 0x39c   :  { %v5336_v11 = vshrl.u32 %v4991_v47, 16  ;;  %v5339_v56 = vshll.u32 %v4991_v47, 16 }
 0x39d   :  { %3231 = vrot.lane.b32.xlu1 %v11718_v58, %s8046_s21  ;;  %v11729_v44 = vor.u32 %v5189_v48, %v5186_v20  ;;  %v11745_v20 = vsel %vm2280_vm7, %v14321_v14, %v13682_v43 }
 0x39e   :  { %2642 = vrot.lane.b32.xlu0 %v2544_v0, %s8046_s21  ;;  %v11736_v63 = vpop.permute.xlu1 %4654  ;;  %v2200_v0 = vrot.slane %v10856_v55, 1  ;;  %v5338_v1 = vrot.slane %v5336_v11, 2  ;;  %v5341_v18 = vrot.slane %v5339_v56, 3  ;;  %v14323_v55 = vrot.slane %v10944_v38, 1 }
 0x39f   :  { %v5191_v2 = vsel %vm2455_vm12, %v5174_v61, %v11729_v44  ;;  %v11747_v48 = vpop.permute.xlu0 %4656  ;;  %v2684_v61 = vsel %vm14309_vm9, %v2681_v31, %v13681_v9  ;;  %v13680_v31 = vrot.slane %v11102_v36, 1  ;;  %v4742_v11 = vor.u32 %v4740_v3, %v4739_v45  ;;  %vm14344_vm9 = vmmov %vm14312_vm3 }
 0x3a0   :  { %5579 = vmatmul.mubr.bf16.gmra.mrb[28].mxu1 %v5191_v2  ;;  %v5342_v47 = vor.u32 %v5341_v18, %v5338_v1  ;;  %v2935_v14 = vor.u32 %v14323_v55, %v10941_v19  ;;  %v11770_v16 = vor.u32 %v2201_v39, %v2200_v0  ;;  %v3130_v3 = vrot.slane %v11102_v36, 2  ;;  %v7957_v18 = vld [vmem:[%s13457_s2 + $0x78] sm:$0xff]  }
 0x3a1   :  { %3284 = vrot.lane.b32.xlu1 %v11745_v20, %s8045_s18  ;;  %5584 = vmatprep.mubr.bf16.mxu1 %v14322_v28  ;;  %v4743_v28 = vsel %vm4677_vm11, %v14324_v25, %v4742_v11  ;;  %vm14330_vm11 = vmmov %vm14312_vm3 }
 0x3a2   :  { %2719 = vrot.lane.b32.xlu0 %v2684_v61, %s8045_s18  ;;  %v2141_v41 = vpop.permute.xlu1 %2140  ;;  %v11774_v56 = vsel %vm2455_vm12, %v10861_v5, %v5342_v47  ;;  %v2937_v15 = vsel %vm1890_vm6, %v2935_v14, %v13680_v31  ;;  %v14325_v5 = vld [vmem:[#allocation154_spill] sm:$0xff]  ;;  %v4993_v45 = vsel %vm3304_vm10, %v4743_v28, 0  ;;  %v2203_v55 = vsel %vm14312_vm3, %v11641_v49, %v11770_v16  ;;  %5784 = vmatpush1.bf16.msra.mxu1 %v7957_v18 }
 0x3a3   :  { %v4195_v2 = vpop.permute.xlu0 %4194  ;;  %v3129_v1 = vrot.slane %v14325_v5, 1  ;;  %v5352_v14 = vshrl.u32 %v4993_v45, 16  ;;  %v5355_v11 = vshll.u32 %v4993_v45, 16  ;;  %v2548_v18 = vrot.slane %v10941_v19, 2 }
 0x3a5   :  { %2847 = vrot.lane.b32.xlu1 %v10743_v26, %s8047_s24  ;;  %v13683_v26 = vrot.slane %v11058_v32, 1  ;;  %v5354_v28 = vrot.slane %v5352_v14, 2  ;;  %v5357_v31 = vrot.slane %v5355_v11, 3  ;;  %v11808_v43 = vor.u32 %v3130_v3, %v3129_v1 }
 0x3a6   :  { %2886 = vrot.lane.b32.xlu0 %v10899_v40, %s8042_s13  ;;  %v2551_v14 = vrot.slane %v10944_v38, 3 }
 0x3a7   :  { %v2062_v61 = vpop.permute.xlu1 %2061  ;;  %v5358_v11 = vor.u32 %v5357_v31, %v5354_v28  ;;  %v13687_v28 = vrot.slane %v11058_v32, 2 }
 0x3a8   :  { %v3328_v0 = vsel %vm3304_vm10, %v10756_v51, %v2062_v61  ;;  %v4576_v39 = vpop.permute.xlu0 %4575 }
 0x3a9   :  { %2988 = vrot.lane.b32.xlu1 %v2937_v15, %s8048_s0  ;;  %v11799_v61 = vsel %vm545_vm0, %v3328_v0, %v11696_v57  ;;  %v14327_v15 = vrot.slane %v10899_v40, 1  ;;  %v14328_v0 = vld [vmem:[#allocation147_spill] sm:$0xff] }
 0x3aa   :  { %2259 = vrot.lane.b32.xlu0 %v2203_v55, %s8048_s0  ;;  %14326 = vst [vmem:[#allocation25_spill] sm:$0xff] %v11799_v61 }
 0x3ab   :  { %v4078_v25 = vpop.permute.xlu1 %4077  ;;  %v3029_v49 = vsel %vm2078_vm1, %v14327_v15, %v13683_v26  ;;  %v14329_v15 = vld [vmem:[#allocation138_spill] sm:$0xff]  ;;  %v11822_v26 = vsel %vm2455_vm12, %v5342_v47, %v5358_v11 }
 0x3ac   :  { %v4784_v9 = vsel %vm3377_vm14, %v11799_v61, %v4078_v25  ;;  %v2064_v45 = vpop.permute.xlu0 %2063  ;;  %v14369_v61 = vld [vmem:[#allocation157_spill] sm:$0xff] }
 0x3ad   :  { %v4822_v57 = vsel %vm3414_vm15, %v4784_v9, %v4195_v2  ;;  %3064 = vrot.lane.b32.xlu1 %v3029_v49, %s8044_s17  ;;  %v3330_v55 = vsel %vm3304_vm10, %v14328_v0, %v2064_v45  ;;  %v3132_v9 = vsel %vm14330_vm11, %v11678_v29, %v11808_v43  ;;  %v11836_v45 = vor.u32 %v2551_v14, %v2548_v18  ;;  %vm14353_vm11 = vmmov %vm14336_vm4 }
 0x3ae   :  { %v4860_v25 = vsel %vm3451_vm13, %v4822_v57, %v11711_v60  ;;  %2336 = vrot.lane.b32.xlu0 %v14329_v15, %s8044_s17  ;;  %v11828_v2 = vsel %vm545_vm0, %v3330_v55, %v2141_v41  ;;  %v13686_v15 = vrot.slane %v14328_v0, 2 }
 0x3af   :  { %v4898_v1 = vsel %vm3488_vm8, %v4860_v25, %v4576_v39  ;;  %v4197_v3 = vpop.permute.xlu1 %4196  ;;  %14331 = vst [vmem:[#allocation129_spill] sm:$0xff] %v11828_v2  ;;  %v14332_v25 = vrot.slane %v10899_v40, 2 }
 0x3b0   :  { %v4080_v31 = vpop.permute.xlu0 %4079  ;;  %v4936_v60 = vsel %vm3525_vm5, %v4898_v1, %v11736_v63  ;;  %v2553_v1 = vsel %vm2455_vm12, %v11707_v59, %v11836_v45 }
 0x3b1   :  { %3188 = vrot.lane.b32.xlu1 %v3132_v9, %s8043_s14  ;;  %v4786_v39 = vsel %vm3377_vm14, %v11828_v2, %v4080_v31  ;;  %v5200_v47 = vshrl.u32 %v4936_v60, 16  ;;  %v5203_v49 = vshll.u32 %v4936_v60, 16  ;;  %v11849_v18 = vsel %vm2280_vm7, %v14332_v25, %v13687_v28 }
 0x3b2   :  { %v4824_v29 = vsel %vm3414_vm15, %v4786_v39, %v4197_v3  ;;  %2434 = vrot.lane.b32.xlu0 %v11718_v58, %s8043_s14  ;;  %v13684_v3 = vrot.slane %v10899_v40, 3 }
 0x3b3   :  { %v4862_v41 = vsel %vm3451_vm13, %v4824_v29, %v11720_v30  ;;  %v4578_v57 = vpop.permute.xlu1 %4577  ;;  %v5202_v55 = vrot.slane %v5200_v47, 2  ;;  %v5205_v63 = vrot.slane %v5203_v49, 3  ;;  %v14333_v49 = vrot.slane %v10756_v51, 2 }
 0x3b4   :  { %v4900_v11 = vsel %vm3488_vm8, %v4862_v41, %v4578_v57  ;;  %v2143_v14 = vpop.permute.xlu0 %2142  ;;  %v14334_v41 = vld [vmem:[#allocation103_spill] sm:$0xff] }
 0x3b5   :  { %v4938_v58 = vsel %vm3525_vm5, %v4900_v11, %v11747_v48  ;;  %3233 = vrot.lane.b32.xlu1 %v11849_v18, %s8046_s21  ;;  %v5206_v30 = vor.u32 %v5205_v63, %v5202_v55  ;;  %v11868_v29 = vsel %vm2280_vm7, %v14333_v49, %v13686_v15  ;;  %v14337_v55 = vld [vmem:[#allocation143_spill] sm:$0xff]  ;;  %v14338_v11 = vld [vmem:[#allocation142_spill] sm:$0xff] }
 0x3b6   :  { %v5216_v9 = vshrl.u32 %v4938_v58, 16  ;;  %v5219_v31 = vshll.u32 %v4938_v58, 16  ;;  %2644 = vrot.lane.b32.xlu0 %v2553_v1, %s8046_s21  ;;  %v2204_v63 = vrot.slane %v14337_v55, 1  ;;  %v2205_v25 = vrot.slane %v14338_v11, 2  ;;  %v14341_v55 = vld [vmem:[#allocation153_spill] sm:$0xff] }
 0x3b7   :  { %v4368_v60 = vpop.permute.xlu1 %4367  ;;  %v5207_v39 = vsel %vm2455_vm12, %v11729_v44, %v5206_v30  ;;  %v14335_v44 = vrot.slane %v10770_v17, 3  ;;  %v13689_v11 = vrot.slane %v14341_v55, 1 }
 0x3b8   :  { %v5218_v47 = vrot.slane %v5216_v9, 2  ;;  %v5221_v48 = vrot.slane %v5219_v31, 3  ;;  %5585 = vmatmul.mubr.bf16.gmra.mrb[32].mxu1 %v5207_v39  ;;  %v11870_v59 = vpop.permute.xlu0 %4369  ;;  %v14339_v31 = vrot.slane %v11102_v36, 1  ;;  %v11894_v49 = vor.u32 %v2205_v25, %v2204_v63  ;;  %v14343_v63 = vld [vmem:[#allocation62_spill] sm:$0xff] }
 0x3b9   :  { %5590 = vmatprep.mubr.bf16.mxu1 %v14334_v41  ;;  %3286 = vrot.lane.b32.xlu1 %v11868_v29, %s8045_s18  ;;  %v2686_v57 = vsel %vm14336_vm4, %v14335_v44, %v13684_v3  ;;  %v14345_v3 = vld [vmem:[#allocation152_spill] sm:$0xff]  ;;  %vm14361_vm4 = vmmov %vm14312_vm3 }
 0x3ba   :  { %2721 = vrot.lane.b32.xlu0 %v2686_v57, %s8045_s18  ;;  %v11883_v58 = vor.u32 %v5221_v48, %v5218_v47  ;;  %v2938_v39 = vor.u32 %v14339_v31, %v14325_v5  ;;  %v14340_v47 = vld [vmem:[#allocation159_spill] sm:$0xff]  ;;  %v2207_v25 = vsel %vm14344_vm9, %v11770_v16, %v11894_v49  ;;  %v2560_v16 = vrot.slane %v11102_v36, 3  ;;  %vm14364_vm9 = vmmov %vm14312_vm3 }
 0x3bb   :  { %v4659_v1 = vpop.permute.xlu1 %4658  ;;  %v13685_v48 = vrot.slane %v14340_v47, 1  ;;  %v13691_v12 = vrot.slane %v14345_v3, 2 }
 0x3bc   :  { %v11885_v9 = vpop.permute.xlu0 %4660  ;;  %v5223_v17 = vsel %vm2455_vm12, %v5206_v30, %v11883_v58  ;;  %v3134_v30 = vrot.slane %v14340_v47, 2 }
 0x3bd   :  { %2849 = vrot.lane.b32.xlu1 %v10756_v51, %s8047_s24  ;;  %v2940_v44 = vsel %vm1890_vm6, %v2938_v39, %v13685_v48  ;;  %v14342_v51 = vld [vmem:[#allocation158_spill] sm:$0xff]  ;;  %v14346_v48 = vrot.slane %v11058_v32, 1 }
 0x3be   :  { %2888 = vrot.lane.b32.xlu0 %v11058_v32, %s8042_s13  ;;  %v3133_v31 = vrot.slane %v14342_v51, 1 }
 0x3bf   :  { %v2145_v41 = vpop.permute.xlu1 %2144  ;;  %v3031_v15 = vsel %vm2078_vm1, %v14346_v48, %v13689_v11  ;;  %v14348_v11 = vld [vmem:[#allocation163_spill] sm:$0xff] }
 0x3c0   :  { %5591 = vmatmul.mubr.bf16.gmra.mrb[36].mxu1 %v5223_v17  ;;  %v4199_v57 = vpop.permute.xlu0 %4198 }
 0x3c1   :  { %5598 = vmatprep.mubr.bf16.mxu1 %v14343_v63  ;;  %2990 = vrot.lane.b32.xlu1 %v2940_v44, %s8048_s0  ;;  %v11918_v63 = vor.u32 %v3134_v30, %v3133_v31  ;;  %v2557_v44 = vrot.slane %v14325_v5, 2  ;;  %v14372_v5 = vld [vmem:[#allocation178_spill] sm:$0xff] }
 0x3c2   :  { %2261 = vrot.lane.b32.xlu0 %v2207_v25, %s8048_s0 }
 0x3c3   :  { %v2066_v17 = vpop.permute.xlu1 %2065  ;;  %v3136_v48 = vsel %vm14312_vm3, %v11808_v43, %v11918_v63  ;;  %vm14368_vm3 = vmmov %vm14353_vm11 }
 0x3c4   :  { %v3332_v39 = vsel %vm3304_vm10, %v14345_v3, %v2066_v17  ;;  %v4580_v28 = vpop.permute.xlu0 %4579 }
 0x3c5   :  { %3066 = vrot.lane.b32.xlu1 %v3031_v15, %s8044_s17  ;;  %v11926_v25 = vsel %vm545_vm0, %v3332_v39, %v2143_v14  ;;  %v13693_v15 = vrot.slane %v14341_v55, 2  ;;  %v11938_v14 = vor.u32 %v2560_v16, %v2557_v44 }
 0x3c6   :  { %2338 = vrot.lane.b32.xlu0 %v11745_v20, %s8044_s17  ;;  %14347 = vst [vmem:[#allocation41_spill] sm:$0xff] %v11926_v25 }
 0x3c7   :  { %v4082_v17 = vpop.permute.xlu1 %4081 }
 0x3c8   :  { %v4788_v53 = vsel %vm3377_vm14, %v11926_v25, %v4082_v17  ;;  %v2068_v31 = vpop.permute.xlu0 %2067  ;;  %v14363_v25 = vld [vmem:[#allocation83_spill] sm:$0xff] }
 0x3c9   :  { %v4826_v30 = vsel %vm3414_vm15, %v4788_v53, %v4199_v57  ;;  %3190 = vrot.lane.b32.xlu1 %v3136_v48, %s8043_s14  ;;  %v3334_v20 = vsel %vm3304_vm10, %v14348_v11, %v2068_v31  ;;  %v14349_v53 = vrot.slane %v11058_v32, 2  ;;  %v2562_v48 = vsel %vm2455_vm12, %v11836_v45, %v11938_v14 }
 0x3ca   :  { %v4864_v39 = vsel %vm3451_vm13, %v4826_v30, %v4368_v60  ;;  %2436 = vrot.lane.b32.xlu0 %v11849_v18, %s8043_s14  ;;  %v11953_v44 = vsel %vm545_vm0, %v3334_v20, %v2145_v41  ;;  %v13692_v18 = vrot.slane %v11058_v32, 3 }
 0x3cb   :  { %v4902_v17 = vsel %vm3488_vm8, %v4864_v39, %v4580_v28  ;;  %v4201_v43 = vpop.permute.xlu1 %4200  ;;  %v11950_v57 = vsel %vm2280_vm7, %v14349_v53, %v13693_v15  ;;  %14350 = vst [vmem:[#allocation28_spill] sm:$0xff] %v11953_v44 }
 0x3cc   :  { %v4084_v16 = vpop.permute.xlu0 %4083  ;;  %v4940_v60 = vsel %vm3525_vm5, %v4902_v17, %v4659_v1 }
 0x3cd   :  { %3235 = vrot.lane.b32.xlu1 %v11950_v57, %s8046_s21  ;;  %v4790_v28 = vsel %vm3377_vm14, %v11953_v44, %v4084_v16  ;;  %v5232_v31 = vshrl.u32 %v4940_v60, 16  ;;  %v5235_v30 = vshll.u32 %v4940_v60, 16  ;;  %v14351_v16 = vrot.slane %v14328_v0, 2 }
 0x3ce   :  { %v4828_v41 = vsel %vm3414_vm15, %v4790_v28, %v4201_v43  ;;  %2646 = vrot.lane.b32.xlu0 %v2562_v48, %s8046_s21  ;;  %v14352_v43 = vrot.slane %v10899_v40, 3 }
 0x3cf   :  { %v4866_v1 = vsel %vm3451_vm13, %v4828_v41, %v11870_v59  ;;  %v4582_v20 = vpop.permute.xlu1 %4581  ;;  %v5234_v39 = vrot.slane %v5232_v31, 2  ;;  %v5237_v17 = vrot.slane %v5235_v30, 3  ;;  %v11974_v45 = vsel %vm2280_vm7, %v14351_v16, %v13691_v12  ;;  %v14354_v31 = vld [vmem:[#allocation151_spill] sm:$0xff]  ;;  %v14355_v41 = vld [vmem:[#allocation150_spill] sm:$0xff] }
 0x3d0   :  { %v4904_v53 = vsel %vm3488_vm8, %v4866_v1, %v4582_v20  ;;  %v11976_v60 = vpop.permute.xlu0 %3973  ;;  %v2688_v59 = vsel %vm14353_vm11, %v14352_v43, %v13692_v18  ;;  %v2208_v30 = vrot.slane %v14354_v31, 1  ;;  %v2209_v1 = vrot.slane %v14355_v41, 2  ;;  %vm14376_vm11 = vmmov %vm14361_vm4 }
 0x3d1   :  { %v4942_v28 = vsel %vm3525_vm5, %v4904_v53, %v11885_v9  ;;  %3288 = vrot.lane.b32.xlu1 %v11974_v45, %s8045_s18  ;;  %v5238_v48 = vor.u32 %v5237_v17, %v5234_v39  ;;  %v14356_v53 = vld [vmem:[#allocation176_spill] sm:$0xff]  ;;  %v14357_v39 = vld [vmem:[#allocation89_spill] sm:$0xff] }
 0x3d2   :  { %v5248_v20 = vshrl.u32 %v4942_v28, 16  ;;  %v5251_v16 = vshll.u32 %v4942_v28, 16  ;;  %2723 = vrot.lane.b32.xlu0 %v2688_v59, %s8045_s18  ;;  %v2942_v15 = vrot.slane %v14356_v53, 1  ;;  %v11998_v17 = vor.u32 %v2209_v1, %v2208_v30 }
 0x3d3   :  { %v11990_v12 = vpop.permute.xlu1 %4375  ;;  %v5239_v40 = vsel %vm2455_vm12, %v11883_v58, %v5238_v48  ;;  %v14358_v59 = vrot.slane %v14340_v47, 1  ;;  %v3138_v1 = vrot.slane %v14356_v53, 2 }
 0x3d4   :  { %v5250_v43 = vrot.slane %v5248_v20, 2  ;;  %v5253_v18 = vrot.slane %v5251_v16, 3  ;;  %5599 = vmatmul.mubr.bf16.gmra.mrb[40].mxu1 %v5239_v40  ;;  %v2147_v9 = vpop.permute.xlu0 %2146  ;;  %v14359_v16 = vld [vmem:[#allocation172_spill] sm:$0xff] }
 0x3d5   :  { %5606 = vmatprep.mubr.bf16.mxu1 %v14357_v39  ;;  %2851 = vrot.lane.b32.xlu1 %v14328_v0, %s8047_s24  ;;  %v2941_v58 = vor.u32 %v14358_v59, %v14342_v51  ;;  %v13696_v40 = vrot.slane %v14359_v16, 1  ;;  %v14360_v0 = vld [vmem:[#allocation175_spill] sm:$0xff]  ;;  %v14362_v59 = vrot.slane %v14341_v55, 1 }
 0x3d6   :  { %2890 = vrot.lane.b32.xlu0 %v14341_v55, %s8042_s13  ;;  %v12005_v28 = vor.u32 %v5253_v18, %v5250_v43  ;;  %v3137_v30 = vrot.slane %v14360_v0, 1  ;;  %v2211_v18 = vsel %vm14361_vm4, %v11894_v49, %v11998_v17  ;;  %v2566_v49 = vrot.slane %v14342_v51, 2 }
 0x3d7   :  { %v12007_v31 = vpop.permute.xlu1 %4666  ;;  %v2943_v41 = vsel %vm1890_vm6, %v2941_v58, %v2942_v15  ;;  %v3033_v58 = vsel %vm2078_vm1, %v14362_v59, %v13696_v40  ;;  %v13703_v40 = vrot.slane %v14348_v11, 2 }
 0x3d8   :  { %v12010_v20 = vpop.permute.xlu0 %4373  ;;  %v5255_v39 = vsel %vm2455_vm12, %v5238_v48, %v12005_v28  ;;  %v2569_v48 = vrot.slane %v14340_v47, 3 }
 0x3d9   :  { %2992 = vrot.lane.b32.xlu1 %v2943_v41, %s8048_s0  ;;  %v12029_v41 = vor.u32 %v3138_v1, %v3137_v30  ;;  %v13697_v30 = vrot.slane %v14359_v16, 2 }
 0x3da   :  { %2263 = vrot.lane.b32.xlu0 %v2211_v18, %s8048_s0 }
 0x3db   :  { %v4372_v43 = vpop.permute.xlu1 %4371  ;;  %v3140_v18 = vsel %vm14364_vm9, %v11918_v63, %v12029_v41  ;;  %vm14392_vm9 = vmmov %vm14368_vm3 }
 0x3dc   :  { %5607 = vmatmul.mubr.bf16.gmra.mrb[44].mxu1 %v5255_v39  ;;  %v12027_v44 = vpop.permute.xlu0 %4664 }
 0x3dd   :  { %5614 = vmatprep.mubr.bf16.mxu1 %v14363_v25  ;;  %3068 = vrot.lane.b32.xlu1 %v3033_v58, %s8044_s17  ;;  %v12044_v25 = vor.u32 %v2569_v48, %v2566_v49 }
 0x3de   :  { %2340 = vrot.lane.b32.xlu0 %v11868_v29, %s8044_s17  ;;  %v14365_v29 = vrot.slane %v14341_v55, 2 }
 0x3df   :  { %v4663_v39 = vpop.permute.xlu1 %4662  ;;  %v2571_v49 = vsel %vm2455_vm12, %v11938_v14, %v12044_v25  ;;  %v14367_v14 = vrot.slane %v11058_v32, 3  ;;  %v13708_v32 = vrot.slane %v14372_v5, 1 }
 0x3e0   :  { %v12040_v59 = vpop.permute.xlu0 %4206  ;;  %v12053_v58 = vsel %vm2280_vm7, %v14365_v29, %v13697_v30 }
 0x3e1   :  { %3192 = vrot.lane.b32.xlu1 %v3140_v18, %s8043_s14  ;;  %v14366_v18 = vrot.slane %v14345_v3, 2 }
 0x3e2   :  { %2438 = vrot.lane.b32.xlu0 %v11950_v57, %s8043_s14  ;;  %v13707_v57 = vrot.slane %v14341_v55, 3 }
 0x3e3   :  { %v2149_v1 = vpop.permute.xlu1 %2148  ;;  %v12070_v29 = vsel %vm2280_vm7, %v14366_v18, %v13703_v40  ;;  %v2944_v18 = vor.u32 %v2942_v15, %v14360_v0  ;;  %v14371_v40 = vld [vmem:[#allocation171_spill] sm:$0xff] }
 0x3e4   :  { %v12055_v63 = vpop.permute.xlu0 %4587  ;;  %v2690_v2 = vsel %vm14368_vm3, %v14367_v14, %v13707_v57  ;;  %v14375_v57 = vld [vmem:[#allocation177_spill] sm:$0xff]  ;;  %vm14405_vm3 = vmmov %vm14361_vm4 }
 0x3e5   :  { %3237 = vrot.lane.b32.xlu1 %v12053_v58, %s8046_s21 }
 0x3e6   :  { %2648 = vrot.lane.b32.xlu0 %v2571_v49, %s8046_s21  ;;  %v2212_v49 = vrot.slane %v14369_v61, 1 }
 0x3e7   :  { %v2070_v48 = vpop.permute.xlu1 %2069 }
 0x3e8   :  { %v4092_v30 = vpop.permute.xlu0 %4091  ;;  %v3336_v51 = vsel %vm3304_vm10, %v14371_v40, %v2070_v48  ;;  %v12088_v33 = vor.u32 %v2213_v62, %v2212_v49  ;;  %v3141_v62 = vrot.slane %v14375_v57, 1  ;;  %v3142_v49 = vrot.slane %v14372_v5, 2 }
 0x3e9   :  { %3290 = vrot.lane.b32.xlu1 %v12070_v29, %s8045_s18  ;;  %v12093_v4 = vsel %vm545_vm0, %v3336_v51, %v2147_v9 }
 0x3ea   :  { %2725 = vrot.lane.b32.xlu0 %v2690_v2, %s8045_s18  ;;  %14373 = vst [vmem:[#allocation98_spill] sm:$0xff] %v12093_v4  ;;  %v2946_v2 = vsel %vm1890_vm6, %v2944_v18, %v13708_v32  ;;  %v2215_v51 = vsel %vm14376_vm11, %v11998_v17, %v12088_v33  ;;  %v2575_v17 = vrot.slane %v14360_v0, 2  ;;  %v14383_v0 = vld [vmem:[#allocation43_spill] sm:$0xff]  ;;  %vm14412_vm11 = vmmov %vm14405_vm3 }
 0x3eb   :  { %v3953_v47 = vpop.permute.xlu1 %3952 }
 0x3ec   :  { %v4203_v36 = vpop.permute.xlu0 %4202 }
 0x3ed   :  { %2853 = vrot.lane.b32.xlu1 %v14345_v3, %s8047_s24  ;;  %v14374_v3 = vld [vmem:[#allocation174_spill] sm:$0xff] }
 0x3ee   :  { %2892 = vrot.lane.b32.xlu0 %v14359_v16, %s8042_s13  ;;  %v13710_v14 = vrot.slane %v14374_v3, 1 }
 0x3ef   :  { %v4086_v61 = vpop.permute.xlu1 %4085 }
 0x3f0   :  { %v4792_v15 = vsel %vm3377_vm14, %v12093_v4, %v4086_v61  ;;  %v4584_v48 = vpop.permute.xlu0 %4583  ;;  %v12119_v4 = vor.u32 %v3142_v49, %v3141_v62 }
 0x3f1   :  { %v4830_v42 = vsel %vm3414_vm15, %v4792_v15, %v4203_v36  ;;  %2994 = vrot.lane.b32.xlu1 %v2946_v2, %s8048_s0  ;;  %v14377_v36 = vrot.slane %v14359_v16, 1 }
 0x3f2   :  { %v4868_v9 = vsel %vm3451_vm13, %v4830_v42, %v4372_v43  ;;  %2265 = vrot.lane.b32.xlu0 %v2215_v51, %s8048_s0  ;;  %v14378_v51 = vld [vmem:[#allocation10_spill] sm:$0xff] }
 0x3f3   :  { %v4906_v18 = vsel %vm3488_vm8, %v4868_v9, %v4584_v48  ;;  %v12111_v61 = vpop.permute.xlu1 %2845  ;;  %v3035_v2 = vsel %vm2078_vm1, %v14377_v36, %v13710_v14  ;;  %v14379_v9 = vld [vmem:[#allocation14_spill] sm:$0xff]  ;;  %v13716_v14 = vrot.slane %v14374_v3, 2 }
 0x3f4   :  { %v4944_v32 = vsel %vm3525_vm5, %v4906_v18, %v4663_v39  ;;  %v2072_v15 = vpop.permute.xlu0 %2071  ;;  %v2578_v39 = vrot.slane %v14356_v53, 3  ;;  %v4750_v18 = vsel %vm3304_vm10, %v14379_v9, %v14378_v51 }
 0x3f5   :  { %v5264_v42 = vshrl.u32 %v4944_v32, 16  ;;  %v5267_v43 = vshll.u32 %v4944_v32, 16  ;;  %3070 = vrot.lane.b32.xlu1 %v3035_v2, %s8044_s17  ;;  %v3338_v48 = vsel %vm3304_vm10, %v11369_v21, %v2072_v15  ;;  %v3144_v32 = vsel %vm14361_vm4, %v12029_v41, %v12119_v4  ;;  %vm14421_vm4 = vmmov %vm14392_vm9 }
 0x3f6   :  { %2342 = vrot.lane.b32.xlu0 %v11974_v45, %s8044_s17  ;;  %v12135_v2 = vsel %vm545_vm0, %v3338_v48, %v2149_v1  ;;  %v12141_v51 = vor.u32 %v2578_v39, %v2575_v17  ;;  %v4760_v41 = vsel %vm545_vm0, %v4750_v18, %v14383_v0  ;;  %v13714_v39 = vrot.slane %v14371_v40, 2 }
 0x3f7   :  { %v5266_v62 = vrot.slane %v5264_v42, 2  ;;  %v5269_v49 = vrot.slane %v5267_v43, 3  ;;  %v4205_v36 = vpop.permute.xlu1 %4204  ;;  %14380 = vst [vmem:[#allocation40_spill] sm:$0xff] %v12135_v2  ;;  %v14381_v42 = vld [vmem:[#allocation65_spill] sm:$0xff]  ;;  %v14382_v43 = vld [vmem:[#allocation15_spill] sm:$0xff]  ;;  %v4798_v48 = vsel %vm3377_vm14, %v4760_v41, %v4092_v30  ;;  %v13713_v18 = vrot.slane %v14359_v16, 3 }
 0x3f8   :  { %v4088_v15 = vpop.permute.xlu0 %4087  ;;  %v4752_v9 = vsel %vm3304_vm10, %v14382_v43, %v14381_v42  ;;  %v14423_v43 = vld [vmem:[#allocation61_spill] sm:$0xff] }
 0x3f9   :  { %3194 = vrot.lane.b32.xlu1 %v3144_v32, %s8043_s14  ;;  %v4794_v45 = vsel %vm3377_vm14, %v12135_v2, %v4088_v15  ;;  %v5270_v53 = vor.u32 %v5269_v49, %v5266_v62  ;;  %v14384_v49 = vld [vmem:[#allocation182_spill] sm:$0xff] }
 0x3fa   :  { %v4832_v1 = vsel %vm3414_vm15, %v4794_v45, %v4205_v36  ;;  %2440 = vrot.lane.b32.xlu0 %v12053_v58, %s8043_s14  ;;  %v4748_v15 = vsel %vm3304_vm10, %v14384_v49, %v3953_v47  ;;  %v14385_v58 = vrot.slane %v14359_v16, 2  ;;  %v14386_v47 = vld [vmem:[#allocation135_spill] sm:$0xff]  ;;  %v2580_v36 = vsel %vm2455_vm12, %v12044_v25, %v12141_v51  ;;  %v14387_v45 = vld [vmem:[#allocation44_spill] sm:$0xff] }
 0x3fb   :  { %v4870_v32 = vsel %vm3451_vm13, %v4832_v1, %v12010_v20  ;;  %v4586_v62 = vpop.permute.xlu1 %4585  ;;  %v5271_v17 = vsel %vm2455_vm12, %v12005_v28, %v5270_v53  ;;  %v4836_v42 = vsel %vm3414_vm15, %v4798_v48, %v14387_v45  ;;  %v14390_v25 = vrot.slane %v14348_v11, 2 }
 0x3fc   :  { %v4908_v0 = vsel %vm3488_vm8, %v4870_v32, %v4586_v62  ;;  %v12165_v30 = vsel %vm2280_vm7, %v14385_v58, %v13716_v14  ;;  %5615 = vmatmul.mubr.bf16.gmra.mrb[48].mxu1 %v5271_v17  ;;  %v12167_v20 = vpop.permute.xlu0 %2717  ;;  %v14388_v32 = vld [vmem:[#allocation64_spill] sm:$0xff]  ;;  %v14389_v17 = vld [vmem:[#allocation49_spill] sm:$0xff]  ;;  %v4758_v58 = vsel %vm545_vm0, %v4748_v15, %v11976_v60  ;;  %v14393_v15 = vld [vmem:[#allocation63_spill] sm:$0xff] }
 0x3fd   :  { %v4946_v28 = vsel %vm3525_vm5, %v4908_v0, %v12027_v44  ;;  %3239 = vrot.lane.b32.xlu1 %v12165_v30, %s8046_s21  ;;  %5622 = vmatprep.mubr.bf16.mxu1 %v14386_v47  ;;  %v4762_v62 = vsel %vm545_vm0, %v4752_v9, %v14388_v32  ;;  %v8015_v44 = vld [vmem:[#allocation2 + $0xa0] ss:$0 sps:$4 sm:$0x77]   ;;  %v12192_v48 = vsel %vm2280_vm7, %v14390_v25, %v13714_v39  ;;  %v14391_v32 = vrot.slane %v14341_v55, 3 }
 0x3fe   :  { %v5280_v41 = vshrl.u32 %v4946_v28, 16  ;;  %v5283_v1 = vshll.u32 %v4946_v28, 16  ;;  %2650 = vrot.lane.b32.xlu0 %v2580_v36, %s8046_s21  ;;  %v4754_v0 = vsel %vm3304_vm10, %v8015_v44, %v14389_v17  ;;  %v4874_v44 = vsel %vm3451_vm13, %v4836_v42, %v14393_v15  ;;  %v14397_v42 = vld [vmem:[#allocation68_spill] sm:$0xff] }
 0x3ff   :  { %v4090_v47 = vpop.permute.xlu1 %4089  ;;  %v2692_v60 = vsel %vm14392_vm9, %v14391_v32, %v13713_v18  ;;  %v14396_v32 = vld [vmem:[#allocation66_spill] sm:$0xff]  ;;  %v4764_v15 = vsel %vm545_vm0, %v4754_v0, %v14397_v42  ;;  %v14403_v42 = vld [vmem:[#allocation9_spill] sm:$0xff]  ;;  %vm14432_vm9 = vmmov %vm14405_vm3 }
 0x400   :  { %v5282_v28 = vrot.slane %v5280_v41, 2  ;;  %v5285_v36 = vrot.slane %v5283_v1, 3  ;;  %v4796_v45 = vsel %vm3377_vm14, %v4758_v58, %v4090_v47  ;;  %v12195_v9 = vpop.permute.xlu0 %2884  ;;  %v14394_v41 = vld [vmem:[#allocation169_spill] sm:$0xff]  ;;  %v14395_v58 = vld [vmem:[#allocation168_spill] sm:$0xff]  ;;  %v4800_v18 = vsel %vm3377_vm14, %v4762_v62, %v14396_v32 }
 0x401   :  { %v4834_v17 = vsel %vm3414_vm15, %v4796_v45, %v12040_v59  ;;  %3292 = vrot.lane.b32.xlu1 %v12192_v48, %s8045_s18  ;;  %v2216_v1 = vrot.slane %v14394_v41, 1  ;;  %v2217_v47 = vrot.slane %v14395_v58, 2  ;;  %v14398_v41 = vld [vmem:[#allocation45_spill] sm:$0xff] }
 0x402   :  { %v4872_v25 = vsel %vm3451_vm13, %v4834_v17, %v11990_v12  ;;  %2727 = vrot.lane.b32.xlu0 %v2692_v60, %s8045_s18  ;;  %v5286_v55 = vor.u32 %v5285_v36, %v5282_v28  ;;  %v4912_v58 = vsel %vm3488_vm8, %v4874_v44, %v14398_v41  ;;  %v13715_v28 = vrot.slane %v11523_v37, 1  ;;  %v14399_v60 = vld [vmem:[#allocation11_spill] sm:$0xff] }
 0x403   :  { %v4910_v59 = vsel %vm3488_vm8, %v4872_v25, %v12055_v63  ;;  %v12219_v45 = vpop.permute.xlu1 %2986  ;;  %v12231_v0 = vor.u32 %v2217_v47, %v2216_v1  ;;  %v4838_v44 = vsel %vm3414_vm15, %v4800_v18, %v14399_v60  ;;  %v14401_v25 = vld [vmem:[#allocation27_spill] sm:$0xff]  ;;  %v3146_v60 = vrot.slane %v11523_v37, 2 }
 0x404   :  { %v12223_v39 = vpop.permute.xlu0 %2257  ;;  %v5287_v12 = vsel %vm2455_vm12, %v5270_v53, %v5286_v55  ;;  %v4948_v62 = vsel %vm3525_vm5, %v4910_v59, %v12007_v31  ;;  %v14400_v53 = vrot.slane %v14372_v5, 1  ;;  %v14402_v31 = vld [vmem:[#allocation69_spill] sm:$0xff]  ;;  %v4950_v59 = vsel %vm3525_vm5, %v4912_v58, %v14403_v42 }
 0x405   :  { %2855 = vrot.lane.b32.xlu1 %v14348_v11, %s8047_s24  ;;  %5623 = vmatmul.mubr.bf16.gmra.mrb[52].mxu1 %v5287_v12  ;;  %v5296_v63 = vshrl.u32 %v4948_v62, 16  ;;  %v5299_v36 = vshll.u32 %v4948_v62, 16  ;;  %v4802_v11 = vsel %vm3377_vm14, %v4764_v15, %v14402_v31  ;;  %v13717_v12 = vrot.slane %v11460_v35, 1  ;;  %v14404_v15 = vld [vmem:[#allocation12_spill] sm:$0xff] }
 0x406   :  { %2894 = vrot.lane.b32.xlu0 %v14374_v3, %s8042_s13  ;;  %v2947_v17 = vor.u32 %v14400_v53, %v14375_v57  ;;  %5630 = vmatprep.mubr.bf16.mxu1 %v14401_v25  ;;  %v3145_v62 = vrot.slane %v11520_v22, 1  ;;  %v4876_v53 = vsel %vm3451_vm13, %v4838_v44, %v14404_v15  ;;  %v2219_v58 = vsel %vm14405_vm3, %v12088_v33, %v12231_v0  ;;  %v14406_v25 = vld [vmem:[#allocation70_spill] sm:$0xff] }
 0x407   :  { %v12243_v32 = vpop.permute.xlu1 %3062  ;;  %v5298_v1 = vrot.slane %v5296_v63, 2  ;;  %v5301_v47 = vrot.slane %v5299_v36, 3  ;;  %v5312_v36 = vshrl.u32 %v4950_v59, 16  ;;  %v4840_v31 = vsel %vm3414_vm15, %v4802_v11, %v14406_v25 }
 0x408   :  { %v2949_v18 = vsel %vm1890_vm6, %v2947_v17, %v13715_v28  ;;  %v12250_v41 = vpop.permute.xlu0 %2334  ;;  %v5315_v17 = vshll.u32 %v4950_v59, 16  ;;  %v14407_v28 = vld [vmem:[#allocation48_spill] sm:$0xff]  ;;  %v14408_v44 = vrot.slane %v14374_v3, 1  ;;  %v2584_v11 = vrot.slane %v14375_v57, 2 }
 0x409   :  { %2996 = vrot.lane.b32.xlu1 %v2949_v18, %s8048_s0  ;;  %v5302_v63 = vor.u32 %v5301_v47, %v5298_v1  ;;  %v4914_v14 = vsel %vm3488_vm8, %v4876_v53, %v14407_v28  ;;  %v12276_v47 = vor.u32 %v3146_v60, %v3145_v62  ;;  %v2587_v59 = vrot.slane %v14372_v5, 3  ;;  %v14409_v28 = vld [vmem:[#allocation18_spill] sm:$0xff]  ;;  %v14410_v53 = vld [vmem:[#allocation140_spill] sm:$0xff] }
 0x40a   :  { %2267 = vrot.lane.b32.xlu0 %v2219_v58, %s8048_s0  ;;  %v3037_v18 = vsel %vm2078_vm1, %v14408_v44, %v13717_v12  ;;  %v4878_v15 = vsel %vm3451_vm13, %v4840_v31, %v14409_v28  ;;  %v5314_v58 = vrot.slane %v5312_v36, 2  ;;  %v5317_v25 = vrot.slane %v5315_v17, 3 }
 0x40b   :  { %v12264_v42 = vpop.permute.xlu1 %3186  ;;  %v5303_v1 = vsel %vm2455_vm12, %v5286_v55, %v5302_v63  ;;  %v14411_v55 = vld [vmem:[#allocation13_spill] sm:$0xff]  ;;  %v3148_v44 = vsel %vm14412_vm11, %v12119_v4, %v12276_v47  ;;  %v13719_v31 = vrot.slane %v11460_v35, 2  ;;  %v12299_v36 = vor.u32 %v2587_v59, %v2584_v11  ;;  %v14414_v4 = vld [vmem:[#allocation71_spill] sm:$0xff]  ;;  %vm14474_vm11 = vmmov %vm14421_vm4 }
 0x40c   :  { %v12273_v33 = vpop.permute.xlu0 %2432  ;;  %v4952_v62 = vsel %vm3525_vm5, %v4914_v14, %v14411_v55  ;;  %v5318_v14 = vor.u32 %v5317_v25, %v5314_v58  ;;  %v14415_v12 = vrot.slane %v14374_v3, 2  ;;  %v13724_v58 = vrot.slane %v14374_v3, 3 }
 0x40d   :  { %3072 = vrot.lane.b32.xlu1 %v3037_v18, %s8044_s17  ;;  %5631 = vmatmul.mubr.bf16.gmra.mrb[56].mxu1 %v5303_v1  ;;  %v14413_v1 = vld [vmem:[#allocation51_spill] sm:$0xff]  ;;  %v5328_v17 = vshrl.u32 %v4952_v62, 16  ;;  %v5331_v28 = vshll.u32 %v4952_v62, 16  ;;  %v13718_v62 = vrot.slane %v11369_v21, 2 }
 0x40e   :  { %2344 = vrot.lane.b32.xlu0 %v12070_v29, %s8044_s17  ;;  %5638 = vmatprep.mubr.bf16.mxu1 %v14410_v53  ;;  %v4916_v29 = vsel %vm3488_vm8, %v4878_v15, %v14413_v1  ;;  %v12312_v15 = vsel %vm2280_vm7, %v14415_v12, %v13719_v31  ;;  %v5319_v59 = vsel %vm2455_vm12, %v5302_v63, %v5318_v14  ;;  %v14422_v31 = vld [vmem:[#allocation22_spill] sm:$0xff] }
 0x40f   :  { %v12288_v60 = vpop.permute.xlu1 %3231  ;;  %v4954_v55 = vsel %vm3525_vm5, %v4916_v29, %v14414_v4  ;;  %v5330_v25 = vrot.slane %v5328_v17, 2  ;;  %v14416_v29 = vrot.slane %v14371_v40, 2  ;;  %v14419_v17 = vld [vmem:[#allocation46_spill] sm:$0xff] }
 0x410   :  { %v12293_v18 = vpop.permute.xlu0 %2642  ;;  %v5344_v12 = vshrl.u32 %v4954_v55, 16  ;;  %v5347_v63 = vshll.u32 %v4954_v55, 16 }
 0x411   :  { %3196 = vrot.lane.b32.xlu1 %v3148_v44, %s8043_s14  ;;  %v5333_v44 = vrot.slane %v5331_v28, 3  ;;  %v12333_v4 = vsel %vm2280_vm7, %v14416_v29, %v13718_v62  ;;  %v2221_v29 = vrot.slane %v11287_v6, 2  ;;  %v14424_v6 = vrot.slane %v11523_v37, 1 }
 0x412   :  { %2442 = vrot.lane.b32.xlu0 %v12165_v30, %s8043_s14  ;;  %v2589_v30 = vsel %vm2455_vm12, %v12141_v51, %v12299_v36  ;;  %14417 = vst [vmem:[#allocation147_spill] sm:$0xff] %v12333_v4 }
 0x413   :  { %v12303_v53 = vpop.permute.xlu1 %3284  ;;  %v5334_v62 = vor.u32 %v5333_v44, %v5330_v25  ;;  %v14426_v25 = vld [vmem:[#allocation77_spill] sm:$0xff] }
 0x414   :  { %v12314_v11 = vpop.permute.xlu0 %2719 }
 0x415   :  { %3241 = vrot.lane.b32.xlu1 %v12312_v15, %s8046_s21  ;;  %5639 = vmatmul.mubr.bf16.gmra.mrb[60].mxu1 %v5319_v59  ;;  %v14418_v59 = vld [vmem:[#allocation19_spill] sm:$0xff] }
 0x416   :  { %2652 = vrot.lane.b32.xlu0 %v2589_v30, %s8046_s21  ;;  %5644 = vmatprep.mubr.bf16.mxu1 %v11774_v56  ;;  %v3582_v28 = vsel %vm3304_vm10, %v14419_v17, %v14418_v59  ;;  %v14420_v56 = vrot.slane %v14359_v16, 3  ;;  %v2220_v30 = vrot.slane %v11290_v27, 1  ;;  %v5346_v59 = vrot.slane %v5344_v12, 2  ;;  %v14428_v12 = vld [vmem:[#allocation81_spill] sm:$0xff] }
 0x417   :  { %v12326_v1 = vpop.permute.xlu1 %2847  ;;  %v3635_v2 = vsel %vm545_vm0, %v3582_v28, %v14422_v31  ;;  %v5349_v17 = vrot.slane %v5347_v63, 3  ;;  %v2950_v27 = vor.u32 %v14424_v6, %v11520_v22  ;;  %v14429_v28 = vld [vmem:[#allocation86_spill] sm:$0xff] }
 0x418   :  { %v12335_v51 = vpop.permute.xlu0 %2886  ;;  %v2694_v55 = vsel %vm14421_vm4, %v14420_v56, %v13724_v58  ;;  %v5335_v56 = vsel %vm2455_vm12, %v5318_v14, %v5334_v62  ;;  %v12364_v31 = vor.u32 %v2221_v29, %v2220_v30  ;;  %v14427_v14 = vld [vmem:[#allocation72_spill] sm:$0xff]  ;;  %v14436_v58 = vld [vmem:[#allocation23_spill] sm:$0xff]  ;;  %vm14546_vm4 = vsmask.f32 4352 }
 0x419   :  { %3294 = vrot.lane.b32.xlu1 %v12333_v4, %s8045_s18  ;;  %v3671_v4 = vsel %vm3377_vm14, %v3635_v2, %v14423_v43  ;;  %v13723_v2 = vrot.slane %v11575_v10, 1  ;;  %v5350_v43 = vor.u32 %v5349_v17, %v5346_v59  ;;  %v3306_v63 = vsel %vm3304_vm10, %v14428_v12, %v14427_v14  ;;  %v14430_v17 = vld [vmem:[#allocation73_spill] sm:$0xff]  ;;  %v14434_v14 = vld [vmem:[#allocation55_spill] sm:$0xff] }
 0x41a   :  { %2729 = vrot.lane.b32.xlu0 %v2694_v55, %s8045_s18  ;;  %14425 = vst [vmem:[#allocation138_spill] sm:$0xff] %v12364_v31  ;;  %v3707_v44 = vsel %vm3414_vm15, %v3671_v4, %v14426_v25  ;;  %v3150_v59 = vrot.slane %v11575_v10, 2  ;;  %v2223_v25 = vsel %vm14432_vm9, %v12231_v0, %v12364_v31  ;;  %v14438_v0 = vld [vmem:[#allocation100_spill] sm:$0xff]  ;;  %v14509_v31 = vld [vmem:[#allocation99_spill] sm:$0xff]  ;;  %vm14552_vm9 = vmmov %vm14546_vm4 }
 0x41b   :  { %v12354_v5 = vpop.permute.xlu1 %2988  ;;  %v2952_v4 = vsel %vm1890_vm6, %v2950_v27, %v13723_v2  ;;  %v14439_v10 = vld [vmem:[#allocation80_spill] sm:$0xff] }
 0x41c   :  { %v12356_v16 = vpop.permute.xlu0 %2259 }
 0x41d   :  { %2857 = vrot.lane.b32.xlu1 %v14371_v40, %s8047_s24  ;;  %5645 = vmatmul.mubr.bf16.gmra.mrb[64].mxu1 %v5335_v56  ;;  %v3743_v40 = vsel %vm3451_vm13, %v3707_v44, %v14429_v28  ;;  %v14431_v56 = vld [vmem:[#allocation47_spill] sm:$0xff]  ;;  %v14433_v44 = vld [vmem:[#allocation52_spill] sm:$0xff]  ;;  %v14435_v28 = vld [vmem:[#allocation78_spill] sm:$0xff] }
 0x41e   :  { %2896 = vrot.lane.b32.xlu0 %v11460_v35, %s8042_s13  ;;  %5650 = vmatprep.mubr.bf16.mxu1 %v11822_v26  ;;  %v3149_v26 = vrot.slane %v11572_v46, 1  ;;  %v3585_v6 = vsel %vm3304_vm10, %v14431_v56, %v14430_v17  ;;  %v3342_v27 = vsel %vm545_vm0, %v3306_v63, %v14433_v44  ;;  %v3779_v2 = vsel %vm3488_vm8, %v3743_v40, %v14435_v28  ;;  %v14437_v56 = vld [vmem:[#allocation119_spill] sm:$0xff] }
 0x41f   :  { %v12377_v55 = vpop.permute.xlu1 %3064  ;;  %v3637_v12 = vsel %vm545_vm0, %v3585_v6, %v14434_v14  ;;  %v3379_v17 = vsel %vm3377_vm14, %v3342_v27, %v14436_v58  ;;  %v3308_v63 = vsel %vm3304_vm10, %v14439_v10, %v14438_v0  ;;  %v14440_v44 = vrot.slane %v11534_v7, 1  ;;  %v14443_v27 = vld [vmem:[#allocation60_spill] sm:$0xff] }
 0x420   :  { %v12382_v30 = vpop.permute.xlu0 %2336  ;;  %v14441_v6 = vrot.slane %v11460_v35, 1  ;;  %v5351_v40 = vsel %vm2455_vm12, %v5334_v62, %v5350_v43  ;;  %v12418_v58 = vor.u32 %v3150_v59, %v3149_v26  ;;  %v2593_v10 = vrot.slane %v11520_v22, 2  ;;  %v7958_v62 = vld [vmem:[%s13458_s3 + $0x40] sm:$0xff]  }
 0x421   :  { %2998 = vrot.lane.b32.xlu1 %v2952_v4, %s8048_s0  ;;  %v3673_v4 = vsel %vm3377_vm14, %v3637_v12, %v14437_v56  ;;  %v3815_v12 = vsel %vm3525_vm5, %v3779_v2, %v14443_v27  ;;  %v2596_v28 = vrot.slane %v11523_v37, 3  ;;  %v14444_v56 = vld [vmem:[#allocation106_spill] sm:$0xff]  ;;  %v7959_v43 = vld [vmem:[%s13458_s3] sm:$0xff]   ;;  %7502 = vmatprep.subr.bf16.mxu0 %v7958_v62 }
 0x422   :  { %2269 = vrot.lane.b32.xlu0 %v2223_v25, %s8048_s0  ;;  %v3039_v25 = vsel %vm2078_vm1, %v14441_v6, %v14440_v44  ;;  %14442 = vst [vmem:[#allocation103_spill] sm:$0xff] %v12418_v58  ;;  %v3709_v0 = vsel %vm3414_vm15, %v3673_v4, %v14444_v56  ;;  %v14445_v2 = vld [vmem:[#allocation20_spill] sm:$0xff]  ;;  %v14446_v59 = vld [vmem:[#allocation37_spill] sm:$0xff]  ;;  %v3152_v56 = vsel %vm14405_vm3, %v12276_v47, %v12418_v58  ;;  %v14479_v58 = vld [vmem:[#allocation115_spill] sm:$0xff] }
 0x423   :  { %v12405_v29 = vpop.permute.xlu1 %3188  ;;  %v3416_v26 = vsel %vm3414_vm15, %v3379_v17, %v14445_v2  ;;  %v3344_v44 = vsel %vm545_vm0, %v3308_v63, %v14446_v59  ;;  %v14447_v6 = vld [vmem:[#allocation125_spill] sm:$0xff]  ;;  %v13729_v17 = vrot.slane %v11534_v7, 2  ;;  %v14451_v2 = vld [vmem:[#allocation67_spill] sm:$0xff]  ;;  %7503 = vmatpush3.bf16.msra.mxu0 %v7959_v43  ;;  %v14459_v43 = vrot.slane %v11460_v35, 2  ;;  %v14502_v7 = vld [vmem:[#allocation102_spill] sm:$0xff] }
 0x424   :  { %v12415_v14 = vpop.permute.xlu0 %2434  ;;  %v3745_v4 = vsel %vm3451_vm13, %v3709_v0, %v14447_v6  ;;  %v14449_v27 = vld [vmem:[#allocation109_spill] sm:$0xff]  ;;  %v14452_v59 = vld [vmem:[#allocation107_spill] sm:$0xff]  ;;  %vm14557_vm3 = vmmov %vm14546_vm4 }
 0x425   :  { %3074 = vrot.lane.b32.xlu1 %v3039_v25, %s8044_s17  ;;  %5651 = vmatmul.mubr.bf16.gmra.mrb[68].mxu1 %v5351_v40  ;;  %v14450_v63 = vld [vmem:[#allocation53_spill] sm:$0xff] }
 0x426   :  { %2346 = vrot.lane.b32.xlu0 %v12192_v48, %s8044_s17  ;;  %5785 = vmatprep.mubr.bf16.mxu1 %v3815_v12  ;;  %v14448_v48 = vld [vmem:[#allocation76_spill] sm:$0xff]  ;;  %v3381_v12 = vsel %vm3377_vm14, %v3344_v44, %v14449_v27  ;;  %v3588_v0 = vsel %vm3304_vm10, %v14451_v2, %v14450_v63  ;;  %v14456_v27 = vld [vmem:[#allocation39_spill] sm:$0xff] }
 0x427   :  { %v12441_v25 = vpop.permute.xlu1 %3233  ;;  %v3453_v40 = vsel %vm3451_vm13, %v3416_v26, %v14448_v48  ;;  %v12459_v26 = vor.u32 %v2596_v28, %v2593_v10  ;;  %v14454_v44 = vld [vmem:[#allocation92_spill] sm:$0xff]  ;;  %v3418_v63 = vsel %vm3414_vm15, %v3381_v12, %v14456_v27  ;;  %v14457_v2 = vld [vmem:[#allocation127_spill] sm:$0xff] }
 0x428   :  { %v12450_v46 = vpop.permute.xlu0 %2644  ;;  %v3490_v6 = vsel %vm3488_vm8, %v3453_v40, %v14452_v59  ;;  %v3639_v47 = vsel %vm545_vm0, %v3588_v0, %v14454_v44  ;;  %v14455_v48 = vld [vmem:[#allocation108_spill] sm:$0xff]  ;;  %v14458_v10 = vld [vmem:[#allocation35_spill] sm:$0xff]  ;;  %v14462_v0 = vld [vmem:[#allocation110_spill] sm:$0xff]  ;;  %v13735_v44 = vrot.slane %v11460_v35, 3 }
 0x429   :  { %3198 = vrot.lane.b32.xlu1 %v3152_v56, %s8043_s14  ;;  %14453 = vst [vmem:[#allocation143_spill] sm:$0xff] %v12459_v26  ;;  %v3781_v62 = vsel %vm3488_vm8, %v3745_v4, %v14455_v48  ;;  %v3675_v40 = vsel %vm3377_vm14, %v3639_v47, %v14457_v2  ;;  %v3527_v28 = vsel %vm3525_vm5, %v3490_v6, %v14458_v10  ;;  %v12485_v4 = vrot.slane %v14384_v49, 2  ;;  %v14463_v47 = vld [vmem:[#allocation84_spill] sm:$0xff]  ;;  %v14465_v10 = vld [vmem:[#allocation130_spill] sm:$0xff] }
 0x42a   :  { %2444 = vrot.lane.b32.xlu0 %v12312_v15, %s8043_s14  ;;  %v12480_v15 = vsel %vm2280_vm7, %v14459_v43, %v13729_v17  ;;  %v2598_v12 = vsel %vm2455_vm12, %v12299_v36, %v12459_v26  ;;  %v3818_v6 = vsel %vm3525_vm5, %v3781_v62, %v14462_v0  ;;  %v3455_v48 = vsel %vm3451_vm13, %v3418_v63, %v14463_v47  ;;  %v14464_v27 = vld [vmem:[#allocation112_spill] sm:$0xff]  ;;  %v14466_v36 = vld [vmem:[#allocation113_spill] sm:$0xff]  ;;  %v14467_v17 = vld [vmem:[#allocation6_spill] sm:$0xff] }
 0x42b   :  { %v12471_v59 = vpop.permute.xlu1 %3286  ;;  %14460 = vst [vmem:[#allocation142_spill] sm:$0xff] %v12480_v15  ;;  %14461 = vst [vmem:[#allocation153_spill] sm:$0xff] %v12485_v4  ;;  %v3711_v2 = vsel %vm3414_vm15, %v3675_v40, %v14464_v27  ;;  %v3310_v62 = vsel %vm3304_vm10, %v14467_v17, %v14466_v36  ;;  %v14468_v0 = vrot.slane %v11369_v21, 2  ;;  %v14470_v40 = vld [vmem:[#allocation96_spill] sm:$0xff]  ;;  %v14472_v27 = vld [vmem:[#allocation111_spill] sm:$0xff]  ;;  %v14473_v17 = vrot.slane %v14374_v3, 3 }
 0x42c   :  { %v12482_v56 = vpop.permute.xlu0 %2721  ;;  %v14475_v36 = vld [vmem:[#allocation117_spill] sm:$0xff]  ;;  %v14476_v49 = vld [vmem:[#allocation114_spill] sm:$0xff] }
 0x42d   :  { %3243 = vrot.lane.b32.xlu1 %v12480_v15, %s8046_s21  ;;  %5786 = vmatmul.mubr.bf16.vlgmr.msra.gmra.mrb[0].mxu1 %v3527_v28  ;;  %v3747_v28 = vsel %vm3451_vm13, %v3711_v2, %v14465_v10  ;;  %v12511_v63 = vsel %vm2280_vm7, %v14468_v0, %v12485_v4  ;;  %v3492_v2 = vsel %vm3488_vm8, %v3455_v48, %v14472_v27  ;;  %v14478_v27 = vld [vmem:[#allocation136_spill] sm:$0xff]  ;;  %v14494_v26 = vld [vmem:[#allocation146_spill] sm:$0xff] }
 0x42e   :  { %2654 = vrot.lane.b32.xlu0 %v2598_v12, %s8046_s21  ;;  %5793 = vmatprep.mubr.bf16.mxu1 %v3818_v6  ;;  %14469 = vst [vmem:[#allocation62_spill] sm:$0xff] %v12511_v63  ;;  %v14471_v12 = vld [vmem:[#allocation17_spill] sm:$0xff]  ;;  %v2696_v10 = vsel %vm14474_vm11, %v14473_v17, %v13735_v44  ;;  %v14480_v44 = vld [vmem:[#allocation87_spill] sm:$0xff]  ;;  %vm14561_vm11 = vmmov %vm14557_vm3 }
 0x42f   :  { %v12502_v43 = vpop.permute.xlu1 %2849  ;;  %v3591_v6 = vsel %vm3304_vm10, %v14471_v12, %v14470_v40  ;;  %v3783_v40 = vsel %vm3488_vm8, %v3747_v28, %v14476_v49  ;;  %v14477_v12 = vld [vmem:[#allocation91_spill] sm:$0xff] }
 0x430   :  { %v12513_v47 = vpop.permute.xlu0 %2888  ;;  %v3641_v0 = vsel %vm545_vm0, %v3591_v6, %v14475_v36  ;;  %v3346_v48 = vsel %vm545_vm0, %v3310_v62, %v14477_v12  ;;  %v3530_v6 = vsel %vm3525_vm5, %v3492_v2, %v14480_v44  ;;  %v14482_v28 = vld [vmem:[#allocation131_spill] sm:$0xff]  ;;  %v14483_v36 = vld [vmem:[#allocation93_spill] sm:$0xff]  ;;  %v14487_v2 = vld [vmem:[#allocation56_spill] sm:$0xff] }
 0x431   :  { %3296 = vrot.lane.b32.xlu1 %v12511_v63, %s8045_s18  ;;  %v3677_v4 = vsel %vm3377_vm14, %v3641_v0, %v14478_v27  ;;  %v3383_v3 = vsel %vm3377_vm14, %v3346_v48, %v14479_v58  ;;  %v14484_v12 = vld [vmem:[#allocation7_spill] sm:$0xff]  ;;  %v14485_v48 = vld [vmem:[#allocation120_spill] sm:$0xff]  ;;  %v14486_v44 = vld [vmem:[#allocation105_spill] sm:$0xff] }
 0x432   :  { %2731 = vrot.lane.b32.xlu0 %v2696_v10, %s8045_s18  ;;  %v14481_v10 = vld [vmem:[#allocation116_spill] sm:$0xff]  ;;  %v3713_v62 = vsel %vm3414_vm15, %v3677_v4, %v14482_v28  ;;  %v3420_v0 = vsel %vm3414_vm15, %v3383_v3, %v14483_v36  ;;  %v14489_v4 = vld [vmem:[#allocation50_spill] sm:$0xff] }
 0x433   :  { %v12536_v63 = vpop.permute.xlu1 %2990  ;;  %v3821_v49 = vsel %vm3525_vm5, %v3783_v40, %v14481_v10  ;;  %v3749_v27 = vsel %vm3451_vm13, %v3713_v62, %v14484_v12  ;;  %v3457_v35 = vsel %vm3451_vm13, %v3420_v0, %v14485_v48  ;;  %v14488_v10 = vld [vmem:[#allocation90_spill] sm:$0xff]  ;;  %v14490_v28 = vld [vmem:[#allocation8_spill] sm:$0xff]  ;;  %v14492_v12 = vld [vmem:[#allocation79_spill] sm:$0xff] }
 0x434   :  { %v12540_v17 = vpop.permute.xlu0 %2261  ;;  %v3494_v3 = vsel %vm3488_vm8, %v3457_v35, %v14490_v28  ;;  %v14491_v36 = vld [vmem:[#allocation88_spill] sm:$0xff]  ;;  %v3785_v21 = vsel %vm3488_vm8, %v3749_v27, %v14492_v12  ;;  %v14493_v0 = vld [vmem:[#allocation54_spill] sm:$0xff] }
 0x435   :  { %5794 = vmatmul.mubr.bf16.gmra.mrb[4].mxu1 %v3530_v6  ;;  %v3385_v6 = vsel %vm3377_vm14, %v14487_v2, %v14486_v44  ;;  %v14497_v35 = vld [vmem:[#allocation36_spill] sm:$0xff] }
 0x436   :  { %5801 = vmatprep.mubr.bf16.mxu1 %v3821_v49  ;;  %v3594_v49 = vsel %vm3304_vm10, %v14489_v4, %v14488_v10  ;;  %v3422_v48 = vsel %vm3414_vm15, %v3385_v6, %v14493_v0  ;;  %v14496_v10 = vld [vmem:[#allocation123_spill] sm:$0xff]  ;;  %v14498_v28 = vld [vmem:[#allocation124_spill] sm:$0xff] }
 0x437   :  { %v12552_v58 = vpop.permute.xlu1 %3066  ;;  %v3643_v62 = vsel %vm545_vm0, %v3594_v49, %v14491_v36  ;;  %v3533_v4 = vsel %vm3525_vm5, %v3494_v3, %v14496_v10  ;;  %v3824_v49 = vsel %vm3525_vm5, %v3785_v21, %v14497_v35  ;;  %v3459_v27 = vsel %vm3451_vm13, %v3422_v48, %v14498_v28  ;;  %v14499_v36 = vld [vmem:[#allocation58_spill] sm:$0xff]  ;;  %v14500_v12 = vld [vmem:[#allocation148_spill] sm:$0xff]  ;;  %v14503_v3 = vld [vmem:[#allocation75_spill] sm:$0xff] }
 0x438   :  { %v12559_v40 = vpop.permute.xlu0 %2338  ;;  %v3679_v44 = vsel %vm3377_vm14, %v3643_v62, %v14494_v26  ;;  %v3597_v10 = vsel %vm3304_vm10, %v14503_v3, %v14502_v7  ;;  %v14505_v35 = vld [vmem:[#allocation133_spill] sm:$0xff]  ;;  %v14506_v28 = vld [vmem:[#allocation134_spill] sm:$0xff] }
 0x439   :  { %v3715_v6 = vsel %vm3414_vm15, %v3679_v44, %v14499_v36  ;;  %v3645_v48 = vsel %vm545_vm0, %v3597_v10, %v14505_v35  ;;  %v14511_v7 = vld [vmem:[#allocation126_spill] sm:$0xff]  ;;  %v14514_v35 = vld [vmem:[#allocation128_spill] sm:$0xff] }
 0x43a   :  { %v3751_v26 = vsel %vm3451_vm13, %v3715_v6, %v14500_v12  ;;  %v14508_v12 = vld [vmem:[#allocation132_spill] sm:$0xff]  ;;  %v14512_v3 = vld [vmem:[#allocation30_spill] sm:$0xff] }
 0x43b   :  { %v12574_v2 = vpop.permute.xlu1 %3190  ;;  %v3787_v44 = vsel %vm3488_vm8, %v3751_v26, %v14506_v28  ;;  %v3387_v37 = vsel %vm3377_vm14, %v14509_v31, %v14508_v12  ;;  %v14515_v28 = vld [vmem:[#allocation188_spill] sm:$0xff]  ;;  %v14516_v12 = vld [vmem:[#allocation31_spill] sm:$0xff] }
 0x43c   :  { %v12576_v15 = vpop.permute.xlu0 %2436  ;;  %v3827_v10 = vsel %vm3525_vm5, %v3787_v44, %v14512_v3  ;;  %v14519_v3 = vld [vmem:[#allocation82_spill] sm:$0xff] }
 0x43d   :  { %14495 = vst [vmem:[#allocation152_spill] sm:$0xff] %v12576_v15  ;;  %5802 = vmatmul.mubr.bf16.gmra.mrb[8].mxu1 %v3533_v4  ;;  %v14504_v4 = vld [vmem:[#allocation59_spill] sm:$0xff] }
 0x43e   :  { %5809 = vmatprep.mubr.bf16.mxu1 %v3824_v49  ;;  %v3496_v21 = vsel %vm3488_vm8, %v3459_v27, %v14504_v4  ;;  %v14507_v49 = vld [vmem:[#allocation179_spill] sm:$0xff]  ;;  %v14513_v4 = vld [vmem:[#allocation160_spill] sm:$0xff] }
 0x43f   :  { %v12588_v62 = vpop.permute.xlu1 %3235  ;;  %v3681_v36 = vsel %vm3377_vm14, %v3645_v48, %v14507_v49  ;;  %v3536_v27 = vsel %vm3525_vm5, %v3496_v21, %v14511_v7  ;;  %v3424_v48 = vsel %vm3414_vm15, %v3387_v37, %v14514_v35  ;;  %v14517_v21 = vld [vmem:[#allocation97_spill] sm:$0xff] }
 0x440   :  { %v12590_v0 = vpop.permute.xlu0 %2646  ;;  %v3717_v26 = vsel %vm3414_vm15, %v3681_v36, %v14513_v4  ;;  %v14518_v7 = vld [vmem:[#allocation85_spill] sm:$0xff] }
 0x441   :  { %14501 = vst [vmem:[#allocation163_spill] sm:$0xff] %v12590_v0  ;;  %v3753_v49 = vsel %vm3451_vm13, %v3717_v26, %v14515_v28  ;;  %v14520_v36 = vld [vmem:[#allocation29_spill] sm:$0xff]  ;;  %v14523_v28 = vld [vmem:[#allocation104_spill] sm:$0xff]  ;;  %v14525_v0 = vld [vmem:[#allocation191_spill] sm:$0xff] }
 0x442   :  { %v14521_v4 = vld [vmem:[#allocation101_spill] sm:$0xff]  ;;  %v3789_v57 = vsel %vm3488_vm8, %v3753_v49, %v14523_v28  ;;  %v14531_v28 = vld [vmem:[#allocation192_spill] sm:$0xff] }
 0x443   :  { %v12603_v6 = vpop.permute.xlu1 %3288  ;;  %v14522_v35 = vld [vmem:[#allocation165_spill] sm:$0xff] }
 0x444   :  { %v12608_v22 = vpop.permute.xlu0 %2723 }
 0x445   :  { %14510 = vst [vmem:[#allocation151_spill] sm:$0xff] %v12608_v22  ;;  %5810 = vmatmul.mubr.bf16.gmra.mrb[12].mxu1 %v3536_v27  ;;  %v3461_v22 = vsel %vm3451_vm13, %v3424_v48, %v14516_v12  ;;  %v3389_v27 = vsel %vm3377_vm14, %v14518_v7, %v14517_v21  ;;  %v14524_v48 = vld [vmem:[#allocation139_spill] sm:$0xff] }
 0x446   :  { %5817 = vmatprep.mubr.bf16.mxu1 %v3827_v10  ;;  %v3600_v10 = vsel %vm3304_vm10, %v14520_v36, %v14519_v3  ;;  %v3498_v37 = vsel %vm3488_vm8, %v3461_v22, %v14521_v4  ;;  %v3426_v12 = vsel %vm3414_vm15, %v3389_v27, %v14524_v48  ;;  %v14527_v3 = vld [vmem:[#allocation137_spill] sm:$0xff]  ;;  %v14528_v22 = vld [vmem:[#allocation164_spill] sm:$0xff] }
 0x447   :  { %v12620_v31 = vpop.permute.xlu1 %2851  ;;  %v3647_v26 = vsel %vm545_vm0, %v3600_v10, %v14522_v35  ;;  %v3539_v36 = vsel %vm3525_vm5, %v3498_v37, %v14527_v3  ;;  %v3830_v10 = vsel %vm3525_vm5, %v3789_v57, %v14528_v22  ;;  %v14529_v4 = vld [vmem:[#allocation141_spill] sm:$0xff]  ;;  %v14530_v35 = vld [vmem:[#allocation166_spill] sm:$0xff]  ;;  %v14534_v37 = vld [vmem:[#allocation95_spill] sm:$0xff] }
 0x448   :  { %v12627_v44 = vpop.permute.xlu0 %2890  ;;  %v3683_v21 = vsel %vm3377_vm14, %v3647_v26, %v14525_v0  ;;  %v3463_v49 = vsel %vm3451_vm13, %v3426_v12, %v14529_v4  ;;  %v14536_v22 = vld [vmem:[#allocation167_spill] sm:$0xff]  ;;  %v14537_v4 = vld [vmem:[#allocation170_spill] sm:$0xff] }
 0x449   :  { %v3719_v27 = vsel %vm3414_vm15, %v3683_v21, %v14530_v35 }
 0x44a   :  { %v3755_v0 = vsel %vm3451_vm13, %v3719_v27, %v14531_v28  ;;  %v14538_v27 = vld [vmem:[#allocation162_spill] sm:$0xff]  ;;  %v14539_v28 = vld [vmem:[#allocation57_spill] sm:$0xff] }
 0x44b   :  { %v12642_v7 = vpop.permute.xlu1 %2992  ;;  %v3791_v21 = vsel %vm3488_vm8, %v3755_v0, %v14537_v4  ;;  %v14541_v0 = vld [vmem:[#allocation173_spill] sm:$0xff] }
 0x44c   :  { %v12644_v15 = vpop.permute.xlu0 %2263 }
 0x44d   :  { %14526 = vst [vmem:[#allocation150_spill] sm:$0xff] %v12644_v15  ;;  %5818 = vmatmul.mubr.bf16.gmra.mrb[16].mxu1 %v3539_v36  ;;  %v14533_v15 = vld [vmem:[#allocation149_spill] sm:$0xff] }
 0x44e   :  { %5825 = vmatprep.mubr.bf16.mxu1 %v3830_v10  ;;  %v3603_v3 = vsel %vm3304_vm10, %v14534_v37, %v14533_v15  ;;  %v14535_v36 = vld [vmem:[#allocation161_spill] sm:$0xff]  ;;  %v2783_v15 = vrot.slane %v10867_v24, 3  ;;  %v2784_v37 = vrot.slane %v10864_v50, 4 }
 0x44f   :  { %v12656_v26 = vpop.permute.xlu1 %3068  ;;  %v3500_v57 = vsel %vm3488_vm8, %v3463_v49, %v14535_v36  ;;  %v3649_v12 = vsel %vm545_vm0, %v3603_v3, %v14536_v22  ;;  %v14540_v36 = vld [vmem:[#allocation144_spill] sm:$0xff]  ;;  %v3833_v22 = vsel %vm3525_vm5, %v3791_v21, %v14541_v0 }
 0x450   :  { %v12658_v48 = vpop.permute.xlu0 %2340  ;;  %v3685_v10 = vsel %vm3377_vm14, %v3649_v12, %v11612_v52  ;;  %v3542_v3 = vsel %vm3525_vm5, %v3500_v57, %v14540_v36  ;;  %v14542_v12 = vld [vmem:[#allocation145_spill] sm:$0xff]  ;;  %v2785_v57 = vor.u32 %v2784_v37, %v2783_v15 }
 0x451   :  { %14532 = vst [vmem:[#allocation89_spill] sm:$0xff] %v12658_v48  ;;  %v3391_v48 = vsel %vm3377_vm14, %v14539_v28, %v14538_v27  ;;  %v3721_v52 = vsel %vm3414_vm15, %v3685_v10, %v11558_v54  ;;  %v14543_v27 = vld [vmem:[#allocation180_spill] sm:$0xff]  ;;  %v14544_v54 = vld [vmem:[#allocation187_spill] sm:$0xff] }
 0x452   :  { %v3428_v4 = vsel %vm3414_vm15, %v3391_v48, %v14542_v12  ;;  %v3757_v24 = vsel %vm3451_vm13, %v3721_v52, %v11692_v13  ;;  %v3393_v10 = vsel %vm3377_vm14, %v14544_v54, %v11539_v23  ;;  %v2787_v13 = vrot.slane %v10941_v19, 3  ;;  %v14547_v52 = vld [vmem:[#allocation181_spill] sm:$0xff]  ;;  %v14548_v12 = vld [vmem:[#allocation183_spill] sm:$0xff]  ;;  %v14549_v19 = vld [vmem:[#allocation198_spill] sm:$0xff] }
 0x453   :  { %v12671_v35 = vpop.permute.xlu1 %3192  ;;  %v3465_v28 = vsel %vm3451_vm13, %v3428_v4, %v14543_v27  ;;  %v3793_v48 = vsel %vm3488_vm8, %v3757_v24, %v11578_v8  ;;  %v3430_v23 = vsel %vm3414_vm15, %v3393_v10, %v14548_v12  ;;  %v14554_v12 = vld [vmem:[#allocation155_spill] sm:$0xff] }
 0x454   :  { %v12678_v49 = vpop.permute.xlu0 %2438  ;;  %v3502_v21 = vsel %vm3488_vm8, %v3465_v28, %v11508_v34  ;;  %v14550_v28 = vld [vmem:[#allocation186_spill] sm:$0xff] }
 0x455   :  { %5826 = vmatmul.mubr.bf16.gmra.mrb[20].mxu1 %v3542_v3  ;;  %v2788_v3 = vrot.slane %v10944_v38, 4  ;;  %v3545_v34 = vsel %vm3525_vm5, %v3502_v21, %v14547_v52  ;;  %v3836_v38 = vsel %vm3525_vm5, %v3793_v48, %v14549_v19  ;;  %v3467_v21 = vsel %vm3451_vm13, %v3430_v23, %v14550_v28  ;;  %v14553_v52 = vld [vmem:[#allocation154_spill] sm:$0xff]  ;;  %v14555_v19 = vld [vmem:[#allocation195_spill] sm:$0xff] }
 0x456   :  { %5833 = vmatprep.mubr.bf16.mxu1 %v3833_v22  ;;  %v14545_v22 = vld [vmem:[#allocation94_spill] sm:$0xff] }
 0x457   :  { %v12690_v50 = vpop.permute.xlu1 %3237  ;;  %v2786_v15 = vsel %vm14546_vm4, %v14545_v22, %v2785_v57  ;;  %v2789_v24 = vor.u32 %v2788_v3, %v2787_v13  ;;  %v14551_v22 = vld [vmem:[#allocation121_spill] sm:$0xff]  ;;  %vm14567_vm4 = vmmov %vm14557_vm3 }
 0x458   :  { %v12694_v36 = vpop.permute.xlu0 %2648  ;;  %v3606_v8 = vsel %vm3304_vm10, %v2786_v15, %v12111_v61  ;;  %v3504_v48 = vsel %vm3488_vm8, %v3467_v21, %v14551_v22 }
 0x459   :  { %v3651_v4 = vsel %vm545_vm0, %v3606_v8, %v12195_v9  ;;  %v2790_v13 = vsel %vm14552_vm9, %v2785_v57, %v2789_v24  ;;  %vm14573_vm9 = vmmov %vm14557_vm3 }
 0x45a   :  { %v3687_v10 = vsel %vm3377_vm14, %v3651_v4, %v12219_v45  ;;  %v2792_v45 = vrot.slane %v14554_v12, 4  ;;  %v3609_v8 = vsel %vm3304_vm10, %v2790_v13, %v12326_v1  ;;  %v14559_v12 = vld [vmem:[#allocation74_spill] sm:$0xff] }
 0x45b   :  { %v12705_v0 = vpop.permute.xlu1 %3290  ;;  %v3723_v61 = vsel %vm3414_vm15, %v3687_v10, %v12243_v32  ;;  %v3548_v32 = vsel %vm3525_vm5, %v3504_v48, %v12167_v20  ;;  %v3653_v57 = vsel %vm545_vm0, %v3609_v8, %v12335_v51  ;;  %v14556_v10 = vld [vmem:[#allocation158_spill] sm:$0xff] }
 0x45c   :  { %v12709_v37 = vpop.permute.xlu0 %2725  ;;  %v3759_v9 = vsel %vm3451_vm13, %v3723_v61, %v12264_v42  ;;  %v3689_v1 = vsel %vm3377_vm14, %v3653_v57, %v12354_v5  ;;  %v2795_v61 = vrot.slane %v14556_v10, 3  ;;  %v14560_v57 = vld [vmem:[#allocation175_spill] sm:$0xff] }
 0x45d   :  { %5834 = vmatmul.mubr.bf16.gmra.mrb[72].mxu1 %v3545_v34  ;;  %v3795_v15 = vsel %vm3488_vm8, %v3759_v9, %v12288_v60  ;;  %v2791_v34 = vrot.slane %v14553_v52, 3  ;;  %v3725_v51 = vsel %vm3414_vm15, %v3689_v1, %v12377_v55  ;;  %v14562_v1 = vld [vmem:[#allocation176_spill] sm:$0xff]  ;;  %v14563_v10 = vld [vmem:[#allocation199_spill] sm:$0xff] }
 0x45e   :  { %5839 = vmatprep.mubr.bf16.mxu1 %v3836_v38  ;;  %v3839_v42 = vsel %vm3525_vm5, %v3795_v15, %v12303_v53  ;;  %v3395_v38 = vsel %vm3377_vm14, %v14555_v19, %v12223_v39  ;;  %v3761_v39 = vsel %vm3451_vm13, %v3725_v51, %v12405_v29  ;;  %v2799_v19 = vrot.slane %v14560_v57, 3  ;;  %v14572_v57 = vld [vmem:[#allocation89_spill] sm:$0xff] }
 0x45f   :  { %v12721_v27 = vpop.permute.xlu1 %2853  ;;  %v2793_v4 = vor.u32 %v2792_v45, %v2791_v34  ;;  %v3432_v20 = vsel %vm3414_vm15, %v3395_v38, %v12250_v41  ;;  %v3797_v5 = vsel %vm3488_vm8, %v3761_v39, %v12441_v25  ;;  %v3397_v45 = vsel %vm3377_vm14, %v14559_v12, %v12356_v16  ;;  %v14569_v12 = vld [vmem:[#allocation151_spill] sm:$0xff] }
 0x460   :  { %v12725_v54 = vpop.permute.xlu0 %2892  ;;  %v3469_v53 = vsel %vm3451_vm13, %v3432_v20, %v12273_v33  ;;  %v14558_v33 = vld [vmem:[#allocation159_spill] sm:$0xff]  ;;  %v3842_v52 = vsel %vm3525_vm5, %v3797_v5, %v12471_v59 }
 0x461   :  { %v3506_v21 = vsel %vm3488_vm8, %v3469_v53, %v12293_v18  ;;  %v2794_v48 = vsel %vm14557_vm3, %v2789_v24, %v2793_v4  ;;  %v2796_v9 = vrot.slane %v14558_v33, 4 }
 0x462   :  { %v3551_v18 = vsel %vm3525_vm5, %v3506_v21, %v12314_v11  ;;  %v3612_v29 = vsel %vm3304_vm10, %v2794_v48, %v12502_v43  ;;  %v3434_v43 = vsel %vm3414_vm15, %v3397_v45, %v12382_v30 }
 0x463   :  { %v12736_v3 = vpop.permute.xlu1 %2994  ;;  %v3655_v25 = vsel %vm545_vm0, %v3612_v29, %v12513_v47  ;;  %v2797_v11 = vor.u32 %v2796_v9, %v2795_v61  ;;  %v3471_v47 = vsel %vm3451_vm13, %v3434_v43, %v12415_v14  ;;  %v2800_v14 = vrot.slane %v14562_v1, 4  ;;  %v14565_v9 = vld [vmem:[#allocation163_spill] sm:$0xff] }
 0x464   :  { %v12742_v23 = vpop.permute.xlu0 %2265  ;;  %v3691_v59 = vsel %vm3377_vm14, %v3655_v25, %v12536_v63  ;;  %v3399_v61 = vsel %vm3377_vm14, %v14563_v10, %v12540_v17  ;;  %v7961_v17 = vld [vmem:[%s13458_s3 + $0x8] sm:$0xff]  }
 0x465   :  { %5840 = vmatmul.mubr.bf16.gmra.mrb[76].mxu1 %v3548_v32  ;;  %v3727_v8 = vsel %vm3414_vm15, %v3691_v59, %v12552_v58  ;;  %v2798_v63 = vsel %vm14561_vm11, %v2793_v4, %v2797_v11  ;;  %vm5952_vm11 = vcmask 1043458  }
 0x466   :  { %5845 = vmatprep.mubr.bf16.mxu1 %v3839_v42  ;;  %v3508_v42 = vsel %vm3488_vm8, %v3471_v47, %v12450_v46  ;;  %v3763_v16 = vsel %vm3451_vm13, %v3727_v8, %v12574_v2  ;;  %v3615_v2 = vsel %vm3304_vm10, %v2798_v63, %v12620_v31  ;;  %v3436_v31 = vsel %vm3414_vm15, %v3399_v61, %v12559_v40  ;;  %v14571_v47 = vld [vmem:[#allocation25_spill] sm:$0xff] }
 0x467   :  { %v12752_v60 = vpop.permute.xlu1 %3070  ;;  %v3799_v30 = vsel %vm3488_vm8, %v3763_v16, %v12588_v62  ;;  %v3554_v46 = vsel %vm3525_vm5, %v3508_v42, %v12482_v56  ;;  %v3657_v62 = vsel %vm545_vm0, %v3615_v2, %v12627_v44  ;;  %v14564_v44 = vld [vmem:[#allocation152_spill] sm:$0xff] }
 0x468   :  { %v12757_v28 = vpop.permute.xlu0 %2342  ;;  %v3845_v21 = vsel %vm3525_vm5, %v3799_v30, %v12603_v6  ;;  %v3693_v5 = vsel %vm3377_vm14, %v3657_v62, %v12642_v7  ;;  %v7960_v6 = vld [vmem:[%s13458_s3 + $0x48] sm:$0xff]   ;;  %v3473_v48 = vsel %vm3451_vm13, %v3436_v31, %v14564_v44 }
 0x469   :  { %v3729_v33 = vsel %vm3414_vm15, %v3693_v5, %v12656_v26  ;;  %v3510_v40 = vsel %vm3488_vm8, %v3473_v48, %v14565_v9  ;;  %7504 = vmatprep.subr.bf16.mxu0 %v7960_v6  ;;  %v14568_v26 = vld [vmem:[#allocation178_spill] sm:$0xff]  ;;  %v14575_v6 = vld [vmem:[#allocation41_spill] sm:$0xff] }
 0x46a   :  { %v5574_v41 = vpop.f32.mrb[24].mxu1  ;;  %v3765_v7 = vsel %vm3451_vm13, %v3729_v33, %v12671_v35  ;;  %v2804_v25 = vrot.slane %v14568_v26, 4  ;;  %v3557_v45 = vsel %vm3525_vm5, %v3510_v40, %v14569_v12  ;;  %7505 = vmatpush3.bf16.msra.mxu0 %v7961_v17  ;;  %v14576_v9 = vld [vmem:[#allocation122_spill] sm:$0xff] }
 0x46b   :  { %v12772_v22 = vpop.permute.xlu1 %3194  ;;  %v5575_v13 = vpop.f32.mrb[25].mxu1  ;;  %v2801_v41 = vor.u32 %v2800_v14, %v2799_v19  ;;  %v2807_v40 = vrot.slane %v14576_v9, 3  ;;  %v7969_v9 = vld [vmem:[%s13458_s3 + $0x28] sm:$0xff]  }
 0x46c   :  { %v12778_v55 = vpop.permute.xlu0 %2440  ;;  %v5576_v15 = vpop.f32.mrb[26].mxu1  ;;  %v14566_v13 = vld [vmem:[#allocation177_spill] sm:$0xff] }
 0x46d   :  { %5846 = vmatmul.mubr.bf16.gmra.mrb[80].mxu1 %v3551_v18  ;;  %v5577_v24 = vpop.f32.mrb[27].mxu1  ;;  %v2803_v18 = vrot.slane %v14566_v13, 3  ;;  %v3801_v15 = vsel %vm3488_vm8, %v3765_v7, %v12690_v50 }
 0x46e   :  { %5851 = vmatprep.mubr.bf16.mxu1 %v3842_v52  ;;  %v2802_v52 = vsel %vm14567_vm4, %v2797_v11, %v2801_v41  ;;  %v3848_v35 = vsel %vm3525_vm5, %v3801_v15, %v12705_v0  ;;  %v14570_v11 = vld [vmem:[#allocation150_spill] sm:$0xff]  ;;  %vm5981_vm4 = vcmask 1045508  }
 0x46f   :  { %v12788_v34 = vpop.permute.xlu1 %3239  ;;  %v3618_v43 = vsel %vm3304_vm10, %v2802_v52, %v12721_v27  ;;  %v3401_v8 = vsel %vm3377_vm14, %v14571_v47, %v14570_v11  ;;  %v2805_v42 = vor.u32 %v2804_v25, %v2803_v18  ;;  %v14578_v11 = vld [vmem:[#allocation28_spill] sm:$0xff] }
 0x470   :  { %v12793_v32 = vpop.permute.xlu0 %2650  ;;  %v3659_v59 = vsel %vm545_vm0, %v3618_v43, %v12725_v54  ;;  %v3438_v19 = vsel %vm3414_vm15, %v3401_v8, %v14572_v57 }
 0x471   :  { %v3695_v27 = vsel %vm3377_vm14, %v3659_v59, %v12736_v3  ;;  %v3475_v0 = vsel %vm3451_vm13, %v3438_v19, %v12678_v49  ;;  %v2806_v14 = vsel %vm14573_vm9, %v2801_v41, %v2805_v42  ;;  %vm6002_vm9 = vcmask 1047558  }
 0x472   :  { %v3731_v54 = vsel %vm3414_vm15, %v3695_v27, %v12752_v60 }
 0x473   :  { %v3293_v38 = vpop.permute.xlu1 %3292  ;;  %v5580_v20 = vpop.f32.mrb[28].mxu1  ;;  %v3767_v30 = vsel %vm3451_vm13, %v3731_v54, %v12772_v22  ;;  %v14574_v22 = vld [vmem:[#allocation129_spill] sm:$0xff] }
 0x474   :  { %v12812_v53 = vpop.permute.xlu0 %2727  ;;  %v5581_v58 = vpop.f32.mrb[29].mxu1  ;;  %v3512_v20 = vsel %vm3488_vm8, %v3475_v0, %v12694_v36  ;;  %v3803_v1 = vsel %vm3488_vm8, %v3767_v30, %v12788_v34  ;;  %v3403_v2 = vsel %vm3377_vm14, %v14574_v22, %v12742_v23 }
 0x475   :  { %5852 = vmatmul.mubr.bf16.gmra.mrb[36].mxu1 %v3554_v46  ;;  %v5582_v51 = vpop.f32.mrb[30].mxu1  ;;  %v3560_v3 = vsel %vm3525_vm5, %v3512_v20, %v12709_v37  ;;  %v3851_v60 = vsel %vm3525_vm5, %v3803_v1, %v3293_v38  ;;  %v7963_v1 = vld [vmem:[%s13458_s3 + $0x10] sm:$0xff]  }
 0x476   :  { %5859 = vmatprep.mubr.bf16.mxu1 %v3845_v21  ;;  %v5583_v4 = vpop.f32.mrb[31].mxu1  ;;  %v3440_v51 = vsel %vm3414_vm15, %v3403_v2, %v12757_v28 }
 0x477   :  { %v2856_v39 = vpop.permute.xlu1 %2855  ;;  %v3477_v37 = vsel %vm3451_vm13, %v3440_v51, %v12778_v55 }
 0x478   :  { %v2895_v56 = vpop.permute.xlu0 %2894  ;;  %v3621_v49 = vsel %vm3304_vm10, %v2806_v14, %v2856_v39  ;;  %v3514_v38 = vsel %vm3488_vm8, %v3477_v37, %v12793_v32  ;;  %v7964_v14 = vld [vmem:[%s13458_s3 + $0x58] sm:$0xff]   ;;  %v7966_v37 = vld [vmem:[%s13458_s3 + $0x60] sm:$0xff]  }
 0x479   :  { %v3661_v36 = vsel %vm545_vm0, %v3621_v49, %v2895_v56  ;;  %v3563_v28 = vsel %vm3525_vm5, %v3514_v38, %v12812_v53  ;;  %v14577_v53 = vld [vmem:[#allocation26_spill] sm:$0xff] }
 0x47a   :  { %v2808_v7 = vrot.slane %v14577_v53, 4 }
 0x47b   :  { %v2997_v29 = vpop.permute.xlu1 %2996 }
 0x47c   :  { %v2268_v24 = vpop.permute.xlu0 %2267  ;;  %v3697_v21 = vsel %vm3377_vm14, %v3661_v36, %v2997_v29  ;;  %v12903_v15 = vor.u32 %v2808_v7, %v2807_v40 }
 0x47d   :  { %5860 = vmatmul.mubr.bf16.gmra.mrb[40].mxu1 %v3557_v45  ;;  %v3405_v32 = vsel %vm3377_vm14, %v14575_v6, %v2268_v24 }
 0x47e   :  { %5867 = vmatprep.mubr.bf16.mxu1 %v3848_v35  ;;  %v2810_v25 = vsel %vm14557_vm3, %v2805_v42, %v12903_v15  ;;  %vm14582_vm3 = vsmask.f32 6400 }
 0x47f   :  { %v3073_v50 = vpop.permute.xlu1 %3072 }
 0x480   :  { %v2345_v16 = vpop.permute.xlu0 %2344  ;;  %v3733_v62 = vsel %vm3414_vm15, %v3697_v21, %v3073_v50 }
 0x481   :  { %v3442_v48 = vsel %vm3414_vm15, %v3405_v32, %v2345_v16 }
 0x483   :  { %v3197_v63 = vpop.permute.xlu1 %3196 }
 0x484   :  { %v2443_v58 = vpop.permute.xlu0 %2442  ;;  %v3769_v4 = vsel %vm3451_vm13, %v3733_v62, %v3197_v63  ;;  %v7962_v63 = vld [vmem:[%s13458_s3 + $0x50] sm:$0xff]   ;;  %v7967_v62 = vld [vmem:[%s13458_s3 + $0x20] sm:$0xff]  }
 0x485   :  { %5868 = vmatmul.mubr.bf16.gmra.mrb[44].mxu1 %v3560_v3  ;;  %v3479_v33 = vsel %vm3451_vm13, %v3442_v48, %v2443_v58  ;;  %7506 = vmatprep.subr.bf16.mxu0 %v7962_v63  ;;  %v7965_v58 = vld [vmem:[%s13458_s3 + $0x18] sm:$0xff]  }
 0x486   :  { %5875 = vmatprep.mubr.bf16.mxu1 %v3851_v60  ;;  %7507 = vmatpush3.bf16.msra.mxu0 %v7963_v1 }
 0x487   :  { %v3242_v46 = vpop.permute.xlu1 %3241  ;;  %7508 = vmatprep.subr.bf16.mxu0 %v7964_v14 }
 0x488   :  { %v2653_v34 = vpop.permute.xlu0 %2652  ;;  %v3805_v23 = vsel %vm3488_vm8, %v3769_v4, %v3242_v46 }
 0x489   :  { %v3516_v17 = vsel %vm3488_vm8, %v3479_v33, %v2653_v34 }
 0x48a   :  { %7509 = vmatpush3.bf16.msra.mxu0 %v7965_v58 }
 0x48b   :  { %v5586_v39 = vpop.f32.mrb[32].mxu1  ;;  %v3295_v10 = vpop.permute.xlu1 %3294  ;;  %7510 = vmatprep.subr.bf16.mxu0 %v7966_v37  ;;  %v7971_v37 = vld [vmem:[%s13458_s3 + $0x30] sm:$0xff]  }
 0x48c   :  { %v5587_v61 = vpop.f32.mrb[33].mxu1  ;;  %v2730_v41 = vpop.permute.xlu0 %2729  ;;  %v3854_v55 = vsel %vm3525_vm5, %v3805_v23, %v3295_v10 }
 0x48d   :  { %v5588_v56 = vpop.f32.mrb[34].mxu1  ;;  %5876 = vmatmul.mubr.bf16.gmra.mrb[48].mxu1 %v3563_v28  ;;  %v3566_v29 = vsel %vm3525_vm5, %v3516_v17, %v2730_v41  ;;  %v7968_v17 = vld [vmem:[%s13458_s3 + $0x68] sm:$0xff]  }
 0x48e   :  { %v5589_v31 = vpop.f32.mrb[35].mxu1  ;;  %5883 = vmatprep.mubr.bf16.mxu1 %v3854_v55  ;;  %7511 = vmatpush3.bf16.msra.mxu0 %v7967_v62 }
 0x48f   :  { %v2858_v5 = vpop.permute.xlu1 %2857  ;;  %7512 = vmatprep.subr.bf16.mxu0 %v7968_v17 }
 0x490   :  { %v2897_v44 = vpop.permute.xlu0 %2896  ;;  %v3624_v12 = vsel %vm3304_vm10, %v2810_v25, %v2858_v5 }
 0x491   :  { %v3663_v43 = vsel %vm545_vm0, %v3624_v12, %v2897_v44 }
 0x492   :  { %7513 = vmatpush3.bf16.msra.mxu0 %v7969_v9 }
 0x493   :  { %v2999_v13 = vpop.permute.xlu1 %2998 }
 0x494   :  { %v2270_v18 = vpop.permute.xlu0 %2269  ;;  %v3699_v59 = vsel %vm3377_vm14, %v3663_v43, %v2999_v13 }
 0x495   :  { %5884 = vmatmul.mubr.bf16.gmra.mrb[52].mxu1 %v3566_v29  ;;  %v3407_v47 = vsel %vm3377_vm14, %v14578_v11, %v2270_v18 }
 0x497   :  { %v3075_v52 = vpop.permute.xlu1 %3074 }
 0x498   :  { %v2347_v26 = vpop.permute.xlu0 %2346  ;;  %v3735_v8 = vsel %vm3414_vm15, %v3699_v59, %v3075_v52 }
 0x499   :  { %v3444_v16 = vsel %vm3414_vm15, %v3407_v47, %v2347_v26 }
 0x49b   :  { %v3199_v24 = vpop.permute.xlu1 %3198 }
 0x49c   :  { %v2445_v45 = vpop.permute.xlu0 %2444  ;;  %v3771_v57 = vsel %vm3451_vm13, %v3735_v8, %v3199_v24 }
 0x49d   :  { %v3481_v42 = vsel %vm3451_vm13, %v3444_v16, %v2445_v45 }
 0x49f   :  { %v3244_v35 = vpop.permute.xlu1 %3243 }
 0x4a0   :  { %v2655_v50 = vpop.permute.xlu0 %2654  ;;  %v3807_v19 = vsel %vm3488_vm8, %v3771_v57, %v3244_v35 }
 0x4a1   :  { %v3518_v0 = vsel %vm3488_vm8, %v3481_v42, %v2655_v50 }
 0x4a3   :  { %v3297_v27 = vpop.permute.xlu1 %3296 }
 0x4a4   :  { %v3857_v54 = vsel %vm3525_vm5, %v3807_v19, %v3297_v27  ;;  %v2732_v20 = vpop.permute.xlu0 %2731 }
 0x4a5   :  { %5891 = vmatprep.mubr.bf16.mxu1 %v3857_v54  ;;  %v3569_v30 = vsel %vm3525_vm5, %v3518_v0, %v2732_v20 }
 0x4a6   :  { %5892 = vmatmul.mubr.bf16.gmra.mrb[56].mxu1 %v3569_v30 }
 0x4e8   :  { %v5640_v3 = vpop.f32.mrb[60].mxu1 }
 0x4e9   :  { %v5641_v49 = vpop.f32.mrb[61].mxu1 }
 0x4ea   :  { %v5642_v60 = vpop.f32.mrb[62].mxu1 }
 0x4eb   :  { %v5643_v36 = vpop.f32.mrb[63].mxu1 }
 0x4f0   :  { %v5646_v46 = vpop.f32.mrb[64].mxu1 }
 0x4f1   :  { %v5647_v22 = vpop.f32.mrb[65].mxu1 }
 0x4f2   :  { %v5648_v2 = vpop.f32.mrb[66].mxu1 }
 0x4f3   :  { %v5649_v34 = vpop.f32.mrb[67].mxu1 }
 0x4f8   :  { %v5652_v51 = vpop.f32.mrb[68].mxu1 }
 0x4f9   :  { %v5653_v21 = vpop.f32.mrb[69].mxu1 }
 0x4fa   :  { %v5654_v38 = vpop.f32.mrb[70].mxu1  ;;  %v7970_v21 = vld [vmem:[%s13458_s3 + $0x70] sm:$0xff]  }
 0x4fb   :  { %v5655_v4 = vpop.f32.mrb[71].mxu1  ;;  %7514 = vmatprep.subr.bf16.mxu0 %v7970_v21 }
 0x4fc   :  { %7515 = vmatpush3.bf16.msra.mxu0 %v7971_v37 }
 0x500   :  { %v5787_v39 = vpop.f32.mrb[0].mxu1 }
 0x501   :  { %v5789_v10 = vpop.f32.mrb[1].mxu1 }
 0x502   :  { %v5790_v23 = vpop.f32.mrb[2].mxu1 }
 0x503   :  { %v5925_v61 = vrot.slane %v5790_v23, 4  ;;  %v5792_v41 = vpop.f32.mrb[3].mxu1 }
 0x505   :  { %v5929_v28 = vmax.f32 %v5787_v39, %v5925_v61 }
 0x507   :  { %v5953_v45 = vsel %vm5952_vm11, %v5929_v28, -inf  ;;  %v5932_v36 = vsel %vm4307_vm2, %v5929_v28, -inf }
 0x508   :  { %v5795_v56 = vpop.f32.mrb[4].mxu1  ;;  %v5954_v59 = vrot.slane %v5953_v45, 4  ;;  %v5933_v62 = vrot.slane %v5932_v36, 4 }
 0x509   :  { %v5975_v55 = vrot.slane %v5795_v56, 4  ;;  %v5797_v31 = vpop.f32.mrb[5].mxu1 }
 0x50a   :  { %v5798_v5 = vpop.f32.mrb[6].mxu1  ;;  %v5955_v42 = vmax.f32 %v5953_v45, %v5954_v59 }
 0x50b   :  { %v5979_v6 = vmax.f32 %v5787_v39, %v5975_v55  ;;  %v5800_v32 = vpop.f32.mrb[7].mxu1 }
 0x50c   :  { %v5956_v30 = vrot.slane %v5955_v42, 2 }
 0x50d   :  { %v5982_v8 = vsel %vm5981_vm4, %v5979_v6, -inf  ;;  %v6003_v57 = vsel %vm6002_vm9, %v5979_v6, -inf  ;;  %v5934_v6 = vmax.f32 %v5932_v36, %v5933_v62  ;;  %v14580_v36 = vld [vmem:[#allocation196_spill] sm:$0xff] }
 0x50e   :  { %v5983_v19 = vrot.slane %v5982_v8, 4  ;;  %v6004_v27 = vrot.slane %v6003_v57, 4  ;;  %v5957_v38 = vmax.f32 %v5955_v42, %v5956_v30 }
 0x510   :  { %v5803_v44 = vpop.f32.mrb[8].mxu1  ;;  %v5984_v14 = vmax.f32 %v5982_v8, %v5983_v19  ;;  %v6005_v46 = vmax.f32 %v6003_v57, %v6004_v27  ;;  %v5958_v32 = vrot.slane %v5957_v38, 1 }
 0x511   :  { %v6025_v48 = vrot.slane %v5803_v44, 4  ;;  %v5805_v33 = vpop.f32.mrb[9].mxu1 }
 0x512   :  { %v5806_v40 = vpop.f32.mrb[10].mxu1  ;;  %v5985_v4 = vrot.slane %v5984_v14, 2  ;;  %v6006_v10 = vrot.slane %v6005_v46, 2 }
 0x513   :  { %v6029_v53 = vmax.f32 %v5798_v5, %v6025_v48  ;;  %v6073_v7 = vrot.slane %v5806_v40, 4  ;;  %v5808_v13 = vpop.f32.mrb[11].mxu1 }
 0x514   :  { %v5986_v44 = vmax.f32 %v5984_v14, %v5985_v4  ;;  %v6007_v33 = vmax.f32 %v6005_v46, %v6006_v10  ;;  %v2225_v46 = vrot.slane %v14580_v36, 2 }
 0x515   :  { %v6077_v18 = vmax.f32 %v5798_v5, %v6073_v7  ;;  %v6051_v63 = vsel %vm5952_vm11, %v6029_v53, -inf  ;;  %v6031_v61 = vsel %vm4307_vm2, %v6029_v53, -inf }
 0x516   :  { %v6052_v22 = vrot.slane %v6051_v63, 4  ;;  %v6032_v17 = vrot.slane %v6031_v61, 4  ;;  %v6008_v45 = vrot.slane %v6007_v33, 1 }
 0x517   :  { %v6079_v58 = vsel %vm5981_vm4, %v6077_v18, -inf  ;;  %v6099_v51 = vsel %vm6002_vm9, %v6077_v18, -inf }
 0x518   :  { %v5811_v29 = vpop.f32.mrb[12].mxu1  ;;  %v6080_v34 = vrot.slane %v6079_v58, 4  ;;  %v6053_v41 = vmax.f32 %v6051_v63, %v6052_v22  ;;  %v6100_v28 = vrot.slane %v6099_v51, 4 }
 0x519   :  { %v5813_v52 = vpop.f32.mrb[13].mxu1 }
 0x51a   :  { %v5814_v26 = vpop.f32.mrb[14].mxu1  ;;  %v6081_v55 = vmax.f32 %v6079_v58, %v6080_v34  ;;  %v6054_v9 = vrot.slane %v6053_v41, 2  ;;  %v6101_v40 = vmax.f32 %v6099_v51, %v6100_v28  ;;  %v5959_v52 = vmax.f32 %v5957_v38, %v5958_v32 }
 0x51b   :  { %v6121_v25 = vrot.slane %v5814_v26, 4  ;;  %v5816_v24 = vpop.f32.mrb[15].mxu1  ;;  %v5987_v26 = vrot.slane %v5986_v44, 1 }
 0x51c   :  { %v6082_v13 = vrot.slane %v6081_v55, 2  ;;  %v12973_v24 = vld [vmem:[%s13460_s5 + $0x1] ss:$0 sm:$0xff] }
 0x51d   :  { %v12944_v12 = vmax.f32 %v5811_v29, %v6121_v25 }
 0x51f   :  { %v6147_v39 = vsel %vm5952_vm11, %v12944_v12, -inf  ;;  %v6127_v25 = vsel %vm4307_vm2, %v12944_v12, -inf  ;;  %v5967_v12 = vadd.f32 %v12973_v24, %v5959_v52  ;;  %v14581_v52 = vld [vmem:[#allocation138_spill] sm:$0xff] }
 0x520   :  { %v5819_v43 = vpop.f32.mrb[16].mxu1  ;;  %v6148_v31 = vrot.slane %v6147_v39, 4  ;;  %v6128_v57 = vrot.slane %v6127_v25, 4 }
 0x521   :  { %v5821_v35 = vpop.f32.mrb[17].mxu1  ;;  %v6169_v50 = vrot.slane %v5819_v43, 4  ;;  %v6033_v43 = vmax.f32 %v6031_v61, %v6032_v17  ;;  %v5969_v37 = vmax.f32 %v5967_v12, 0.0 }
 0x522   :  { %v5822_v11 = vpop.f32.mrb[18].mxu1  ;;  %v6149_v18 = vmax.f32 %v6147_v39, %v6148_v31  ;;  %v6129_v34 = vmax.f32 %v6127_v25, %v6128_v57 }
 0x523   :  { %v5824_v47 = vpop.f32.mrb[19].mxu1  ;;  %v6173_v16 = vmax.f32 %v5811_v29, %v6169_v50  ;;  %v5935_v29 = vrot.slane %v5934_v6, 2  ;;  %v6055_v50 = vmax.f32 %v6053_v41, %v6054_v9  ;;  %v6034_v30 = vrot.slane %v6033_v43, 2 }
 0x524   :  { %v6150_v42 = vrot.slane %v6149_v18, 2  ;;  %v6130_v31 = vrot.slane %v6129_v34, 2 }
 0x525   :  { %v6175_v7 = vsel %vm5981_vm4, %v6173_v16, -inf  ;;  %v6195_v53 = vsel %vm6002_vm9, %v6173_v16, -inf  ;;  %v6083_v16 = vmax.f32 %v6081_v55, %v6082_v13  ;;  %v5936_v27 = vmax.f32 %v5934_v6, %v5935_v29 }
 0x526   :  { %v6176_v35 = vrot.slane %v6175_v7, 4  ;;  %v6196_v47 = vrot.slane %v6195_v53, 4  ;;  %v6056_v58 = vrot.slane %v6055_v50, 1  ;;  %v6151_v51 = vmax.f32 %v6149_v18, %v6150_v42 }
 0x527   :  { %v6084_v22 = vrot.slane %v6083_v16, 1  ;;  %v5937_v21 = vrot.slane %v5936_v27, 1  ;;  %v6035_v4 = vmax.f32 %v6033_v43, %v6034_v30  ;;  %v6131_v43 = vmax.f32 %v6129_v34, %v6130_v31 }
 0x528   :  { %v5827_v0 = vpop.f32.mrb[20].mxu1  ;;  %v6177_v63 = vmax.f32 %v6175_v7, %v6176_v35 }
 0x529   :  { %v6217_v54 = vrot.slane %v5827_v0, 4  ;;  %v5829_v20 = vpop.f32.mrb[21].mxu1  ;;  %v5988_v0 = vmax.f32 %v5986_v44, %v5987_v26  ;;  %v6085_v55 = vmax.f32 %v6083_v16, %v6084_v22  ;;  %v5938_v44 = vmax.f32 %v5936_v27, %v5937_v21 }
 0x52a   :  { %v5830_v1 = vpop.f32.mrb[22].mxu1  ;;  %v6009_v20 = vmax.f32 %v6007_v33, %v6008_v45  ;;  %v6178_v39 = vrot.slane %v6177_v63, 2 }
 0x52b   :  { %v12951_v3 = vmax.f32 %v5822_v11, %v6217_v54  ;;  %v6265_v49 = vrot.slane %v5830_v1, 4  ;;  %v5832_v60 = vpop.f32.mrb[23].mxu1  ;;  %v14579_v1 = vld [vmem:[#allocation21_spill] sm:$0xff]  ;;  %v5996_v62 = vadd.f32 %v12973_v24, %v5988_v0  ;;  %v6093_v45 = vadd.f32 %v12973_v24, %v6085_v55 }
 0x52c   :  { %v2224_v14 = vrot.slane %v14579_v1, 1  ;;  %v6197_v60 = vmax.f32 %v6195_v53, %v6196_v47  ;;  %v6017_v38 = vadd.f32 %v12973_v24, %v6009_v20  ;;  %v6179_v7 = vmax.f32 %v6177_v63, %v6178_v39 }
 0x52d   :  { %v12954_v2 = vmax.f32 %v5822_v11, %v6265_v49  ;;  %v6102_v11 = vrot.slane %v6101_v40, 2  ;;  %v6243_v6 = vsel %vm5952_vm11, %v12951_v3, -inf  ;;  %v5998_v33 = vmax.f32 %v5996_v62, 0.0 }
 0x52e   :  { %v6198_v41 = vrot.slane %v6197_v60, 2  ;;  %v6019_v9 = vmax.f32 %v6017_v38, 0.0  ;;  %v6223_v13 = vsel %vm4307_vm2, %v12951_v3, -inf  ;;  %v6244_v29 = vrot.slane %v6243_v6, 4 }
 0x52f   :  { %v6103_v49 = vmax.f32 %v6101_v40, %v6102_v11  ;;  %v6036_v40 = vrot.slane %v6035_v4, 1  ;;  %v6224_v3 = vrot.slane %v6223_v13, 4  ;;  %v6180_v16 = vrot.slane %v6179_v7, 1 }
 0x530   :  { %v5835_v23 = vpop.f32.mrb[72].mxu1  ;;  %v6199_v53 = vmax.f32 %v6197_v60, %v6198_v41  ;;  %v13001_v47 = vpack.c.bf16 %v6019_v9, %v6019_v9  ;;  %v6271_v57 = vsel %vm5981_vm4, %v12954_v2, -inf  ;;  %v6245_v12 = vmax.f32 %v6243_v6, %v6244_v29 }
 0x531   :  { %v5836_v56 = vpop.f32.mrb[73].mxu1  ;;  %v6057_v23 = vmax.f32 %v6055_v50, %v6056_v58  ;;  %v6104_v61 = vrot.slane %v6103_v49, 1  ;;  %v12998_v50 = vpack.c.bf16 %v5998_v33, %v5998_v33  ;;  %v6291_v0 = vsel %vm6002_vm9, %v12954_v2, -inf }
 0x532   :  { %v5837_v5 = vpop.f32.mrb[74].mxu1  ;;  %v12980_v56 = vor.u32 %v2225_v46, %v2224_v14  ;;  %v6200_v27 = vrot.slane %v6199_v53, 1  ;;  %v6095_v30 = vmax.f32 %v6093_v45, 0.0  ;;  %v6132_v63 = vrot.slane %v6131_v43, 1  ;;  %v7976_v45 = vld [vmem:[%s13458_s3 + $0x38] sm:$0xff]  }
 0x533   :  { %v5838_v48 = vpop.f32.mrb[75].mxu1  ;;  %v6152_v5 = vrot.slane %v6151_v51, 1  ;;  %v6105_v18 = vmax.f32 %v6103_v49, %v6104_v61  ;;  %v6065_v25 = vadd.f32 %v12973_v24, %v6057_v23  ;;  %v6225_v58 = vmax.f32 %v6223_v13, %v6224_v3 }
 0x534   :  { %v12984_v48 = vpack.c.bf16 %v5969_v37, %v5969_v37  ;;  %v12991_v26 = vsel %vm14582_vm3, %v14581_v52, %v12980_v56  ;;  %v6272_v49 = vrot.slane %v6271_v57, 4  ;;  %v6330_v46 = vunpack.c.l.b16 %v12998_v50 }
 0x535   :  { %v6153_v35 = vmax.f32 %v6151_v51, %v6152_v5  ;;  %v6067_v20 = vmax.f32 %v6065_v25, 0.0  ;;  %v6181_v34 = vmax.f32 %v6179_v7, %v6180_v16  ;;  %v6292_v51 = vrot.slane %v6291_v0, 4  ;;  %v7975_v25 = vld [vmem:[%s13458_s3 + $0x78] sm:$0xff]  }
 0x536   :  { %v6321_v11 = vunpack.c.l.b16 %v12984_v48  ;;  %v6339_v2 = vunpack.c.l.b16 %v13001_v47  ;;  %v6201_v37 = vmax.f32 %v6199_v53, %v6200_v27  ;;  %v6246_v62 = vrot.slane %v6245_v12, 2  ;;  %7516 = vmatprep.subr.bf16.mxu0 %v7975_v25 }
 0x537   :  { %v6161_v1 = vadd.f32 %v12973_v24, %v6153_v35  ;;  %v13016_v39 = vpack.c.bf16 %v6095_v30, %v6095_v30  ;;  %v6226_v61 = vrot.slane %v6225_v58, 2  ;;  %v6273_v41 = vmax.f32 %v6271_v57, %v6272_v49  ;;  %7517 = vmatpush3.bf16.msra.mxu0 %v7976_v45 }
 0x538   :  { %v5841_v59 = vpop.f32.mrb[76].mxu1  ;;  %v6189_v31 = vadd.f32 %v12973_v24, %v6181_v34  ;;  %v6293_v5 = vmax.f32 %v6291_v0, %v6292_v51  ;;  %v6247_v9 = vmax.f32 %v6245_v12, %v6246_v62  ;;  %vm6316_vm3 = vcmask 1041409  }
 0x539   :  { %v5842_v8 = vpop.f32.mrb[77].mxu1  ;;  %v12996_v59 = vadd.f32 %v12973_v24, %v5938_v44  ;;  %v6163_v23 = vmax.f32 %v6161_v1, 0.0  ;;  %v6364_v52 = vunpack.c.l.b16 %v13016_v39  ;;  %v6227_v35 = vmax.f32 %v6225_v58, %v6226_v61 }
 0x53a   :  { %v5843_v19 = vpop.f32.mrb[78].mxu1  ;;  %v6037_v8 = vmax.f32 %v6035_v4, %v6036_v40  ;;  %v13014_v4 = vpack.c.bf16 %v6067_v20, %v6067_v20  ;;  %v6274_v3 = vrot.slane %v6273_v41, 2  ;;  %v6294_v27 = vrot.slane %v6293_v5, 2 }
 0x53b   :  { %v5844_v54 = vpop.f32.mrb[79].mxu1  ;;  %v6113_v19 = vadd.f32 %v12973_v24, %v6105_v18 }
 0x53c   :  { %v13011_v22 = vadd.f32 %v12973_v24, %v6037_v8  ;;  %v6355_v29 = vunpack.c.l.b16 %v13014_v4  ;;  %v6275_v49 = vmax.f32 %v6273_v41, %v6274_v3  ;;  %v13041_v34 = vmax.f32 %v6293_v5, %v6294_v27 }
 0x53d   :  { %v6115_v21 = vmax.f32 %v6113_v19, 0.0  ;;  %v6191_v19 = vmax.f32 %v6189_v31, 0.0 }
 0x53e   :  { %v6276_v5 = vrot.slane %v6275_v49, 1 }
 0x53f   :  { %v13021_v33 = vpack.c.bf16 %v6115_v21, %v6115_v21 }
 0x540   :  { %v5847_v10 = vpop.f32.mrb[80].mxu1 }
 0x541   :  { %v5848_v28 = vpop.f32.mrb[81].mxu1  ;;  %v6133_v10 = vmax.f32 %v6131_v43, %v6132_v63  ;;  %v13032_v43 = vpack.c.bf16 %v6163_v23, %v6163_v23 }
 0x542   :  { %v5849_v32 = vpop.f32.mrb[82].mxu1 }
 0x543   :  { %v5850_v17 = vpop.f32.mrb[83].mxu1  ;;  %v13035_v57 = vadd.f32 %v12973_v24, %v6133_v10 }
 0x544   :  { %v6209_v17 = vadd.f32 %v12973_v24, %v6201_v37 }
 0x546   :  { %v6211_v0 = vmax.f32 %v6209_v17, 0.0 }
 0x548   :  { %v5853_v42 = vpop.f32.mrb[36].mxu1  ;;  %v13045_v10 = vpack.c.bf16 %v6211_v0, %v6211_v0 }
 0x549   :  { %v5855_v54 = vpop.f32.mrb[37].mxu1 }
 0x54a   :  { %v5856_v14 = vpop.f32.mrb[38].mxu1  ;;  %v6248_v54 = vrot.slane %v6247_v9, 1 }
 0x54b   :  { %v5926_v60 = vrot.slane %v5856_v14, 4  ;;  %v5858_v36 = vpop.f32.mrb[39].mxu1 }
 0x54c   :  { %v6389_v36 = vunpack.c.l.b16 %v13032_v43  ;;  %v6249_v23 = vmax.f32 %v6247_v9, %v6248_v54 }
 0x54d   :  { %v5930_v38 = vmax.f32 %v5853_v42, %v5926_v60  ;;  %v6373_v60 = vunpack.c.l.b16 %v13021_v33 }
 0x54e   :  { %v13052_v3 = vadd.f32 %v12973_v24, %v6249_v23 }
 0x54f   :  { %v5939_v28 = vsel %vm4307_vm2, %v5930_v38, -inf  ;;  %v5960_v55 = vsel %vm5952_vm11, %v5930_v38, -inf  ;;  %v13043_v38 = vpack.c.bf16 %v6191_v19, %v6191_v19 }
 0x550   :  { %v5940_v6 = vrot.slane %v5939_v28, 4  ;;  %v5961_v32 = vrot.slane %v5960_v55, 4  ;;  %v5861_v44 = vpop.f32.mrb[40].mxu1 }
 0x551   :  { %v5976_v40 = vrot.slane %v5861_v44, 4  ;;  %v5863_v7 = vpop.f32.mrb[41].mxu1 }
 0x552   :  { %v5941_v13 = vmax.f32 %v5939_v28, %v5940_v6  ;;  %v5962_v18 = vmax.f32 %v5960_v55, %v5961_v32  ;;  %v5864_v53 = vpop.f32.mrb[42].mxu1 }
 0x553   :  { %v5980_v8 = vmax.f32 %v5853_v42, %v5976_v40  ;;  %v5866_v16 = vpop.f32.mrb[43].mxu1  ;;  %v6228_v42 = vrot.slane %v6227_v35, 1 }
 0x554   :  { %v5963_v12 = vrot.slane %v5962_v18, 2  ;;  %v5942_v63 = vrot.slane %v5941_v13, 2 }
 0x555   :  { %v5989_v20 = vsel %vm5981_vm4, %v5980_v8, -inf  ;;  %v6010_v30 = vsel %vm6002_vm9, %v5980_v8, -inf  ;;  %v13047_v44 = vmax.f32 %v6227_v35, %v6228_v42 }
 0x556   :  { %v5964_v1 = vmax.f32 %v5962_v18, %v5963_v12  ;;  %v5990_v14 = vrot.slane %v5989_v20, 4  ;;  %v6011_v58 = vrot.slane %v6010_v30, 4  ;;  %v5943_v55 = vmax.f32 %v5941_v13, %v5942_v63 }
 0x557   :  { %v6296_v18 = vrot.slane %v13041_v34, 1 }
 0x558   :  { %v5965_v51 = vrot.slane %v5964_v1, 1  ;;  %v5991_v21 = vmax.f32 %v5989_v20, %v5990_v14  ;;  %v6012_v37 = vmax.f32 %v6010_v30, %v6011_v58  ;;  %v5869_v62 = vpop.f32.mrb[44].mxu1  ;;  %v5944_v16 = vrot.slane %v5943_v55, 1 }
 0x559   :  { %v6026_v61 = vrot.slane %v5869_v62, 4  ;;  %v5871_v28 = vpop.f32.mrb[45].mxu1  ;;  %v6398_v30 = vunpack.c.l.b16 %v13043_v38  ;;  %v13106_v4 = vmax.f32 %v13041_v34, %v6296_v18 }
 0x55a   :  { %v5966_v31 = vmax.f32 %v5964_v1, %v5965_v51  ;;  %v5992_v41 = vrot.slane %v5991_v21, 2  ;;  %v6013_v6 = vrot.slane %v6012_v37, 2  ;;  %v5872_v32 = vpop.f32.mrb[46].mxu1  ;;  %v13059_v51 = vmax.f32 %v6275_v49, %v6276_v5 }
 0x55b   :  { %v6030_v17 = vmax.f32 %v5864_v53, %v6026_v61  ;;  %v6074_v40 = vrot.slane %v5872_v32, 4  ;;  %v5874_v7 = vpop.f32.mrb[47].mxu1  ;;  %v5945_v23 = vmax.f32 %v5943_v55, %v5944_v16 }
 0x55c   :  { %v5968_v25 = vadd.f32 %v12973_v24, %v5966_v31  ;;  %v5993_v45 = vmax.f32 %v5991_v21, %v5992_v41  ;;  %v6014_v9 = vmax.f32 %v6012_v37, %v6013_v6  ;;  %v5948_v7 = vmax.f32 %v12996_v59, 0.0 }
 0x55d   :  { %v6038_v13 = vsel %vm4307_vm2, %v6030_v17, -inf  ;;  %v6058_v8 = vsel %vm5952_vm11, %v6030_v17, -inf  ;;  %v6078_v35 = vmax.f32 %v5864_v53, %v6074_v40  ;;  %v13065_v16 = vadd.f32 %v12973_v24, %v5945_v23 }
 0x55e   :  { %v5970_v19 = vmax.f32 %v5968_v25, 0.0  ;;  %v5994_v27 = vrot.slane %v5993_v45, 1  ;;  %v6015_v12 = vrot.slane %v6014_v9, 1  ;;  %v6059_v0 = vrot.slane %v6058_v8, 4 }
 0x55f   :  { %v6086_v54 = vsel %vm5981_vm4, %v6078_v35, -inf  ;;  %v6106_v20 = vsel %vm6002_vm9, %v6078_v35, -inf  ;;  %v6039_v14 = vrot.slane %v6038_v13, 4 }
 0x560   :  { %v5972_v63 = vpack.c.bf16 %v5970_v19, %v5970_v19  ;;  %v5995_v1 = vmax.f32 %v5993_v45, %v5994_v27  ;;  %v6087_v58 = vrot.slane %v6086_v54, 4  ;;  %v5877_v42 = vpop.f32.mrb[48].mxu1  ;;  %v6016_v21 = vmax.f32 %v6014_v9, %v6015_v12 }
 0x561   :  { %v6060_v53 = vmax.f32 %v6058_v8, %v6059_v0  ;;  %v6107_v37 = vrot.slane %v6106_v20, 4  ;;  %v5879_v62 = vpop.f32.mrb[49].mxu1  ;;  %v6040_v45 = vmax.f32 %v6038_v13, %v6039_v14 }
 0x562   :  { %v5997_v61 = vadd.f32 %v12973_v24, %v5995_v1  ;;  %v6088_v28 = vmax.f32 %v6086_v54, %v6087_v58  ;;  %v5880_v31 = vpop.f32.mrb[50].mxu1  ;;  %v6322_v41 = vunpack.c.l.b16 %v5972_v63  ;;  %v6018_v9 = vadd.f32 %v12973_v24, %v6016_v21 }
 0x563   :  { %v6061_v6 = vrot.slane %v6060_v53, 2  ;;  %v6108_v32 = vmax.f32 %v6106_v20, %v6107_v37  ;;  %v6122_v17 = vrot.slane %v5880_v31, 4  ;;  %v5882_v40 = vpop.f32.mrb[51].mxu1  ;;  %v13071_v54 = vpack.c.bf16 %v5948_v7, %v5948_v7 }
 0x564   :  { %v5999_v25 = vmax.f32 %v5997_v61, 0.0  ;;  %v6089_v49 = vrot.slane %v6088_v28, 2  ;;  %v6323_v5 = vrot.slane %v6322_v41, 7  ;;  %v6041_v20 = vrot.slane %v6040_v45, 2 }
 0x565   :  { %v6062_v8 = vmax.f32 %v6060_v53, %v6061_v6  ;;  %v6109_v35 = vrot.slane %v6108_v32, 2  ;;  %v6126_v55 = vmax.f32 %v5877_v42, %v6122_v17  ;;  %v6020_v21 = vmax.f32 %v6018_v9, 0.0 }
 0x566   :  { %v6001_v19 = vpack.c.bf16 %v5999_v25, %v5999_v25  ;;  %v6090_v27 = vmax.f32 %v6088_v28, %v6089_v49  ;;  %v6324_v12 = vsel %vm6316_vm3, %v6323_v5, %v6321_v11  ;;  %v5949_v41 = vmax.f32 %v13065_v16, 0.0 }
 0x567   :  { %v6063_v0 = vrot.slane %v6062_v8, 1  ;;  %v6110_v59 = vmax.f32 %v6108_v32, %v6109_v35  ;;  %v6134_v13 = vsel %vm4307_vm2, %v6126_v55, -inf  ;;  %v6154_v1 = vsel %vm5952_vm11, %v6126_v55, -inf }
 0x568   :  { %v6091_v63 = vrot.slane %v6090_v27, 1  ;;  %v5885_v14 = vpop.f32.mrb[52].mxu1  ;;  %v6325_v58 = vpack.c.b16 %v6324_v12, %v6324_v12  ;;  %v6155_v62 = vrot.slane %v6154_v1, 4  ;;  %v6135_v61 = vrot.slane %v6134_v13, 4 }
 0x569   :  { %v6064_v53 = vmax.f32 %v6062_v8, %v6063_v0  ;;  %v6111_v37 = vrot.slane %v6110_v59, 1  ;;  %v5887_v23 = vpop.f32.mrb[53].mxu1  ;;  %v6170_v11 = vrot.slane %v5885_v14, 4  ;;  %v6331_v31 = vunpack.c.l.b16 %v6001_v19 }
 0x56a   :  { %v6092_v48 = vmax.f32 %v6090_v27, %v6091_v63  ;;  %6326 = vrot.lane.b32.xlu0 %v6325_v58, %s8042_s13  ;;  %v13075_v28 = vpop.f32.mrb[54].mxu1  ;;  %v6156_v17 = vmax.f32 %v6154_v1, %v6155_v62  ;;  %v6042_v7 = vmax.f32 %v6040_v45, %v6041_v20  ;;  %v6022_v9 = vpack.c.bf16 %v6020_v21, %v6020_v21 }
 0x56b   :  { %v6066_v6 = vadd.f32 %v12973_v24, %v6064_v53  ;;  %v6112_v32 = vmax.f32 %v6110_v59, %v6111_v37  ;;  %v5890_v40 = vpop.f32.mrb[55].mxu1  ;;  %v6174_v49 = vmax.f32 %v5877_v42, %v6170_v11  ;;  %v6332_v5 = vrot.slane %v6331_v31, 7 }
 0x56c   :  { %v6094_v25 = vadd.f32 %v12973_v24, %v6092_v48  ;;  %v6157_v55 = vrot.slane %v6156_v17, 2  ;;  %v6136_v12 = vmax.f32 %v6134_v13, %v6135_v61  ;;  %v6043_v45 = vrot.slane %v6042_v7, 1 }
 0x56d   :  { %v6068_v8 = vmax.f32 %v6066_v6, 0.0  ;;  %v6114_v35 = vadd.f32 %v12973_v24, %v6112_v32  ;;  %v6182_v19 = vsel %vm5981_vm4, %v6174_v49, -inf  ;;  %v6202_v16 = vsel %vm6002_vm9, %v6174_v49, -inf }
 0x56e   :  { %v6096_v27 = vmax.f32 %v6094_v25, 0.0  ;;  %v6158_v63 = vmax.f32 %v6156_v17, %v6157_v55  ;;  %v6183_v1 = vrot.slane %v6182_v19, 4  ;;  %v6203_v14 = vrot.slane %v6202_v16, 4 }
 0x56f   :  { %v6070_v0 = vpack.c.bf16 %v6068_v8, %v6068_v8  ;;  %v6116_v59 = vmax.f32 %v6114_v35, 0.0  ;;  %v6333_v42 = vsel %vm6316_vm3, %v6332_v5, %v6330_v46  ;;  %v6137_v13 = vrot.slane %v6136_v12, 2 }
 0x570   :  { %v6098_v20 = vpack.c.bf16 %v6096_v27, %v6096_v27  ;;  %v6159_v21 = vrot.slane %v6158_v63, 1  ;;  %v6184_v53 = vmax.f32 %v6182_v19, %v6183_v1  ;;  %v6334_v37 = vpack.c.b16 %v6333_v42, %v6333_v42 }
 0x571   :  { %v6118_v58 = vpack.c.bf16 %v6116_v59, %v6116_v59  ;;  %v6204_v62 = vmax.f32 %v6202_v16, %v6203_v14  ;;  %v6340_v23 = vunpack.c.l.b16 %v6022_v9  ;;  %v6356_v48 = vunpack.c.l.b16 %v6070_v0 }
 0x572   :  { %v6160_v61 = vmax.f32 %v6158_v63, %v6159_v21  ;;  %v6185_v11 = vrot.slane %v6184_v53, 2  ;;  %6335 = vrot.lane.b32.xlu0 %v6334_v37, %s8044_s17  ;;  %v6365_v31 = vunpack.c.l.b16 %v6098_v20  ;;  %v6044_v32 = vmax.f32 %v6042_v7, %v6043_v45  ;;  %v7981_v7 = vld [vmem:[%s13458_s3 + $0xc0] sm:$0xff]  }
 0x573   :  { %v6374_v6 = vunpack.c.l.b16 %v6118_v58  ;;  %v6205_v17 = vrot.slane %v6204_v62, 2  ;;  %v6341_v40 = vrot.slane %v6340_v23, 7  ;;  %v6357_v50 = vrot.slane %v6356_v48, 7  ;;  %7524 = vmatprep.subr.bf16.mxu0 %v7981_v7 }
 0x574   :  { %v6162_v46 = vadd.f32 %v12973_v24, %v6160_v61  ;;  %v6186_v25 = vmax.f32 %v6184_v53, %v6185_v11  ;;  %v6366_v49 = vrot.slane %v6365_v31, 7  ;;  %v6138_v8 = vmax.f32 %v6136_v12, %v6137_v13 }
 0x575   :  { %v6375_v5 = vrot.slane %v6374_v6, 7  ;;  %v6206_v35 = vmax.f32 %v6204_v62, %v6205_v17  ;;  %v6342_v9 = vsel %vm6316_vm3, %v6341_v40, %v6339_v2  ;;  %v6358_v55 = vsel %vm6316_vm3, %v6357_v50, %v6355_v29 }
 0x576   :  { %v6164_v27 = vmax.f32 %v6162_v46, 0.0  ;;  %v6187_v19 = vrot.slane %v6186_v25, 1  ;;  %v6343_v16 = vpack.c.b16 %v6342_v9, %v6342_v9  ;;  %v6359_v0 = vpack.c.b16 %v6358_v55, %v6358_v55 }
 0x577   :  { %v6207_v59 = vrot.slane %v6206_v35, 1  ;;  %v6367_v12 = vsel %vm6316_vm3, %v6366_v49, %v6364_v52  ;;  %v6376_v47 = vsel %vm6316_vm3, %v6375_v5, %v6373_v60  ;;  %v5951_v2 = vpack.c.bf16 %v5949_v41, %v5949_v41 }
 0x578   :  { %v6166_v29 = vpack.c.bf16 %v6164_v27, %v6164_v27  ;;  %v6188_v63 = vmax.f32 %v6186_v25, %v6187_v19  ;;  %6344 = vrot.lane.b32.xlu0 %v6343_v16, %s8046_s21  ;;  %6360 = vrot.lane.b32.xlu1 %v6359_v0, %s8042_s13  ;;  %v6407_v52 = vunpack.c.l.b16 %v13045_v10  ;;  %v6313_v60 = vunpack.c.l.b16 %v13071_v54 }
 0x579   :  { %v5893_v39 = vpop.f32.mrb[56].mxu1  ;;  %v6208_v1 = vmax.f32 %v6206_v35, %v6207_v59  ;;  %v6314_v41 = vunpack.c.l.b16 %v5951_v2  ;;  %v13113_v20 = vadd.f32 %v12973_v24, %v6044_v32  ;;  %v6368_v18 = vpack.c.b16 %v6367_v12, %v6367_v12 }
 0x57a   :  { %v6218_v33 = vrot.slane %v5893_v39, 4  ;;  %v5895_v45 = vpop.f32.mrb[57].mxu1  ;;  %v6190_v34 = vadd.f32 %v12973_v24, %v6188_v63  ;;  %v6390_v42 = vunpack.c.l.b16 %v6166_v29  ;;  %v6139_v58 = vrot.slane %v6138_v8, 1 }
 0x57b   :  { %v5896_v14 = vpop.f32.mrb[58].mxu1  ;;  %v6210_v21 = vadd.f32 %v12973_v24, %v6208_v1  ;;  %v6377_v54 = vpack.c.b16 %v6376_v47, %v6376_v47  ;;  %v6315_v23 = vrot.slane %v6314_v41, 7  ;;  %v6259_v59 = vmax.f32 %v13052_v3, 0.0 }
 0x57c   :  { %v6222_v53 = vmax.f32 %v13075_v28, %v6218_v33  ;;  %v6266_v10 = vrot.slane %v5896_v14, 4  ;;  %v5898_v37 = vpop.f32.mrb[59].mxu1  ;;  %v6192_v13 = vmax.f32 %v6190_v34, 0.0  ;;  %6369 = vrot.lane.b32.xlu1 %v6368_v18, %s8044_s17  ;;  %v6391_v62 = vrot.slane %v6390_v42, 7 }
 0x57d   :  { %v6212_v48 = vmax.f32 %v6210_v21, 0.0  ;;  %v13130_v43 = vsel %vm6316_vm3, %v6315_v23, %v6313_v60  ;;  %v6285_v12 = vadd.f32 %v12973_v24, %v13059_v51  ;;  %v6048_v1 = vmax.f32 %v13113_v20, 0.0 }
 0x57e   :  { %v6230_v61 = vsel %vm4307_vm2, %v6222_v53, -inf  ;;  %v6250_v11 = vsel %vm5952_vm11, %v6222_v53, -inf  ;;  %v6270_v31 = vmax.f32 %v13075_v28, %v6266_v10  ;;  %v6194_v6 = vpack.c.bf16 %v6192_v13, %v6192_v13 }
 0x57f   :  { %v6231_v32 = vrot.slane %v6230_v61, 4  ;;  %v6251_v17 = vrot.slane %v6250_v11, 4  ;;  %v6392_v40 = vsel %vm6316_vm3, %v6391_v62, %v6389_v36  ;;  %v6214_v50 = vpack.c.bf16 %v6212_v48, %v6212_v48 }
 0x580   :  { %v6278_v46 = vsel %vm5981_vm4, %v6270_v31, -inf  ;;  %v6298_v25 = vsel %vm6002_vm9, %v6270_v31, -inf  ;;  %v6393_v49 = vpack.c.b16 %v6392_v40, %v6392_v40  ;;  %6378 = vrot.lane.b32.xlu1 %v6377_v54, %s8046_s21  ;;  %v6140_v28 = vmax.f32 %v6138_v8, %v6139_v58 }
 0x581   :  { %v6232_v5 = vmax.f32 %v6230_v61, %v6231_v32  ;;  %v6252_v35 = vmax.f32 %v6250_v11, %v6251_v17  ;;  %v6279_v9 = vrot.slane %v6278_v46, 4  ;;  %v6299_v55 = vrot.slane %v6298_v25, 4 }
 0x582   :  { %6394 = vrot.lane.b32.xlu0 %v6393_v49, %s8042_s13  ;;  %v6399_v7 = vunpack.c.l.b16 %v6194_v6  ;;  %v6408_v27 = vunpack.c.l.b16 %v6214_v50  ;;  %v6142_v33 = vadd.f32 %v12973_v24, %v6140_v28  ;;  %v6237_v18 = vadd.f32 %v12973_v24, %v13047_v44 }
 0x583   :  { %v6233_v36 = vrot.slane %v6232_v5, 2  ;;  %v6253_v19 = vrot.slane %v6252_v35, 2  ;;  %v6280_v16 = vmax.f32 %v6278_v46, %v6279_v9  ;;  %v6300_v0 = vmax.f32 %v6298_v25, %v6299_v55 }
 0x584   :  { %v6400_v47 = vrot.slane %v6399_v7, 7  ;;  %v6409_v2 = vrot.slane %v6408_v27, 7  ;;  %v6261_v14 = vpack.c.bf16 %v6259_v59, %v6259_v59  ;;  %v6305_v42 = vadd.f32 %v12973_v24, %v13106_v4 }
 0x585   :  { %v6234_v29 = vmax.f32 %v6232_v5, %v6233_v36  ;;  %v6254_v8 = vmax.f32 %v6252_v35, %v6253_v19  ;;  %v6281_v63 = vrot.slane %v6280_v16, 2  ;;  %v6301_v39 = vrot.slane %v6300_v0, 2  ;;  %v14583_v19 = vld [vmem:[#allocation197_spill] sm:$0xff] }
 0x586   :  { %v6401_v45 = vsel %vm6316_vm3, %v6400_v47, %v6398_v30  ;;  %v6410_v60 = vsel %vm6316_vm3, %v6409_v2, %v6407_v52  ;;  %v6287_v10 = vmax.f32 %v6285_v12, 0.0  ;;  %v6144_v30 = vmax.f32 %v6142_v33, 0.0 }
 0x587   :  { %v6235_v3 = vrot.slane %v6234_v29, 1  ;;  %v6255_v41 = vrot.slane %v6254_v8, 1  ;;  %v6282_v34 = vmax.f32 %v6280_v16, %v6281_v63  ;;  %v6302_v51 = vmax.f32 %v6300_v0, %v6301_v39 }
 0x588   :  { %v6402_v20 = vpack.c.b16 %v6401_v45, %v6401_v45  ;;  %v6047_v52 = vmax.f32 %v13011_v22, 0.0  ;;  %v6050_v37 = vpack.c.bf16 %v6048_v1, %v6048_v1  ;;  %v6307_v23 = vmax.f32 %v6305_v42, 0.0  ;;  %v14584_v42 = vld [vmem:[#allocation32_spill] sm:$0xff] }
 0x589   :  { %v6236_v58 = vmax.f32 %v6234_v29, %v6235_v3  ;;  %v6256_v21 = vmax.f32 %v6254_v8, %v6255_v41  ;;  %v6283_v53 = vrot.slane %v6282_v34, 1  ;;  %v6303_v38 = vrot.slane %v6302_v51, 1 }
 0x58a   :  { %6403 = vrot.lane.b32.xlu0 %v6402_v20, %s8044_s17  ;;  %v6411_v4 = vpack.c.b16 %v6410_v60, %v6410_v60  ;;  %v6049_v48 = vpack.c.bf16 %v6047_v52, %v6047_v52  ;;  %v6349_v61 = vunpack.c.l.b16 %v6050_v37  ;;  %v6289_v17 = vpack.c.bf16 %v6287_v10, %v6287_v10  ;;  %v14587_v10 = vld [vmem:[#allocation142_spill] sm:$0xff]  ;;  %v14588_v52 = vld [vmem:[#allocation143_spill] sm:$0xff] }
 0x58b   :  { %v6238_v13 = vadd.f32 %v12973_v24, %v6236_v58  ;;  %v6258_v44 = vadd.f32 %v12973_v24, %v6256_v21  ;;  %v6284_v54 = vmax.f32 %v6282_v34, %v6283_v53  ;;  %v6304_v62 = vmax.f32 %v6302_v51, %v6303_v38  ;;  %v14585_v58 = vld [vmem:[#allocation42_spill] sm:$0xff]  ;;  %v14586_v53 = vld [vmem:[#allocation147_spill] sm:$0xff] }
 0x58c   :  { %v6348_v22 = vunpack.c.l.b16 %v6049_v48  ;;  %v6350_v40 = vrot.slane %v6349_v61, 7  ;;  %v6143_v50 = vmax.f32 %v13035_v57, 0.0  ;;  %v6146_v5 = vpack.c.bf16 %v6144_v30, %v6144_v30  ;;  %v14594_v61 = vld [vmem:[#allocation193_spill] sm:$0xff] }
 0x58d   :  { %v6240_v11 = vmax.f32 %v6238_v13, 0.0  ;;  %v6260_v31 = vmax.f32 %v6258_v44, 0.0  ;;  %v6286_v6 = vadd.f32 %v12973_v24, %v6284_v54  ;;  %v6306_v32 = vadd.f32 %v12973_v24, %v6304_v62  ;;  %v14590_v62 = vld [vmem:[#allocation185_spill] sm:$0xff] }
 0x58e   :  { %6412 = vrot.lane.b32.xlu0 %v6411_v4, %s8046_s21  ;;  %v13154_v35 = vsel %vm6316_vm3, %v6350_v40, %v6348_v22  ;;  %v6145_v9 = vpack.c.bf16 %v6143_v50, %v6143_v50  ;;  %v6239_v55 = vmax.f32 %v6237_v18, 0.0  ;;  %v6309_v7 = vpack.c.bf16 %v6307_v23, %v6307_v23  ;;  %v14591_v23 = vld [vmem:[#allocation194_spill] sm:$0xff] }
 0x58f   :  { %v6262_v46 = vpack.c.bf16 %v6260_v31, %v6260_v31  ;;  %v6288_v25 = vmax.f32 %v6286_v6, 0.0  ;;  %v6308_v49 = vmax.f32 %v6306_v32, 0.0  ;;  %v6242_v28 = vpack.c.bf16 %v6240_v11, %v6240_v11  ;;  %v14595_v31 = vld [vmem:[#allocation189_spill] sm:$0xff]  ;;  %v14596_v32 = vld [vmem:[#allocation16_spill] sm:$0xff]  ;;  %v14597_v40 = vld [vmem:[#allocation190_spill] sm:$0xff] }
 0x590   :  { %v6423_v16 = vunpack.c.l.b16 %v6261_v14  ;;  %v6383_v0 = vunpack.c.l.b16 %v6146_v5  ;;  %v6241_v57 = vpack.c.bf16 %v6239_v55, %v6239_v55  ;;  %v6432_v47 = vunpack.c.l.b16 %v6289_v17 }
 0x591   :  { %v6290_v27 = vpack.c.bf16 %v6288_v25, %v6288_v25  ;;  %v6310_v24 = vpack.c.bf16 %v6308_v49, %v6308_v49  ;;  %v6424_v36 = vunpack.c.l.b16 %v6262_v46  ;;  %v6417_v59 = vunpack.c.l.b16 %v6242_v28  ;;  %v14598_v46 = vld [vmem:[#allocation118_spill] sm:$0xff] }
 0x592   :  { %2898 = vrot.lane.b32.xlu0 %v14583_v19, %s8042_s13  ;;  %v6382_v8 = vunpack.c.l.b16 %v6145_v9  ;;  %v6384_v63 = vrot.slane %v6383_v0, 7  ;;  %v6416_v39 = vunpack.c.l.b16 %v6241_v57  ;;  %v6441_v60 = vunpack.c.l.b16 %v6309_v7  ;;  %v14603_v57 = vld [vmem:[#allocation62_spill] sm:$0xff] }
 0x593   :  { %v6425_v12 = vrot.slane %v6424_v36, 7  ;;  %v6433_v2 = vunpack.c.l.b16 %v6290_v27  ;;  %v6442_v29 = vunpack.c.l.b16 %v6310_v24  ;;  %v6418_v1 = vrot.slane %v6417_v59, 7  ;;  %v14601_v27 = vld [vmem:[#allocation103_spill] sm:$0xff] }
 0x594   :  { %v13162_v34 = vsel %vm6316_vm3, %v6384_v63, %v6382_v8  ;;  %v2602_v20 = vrot.slane %v14584_v42, 2  ;;  %v2605_v21 = vrot.slane %v14585_v58, 3  ;;  %v2697_v13 = vrot.slane %v14583_v19, 3  ;;  %v7972_v63 = vld [vmem:[#allocation2 + $0x90] ss:$0 sps:$4 sm:$0x11]  }
 0x595   :  { %v6426_v33 = vsel %vm6316_vm3, %v6425_v12, %v6423_v16  ;;  %v6434_v45 = vrot.slane %v6433_v2, 7  ;;  %v6443_v3 = vrot.slane %v6442_v29, 7  ;;  %v13165_v51 = vsel %vm6316_vm3, %v6418_v1, %v6416_v39  ;;  %v14605_v12 = vld [vmem:[#allocation14_spill] sm:$0xff]  ;;  %v14606_v29 = vld [vmem:[#allocation153_spill] sm:$0xff] }
 0x596   :  { %2271 = vrot.lane.b32.xlu0 %v12991_v26, %s8048_s0  ;;  %v6427_v41 = vpack.c.b16 %v6426_v33, %v6426_v33  ;;  %v2606_v38 = vor.u32 %v2605_v21, %v2602_v20  ;;  %v14589_v44 = vrot.slane %v14585_v58, 1  ;;  %v14592_v4 = vrot.slane %v14591_v23, 3  ;;  %v7973_v33 = vld [vmem:[#allocation2 + $0x90] ss:$0 sps:$4 sm:$0x33]  }
 0x597   :  { %v6435_v18 = vsel %vm6316_vm3, %v6434_v45, %v6432_v47  ;;  %v6444_v14 = vsel %vm6316_vm3, %v6443_v3, %v6441_v60  ;;  %vm14593_vm2 = vcmask 1044480   ;;  %v2954_v11 = vrot.slane %v14594_v61, 1  ;;  %v14607_v60 = vld [vmem:[#allocation33_spill] sm:$0xff] }
 0x598   :  { %6428 = vrot.lane.b32.xlu1 %v6427_v41, %s8042_s13  ;;  %v6436_v26 = vpack.c.b16 %v6435_v18, %v6435_v18  ;;  %v6445_v30 = vpack.c.b16 %v6444_v14, %v6444_v14  ;;  %v2607_v37 = vsel %vm2455_vm12, %v14588_v52, %v2606_v38  ;;  %v2953_v54 = vor.u32 %v14589_v44, %v14584_v42  ;;  %v14608_v41 = vld [vmem:[#allocation182_spill] sm:$0xff]  ;;  %vm14609_vm9 = vmmov %vm14593_vm2 }
 0x599   :  { %v2698_v48 = vsel %vm14593_vm2, %v14592_v4, %v2697_v13  ;;  %v2228_v6 = vrot.slane %v14595_v31, 1  ;;  %v2229_v17 = vrot.slane %v14596_v32, 2  ;;  %v3040_v50 = vrot.slane %v14597_v40, 1 }
 0x59a   :  { %2348 = vrot.lane.b32.xlu0 %v14586_v53, %s8044_s17  ;;  %v2955_v22 = vsel %vm1890_vm6, %v2953_v54, %v2954_v11  ;;  %v3153_v25 = vrot.slane %v14598_v46, 1  ;;  %v3154_v49 = vrot.slane %v14594_v61, 2  ;;  %v14599_v9 = vrot.slane %v14583_v19, 1 }
 0x59b   :  { %v2230_v5 = vor.u32 %v2229_v17, %v2228_v6  ;;  %vm14600_vm11 = vsmask.f32 6400  ;;  %v13211_v36 = vrot.slane %v14597_v40, 2  ;;  %v2611_v16 = vrot.slane %v14598_v46, 2 }
 0x59c   :  { %6437 = vrot.lane.b32.xlu1 %v6436_v26, %s8044_s17  ;;  %v3041_v55 = vsel %vm2078_vm1, %v14599_v9, %v3040_v50  ;;  %v3155_v28 = vor.u32 %v3154_v49, %v3153_v25  ;;  %vm14602_vm4 = vmmov %vm14600_vm11  ;;  %v2614_v0 = vrot.slane %v14594_v61, 3  ;;  %v3262_v47 = vrot.slane %v14605_v12, 2  ;;  %v14610_v26 = vld [vmem:[#allocation24_spill] sm:$0xff]  ;;  %v7974_v9 = vld [vmem:[#allocation2 + $0x94] ss:$0 sps:$4 sm:$0x33]  }
 0x59d   :  { %v2231_v7 = vsel %vm14600_vm11, %v12980_v56, %v2230_v5  ;;  %v14604_v56 = vrot.slane %v14583_v19, 2  ;;  %v2699_v1 = vrot.slane %v14597_v40, 3  ;;  %v2035_v19 = vshll.u32 %v7972_v63, 16  ;;  %vm14614_vm3 = vmmov %vm14602_vm4 }
 0x59e   :  { %2446 = vrot.lane.b32.xlu0 %v14587_v10, %s8043_s14  ;;  %v3156_v24 = vsel %vm14602_vm4, %v14601_v27, %v3155_v28  ;;  %v2615_v2 = vor.u32 %v2614_v0, %v2611_v16  ;;  %v3263_v8 = vsel %vm2280_vm7, %v14606_v29, %v3262_v47  ;;  %v2956_v45 = vor.u32 %v2954_v11, %v14598_v46  ;;  %v14611_v10 = vld [vmem:[#allocation34_spill] sm:$0xff]  ;;  %v14613_v11 = vld [vmem:[#allocation184_spill] sm:$0xff]  ;;  %vm14615_vm2 = vmmov %vm14614_vm3 }
 0x59f   :  { %v2413_v59 = vsel %vm2280_vm7, %v14604_v56, %v13211_v36  ;;  %v2960_v3 = vrot.slane %v14607_v60, 1  ;;  %v2700_v18 = vsel %vm14609_vm9, %v2697_v13, %v2699_v1  ;;  %v2037_v14 = vrot.slane %v2035_v19, 1  ;;  %vm14617_vm11 = vmmov %vm14609_vm9 }
 0x5a0   :  { %6446 = vrot.lane.b32.xlu1 %v6445_v30, %s8046_s21  ;;  %v2616_v39 = vsel %vm2455_vm12, %v2606_v38, %v2615_v2  ;;  %v2233_v20 = vshrl.u32 %v7973_v33, 16  ;;  %v2236_v21 = vshll.u32 %v7973_v33, 16  ;;  %v3042_v38 = vrot.slane %v14610_v26, 1 }
 0x5a1   :  { %v2961_v53 = vsel %vm1890_vm6, %v2956_v45, %v2960_v3  ;;  %v3157_v30 = vrot.slane %v14611_v10, 1  ;;  %v3158_v52 = vrot.slane %v14607_v60, 2  ;;  %v2114_v54 = vrot.slane %v7972_v63, 1  ;;  %v7979_v63 = vld [vmem:[#allocation2 + $0x9c] ss:$0 sps:$4 sm:$0x33]  }
 0x5a2   :  { %2656 = vrot.lane.b32.xlu0 %v2607_v37, %s8046_s21  ;;  %v14612_v37 = vld [vmem:[#allocation38_spill] sm:$0xff]  ;;  %v2235_v13 = vrot.slane %v2233_v20, 1  ;;  %v3043_v23 = vsel %vm2078_vm1, %v3040_v50, %v3042_v38  ;;  %v3211_v17 = vrot.slane %v14610_v26, 2  ;;  %v2316_v49 = vrot.slane %v7973_v33, 2 }
 0x5a3   :  { %v2038_v44 = vsel %vm1890_vm6, %v14612_v37, %v2037_v14  ;;  %v3159_v4 = vor.u32 %v3158_v52, %v3157_v30  ;;  %v2115_v31 = vsel %vm2078_vm1, %v14613_v11, %v2114_v54  ;;  %v2414_v0 = vrot.slane %v7974_v9, 2  ;;  %v7980_v20 = vld [vmem:[#allocation2 + $0xa0] ss:$0 sps:$4 sm:$0x33]   ;;  %v8000_v30 = vld [vmem:[%s13459_s4 + $0x10] sm:$0xff]   ;;  %v8001_v54 = vld [vmem:[%s13459_s4 + $0x18] sm:$0xff]  }
 0x5a4   :  { %2859 = vrot.lane.b32.xlu1 %v14590_v62, %s8047_s24  ;;  %v2238_v62 = vrot.slane %v2236_v21, 2  ;;  %v3212_v27 = vsel %vm2280_vm7, %v13211_v36, %v3211_v17  ;;  %v2317_v16 = vsel %vm2280_vm7, %v14606_v29, %v2316_v49  ;;  %v3162_v33 = vshrl.u32 %v7979_v63, 16  ;;  %v7998_v21 = vld [vmem:[%s13459_s4] sm:$0xff]   ;;  %v7984_v9 = vld [vmem:[%s13458_s3 + $0x88] sm:$0xff]  }
 0x5a5   :  { %v3160_v32 = vsel %vm14614_vm3, %v3155_v28, %v3159_v4  ;;  %v3165_v45 = vshll.u32 %v7979_v63, 16 }
 0x5a6   :  { %2733 = vrot.lane.b32.xlu0 %v2698_v48, %s8045_s18  ;;  %v7977_v48 = vld [vmem:[#allocation2 + $0x94] ss:$0 sps:$4 sm:$0x77]   ;;  %v2239_v6 = vor.u32 %v2238_v62, %v2235_v13 }
 0x5a7   :  { %v2621_v25 = vshll.u32 %v7977_v48, 16  ;;  %v2701_v29 = vrot.slane %v7977_v48, 3 }
 0x5a8   :  { %3000 = vrot.lane.b32.xlu1 %v2955_v22, %s8048_s0  ;;  %v2618_v22 = vshrl.u32 %v7977_v48, 16  ;;  %v2240_v50 = vsel %vm14615_vm2, %v2230_v5, %v2239_v6  ;;  %v7978_v5 = vld [vmem:[#allocation2 + $0x9c] ss:$0 sps:$4 sm:$0x11]   ;;  %v6318_v48 = vpack.c.b16 %v13130_v43, %v13130_v43 }
 0x5a9   :  { %v3044_v60 = vrot.slane %v7978_v5, 1 }
 0x5aa   :  { %2900 = vrot.lane.b32.xlu0 %v14597_v40, %s8042_s13  ;;  %v2620_v28 = vrot.slane %v2618_v22, 2  ;;  %v7982_v22 = vld [vmem:[%s13458_s3 + $0x80] sm:$0xff]  }
 0x5ac   :  { %3076 = vrot.lane.b32.xlu1 %v3041_v55, %s8044_s17  ;;  %v14616_v55 = vld [vmem:[#allocation15_spill] sm:$0xff] }
 0x5ae   :  { %2273 = vrot.lane.b32.xlu0 %v2231_v7, %s8048_s0  ;;  %v3264_v7 = vrot.slane %v14616_v55, 2 }
 0x5b0   :  { %3200 = vrot.lane.b32.xlu1 %v3156_v24, %s8043_s14  ;;  %v2623_v24 = vrot.slane %v2621_v25, 3 }
 0x5b2   :  { %2350 = vrot.lane.b32.xlu0 %v14603_v57, %s8044_s17  ;;  %v3265_v57 = vsel %vm2280_vm7, %v3262_v47, %v3264_v7  ;;  %v2624_v56 = vor.u32 %v2623_v24, %v2620_v28  ;;  %v2964_v47 = vor.u32 %v14611_v10, %v2960_v3  ;;  %v3045_v3 = vsel %vm2078_vm1, %v3042_v38, %v3044_v60  ;;  %v7987_v24 = vld [vmem:[%s13458_s3 + $0xd8] sm:$0xff]  }
 0x5b3   :  { %v3266_v10 = vrot.slane %v7980_v20, 2  ;;  %vm14619_vm1 = vsmask.f32 4352 }
 0x5b4   :  { %3245 = vrot.lane.b32.xlu1 %v2413_v59, %s8046_s21 }
 0x5b5   :  { %v3267_v37 = vsel %vm2280_vm7, %v3264_v7, %v3266_v10  ;;  %v7985_v7 = vld [vmem:[%s13458_s3 + $0xd0] sm:$0xff]   ;;  %v2812_v10 = vrot.slane %v14585_v58, 4 }
 0x5b6   :  { %2448 = vrot.lane.b32.xlu0 %v2413_v59, %s8043_s14  ;;  %v2415_v59 = vsel %vm2280_vm7, %v13211_v36, %v2414_v0  ;;  %v2702_v36 = vsel %vm14617_vm11, %v2699_v1, %v2701_v29  ;;  %v3213_v1 = vrot.slane %v7979_v63, 2 }
 0x5b8   :  { %3298 = vrot.lane.b32.xlu1 %v3263_v8, %s8045_s18  ;;  %v2966_v8 = vshll.u32 %v7978_v5, 16  ;;  %v3214_v38 = vsel %vm2280_vm7, %v3211_v17, %v3213_v1  ;;  %v7990_v5 = vld [vmem:[%s13458_s3 + $0xa0] sm:$0xff]   ;;  %vm14623_vm7 = vmmov %vm14619_vm1 }
 0x5ba   :  { %2658 = vrot.lane.b32.xlu0 %v2616_v39, %s8046_s21  ;;  %v2625_v39 = vsel %vm2455_vm12, %v2615_v2, %v2624_v56  ;;  %v2968_v19 = vrot.slane %v2966_v8, 1  ;;  %vm14618_vm12 = vmmov %vm14615_vm2  ;;  %v7992_v8 = vld [vmem:[%s13458_s3 + $0xa8] sm:$0xff]  }
 0x5bc   :  { %2861 = vrot.lane.b32.xlu1 %v14608_v41, %s8047_s24  ;;  %v2969_v2 = vsel %vm1890_vm6, %v2964_v47, %v2968_v19  ;;  %v7994_v47 = vld [vmem:[%s13458_s3 + $0xb0] sm:$0xff]   ;;  %vm14621_vm6 = vmmov %vm14619_vm1 }
 0x5be   :  { %2735 = vrot.lane.b32.xlu0 %v2700_v18, %s8045_s18  ;;  %v3164_v18 = vrot.slane %v3162_v33, 1  ;;  %v7995_v33 = vld [vmem:[%s13458_s3 + $0xf8] sm:$0xff]  }
 0x5c0   :  { %3002 = vrot.lane.b32.xlu1 %v2961_v53, %s8048_s0  ;;  %v8049_v53 = vmov 0.0  }
 0x5c1   :  { %7703 = vmatprep.subr.bf16.mxu1 %v8049_v53 }
 0x5c2   :  { %2073 = vrot.lane.b32.xlu0 %v2038_v44, %s8047_s24  ;;  %7704 = vmatpush3.bf16.msra.mxu1 %v7998_v21 }
 0x5c3   :  { %7705 = vmatprep.subr.bf16.mxu1 %v8049_v53 }
 0x5c4   :  { %3078 = vrot.lane.b32.xlu1 %v3043_v23, %s8044_s17  ;;  %v8002_v23 = vld [vmem:[%s13459_s4 + $0x20] sm:$0xff]  }
 0x5c6   :  { %2150 = vrot.lane.b32.xlu0 %v2115_v31, %s8042_s13 }
 0x5c8   :  { %3202 = vrot.lane.b32.xlu1 %v3160_v32, %s8043_s14 }
 0x5ca   :  { %2275 = vrot.lane.b32.xlu0 %v2240_v50, %s8048_s0  ;;  %v7983_v50 = vld [vmem:[%s13458_s3 + $0xc8] sm:$0xff]  }
 0x5cc   :  { %3247 = vrot.lane.b32.xlu1 %v3212_v27, %s8046_s21  ;;  %v7986_v27 = vld [vmem:[%s13458_s3 + $0x90] sm:$0xff]  }
 0x5ce   :  { %2352 = vrot.lane.b32.xlu0 %v2317_v16, %s8044_s17  ;;  %v7988_v16 = vld [vmem:[%s13458_s3 + $0x98] sm:$0xff]  }
 0x5d0   :  { %3300 = vrot.lane.b32.xlu1 %v3265_v57, %s8045_s18  ;;  %v7989_v57 = vld [vmem:[%s13458_s3 + $0xe0] sm:$0xff]  }
 0x5d2   :  { %2450 = vrot.lane.b32.xlu0 %v2415_v59, %s8043_s14  ;;  %v7991_v59 = vld [vmem:[%s13458_s3 + $0xe8] sm:$0xff]  }
 0x5d4   :  { %2863 = vrot.lane.b32.xlu1 %v14605_v12, %s8047_s24  ;;  %v3167_v12 = vrot.slane %v3165_v45, 2 }
 0x5d6   :  { %2660 = vrot.lane.b32.xlu0 %v2625_v39, %s8046_s21  ;;  %v3168_v14 = vor.u32 %v3167_v12, %v3164_v18  ;;  %v7993_v39 = vld [vmem:[%s13458_s3 + $0xf0] sm:$0xff]   ;;  %v6386_v18 = vpack.c.b16 %v13162_v34, %v13162_v34  ;;  %v2811_v34 = vrot.slane %v14584_v42, 3 }
 0x5d7   :  { %v14620_v42 = vld [vmem:[#allocation98_spill] sm:$0xff] }
 0x5d8   :  { %2902 = vrot.lane.b32.xlu1 %v14610_v26, %s8042_s13  ;;  %v3169_v40 = vsel %vm14618_vm12, %v3159_v4, %v3168_v14  ;;  %v7999_v26 = vld [vmem:[%s13459_s4 + $0x8] sm:$0xff]   ;;  %v6352_v4 = vpack.c.b16 %v13154_v35, %v13154_v35 }
 0x5d9   :  { %7706 = vmatpush3.bf16.msra.mxu1 %v7999_v26  ;;  %v8003_v35 = vld [vmem:[%s13459_s4 + $0x28] sm:$0xff]  }
 0x5da   :  { %2737 = vrot.lane.b32.xlu0 %v2702_v36, %s8045_s18  ;;  %7707 = vmatprep.subr.bf16.mxu1 %v8049_v53  ;;  %v6420_v36 = vpack.c.b16 %v13165_v51, %v13165_v51 }
 0x5dc   :  { %3004 = vrot.lane.b32.xlu1 %v2969_v2, %s8048_s0  ;;  %v6327_v52 = vpop.permute.xlu0 %6326  ;;  %v7996_v2 = vld [vmem:[%s13458_s3 + $0xb8] sm:$0xff]  }
 0x5dd   :  { %7708 = vmatpush3.bf16.msra.mxu1 %v8000_v30  ;;  %v6450_v6 = vsel %vm545_vm0, %v6318_v48, %v6327_v52 }
 0x5de   :  { %7709 = vmatprep.subr.bf16.mxu1 %v8049_v53 }
 0x5e0   :  { %3080 = vrot.lane.b32.xlu1 %v3045_v3, %s8044_s17 }
 0x5e1   :  { %7710 = vmatpush3.bf16.msra.mxu1 %v8001_v54 }
 0x5e2   :  { %7711 = vmatprep.subr.bf16.mxu1 %v8049_v53 }
 0x5e4   :  { %3204 = vrot.lane.b32.xlu1 %v3169_v40, %s8043_s14  ;;  %v6336_v13 = vpop.permute.xlu0 %6335 }
 0x5e5   :  { %7712 = vmatpush3.bf16.msra.mxu1 %v8002_v23  ;;  %v6452_v25 = vsel %vm3414_vm15, %v6450_v6, %v6336_v13 }
 0x5e6   :  { %7713 = vmatprep.subr.bf16.mxu1 %v8049_v53 }
 0x5e8   :  { %3249 = vrot.lane.b32.xlu1 %v3214_v38, %s8046_s21 }
 0x5e9   :  { %7714 = vmatpush3.bf16.msra.mxu1 %v8003_v35 }
 0x5ea   :  { %v6361_v44 = vpop.permute.xlu1 %6360  ;;  %v6345_v11 = vpop.permute.xlu0 %6344  ;;  %7715 = vmatprep.subr.bf16.mxu1 %v8049_v53 }
 0x5eb   :  { %v6458_v31 = vsel %vm545_vm0, %v6352_v4, %v6361_v44  ;;  %v6454_v49 = vsel %vm3488_vm8, %v6452_v25, %v6345_v11 }
 0x5ec   :  { %3302 = vrot.lane.b32.xlu1 %v3267_v37, %s8045_s18  ;;  %v2813_v37 = vor.u32 %v2812_v10, %v2811_v34  ;;  %v8005_v10 = vld [vmem:[%s13459_s4 + $0x38] sm:$0xff]  }
 0x5ee   :  { %v6370_v62 = vpop.permute.xlu1 %6369  ;;  %v2814_v13 = vsel %vm14619_vm1, %v12903_v15, %v2813_v37 }
 0x5ef   :  { %v6460_v32 = vsel %vm3414_vm15, %v6458_v31, %v6370_v62 }
 0x5f2   :  { %v6379_v17 = vpop.permute.xlu1 %6378 }
 0x5f3   :  { %v6462_v43 = vsel %vm3488_vm8, %v6460_v32, %v6379_v17 }
 0x5f4   :  { %6773 = vmatprep.mubr.bf16.mxu0 %v6462_v43  ;;  %v6395_v55 = vpop.permute.xlu0 %6394 }
 0x5f5   :  { %6774 = vmatmul.mubr.bf16.vlgmr.msra.gmra.mrb[144].mxu0 %v6454_v49  ;;  %v6466_v40 = vsel %vm545_vm0, %v6386_v18, %v6395_v55 }
 0x5f6   :  { %7525 = vmatpush3.bf16.msra.mxu0 %v7982_v22 }
 0x5f7   :  { %7526 = vmatprep.subr.bf16.mxu0 %v7983_v50 }
 0x5fa   :  { %7527 = vmatpush3.bf16.msra.mxu0 %v7984_v9 }
 0x5fb   :  { %7528 = vmatprep.subr.bf16.mxu0 %v7985_v7  ;;  %v2815_v7 = vrot.slane %v14598_v46, 3 }
 0x5fc   :  { %v6404_v28 = vpop.permute.xlu0 %6403 }
 0x5fd   :  { %v6468_v1 = vsel %vm3414_vm15, %v6466_v40, %v6404_v28  ;;  %v8016_v40 = vld [vmem:[#allocation2 + $0x94] sm:$0xf] }
 0x5fe   :  { %7529 = vmatpush3.bf16.msra.mxu0 %v7986_v27  ;;  %v2816_v27 = vrot.slane %v14594_v61, 4 }
 0x5ff   :  { %7530 = vmatprep.subr.bf16.mxu0 %v7987_v24 }
 0x600   :  { %v6413_v0 = vpop.permute.xlu0 %6412 }
 0x601   :  { %v6470_v21 = vsel %vm3488_vm8, %v6468_v1, %v6413_v0 }
 0x602   :  { %7531 = vmatpush3.bf16.msra.mxu0 %v7988_v16  ;;  %v2817_v16 = vor.u32 %v2816_v27, %v2815_v7 }
 0x603   :  { %7532 = vmatprep.subr.bf16.mxu0 %v7989_v57 }
 0x604   :  { %v2899_v56 = vpop.permute.xlu0 %2898 }
 0x606   :  { %7533 = vmatpush3.bf16.msra.mxu0 %v7990_v5  ;;  %v2818_v5 = vsel %vm14621_vm6, %v2813_v37, %v2817_v16 }
 0x607   :  { %7534 = vmatprep.subr.bf16.mxu0 %v7991_v59 }
 0x608   :  { %v2272_v63 = vpop.permute.xlu0 %2271 }
 0x609   :  { %v3409_v58 = vsel %vm3377_vm14, %v14620_v42, %v2272_v63 }
 0x60a   :  { %v6429_v29 = vpop.permute.xlu1 %6428  ;;  %7535 = vmatpush3.bf16.msra.mxu0 %v7992_v8 }
 0x60b   :  { %7536 = vmatprep.subr.bf16.mxu0 %v7993_v39  ;;  %v6474_v12 = vsel %vm545_vm0, %v6420_v36, %v6429_v29 }
 0x60c   :  { %v2349_v19 = vpop.permute.xlu0 %2348 }
 0x60d   :  { %v3446_v17 = vsel %vm3414_vm15, %v3409_v58, %v2349_v19 }
 0x60e   :  { %v6438_v45 = vpop.permute.xlu1 %6437  ;;  %7537 = vmatpush3.bf16.msra.mxu0 %v7994_v47  ;;  %v14622_v47 = vld [vmem:[#allocation40_spill] sm:$0xff] }
 0x60f   :  { %7538 = vmatprep.subr.bf16.mxu0 %v7995_v33  ;;  %v6476_v3 = vsel %vm3414_vm15, %v6474_v12, %v6438_v45 }
 0x610   :  { %v2447_v60 = vpop.permute.xlu0 %2446 }
 0x611   :  { %v3483_v15 = vsel %vm3451_vm13, %v3446_v17, %v2447_v60 }
 0x612   :  { %v6447_v14 = vpop.permute.xlu1 %6446  ;;  %7539 = vmatpush3.bf16.msra.mxu0 %v7996_v2 }
 0x613   :  { %v6478_v51 = vsel %vm3488_vm8, %v6476_v3, %v6447_v14 }
 0x614   :  { %v2657_v20 = vpop.permute.xlu0 %2656  ;;  %6813 = vmatprep.mubr.bf16.mxu0 %v6478_v51  ;;  %v7173_v51 = vcombine.low %v8016_v40, %v8016_v40 }
 0x615   :  { %6814 = vmatmul.mubr.bf16.vlgmr.msra.gmra.mrb[148].mxu0 %v6470_v21  ;;  %v3520_v43 = vsel %vm3488_vm8, %v3483_v15, %v2657_v20 }
 0x616   :  { %v2860_v26 = vpop.permute.xlu1 %2859  ;;  %v2820_v21 = vshrl.u32 %v7173_v51, 16 }
 0x617   :  { %v3627_v23 = vsel %vm3304_vm10, %v2814_v13, %v2860_v26  ;;  %v2823_v26 = vshll.u32 %v7173_v51, 16 }
 0x618   :  { %v2734_v38 = vpop.permute.xlu0 %2733  ;;  %v3665_v48 = vsel %vm545_vm0, %v3627_v23, %v2899_v56 }
 0x619   :  { %v3572_v49 = vsel %vm3525_vm5, %v3520_v43, %v2734_v38  ;;  %v8004_v38 = vld [vmem:[%s13459_s4 + $0x30] sm:$0xff]  }
 0x61a   :  { %v3001_v30 = vpop.permute.xlu1 %3000  ;;  %7716 = vmatpush3.bf16.msra.mxu1 %v8004_v38 }
 0x61b   :  { %v3701_v31 = vsel %vm3377_vm14, %v3665_v48, %v3001_v30  ;;  %v2822_v30 = vrot.slane %v2820_v21, 3  ;;  %7717 = vmatprep.subr.bf16.mxu1 %v8049_v53 }
 0x61c   :  { %v2901_v52 = vpop.permute.xlu0 %2900 }
 0x61e   :  { %v3077_v44 = vpop.permute.xlu1 %3076  ;;  %7718 = vmatpush3.bf16.msra.mxu1 %v8005_v10 }
 0x61f   :  { %v3737_v6 = vsel %vm3414_vm15, %v3701_v31, %v3077_v44 }
 0x620   :  { %v2274_v54 = vpop.permute.xlu0 %2273 }
 0x621   :  { %v3411_v46 = vsel %vm3377_vm14, %v14622_v47, %v2274_v54 }
 0x622   :  { %v3201_v62 = vpop.permute.xlu1 %3200 }
 0x623   :  { %v3773_v22 = vsel %vm3451_vm13, %v3737_v6, %v3201_v62 }
 0x624   :  { %v2351_v4 = vpop.permute.xlu0 %2350 }
 0x625   :  { %v3448_v19 = vsel %vm3414_vm15, %v3411_v46, %v2351_v4 }
 0x626   :  { %v3246_v11 = vpop.permute.xlu1 %3245 }
 0x627   :  { %v3809_v35 = vsel %vm3488_vm8, %v3773_v22, %v3246_v11 }
 0x628   :  { %v2449_v32 = vpop.permute.xlu0 %2448 }
 0x629   :  { %v3485_v45 = vsel %vm3451_vm13, %v3448_v19, %v2449_v32 }
 0x62a   :  { %v3299_v25 = vpop.permute.xlu1 %3298 }
 0x62b   :  { %v3860_v50 = vsel %vm3525_vm5, %v3809_v35, %v3299_v25 }
 0x62c   :  { %5899 = vmatprep.mubr.bf16.mxu1 %v3860_v50  ;;  %v2659_v9 = vpop.permute.xlu0 %2658 }
 0x62d   :  { %5900 = vmatmul.mubr.bf16.gmra.mrb[84].mxu1 %v3572_v49  ;;  %v3522_v60 = vsel %vm3488_vm8, %v3485_v45, %v2659_v9 }
 0x62e   :  { %v2862_v55 = vpop.permute.xlu1 %2861 }
 0x62f   :  { %v3630_v59 = vsel %vm3304_vm10, %v2818_v5, %v2862_v55 }
 0x630   :  { %v2736_v24 = vpop.permute.xlu0 %2735  ;;  %v3667_v8 = vsel %vm545_vm0, %v3630_v59, %v2901_v52  ;;  %v2825_v52 = vrot.slane %v2823_v26, 4 }
 0x631   :  { %v3575_v12 = vsel %vm3525_vm5, %v3522_v60, %v2736_v24  ;;  %v7243_v24 = vld [vmem:[%s13460_s5 + $0x2] ss:$0 sm:$0xff] }
 0x632   :  { %v3003_v28 = vpop.permute.xlu1 %3002  ;;  %v2826_v54 = vor.u32 %v2825_v52, %v2822_v30 }
 0x633   :  { %v3703_v39 = vsel %vm3377_vm14, %v3667_v8, %v3003_v28 }
 0x634   :  { %v2074_v57 = vpop.permute.xlu0 %2073  ;;  %v2827_v23 = vsel %vm14623_vm7, %v2817_v16, %v2826_v54 }
 0x635   :  { %v3340_v48 = vsel %vm3304_vm10, %v14608_v41, %v2074_v57 }
 0x636   :  { %v3079_v0 = vpop.permute.xlu1 %3078 }
 0x637   :  { %v3739_v61 = vsel %vm3414_vm15, %v3703_v39, %v3079_v0 }
 0x638   :  { %v2151_v29 = vpop.permute.xlu0 %2150 }
 0x639   :  { %v3376_v42 = vsel %vm545_vm0, %v3340_v48, %v2151_v29 }
 0x63a   :  { %v3203_v56 = vpop.permute.xlu1 %3202 }
 0x63b   :  { %v3775_v33 = vsel %vm3451_vm13, %v3739_v61, %v3203_v56 }
 0x63c   :  { %v2276_v3 = vpop.permute.xlu0 %2275 }
 0x63d   :  { %v3413_v6 = vsel %vm3377_vm14, %v3376_v42, %v2276_v3 }
 0x63e   :  { %v3248_v63 = vpop.permute.xlu1 %3247 }
 0x63f   :  { %v3811_v36 = vsel %vm3488_vm8, %v3775_v33, %v3248_v63 }
 0x640   :  { %v2353_v20 = vpop.permute.xlu0 %2352 }
 0x641   :  { %v3450_v17 = vsel %vm3414_vm15, %v3413_v6, %v2353_v20 }
 0x642   :  { %v3301_v2 = vpop.permute.xlu1 %3300 }
 0x643   :  { %v3863_v18 = vsel %vm3525_vm5, %v3811_v36, %v3301_v2 }
 0x644   :  { %5905 = vmatprep.mubr.bf16.mxu1 %v3863_v18  ;;  %v2451_v37 = vpop.permute.xlu0 %2450 }
 0x645   :  { %5906 = vmatmul.mubr.bf16.gmra.mrb[88].mxu1 %v3575_v12  ;;  %v3487_v35 = vsel %vm3451_vm13, %v3450_v17, %v2451_v37  ;;  %v7276_v12 = vld [vmem:[%s13460_s5 + $0x3] ss:$0 sm:$0xff] }
 0x646   :  { %v2864_v14 = vpop.permute.xlu1 %2863 }
 0x647   :  { %v3633_v4 = vsel %vm3304_vm10, %v2827_v23, %v2864_v14 }
 0x648   :  { %v2661_v62 = vpop.permute.xlu0 %2660 }
 0x649   :  { %v3524_v43 = vsel %vm3488_vm8, %v3487_v35, %v2661_v62 }
 0x64a   :  { %v2903_v1 = vpop.permute.xlu1 %2902 }
 0x64b   :  { %v3669_v11 = vsel %vm545_vm0, %v3633_v4, %v2903_v1  ;;  %vm8050_vm0 = vmmov 0  }
 0x64c   :  { %v2738_v22 = vpop.permute.xlu0 %2737 }
 0x64d   :  { %v3578_v49 = vsel %vm3525_vm5, %v3524_v43, %v2738_v22 }
 0x64e   :  { %v3005_v34 = vpop.permute.xlu1 %3004 }
 0x64f   :  { %v3705_v58 = vsel %vm3377_vm14, %v3669_v11, %v3005_v34 }
 0x652   :  { %v3081_v44 = vpop.permute.xlu1 %3080 }
 0x653   :  { %v3741_v32 = vsel %vm3414_vm15, %v3705_v58, %v3081_v44 }
 0x656   :  { %v3205_v13 = vpop.permute.xlu1 %3204 }
 0x657   :  { %v3777_v15 = vsel %vm3451_vm13, %v3741_v32, %v3205_v13 }
 0x65a   :  { %v3250_v31 = vpop.permute.xlu1 %3249 }
 0x65b   :  { %v3813_v41 = vsel %vm3488_vm8, %v3777_v15, %v3250_v31 }
 0x65e   :  { %v3303_v25 = vpop.permute.xlu1 %3302 }
 0x65f   :  { %v3866_v50 = vsel %vm3525_vm5, %v3813_v41, %v3303_v25 }
 0x660   :  { %5911 = vmatprep.mubr.bf16.mxu1 %v3866_v50 }
 0x661   :  { %5912 = vmatmul.mubr.bf16.gmra.mrb[92].mxu1 %v3578_v49 }
 0x662   :  { %7719 = vmatprep.mubr.msk.bf16.mxu1 %vm8050_vm0, %v8049_v53 }
 0x6c8   :  { %v7518_v9 = vpop.f32.mrb[144].mxu0 }
 0x6c9   :  { %v7519_v55 = vpop.f32.mrb[145].mxu0 }
 0x6ca   :  { %v7520_v7 = vadd.f32 %v7519_v55, %v7518_v9  ;;  %v7521_v27 = vpop.f32.mrb[146].mxu0 }
 0x6cb   :  { %v7522_v28 = vpop.f32.mrb[147].mxu0 }
 0x6cc   :  { %v6776_v57 = vadd.f32 %v7520_v7, %v7243_v24 }
 0x6e8   :  { %v7540_v16 = vpop.f32.mrb[148].mxu0 }
 0x6e9   :  { %v7541_v0 = vpop.f32.mrb[149].mxu0 }
 0x6ea   :  { %v7542_v5 = vadd.f32 %v7541_v0, %v7540_v16  ;;  %v7543_v56 = vpop.f32.mrb[150].mxu0 }
 0x6eb   :  { %v7544_v59 = vpop.f32.mrb[151].mxu0 }
 0x6ec   :  { %v6816_v8 = vadd.f32 %v7542_v5, %v6776_v57 }
 0x6ee   :  { %v6821_v63 = vmax.f32 %v6816_v8, 0.0 }
 0x6f0   :  { %v6822_v39 = vpack.c.bf16 %v6821_v63, %v6821_v63 }
 0x6f2   :  { %7720 = vmatmul.mubr.bf16.vlgmr.msra.gmra.mrb[96].mxu1 %v6822_v39 }
 0x700   :  { %v5901_v53 = vpop.f32.mrb[84].mxu1 }
 0x701   :  { %v5902_v29 = vpop.f32.mrb[85].mxu1 }
 0x702   :  { %v5903_v47 = vpop.f32.mrb[86].mxu1 }
 0x703   :  { %v5904_v46 = vpop.f32.mrb[87].mxu1 }
 0x718   :  { %v5907_v61 = vpop.f32.mrb[88].mxu1 }
 0x719   :  { %v5908_v19 = vpop.f32.mrb[89].mxu1 }
 0x71a   :  { %v5909_v33 = vpop.f32.mrb[90].mxu1 }
 0x71b   :  { %v5910_v45 = vpop.f32.mrb[91].mxu1 }
 0x734   :  { %v5913_v36 = vpop.f32.mrb[92].mxu1 }
 0x735   :  { %v5914_v2 = vpop.f32.mrb[93].mxu1 }
 0x736   :  { %v5915_v60 = vpop.f32.mrb[94].mxu1 }
 0x737   :  { %v5916_v18 = vpop.f32.mrb[95].mxu1 }
 0x7c5   :  { %v6926_v3 = vpop.f32.mrb[96].mxu1 }
 0x7c6   :  { %v6927_v14 = vadd.f32 %v7276_v12, %v6926_v3  ;;  %v7721_v40 = vpop.f32.mrb[97].mxu1 }
 0x7c7   :  { %v6929_v51 = vpop.f32.mrb[98].mxu1 }
 0x7c8   :  { %6932 = vst [vmem:[#allocation3] sm:$0x3] %v6927_v14  ;;  %v7722_v1 = vpop.f32.mrb[99].mxu1 }
 0x7c9   :  { %8028 = shalt.err (!%p8025_p4)
}
 0x7ca   :  { %s8029_s5 = scalar_lea.hbm %s13461_s6, 32 }
 0x7cb   :  { %p8030_p5 = scmp.ne.s32.totalorder %s13461_s6, %s8029_s5  ;;  %p8033_p6 = scmp.lt.u32.totalorder %s8029_s5, %s13461_s6 }
 0x7cd   :  { %p8035_p7 = pnand %p8033_p6, %p8030_p5 }
 0x7cf   :  { %8038 = shalt.err (!%p8035_p7)
}
 0x7d0   :  { %6942 = dma.vmem_to_hbm [thread:$0]  %s6940_s25, 32, %s13461_s6, [#allocation4]  }
 0x7d1   :  { %8039 = dma.done.wait [#allocation4], 32  }
 0x7d2   :  { %8040 = vsyncadd [#allocation4], 4294967264 }
 0x7d3   :  { %6946 = vsyncpa [#allocation4], 1 }

</bundles_post_ra>
